<compile_context>
chip_gen: v5e
topology: v5e:2x2
jax: 0.10.0
libtpu: 0.0.40
codegen_flags: <defaults>
</compile_context>

<pallas_src>
import functools

import jax
import jax.numpy as jnp
import numpy as np
from jax.experimental import pallas as pl
from jax.experimental.pallas import tpu as pltpu

LANE = 128           # lane-pad channel dims to multiples of this
SUBLANE_BF16 = 16    # 16-row alignment for packed-bf16 scratch slices


def _round_up(x, m):
    return ((x + m - 1) // m) * m


# ----------------------------------------------------------------------------
# Pallas kernel
# ----------------------------------------------------------------------------
def make_kernel(geom, reverse):
    Pp = geom["Pp"]
    K = geom["K"]
    L = geom["L"]
    dr = geom["d_rate"]
    nf = geom["n_flows"]
    Tt = geom["T_tile"]
    halo = geom["halo"]
    T_ext = geom["T_ext"]
    pad_lo = geom["pad_lo"]

    def kernel(x0_ref, x1_ref, mask_ref, cond_ref,
               pre_w_ref, pre_b_ref, post_w_ref, post_b_ref,
               in_w_ref, rs_w_ref, rs_b_ref, out_ref, pad_ref):
        t = pl.program_id(1)
        # start row (in halo-padded time coordinates) of this tile's extended
        # (overlap-save) window
        row0 = pl.multiple_of(t * Tt, Tt)

        x0_ext = x0_ref[pl.ds(row0, T_ext), :]        # (T_ext, harl_pad) bf16
        mask_ext = mask_ref[pl.ds(row0, T_ext), :]    # (T_ext, 1)        f32
        x1 = x1_ref[...]                              # (Tt, harl_pad)    f32
        cond = cond_ref[...]                          # (L, 2*Pp)         f32

        # hoisted broadcasts (JAX does not CSE broadcast_in_dim)
        mP = jnp.broadcast_to(mask_ext, (T_ext, Pp))
        mP_c = mP[halo:halo + Tt, :]
        mH_c = jnp.broadcast_to(mask_ext[halo:halo + Tt, :],
                                (Tt, x1.shape[-1]))

        # prenet for ALL flows in one wide MXU matmul:
        # (T_ext, harl_pad) @ (harl_pad, nf*Pp), bf16 operands / f32 acc.
        h_all = jnp.dot(x0_ext, pre_w_ref[...],
                        preferred_element_type=jnp.float32)

        # zero only the halo rows of the time-shift scratch; the centre
        # (T_ext rows) is rewritten on every WN layer.
        pad_ref[0:pad_lo, :] = jnp.zeros((pad_lo, Pp), jnp.bfloat16)
        pad_ref[pad_lo + T_ext:pad_lo + T_ext + pad_lo, :] = jnp.zeros(
            (pad_lo, Pp), jnp.bfloat16)

        # TODO(synk): convert to lax.fori_loop over flows (dynamic weight
        # indexing) if the unrolled version spills at production n_flows/L.
        for f in range(nf):
            h = (h_all[:, f * Pp:(f + 1) * Pp] + pre_b_ref[f:f + 1, :]) * mP
            x = h                                     # (T_ext, Pp) f32
            out_acc = None

            # ---- shared WN block (recomputed over the halo: overlap-save) --
            for i in range(L):
                dil = dr ** i
                pad = (K - 1) // 2 * dil
                # hidden state into the centre of the zero-haloed bf16 scratch
                pad_ref[pad_lo:pad_lo + T_ext, :] = x.astype(jnp.bfloat16)
                # dilated conv = K accumulating (T_ext,Pp)@(Pp,2Pp) matmuls;
                # shifted taps read straight from the scratch (no concat temp)
                x_in = None
                for k in range(K):
                    off = pad_lo + k * dil - pad      # static offset
                    tap = pad_ref[off:off + T_ext, :]
                    part = jnp.dot(tap, in_w_ref[i * K + k],
                                   preferred_element_type=jnp.float32)
                    x_in = part if x_in is None else x_in + part
                x_in = x_in + cond[i:i + 1, :]        # (T_ext, 2Pp) f32
                acts = (jnp.tanh(x_in[:, :Pp])
                        * jax.nn.sigmoid(x_in[:, Pp:])).astype(jnp.bfloat16)
                if i < L - 1:
                    rs = (jnp.dot(acts, rs_w_ref[i],
                                  preferred_element_type=jnp.float32)
                          + rs_b_ref[i:i + 1, :])     # (T_ext, 2Pp)
                    x = (x + rs[:, :Pp]) * mP
                    skip = rs[:, Pp:]
                else:
                    # last layer: only the first Pp output channels are used
                    skip = (jnp.dot(acts, rs_w_ref[i][:, :Pp],
                                    preferred_element_type=jnp.float32)
                            + rs_b_ref[i:i + 1, :Pp])
                out_acc = skip if out_acc is None else out_acc + skip

            # postnet only over the centre rows of the tile
            wn_out = (out_acc[halo:halo + Tt, :] * mP_c).astype(jnp.bfloat16)
            x1_mean = (jnp.dot(wn_out, post_w_ref[f],
                               preferred_element_type=jnp.float32)
                       + post_b_ref[f:f + 1, :]) * mH_c
            if not reverse:
                x1 = x1_mean + x1 * mH_c
            else:
                x1 = (x1 - x1_mean) * mH_c

        out_ref[...] = x1

    return kernel


# ----------------------------------------------------------------------------
# Wrapper: layout conversion, flip folding, channel/time padding, pallas_call
# ----------------------------------------------------------------------------
def param_share_flow_pallas(z_nct, mask_n1t, g_ng1, params, cfg, reverse=False):
    B, C, T = z_nct.shape
    harl = C // 2
    P, L, K = cfg["P"], cfg["L"], cfg["K"]
    dr, nf = cfg["d_rate"], cfg["n_flows"]

    # ---- static geometry ---------------------------------------------------
    Pp = _round_up(P, LANE)                 # lane-padded hidden channels
    harl_pad = _round_up(harl, LANE)        # lane-padded half channels
    T_tile = int(cfg.get("t_tile", 512))
    T_tile = max(SUBLANE_BF16, (T_tile // SUBLANE_BF16) * SUBLANE_BF16)
    n_t = -(-T // T_tile)                   # cdiv
    T_pad = n_t * T_tile
    # full per-flow receptive-field halo (sum over layers, not just the last)
    rf = sum((K - 1) // 2 * dr ** i for i in range(L))
    halo = _round_up(rf, SUBLANE_BF16) if rf else 0
    T_ext = T_tile + 2 * halo
    max_layer_pad = (K - 1) // 2 * dr ** (L - 1)
    pad_lo = max(SUBLANE_BF16, _round_up(max_layer_pad, SUBLANE_BF16))
    T_full = halo + T_pad + halo            # padded time extent of x0 / mask

    geom = dict(Pp=Pp, K=K, L=L, d_rate=dr, n_flows=nf,
                T_tile=T_tile, halo=halo, T_ext=T_ext, pad_lo=pad_lo)

    # ---- inputs / flip folding ----------------------------------------------
    z = z_nct.astype(jnp.float32)
    mask_bt1 = jnp.transpose(mask_n1t, (0, 2, 1)).astype(jnp.float32)  # (B,T,1)

    # The flow updates one half of z ("x1") conditioned on the other ("x0").
    # torch.flip over channels is folded into weight permutations (reverse
    # mode) and the output assembly below — no bulk channel reversal in-kernel.
    if not reverse:
        x0_nct, x1_nct = z[:, :harl, :], z[:, harl:, :]
        pre_w, pre_b = params["pre_w"], params["pre_b"]
        post_w, post_b = params["post_w"], params["post_b"]
    else:
        x0_nct, x1_nct = z[:, harl:, :], z[:, :harl, :]
        pre_w = params["pre_w"][::-1][:, ::-1, :]     # reversed flow order +
        pre_b = params["pre_b"][::-1]                 # channel flip folded in
        post_w = params["post_w"][::-1][:, :, ::-1]
        post_b = params["post_b"][::-1][:, ::-1]

    x0_btc = jnp.transpose(x0_nct, (0, 2, 1))
    x1_btc = jnp.transpose(x1_nct, (0, 2, 1))

    # zero-pad: time by the halo (left) and halo + tile remainder (right);
    # channels up to the lane multiple.  Zero mask rows ⇒ zero hidden state,
    # which matches the conv's zero padding at the true sequence boundary.
    x0 = jnp.pad(x0_btc, ((0, 0), (halo, halo + T_pad - T),
                          (0, harl_pad - harl))).astype(jnp.bfloat16)
    x1 = jnp.pad(x1_btc, ((0, 0), (0, T_pad - T), (0, harl_pad - harl)))
    mask = jnp.pad(mask_bt1, ((0, 0), (halo, halo + T_pad - T), (0, 0)))

    # speaker conditioning (M=1 matmul) + in-conv bias, precomputed per layer
    g = g_ng1[:, :, 0].astype(jnp.float32)
    cond = (g @ params["cond_w"] + params["cond_b"]).reshape(B, L, 2 * P)
    cond = cond + params["in_b"][None]
    cond_p = jnp.zeros((B, L, 2 * Pp), jnp.float32)
    cond_p = cond_p.at[:, :, :P].set(cond[:, :, :P])
    cond_p = cond_p.at[:, :, Pp:Pp + P].set(cond[:, :, P:])

    # ---- weight prep: lane padding + prenet hoist ---------------------------
    bf = jnp.bfloat16
    pre_w_p = jnp.zeros((nf, harl_pad, Pp), jnp.float32)
    pre_w_p = pre_w_p.at[:, :harl, :P].set(pre_w)
    # one wide prenet weight: (harl_pad, nf*Pp); flow f lives in cols [f*Pp:)
    pre_w_all = jnp.transpose(pre_w_p, (1, 0, 2)).reshape(
        harl_pad, nf * Pp).astype(bf)
    pre_b_p = jnp.zeros((nf, Pp), jnp.float32).at[:, :P].set(pre_b)

    post_w_p = jnp.zeros((nf, Pp, harl_pad), jnp.float32)
    post_w_p = post_w_p.at[:, :P, :harl].set(post_w).astype(bf)
    post_b_p = jnp.zeros((nf, harl_pad), jnp.float32).at[:, :harl].set(post_b)

    in_w = params["in_w"]                         # (L, K, P, 2P)
    in_w_p = jnp.zeros((L, K, Pp, 2 * Pp), jnp.float32)
    in_w_p = in_w_p.at[:, :, :P, :P].set(in_w[..., :P])
    in_w_p = in_w_p.at[:, :, :P, Pp:Pp + P].set(in_w[..., P:])
    in_w_p = in_w_p.reshape(L * K, Pp, 2 * Pp).astype(bf)

    rs_w = params["rs_w"]                         # (L, P, 2P)
    rs_w_p = jnp.zeros((L, Pp, 2 * Pp), jnp.float32)
    rs_w_p = rs_w_p.at[:, :P, :P].set(rs_w[:, :, :P])
    rs_w_p = rs_w_p.at[:, :P, Pp:Pp + P].set(rs_w[:, :, P:]).astype(bf)

    rs_b = params["rs_b"]                         # (L, 2P)
    rs_b_p = jnp.zeros((L, 2 * Pp), jnp.float32)
    rs_b_p = rs_b_p.at[:, :P].set(rs_b[:, :P])
    rs_b_p = rs_b_p.at[:, Pp:Pp + P].set(rs_b[:, P:])

    weights = (pre_w_all, pre_b_p, post_w_p, post_b_p, in_w_p, rs_w_p, rs_b_p)

    # ---- specs / pallas_call -------------------------------------------------
    def full_spec(a):
        zeros = (0,) * a.ndim
        return pl.BlockSpec(a.shape, lambda b, t, _z=zeros: _z)

    in_specs = [
        # x0 / mask: whole (halo-padded) sequence per batch item, resident
        # across the T-tile axis; tiles slice their extended window with pl.ds.
        pl.BlockSpec((None, T_full, harl_pad), lambda b, t: (b, 0, 0)),
        pl.BlockSpec((None, T_tile, harl_pad), lambda b, t: (b, t, 0)),  # x1
        pl.BlockSpec((None, T_full, 1), lambda b, t: (b, 0, 0)),         # mask
        pl.BlockSpec((None, L, 2 * Pp), lambda b, t: (b, 0, 0)),         # cond
    ] + [full_spec(a) for a in weights]
    out_spec = pl.BlockSpec((None, T_tile, harl_pad), lambda b, t: (b, t, 0))

    try:
        vmem_cap = int(pltpu.get_tpu_info().vmem_capacity_bytes)
    except Exception:
        vmem_cap = 64 * 1024 * 1024
    vmem_limit = min(int(vmem_cap * 0.8), 112 * 1024 * 1024)

    scratch_rows = pad_lo + T_ext + pad_lo
    x1_out = pl.pallas_call(
        make_kernel(geom, reverse),
        out_shape=jax.ShapeDtypeStruct((B, T_pad, harl_pad), jnp.float32),
        grid=(B, n_t),
        in_specs=in_specs,
        out_specs=out_spec,
        scratch_shapes=[pltpu.VMEM((scratch_rows, Pp), jnp.bfloat16)],
        input_output_aliases={1: 0},     # x1 input buffer reused for output
        compiler_params=pltpu.CompilerParams(
            dimension_semantics=("parallel", "parallel"),
            vmem_limit_bytes=vmem_limit),
    )(x0, x1, mask, cond_p, *weights)

    # ---- output assembly (trim padding, fold the channel Flip) --------------
    x1_out = x1_out[:, :T, :harl]
    x1_out_nct = jnp.transpose(x1_out, (0, 2, 1))[:, ::-1, :]
    x0_pass_nct = x0_nct[:, ::-1, :]
    if not reverse:
        out = jnp.concatenate([x1_out_nct, x0_pass_nct], axis=1)
    else:
        out = jnp.concatenate([x0_pass_nct, x1_out_nct], axis=1)
    return out


# ----------------------------------------------------------------------------
# Pure-JAX reference (straightforward translation of the PyTorch module)
# ----------------------------------------------------------------------------
def param_share_flow_ref(z_nct, mask_n1t, g_ng1, p, cfg, reverse=False):
    harl = cfg["in_z"] // 2
    P, L, K, dr, nf = cfg["P"], cfg["L"], cfg["K"], cfg["d_rate"], cfg["n_flows"]

    z = jnp.transpose(z_nct, (0, 2, 1))
    mask = jnp.transpose(mask_n1t, (0, 2, 1))
    g = jnp.transpose(g_ng1, (0, 2, 1))
    if reverse:
        z = z[:, :, ::-1]

    x0, x1 = z[..., :harl], z[..., harl:]
    T = z.shape[1]
    g_cond = jnp.einsum("bog,gx->box", g, p["cond_w"]) + p["cond_b"][None]

    order = list(range(nf)) if not reverse else list(reversed(range(nf)))
    for f in order:
        h = (jnp.einsum("btc,cp->btp", x0, p["pre_w"][f]) + p["pre_b"][f]) * mask
        x = h
        out_acc = jnp.zeros_like(h)
        for i in range(L):
            dil = dr ** i
            pad = (K - 1) // 2 * dil
            xp = jnp.pad(x, ((0, 0), (pad, pad), (0, 0)))
            x_in = p["in_b"][i][None, None, :]
            for k in range(K):
                x_in = x_in + jnp.einsum("btp,pq->btq",
                                         xp[:, k * dil:k * dil + T],
                                         p["in_w"][i, k])
            acts_in = x_in + g_cond[:, :, i * 2 * P:(i + 1) * 2 * P]
            acts = jnp.tanh(acts_in[..., :P]) * jax.nn.sigmoid(acts_in[..., P:])
            rs = jnp.einsum("btp,pq->btq", acts, p["rs_w"][i]) + p["rs_b"][i]
            if i < L - 1:
                x = (x + rs[..., :P]) * mask
                out_acc = out_acc + rs[..., P:]
            else:
                out_acc = out_acc + rs[..., :P]
        wn_out = out_acc * mask
        x1_mean = (jnp.einsum("btp,ph->bth", wn_out, p["post_w"][f])
                   + p["post_b"][f]) * mask
        if not reverse:
            x1 = x1_mean + x1 * mask
        else:
            x1 = (x1 - x1_mean) * mask

    out = jnp.concatenate([x0, x1], axis=-1)
    if not reverse:
        out = out[:, :, ::-1]
    return jnp.transpose(out, (0, 2, 1))


# ----------------------------------------------------------------------------
# Deterministic parameter init (synthetic; shapes follow the module __init__)
# ----------------------------------------------------------------------------
def init_params(key, cfg):
    harl = cfg["in_z"] // 2
    P, G, L, K, nf = cfg["P"], cfg["G"], cfg["L"], cfg["K"], cfg["n_flows"]
    ks = jax.random.split(key, 10)
    s = 0.1
    params = dict(
        pre_w=jax.random.normal(ks[0], (nf, harl, P)) * s,
        pre_b=jax.random.normal(ks[1], (nf, P)) * s,
        post_w=jax.random.normal(ks[2], (nf, P, harl)) * s,
        post_b=jax.random.normal(ks[3], (nf, harl)) * s,
        cond_w=jax.random.normal(ks[4], (G, 2 * P * L)) * s,
        cond_b=jax.random.normal(ks[5], (1, 2 * P * L)) * s,
        in_w=jax.random.normal(ks[6], (L, K, P, 2 * P)) * s,
        in_b=jax.random.normal(ks[7], (L, 2 * P)) * s,
        # last layer's res_skip conv is P->P in VITS; its weights live in [:, :P]
        rs_w=jax.random.normal(ks[8], (L, P, 2 * P)) * s,
        rs_b=jax.random.normal(ks[9], (L, 2 * P)) * s,
    )
    return {k: v.astype(jnp.float32) for k, v in params.items()}


# ----------------------------------------------------------------------------
if __name__ == "__main__":
    # Two small configs; both force multiple T tiles (t_tile=32) to exercise
    # the overlap-save halo, the second also exercises dilation d_rate=2.
    configs = [
        (dict(B=2, T=96, in_z=16, P=32, G=32, n_flows=2, K=5, d_rate=1, L=2,
              t_tile=32), (96, 70)),
        (dict(B=2, T=80, in_z=12, P=24, G=16, n_flows=2, K=3, d_rate=2, L=3,
              t_tile=32), (80, 57)),
    ]

    key = jax.random.PRNGKey(0)
    for ci, (cfg, lens) in enumerate(configs):
        B, T, C, G = cfg["B"], cfg["T"], cfg["in_z"], cfg["G"]
        kk = jax.random.fold_in(key, ci)
        k_z, k_g, k_p = jax.random.split(kk, 3)

        # PyTorch-convention inputs (NCT)
        z = jax.random.normal(k_z, (B, C, T), jnp.float32)
        lengths = jnp.array(lens, jnp.int32)
        z_mask = (jnp.arange(T)[None, :] < lengths[:, None]
                  ).astype(jnp.float32)[:, None, :]
        speaker_emb = jax.random.normal(k_g, (B, G, 1), jnp.float32)
        params = init_params(k_p, cfg)

        for reverse in (False, True):
            run = jax.jit(functools.partial(
                param_share_flow_pallas, params=params, cfg=cfg,
                reverse=reverse))
            out_pallas = jax.block_until_ready(run(z, z_mask, speaker_emb))
            out_ref = jax.block_until_ready(
                param_share_flow_ref(z, z_mask, speaker_emb, params, cfg,
                                     reverse=reverse))
            # kernel uses bf16 MXU operands (f32 accumulation) vs the f32
            # reference -> bf16-appropriate tolerance.
            np.testing.assert_allclose(np.asarray(out_pallas),
                                       np.asarray(out_ref),
                                       rtol=2e-2, atol=2e-2)

    print("KERNEL_OK")
</pallas_src>

<mosaic_0001>
module attributes {stable_mosaic.version = 11 : i64} {
  func.func @kernel(%arg0: i32, %arg1: i32, %arg2: memref<1x128x128xbf16, #tpu.memory_space<vmem>>, %arg3: memref<1x32x128xf32, #tpu.memory_space<vmem>>, %arg4: memref<1x128x1xf32, #tpu.memory_space<vmem>>, %arg5: memref<1x2x256xf32, #tpu.memory_space<vmem>>, %arg6: memref<128x256xbf16, #tpu.memory_space<vmem>>, %arg7: memref<2x128xf32, #tpu.memory_space<vmem>>, %arg8: memref<2x128x128xbf16, #tpu.memory_space<vmem>>, %arg9: memref<2x128xf32, #tpu.memory_space<vmem>>, %arg10: memref<10x128x256xbf16, #tpu.memory_space<vmem>>, %arg11: memref<2x128x256xbf16, #tpu.memory_space<vmem>>, %arg12: memref<2x256xf32, #tpu.memory_space<vmem>>, %arg13: memref<1x32x128xf32, #tpu.memory_space<vmem>>, %arg14: memref<96x128xbf16, #tpu.memory_space<vmem>>) attributes {dimension_semantics = [#tpu.dimension_semantics<parallel>, #tpu.dimension_semantics<parallel>], iteration_bounds = array<i64: 2, 3>, scalar_prefetch = 0 : i64, scratch_operands = 1 : i64, tpu.core_type = #tpu.core_type<tc>, window_params = [{transform_indices = @transform_0, window_bounds = array<i64: 1, 128, 128>}, {transform_indices = @transform_1, window_bounds = array<i64: 1, 32, 128>}, {transform_indices = @transform_2, window_bounds = array<i64: 1, 128, 1>}, {transform_indices = @transform_3, window_bounds = array<i64: 1, 2, 256>}, {pipeline_mode = #tpu.pipeline_mode<synchronous>, transform_indices = @transform_4, window_bounds = array<i64: 128, 256>}, {pipeline_mode = #tpu.pipeline_mode<synchronous>, transform_indices = @transform_5, window_bounds = array<i64: 2, 128>}, {pipeline_mode = #tpu.pipeline_mode<synchronous>, transform_indices = @transform_6, window_bounds = array<i64: 2, 128, 128>}, {pipeline_mode = #tpu.pipeline_mode<synchronous>, transform_indices = @transform_7, window_bounds = array<i64: 2, 128>}, {pipeline_mode = #tpu.pipeline_mode<synchronous>, transform_indices = @transform_8, window_bounds = array<i64: 10, 128, 256>}, {pipeline_mode = #tpu.pipeline_mode<synchronous>, transform_indices = @transform_9, window_bounds = array<i64: 2, 128, 256>}, {pipeline_mode = #tpu.pipeline_mode<synchronous>, transform_indices = @transform_10, window_bounds = array<i64: 2, 256>}, {transform_indices = @transform_11, window_bounds = array<i64: 1, 32, 128>}]} {
    %c32_i32 = arith.constant 32 : i32
    %0 = arith.muli %arg1, %c32_i32 : i32
    %1 = tpu.assume_multiple %0, 32 : i32
    %c0 = arith.constant 0 : index
    %2 = arith.index_cast %1 : i32 to index
    %c0_0 = arith.constant 0 : index
    %3 = vector.load %arg2[%c0, %2, %c0_0] : memref<1x128x128xbf16, #tpu.memory_space<vmem>>, vector<1x64x128xbf16>
    %4 = vector.shape_cast %3 : vector<1x64x128xbf16> to vector<64x128xbf16>
    %c0_1 = arith.constant 0 : index
    %5 = arith.index_cast %1 : i32 to index
    %c0_2 = arith.constant 0 : index
    %6 = vector.load %arg4[%c0_1, %5, %c0_2] : memref<1x128x1xf32, #tpu.memory_space<vmem>>, vector<1x64x1xf32>
    %7 = vector.shape_cast %6 : vector<1x64x1xf32> to vector<64x1xf32>
    %c0_3 = arith.constant 0 : index
    %c0_4 = arith.constant 0 : index
    %c0_5 = arith.constant 0 : index
    %8 = vector.load %arg3[%c0_3, %c0_4, %c0_5] : memref<1x32x128xf32, #tpu.memory_space<vmem>>, vector<1x32x128xf32>
    %9 = vector.shape_cast %8 : vector<1x32x128xf32> to vector<32x128xf32>
    %c0_6 = arith.constant 0 : index
    %c0_7 = arith.constant 0 : index
    %c0_8 = arith.constant 0 : index
    %10 = vector.load %arg5[%c0_6, %c0_7, %c0_8] : memref<1x2x256xf32, #tpu.memory_space<vmem>>, vector<1x2x256xf32>
    %11 = vector.shape_cast %10 : vector<1x2x256xf32> to vector<2x256xf32>
    %12 = vector.shape_cast %7 : vector<64x1xf32> to vector<64x1xf32>
    %13 = vector.broadcast %12 : vector<64x1xf32> to vector<64x128xf32>
    %14 = vector.extract_strided_slice %13 {offsets = [16, 0], sizes = [32, 128], strides = [1, 1]} : vector<64x128xf32> to vector<32x128xf32>
    %15 = vector.extract_strided_slice %7 {offsets = [16, 0], sizes = [32, 1], strides = [1, 1]} : vector<64x1xf32> to vector<32x1xf32>
    %16 = vector.shape_cast %15 : vector<32x1xf32> to vector<32x1xf32>
    %17 = vector.broadcast %16 : vector<32x1xf32> to vector<32x128xf32>
    %c0_9 = arith.constant 0 : index
    %c0_10 = arith.constant 0 : index
    %18 = vector.load %arg6[%c0_9, %c0_10] : memref<128x256xbf16, #tpu.memory_space<vmem>>, vector<128x256xbf16>
    %cst = arith.constant dense<0.000000e+00> : vector<64x256xf32>
    %19 = tpu.matmul %4, %18, %cst {dimension_numbers = #tpu.dot_dimension_numbers<[1], [0], [0], [1], [0, 0, 1, 1], [], []>} : vector<64x128xbf16>, vector<128x256xbf16>, vector<64x256xf32> -> vector<64x256xf32>
    %cst_11 = arith.constant 0.000000e+00 : bf16
    %20 = vector.broadcast %cst_11 : bf16 to vector<16x128xbf16>
    %c0_12 = arith.constant 0 : index
    %c0_13 = arith.constant 0 : index
    %21 = vector.load %arg14[%c0_12, %c0_13] : memref<96x128xbf16, #tpu.memory_space<vmem>>, vector<16x128xbf16>
    tpu.vector_store %arg14[%c0_12, %c0_13], %20 {strides = array<i32>} : memref<96x128xbf16, #tpu.memory_space<vmem>>, vector<16x128xbf16>,
    %cst_14 = arith.constant 0.000000e+00 : bf16
    %22 = vector.broadcast %cst_14 : bf16 to vector<16x128xbf16>
    %c80 = arith.constant 80 : index
    %c0_15 = arith.constant 0 : index
    %23 = vector.load %arg14[%c80, %c0_15] : memref<96x128xbf16, #tpu.memory_space<vmem>>, vector<16x128xbf16>
    tpu.vector_store %arg14[%c80, %c0_15], %22 {strides = array<i32>} : memref<96x128xbf16, #tpu.memory_space<vmem>>, vector<16x128xbf16>,
    %24 = vector.extract_strided_slice %19 {offsets = [0, 0], sizes = [64, 128], strides = [1, 1]} : vector<64x256xf32> to vector<64x128xf32>
    %c0_16 = arith.constant 0 : index
    %c0_17 = arith.constant 0 : index
    %25 = vector.load %arg7[%c0_16, %c0_17] : memref<2x128xf32, #tpu.memory_space<vmem>>, vector<1x128xf32>
    %26 = vector.broadcast %25 : vector<1x128xf32> to vector<64x128xf32>
    %27 = arith.addf %24, %26 : vector<64x128xf32>
    %28 = arith.mulf %27, %13 : vector<64x128xf32>
    %29 = arith.truncf %28 : vector<64x128xf32> to vector<64x128xbf16>
    %c16 = arith.constant 16 : index
    %c0_18 = arith.constant 0 : index
    %30 = vector.load %arg14[%c16, %c0_18] : memref<96x128xbf16, #tpu.memory_space<vmem>>, vector<64x128xbf16>
    tpu.vector_store %arg14[%c16, %c0_18], %29 {strides = array<i32>} : memref<96x128xbf16, #tpu.memory_space<vmem>>, vector<64x128xbf16>,
    %c14 = arith.constant 14 : index
    %c0_19 = arith.constant 0 : index
    %31 = vector.load %arg14[%c14, %c0_19] : memref<96x128xbf16, #tpu.memory_space<vmem>>, vector<64x128xbf16>
    %c0_20 = arith.constant 0 : index
    %c0_21 = arith.constant 0 : index
    %c0_22 = arith.constant 0 : index
    %32 = vector.load %arg10[%c0_20, %c0_21, %c0_22] : memref<10x128x256xbf16, #tpu.memory_space<vmem>>, vector<1x128x256xbf16>
    %33 = vector.shape_cast %32 : vector<1x128x256xbf16> to vector<128x256xbf16>
    %cst_23 = arith.constant dense<0.000000e+00> : vector<64x256xf32>
    %34 = tpu.matmul %31, %33, %cst_23 {dimension_numbers = #tpu.dot_dimension_numbers<[1], [0], [0], [1], [0, 0, 1, 1], [], []>} : vector<64x128xbf16>, vector<128x256xbf16>, vector<64x256xf32> -> vector<64x256xf32>
    %c15 = arith.constant 15 : index
    %c0_24 = arith.constant 0 : index
    %35 = vector.load %arg14[%c15, %c0_24] : memref<96x128xbf16, #tpu.memory_space<vmem>>, vector<64x128xbf16>
    %c1 = arith.constant 1 : index
    %c0_25 = arith.constant 0 : index
    %c0_26 = arith.constant 0 : index
    %36 = vector.load %arg10[%c1, %c0_25, %c0_26] : memref<10x128x256xbf16, #tpu.memory_space<vmem>>, vector<1x128x256xbf16>
    %37 = vector.shape_cast %36 : vector<1x128x256xbf16> to vector<128x256xbf16>
    %cst_27 = arith.constant dense<0.000000e+00> : vector<64x256xf32>
    %38 = tpu.matmul %35, %37, %cst_27 {dimension_numbers = #tpu.dot_dimension_numbers<[1], [0], [0], [1], [0, 0, 1, 1], [], []>} : vector<64x128xbf16>, vector<128x256xbf16>, vector<64x256xf32> -> vector<64x256xf32>
    %39 = arith.addf %34, %38 : vector<64x256xf32>
    %c16_28 = arith.constant 16 : index
    %c0_29 = arith.constant 0 : index
    %40 = vector.load %arg14[%c16_28, %c0_29] : memref<96x128xbf16, #tpu.memory_space<vmem>>, vector<64x128xbf16>
    %c2 = arith.constant 2 : index
    %c0_30 = arith.constant 0 : index
    %c0_31 = arith.constant 0 : index
    %41 = vector.load %arg10[%c2, %c0_30, %c0_31] : memref<10x128x256xbf16, #tpu.memory_space<vmem>>, vector<1x128x256xbf16>
    %42 = vector.shape_cast %41 : vector<1x128x256xbf16> to vector<128x256xbf16>
    %cst_32 = arith.constant dense<0.000000e+00> : vector<64x256xf32>
    %43 = tpu.matmul %40, %42, %cst_32 {dimension_numbers = #tpu.dot_dimension_numbers<[1], [0], [0], [1], [0, 0, 1, 1], [], []>} : vector<64x128xbf16>, vector<128x256xbf16>, vector<64x256xf32> -> vector<64x256xf32>
    %44 = arith.addf %39, %43 : vector<64x256xf32>
    %c17 = arith.constant 17 : index
    %c0_33 = arith.constant 0 : index
    %45 = vector.load %arg14[%c17, %c0_33] : memref<96x128xbf16, #tpu.memory_space<vmem>>, vector<64x128xbf16>
    %c3 = arith.constant 3 : index
    %c0_34 = arith.constant 0 : index
    %c0_35 = arith.constant 0 : index
    %46 = vector.load %arg10[%c3, %c0_34, %c0_35] : memref<10x128x256xbf16, #tpu.memory_space<vmem>>, vector<1x128x256xbf16>
    %47 = vector.shape_cast %46 : vector<1x128x256xbf16> to vector<128x256xbf16>
    %cst_36 = arith.constant dense<0.000000e+00> : vector<64x256xf32>
    %48 = tpu.matmul %45, %47, %cst_36 {dimension_numbers = #tpu.dot_dimension_numbers<[1], [0], [0], [1], [0, 0, 1, 1], [], []>} : vector<64x128xbf16>, vector<128x256xbf16>, vector<64x256xf32> -> vector<64x256xf32>
    %49 = arith.addf %44, %48 : vector<64x256xf32>
    %c18 = arith.constant 18 : index
    %c0_37 = arith.constant 0 : index
    %50 = vector.load %arg14[%c18, %c0_37] : memref<96x128xbf16, #tpu.memory_space<vmem>>, vector<64x128xbf16>
    %c4 = arith.constant 4 : index
    %c0_38 = arith.constant 0 : index
    %c0_39 = arith.constant 0 : index
    %51 = vector.load %arg10[%c4, %c0_38, %c0_39] : memref<10x128x256xbf16, #tpu.memory_space<vmem>>, vector<1x128x256xbf16>
    %52 = vector.shape_cast %51 : vector<1x128x256xbf16> to vector<128x256xbf16>
    %cst_40 = arith.constant dense<0.000000e+00> : vector<64x256xf32>
    %53 = tpu.matmul %50, %52, %cst_40 {dimension_numbers = #tpu.dot_dimension_numbers<[1], [0], [0], [1], [0, 0, 1, 1], [], []>} : vector<64x128xbf16>, vector<128x256xbf16>, vector<64x256xf32> -> vector<64x256xf32>
    %54 = arith.addf %49, %53 : vector<64x256xf32>
    %55 = vector.extract_strided_slice %11 {offsets = [0, 0], sizes = [1, 256], strides = [1, 1]} : vector<2x256xf32> to vector<1x256xf32>
    %56 = vector.broadcast %55 : vector<1x256xf32> to vector<64x256xf32>
    %57 = arith.addf %54, %56 : vector<64x256xf32>
    %58 = vector.extract_strided_slice %57 {offsets = [0, 0], sizes = [64, 128], strides = [1, 1]} : vector<64x256xf32> to vector<64x128xf32>
    %59 = math.tanh %58 : vector<64x128xf32>
    %60 = vector.extract_strided_slice %57 {offsets = [0, 128], sizes = [64, 128], strides = [1, 1]} : vector<64x256xf32> to vector<64x128xf32>
    %61 = arith.negf %60 : vector<64x128xf32>
    %62 = math.exp %61 : vector<64x128xf32>
    %cst_41 = arith.constant 1.000000e+00 : f32
    %63 = vector.broadcast %cst_41 : f32 to vector<64x128xf32>
    %64 = arith.addf %63, %62 : vector<64x128xf32>
    %65 = arith.divf %63, %64 : vector<64x128xf32>
    %66 = arith.mulf %59, %65 : vector<64x128xf32>
    %67 = arith.truncf %66 : vector<64x128xf32> to vector<64x128xbf16>
    %c0_42 = arith.constant 0 : index
    %c0_43 = arith.constant 0 : index
    %c0_44 = arith.constant 0 : index
    %68 = vector.load %arg11[%c0_42, %c0_43, %c0_44] : memref<2x128x256xbf16, #tpu.memory_space<vmem>>, vector<1x128x256xbf16>
    %69 = vector.shape_cast %68 : vector<1x128x256xbf16> to vector<128x256xbf16>
    %cst_45 = arith.constant dense<0.000000e+00> : vector<64x256xf32>
    %70 = tpu.matmul %67, %69, %cst_45 {dimension_numbers = #tpu.dot_dimension_numbers<[1], [0], [0], [1], [0, 0, 1, 1], [], []>} : vector<64x128xbf16>, vector<128x256xbf16>, vector<64x256xf32> -> vector<64x256xf32>
    %c0_46 = arith.constant 0 : index
    %c0_47 = arith.constant 0 : index
    %71 = vector.load %arg12[%c0_46, %c0_47] : memref<2x256xf32, #tpu.memory_space<vmem>>, vector<1x256xf32>
    %72 = vector.broadcast %71 : vector<1x256xf32> to vector<64x256xf32>
    %73 = arith.addf %70, %72 : vector<64x256xf32>
    %74 = vector.extract_strided_slice %73 {offsets = [0, 0], sizes = [64, 128], strides = [1, 1]} : vector<64x256xf32> to vector<64x128xf32>
    %75 = arith.addf %28, %74 : vector<64x128xf32>
    %76 = arith.mulf %75, %13 : vector<64x128xf32>
    %77 = vector.extract_strided_slice %73 {offsets = [0, 128], sizes = [64, 128], strides = [1, 1]} : vector<64x256xf32> to vector<64x128xf32>
    %78 = arith.truncf %76 : vector<64x128xf32> to vector<64x128xbf16>
    %c16_48 = arith.constant 16 : index
    %c0_49 = arith.constant 0 : index
    %79 = vector.load %arg14[%c16_48, %c0_49] : memref<96x128xbf16, #tpu.memory_space<vmem>>, vector<64x128xbf16>
    tpu.vector_store %arg14[%c16_48, %c0_49], %78 {strides = array<i32>} : memref<96x128xbf16, #tpu.memory_space<vmem>>, vector<64x128xbf16>,
    %c14_50 = arith.constant 14 : index
    %c0_51 = arith.constant 0 : index
    %80 = vector.load %arg14[%c14_50, %c0_51] : memref<96x128xbf16, #tpu.memory_space<vmem>>, vector<64x128xbf16>
    %c5 = arith.constant 5 : index
    %c0_52 = arith.constant 0 : index
    %c0_53 = arith.constant 0 : index
    %81 = vector.load %arg10[%c5, %c0_52, %c0_53] : memref<10x128x256xbf16, #tpu.memory_space<vmem>>, vector<1x128x256xbf16>
    %82 = vector.shape_cast %81 : vector<1x128x256xbf16> to vector<128x256xbf16>
    %cst_54 = arith.constant dense<0.000000e+00> : vector<64x256xf32>
    %83 = tpu.matmul %80, %82, %cst_54 {dimension_numbers = #tpu.dot_dimension_numbers<[1], [0], [0], [1], [0, 0, 1, 1], [], []>} : vector<64x128xbf16>, vector<128x256xbf16>, vector<64x256xf32> -> vector<64x256xf32>
    %c15_55 = arith.constant 15 : index
    %c0_56 = arith.constant 0 : index
    %84 = vector.load %arg14[%c15_55, %c0_56] : memref<96x128xbf16, #tpu.memory_space<vmem>>, vector<64x128xbf16>
    %c6 = arith.constant 6 : index
    %c0_57 = arith.constant 0 : index
    %c0_58 = arith.constant 0 : index
    %85 = vector.load %arg10[%c6, %c0_57, %c0_58] : memref<10x128x256xbf16, #tpu.memory_space<vmem>>, vector<1x128x256xbf16>
    %86 = vector.shape_cast %85 : vector<1x128x256xbf16> to vector<128x256xbf16>
    %cst_59 = arith.constant dense<0.000000e+00> : vector<64x256xf32>
    %87 = tpu.matmul %84, %86, %cst_59 {dimension_numbers = #tpu.dot_dimension_numbers<[1], [0], [0], [1], [0, 0, 1, 1], [], []>} : vector<64x128xbf16>, vector<128x256xbf16>, vector<64x256xf32> -> vector<64x256xf32>
    %88 = arith.addf %83, %87 : vector<64x256xf32>
    %c16_60 = arith.constant 16 : index
    %c0_61 = arith.constant 0 : index
    %89 = vector.load %arg14[%c16_60, %c0_61] : memref<96x128xbf16, #tpu.memory_space<vmem>>, vector<64x128xbf16>
    %c7 = arith.constant 7 : index
    %c0_62 = arith.constant 0 : index
    %c0_63 = arith.constant 0 : index
    %90 = vector.load %arg10[%c7, %c0_62, %c0_63] : memref<10x128x256xbf16, #tpu.memory_space<vmem>>, vector<1x128x256xbf16>
    %91 = vector.shape_cast %90 : vector<1x128x256xbf16> to vector<128x256xbf16>
    %cst_64 = arith.constant dense<0.000000e+00> : vector<64x256xf32>
    %92 = tpu.matmul %89, %91, %cst_64 {dimension_numbers = #tpu.dot_dimension_numbers<[1], [0], [0], [1], [0, 0, 1, 1], [], []>} : vector<64x128xbf16>, vector<128x256xbf16>, vector<64x256xf32> -> vector<64x256xf32>
    %93 = arith.addf %88, %92 : vector<64x256xf32>
    %c17_65 = arith.constant 17 : index
    %c0_66 = arith.constant 0 : index
    %94 = vector.load %arg14[%c17_65, %c0_66] : memref<96x128xbf16, #tpu.memory_space<vmem>>, vector<64x128xbf16>
    %c8 = arith.constant 8 : index
    %c0_67 = arith.constant 0 : index
    %c0_68 = arith.constant 0 : index
    %95 = vector.load %arg10[%c8, %c0_67, %c0_68] : memref<10x128x256xbf16, #tpu.memory_space<vmem>>, vector<1x128x256xbf16>
    %96 = vector.shape_cast %95 : vector<1x128x256xbf16> to vector<128x256xbf16>
    %cst_69 = arith.constant dense<0.000000e+00> : vector<64x256xf32>
    %97 = tpu.matmul %94, %96, %cst_69 {dimension_numbers = #tpu.dot_dimension_numbers<[1], [0], [0], [1], [0, 0, 1, 1], [], []>} : vector<64x128xbf16>, vector<128x256xbf16>, vector<64x256xf32> -> vector<64x256xf32>
    %98 = arith.addf %93, %97 : vector<64x256xf32>
    %c18_70 = arith.constant 18 : index
    %c0_71 = arith.constant 0 : index
    %99 = vector.load %arg14[%c18_70, %c0_71] : memref<96x128xbf16, #tpu.memory_space<vmem>>, vector<64x128xbf16>
    %c9 = arith.constant 9 : index
    %c0_72 = arith.constant 0 : index
    %c0_73 = arith.constant 0 : index
    %100 = vector.load %arg10[%c9, %c0_72, %c0_73] : memref<10x128x256xbf16, #tpu.memory_space<vmem>>, vector<1x128x256xbf16>
    %101 = vector.shape_cast %100 : vector<1x128x256xbf16> to vector<128x256xbf16>
    %cst_74 = arith.constant dense<0.000000e+00> : vector<64x256xf32>
    %102 = tpu.matmul %99, %101, %cst_74 {dimension_numbers = #tpu.dot_dimension_numbers<[1], [0], [0], [1], [0, 0, 1, 1], [], []>} : vector<64x128xbf16>, vector<128x256xbf16>, vector<64x256xf32> -> vector<64x256xf32>
    %103 = arith.addf %98, %102 : vector<64x256xf32>
    %104 = vector.extract_strided_slice %11 {offsets = [1, 0], sizes = [1, 256], strides = [1, 1]} : vector<2x256xf32> to vector<1x256xf32>
    %105 = vector.broadcast %104 : vector<1x256xf32> to vector<64x256xf32>
    %106 = arith.addf %103, %105 : vector<64x256xf32>
    %107 = vector.extract_strided_slice %106 {offsets = [0, 0], sizes = [64, 128], strides = [1, 1]} : vector<64x256xf32> to vector<64x128xf32>
    %108 = math.tanh %107 : vector<64x128xf32>
    %109 = vector.extract_strided_slice %106 {offsets = [0, 128], sizes = [64, 128], strides = [1, 1]} : vector<64x256xf32> to vector<64x128xf32>
    %110 = arith.negf %109 : vector<64x128xf32>
    %111 = math.exp %110 : vector<64x128xf32>
    %cst_75 = arith.constant 1.000000e+00 : f32
    %112 = vector.broadcast %cst_75 : f32 to vector<64x128xf32>
    %113 = arith.addf %112, %111 : vector<64x128xf32>
    %114 = arith.divf %112, %113 : vector<64x128xf32>
    %115 = arith.mulf %108, %114 : vector<64x128xf32>
    %116 = arith.truncf %115 : vector<64x128xf32> to vector<64x128xbf16>
    %c1_76 = arith.constant 1 : index
    %c0_77 = arith.constant 0 : index
    %c0_78 = arith.constant 0 : index
    %117 = vector.load %arg11[%c1_76, %c0_77, %c0_78] : memref<2x128x256xbf16, #tpu.memory_space<vmem>>, vector<1x128x256xbf16>
    %118 = vector.shape_cast %117 : vector<1x128x256xbf16> to vector<128x256xbf16>
    %119 = vector.extract_strided_slice %118 {offsets = [0, 0], sizes = [128, 128], strides = [1, 1]} : vector<128x256xbf16> to vector<128x128xbf16>
    %cst_79 = arith.constant dense<0.000000e+00> : vector<64x128xf32>
    %120 = tpu.matmul %116, %119, %cst_79 {dimension_numbers = #tpu.dot_dimension_numbers<[1], [0], [0], [1], [0, 0, 1, 1], [], []>} : vector<64x128xbf16>, vector<128x128xbf16>, vector<64x128xf32> -> vector<64x128xf32>
    %c1_80 = arith.constant 1 : index
    %c0_81 = arith.constant 0 : index
    %121 = vector.load %arg12[%c1_80, %c0_81] : memref<2x256xf32, #tpu.memory_space<vmem>>, vector<1x128xf32>
    %122 = vector.broadcast %121 : vector<1x128xf32> to vector<64x128xf32>
    %123 = arith.addf %120, %122 : vector<64x128xf32>
    %124 = arith.addf %77, %123 : vector<64x128xf32>
    %125 = vector.extract_strided_slice %124 {offsets = [16, 0], sizes = [32, 128], strides = [1, 1]} : vector<64x128xf32> to vector<32x128xf32>
    %126 = arith.mulf %125, %14 : vector<32x128xf32>
    %127 = arith.truncf %126 : vector<32x128xf32> to vector<32x128xbf16>
    %c0_82 = arith.constant 0 : index
    %c0_83 = arith.constant 0 : index
    %c0_84 = arith.constant 0 : index
    %128 = vector.load %arg8[%c0_82, %c0_83, %c0_84] : memref<2x128x128xbf16, #tpu.memory_space<vmem>>, vector<1x128x128xbf16>
    %129 = vector.shape_cast %128 : vector<1x128x128xbf16> to vector<128x128xbf16>
    %cst_85 = arith.constant dense<0.000000e+00> : vector<32x128xf32>
    %130 = tpu.matmul %127, %129, %cst_85 {dimension_numbers = #tpu.dot_dimension_numbers<[1], [0], [0], [1], [0, 0, 1, 1], [], []>} : vector<32x128xbf16>, vector<128x128xbf16>, vector<32x128xf32> -> vector<32x128xf32>
    %c0_86 = arith.constant 0 : index
    %c0_87 = arith.constant 0 : index
    %131 = vector.load %arg9[%c0_86, %c0_87] : memref<2x128xf32, #tpu.memory_space<vmem>>, vector<1x128xf32>
    %132 = vector.broadcast %131 : vector<1x128xf32> to vector<32x128xf32>
    %133 = arith.addf %130, %132 : vector<32x128xf32>
    %134 = arith.mulf %133, %17 : vector<32x128xf32>
    %135 = arith.mulf %9, %17 : vector<32x128xf32>
    %136 = arith.addf %134, %135 : vector<32x128xf32>
    %137 = vector.extract_strided_slice %19 {offsets = [0, 128], sizes = [64, 128], strides = [1, 1]} : vector<64x256xf32> to vector<64x128xf32>
    %c1_88 = arith.constant 1 : index
    %c0_89 = arith.constant 0 : index
    %138 = vector.load %arg7[%c1_88, %c0_89] : memref<2x128xf32, #tpu.memory_space<vmem>>, vector<1x128xf32>
    %139 = vector.broadcast %138 : vector<1x128xf32> to vector<64x128xf32>
    %140 = arith.addf %137, %139 : vector<64x128xf32>
    %141 = arith.mulf %140, %13 : vector<64x128xf32>
    %142 = arith.truncf %141 : vector<64x128xf32> to vector<64x128xbf16>
    %c16_90 = arith.constant 16 : index
    %c0_91 = arith.constant 0 : index
    %143 = vector.load %arg14[%c16_90, %c0_91] : memref<96x128xbf16, #tpu.memory_space<vmem>>, vector<64x128xbf16>
    tpu.vector_store %arg14[%c16_90, %c0_91], %142 {strides = array<i32>} : memref<96x128xbf16, #tpu.memory_space<vmem>>, vector<64x128xbf16>,
    %c14_92 = arith.constant 14 : index
    %c0_93 = arith.constant 0 : index
    %144 = vector.load %arg14[%c14_92, %c0_93] : memref<96x128xbf16, #tpu.memory_space<vmem>>, vector<64x128xbf16>
    %c0_94 = arith.constant 0 : index
    %c0_95 = arith.constant 0 : index
    %c0_96 = arith.constant 0 : index
    %145 = vector.load %arg10[%c0_94, %c0_95, %c0_96] : memref<10x128x256xbf16, #tpu.memory_space<vmem>>, vector<1x128x256xbf16>
    %146 = vector.shape_cast %145 : vector<1x128x256xbf16> to vector<128x256xbf16>
    %cst_97 = arith.constant dense<0.000000e+00> : vector<64x256xf32>
    %147 = tpu.matmul %144, %146, %cst_97 {dimension_numbers = #tpu.dot_dimension_numbers<[1], [0], [0], [1], [0, 0, 1, 1], [], []>} : vector<64x128xbf16>, vector<128x256xbf16>, vector<64x256xf32> -> vector<64x256xf32>
    %c15_98 = arith.constant 15 : index
    %c0_99 = arith.constant 0 : index
    %148 = vector.load %arg14[%c15_98, %c0_99] : memref<96x128xbf16, #tpu.memory_space<vmem>>, vector<64x128xbf16>
    %c1_100 = arith.constant 1 : index
    %c0_101 = arith.constant 0 : index
    %c0_102 = arith.constant 0 : index
    %149 = vector.load %arg10[%c1_100, %c0_101, %c0_102] : memref<10x128x256xbf16, #tpu.memory_space<vmem>>, vector<1x128x256xbf16>
    %150 = vector.shape_cast %149 : vector<1x128x256xbf16> to vector<128x256xbf16>
    %cst_103 = arith.constant dense<0.000000e+00> : vector<64x256xf32>
    %151 = tpu.matmul %148, %150, %cst_103 {dimension_numbers = #tpu.dot_dimension_numbers<[1], [0], [0], [1], [0, 0, 1, 1], [], []>} : vector<64x128xbf16>, vector<128x256xbf16>, vector<64x256xf32> -> vector<64x256xf32>
    %152 = arith.addf %147, %151 : vector<64x256xf32>
    %c16_104 = arith.constant 16 : index
    %c0_105 = arith.constant 0 : index
    %153 = vector.load %arg14[%c16_104, %c0_105] : memref<96x128xbf16, #tpu.memory_space<vmem>>, vector<64x128xbf16>
    %c2_106 = arith.constant 2 : index
    %c0_107 = arith.constant 0 : index
    %c0_108 = arith.constant 0 : index
    %154 = vector.load %arg10[%c2_106, %c0_107, %c0_108] : memref<10x128x256xbf16, #tpu.memory_space<vmem>>, vector<1x128x256xbf16>
    %155 = vector.shape_cast %154 : vector<1x128x256xbf16> to vector<128x256xbf16>
    %cst_109 = arith.constant dense<0.000000e+00> : vector<64x256xf32>
    %156 = tpu.matmul %153, %155, %cst_109 {dimension_numbers = #tpu.dot_dimension_numbers<[1], [0], [0], [1], [0, 0, 1, 1], [], []>} : vector<64x128xbf16>, vector<128x256xbf16>, vector<64x256xf32> -> vector<64x256xf32>
    %157 = arith.addf %152, %156 : vector<64x256xf32>
    %c17_110 = arith.constant 17 : index
    %c0_111 = arith.constant 0 : index
    %158 = vector.load %arg14[%c17_110, %c0_111] : memref<96x128xbf16, #tpu.memory_space<vmem>>, vector<64x128xbf16>
    %c3_112 = arith.constant 3 : index
    %c0_113 = arith.constant 0 : index
    %c0_114 = arith.constant 0 : index
    %159 = vector.load %arg10[%c3_112, %c0_113, %c0_114] : memref<10x128x256xbf16, #tpu.memory_space<vmem>>, vector<1x128x256xbf16>
    %160 = vector.shape_cast %159 : vector<1x128x256xbf16> to vector<128x256xbf16>
    %cst_115 = arith.constant dense<0.000000e+00> : vector<64x256xf32>
    %161 = tpu.matmul %158, %160, %cst_115 {dimension_numbers = #tpu.dot_dimension_numbers<[1], [0], [0], [1], [0, 0, 1, 1], [], []>} : vector<64x128xbf16>, vector<128x256xbf16>, vector<64x256xf32> -> vector<64x256xf32>
    %162 = arith.addf %157, %161 : vector<64x256xf32>
    %c18_116 = arith.constant 18 : index
    %c0_117 = arith.constant 0 : index
    %163 = vector.load %arg14[%c18_116, %c0_117] : memref<96x128xbf16, #tpu.memory_space<vmem>>, vector<64x128xbf16>
    %c4_118 = arith.constant 4 : index
    %c0_119 = arith.constant 0 : index
    %c0_120 = arith.constant 0 : index
    %164 = vector.load %arg10[%c4_118, %c0_119, %c0_120] : memref<10x128x256xbf16, #tpu.memory_space<vmem>>, vector<1x128x256xbf16>
    %165 = vector.shape_cast %164 : vector<1x128x256xbf16> to vector<128x256xbf16>
    %cst_121 = arith.constant dense<0.000000e+00> : vector<64x256xf32>
    %166 = tpu.matmul %163, %165, %cst_121 {dimension_numbers = #tpu.dot_dimension_numbers<[1], [0], [0], [1], [0, 0, 1, 1], [], []>} : vector<64x128xbf16>, vector<128x256xbf16>, vector<64x256xf32> -> vector<64x256xf32>
    %167 = arith.addf %162, %166 : vector<64x256xf32>
    %168 = vector.extract_strided_slice %11 {offsets = [0, 0], sizes = [1, 256], strides = [1, 1]} : vector<2x256xf32> to vector<1x256xf32>
    %169 = vector.broadcast %168 : vector<1x256xf32> to vector<64x256xf32>
    %170 = arith.addf %167, %169 : vector<64x256xf32>
    %171 = vector.extract_strided_slice %170 {offsets = [0, 0], sizes = [64, 128], strides = [1, 1]} : vector<64x256xf32> to vector<64x128xf32>
    %172 = math.tanh %171 : vector<64x128xf32>
    %173 = vector.extract_strided_slice %170 {offsets = [0, 128], sizes = [64, 128], strides = [1, 1]} : vector<64x256xf32> to vector<64x128xf32>
    %174 = arith.negf %173 : vector<64x128xf32>
    %175 = math.exp %174 : vector<64x128xf32>
    %cst_122 = arith.constant 1.000000e+00 : f32
    %176 = vector.broadcast %cst_122 : f32 to vector<64x128xf32>
    %177 = arith.addf %176, %175 : vector<64x128xf32>
    %178 = arith.divf %176, %177 : vector<64x128xf32>
    %179 = arith.mulf %172, %178 : vector<64x128xf32>
    %180 = arith.truncf %179 : vector<64x128xf32> to vector<64x128xbf16>
    %c0_123 = arith.constant 0 : index
    %c0_124 = arith.constant 0 : index
    %c0_125 = arith.constant 0 : index
    %181 = vector.load %arg11[%c0_123, %c0_124, %c0_125] : memref<2x128x256xbf16, #tpu.memory_space<vmem>>, vector<1x128x256xbf16>
    %182 = vector.shape_cast %181 : vector<1x128x256xbf16> to vector<128x256xbf16>
    %cst_126 = arith.constant dense<0.000000e+00> : vector<64x256xf32>
    %183 = tpu.matmul %180, %182, %cst_126 {dimension_numbers = #tpu.dot_dimension_numbers<[1], [0], [0], [1], [0, 0, 1, 1], [], []>} : vector<64x128xbf16>, vector<128x256xbf16>, vector<64x256xf32> -> vector<64x256xf32>
    %c0_127 = arith.constant 0 : index
    %c0_128 = arith.constant 0 : index
    %184 = vector.load %arg12[%c0_127, %c0_128] : memref<2x256xf32, #tpu.memory_space<vmem>>, vector<1x256xf32>
    %185 = vector.broadcast %184 : vector<1x256xf32> to vector<64x256xf32>
    %186 = arith.addf %183, %185 : vector<64x256xf32>
    %187 = vector.extract_strided_slice %186 {offsets = [0, 0], sizes = [64, 128], strides = [1, 1]} : vector<64x256xf32> to vector<64x128xf32>
    %188 = arith.addf %141, %187 : vector<64x128xf32>
    %189 = arith.mulf %188, %13 : vector<64x128xf32>
    %190 = vector.extract_strided_slice %186 {offsets = [0, 128], sizes = [64, 128], strides = [1, 1]} : vector<64x256xf32> to vector<64x128xf32>
    %191 = arith.truncf %189 : vector<64x128xf32> to vector<64x128xbf16>
    %c16_129 = arith.constant 16 : index
    %c0_130 = arith.constant 0 : index
    %192 = vector.load %arg14[%c16_129, %c0_130] : memref<96x128xbf16, #tpu.memory_space<vmem>>, vector<64x128xbf16>
    tpu.vector_store %arg14[%c16_129, %c0_130], %191 {strides = array<i32>} : memref<96x128xbf16, #tpu.memory_space<vmem>>, vector<64x128xbf16>,
    %c14_131 = arith.constant 14 : index
    %c0_132 = arith.constant 0 : index
    %193 = vector.load %arg14[%c14_131, %c0_132] : memref<96x128xbf16, #tpu.memory_space<vmem>>, vector<64x128xbf16>
    %c5_133 = arith.constant 5 : index
    %c0_134 = arith.constant 0 : index
    %c0_135 = arith.constant 0 : index
    %194 = vector.load %arg10[%c5_133, %c0_134, %c0_135] : memref<10x128x256xbf16, #tpu.memory_space<vmem>>, vector<1x128x256xbf16>
    %195 = vector.shape_cast %194 : vector<1x128x256xbf16> to vector<128x256xbf16>
    %cst_136 = arith.constant dense<0.000000e+00> : vector<64x256xf32>
    %196 = tpu.matmul %193, %195, %cst_136 {dimension_numbers = #tpu.dot_dimension_numbers<[1], [0], [0], [1], [0, 0, 1, 1], [], []>} : vector<64x128xbf16>, vector<128x256xbf16>, vector<64x256xf32> -> vector<64x256xf32>
    %c15_137 = arith.constant 15 : index
    %c0_138 = arith.constant 0 : index
    %197 = vector.load %arg14[%c15_137, %c0_138] : memref<96x128xbf16, #tpu.memory_space<vmem>>, vector<64x128xbf16>
    %c6_139 = arith.constant 6 : index
    %c0_140 = arith.constant 0 : index
    %c0_141 = arith.constant 0 : index
    %198 = vector.load %arg10[%c6_139, %c0_140, %c0_141] : memref<10x128x256xbf16, #tpu.memory_space<vmem>>, vector<1x128x256xbf16>
    %199 = vector.shape_cast %198 : vector<1x128x256xbf16> to vector<128x256xbf16>
    %cst_142 = arith.constant dense<0.000000e+00> : vector<64x256xf32>
    %200 = tpu.matmul %197, %199, %cst_142 {dimension_numbers = #tpu.dot_dimension_numbers<[1], [0], [0], [1], [0, 0, 1, 1], [], []>} : vector<64x128xbf16>, vector<128x256xbf16>, vector<64x256xf32> -> vector<64x256xf32>
    %201 = arith.addf %196, %200 : vector<64x256xf32>
    %c16_143 = arith.constant 16 : index
    %c0_144 = arith.constant 0 : index
    %202 = vector.load %arg14[%c16_143, %c0_144] : memref<96x128xbf16, #tpu.memory_space<vmem>>, vector<64x128xbf16>
    %c7_145 = arith.constant 7 : index
    %c0_146 = arith.constant 0 : index
    %c0_147 = arith.constant 0 : index
    %203 = vector.load %arg10[%c7_145, %c0_146, %c0_147] : memref<10x128x256xbf16, #tpu.memory_space<vmem>>, vector<1x128x256xbf16>
    %204 = vector.shape_cast %203 : vector<1x128x256xbf16> to vector<128x256xbf16>
    %cst_148 = arith.constant dense<0.000000e+00> : vector<64x256xf32>
    %205 = tpu.matmul %202, %204, %cst_148 {dimension_numbers = #tpu.dot_dimension_numbers<[1], [0], [0], [1], [0, 0, 1, 1], [], []>} : vector<64x128xbf16>, vector<128x256xbf16>, vector<64x256xf32> -> vector<64x256xf32>
    %206 = arith.addf %201, %205 : vector<64x256xf32>
    %c17_149 = arith.constant 17 : index
    %c0_150 = arith.constant 0 : index
    %207 = vector.load %arg14[%c17_149, %c0_150] : memref<96x128xbf16, #tpu.memory_space<vmem>>, vector<64x128xbf16>
    %c8_151 = arith.constant 8 : index
    %c0_152 = arith.constant 0 : index
    %c0_153 = arith.constant 0 : index
    %208 = vector.load %arg10[%c8_151, %c0_152, %c0_153] : memref<10x128x256xbf16, #tpu.memory_space<vmem>>, vector<1x128x256xbf16>
    %209 = vector.shape_cast %208 : vector<1x128x256xbf16> to vector<128x256xbf16>
    %cst_154 = arith.constant dense<0.000000e+00> : vector<64x256xf32>
    %210 = tpu.matmul %207, %209, %cst_154 {dimension_numbers = #tpu.dot_dimension_numbers<[1], [0], [0], [1], [0, 0, 1, 1], [], []>} : vector<64x128xbf16>, vector<128x256xbf16>, vector<64x256xf32> -> vector<64x256xf32>
    %211 = arith.addf %206, %210 : vector<64x256xf32>
    %c18_155 = arith.constant 18 : index
    %c0_156 = arith.constant 0 : index
    %212 = vector.load %arg14[%c18_155, %c0_156] : memref<96x128xbf16, #tpu.memory_space<vmem>>, vector<64x128xbf16>
    %c9_157 = arith.constant 9 : index
    %c0_158 = arith.constant 0 : index
    %c0_159 = arith.constant 0 : index
    %213 = vector.load %arg10[%c9_157, %c0_158, %c0_159] : memref<10x128x256xbf16, #tpu.memory_space<vmem>>, vector<1x128x256xbf16>
    %214 = vector.shape_cast %213 : vector<1x128x256xbf16> to vector<128x256xbf16>
    %cst_160 = arith.constant dense<0.000000e+00> : vector<64x256xf32>
    %215 = tpu.matmul %212, %214, %cst_160 {dimension_numbers = #tpu.dot_dimension_numbers<[1], [0], [0], [1], [0, 0, 1, 1], [], []>} : vector<64x128xbf16>, vector<128x256xbf16>, vector<64x256xf32> -> vector<64x256xf32>
    %216 = arith.addf %211, %215 : vector<64x256xf32>
    %217 = vector.extract_strided_slice %11 {offsets = [1, 0], sizes = [1, 256], strides = [1, 1]} : vector<2x256xf32> to vector<1x256xf32>
    %218 = vector.broadcast %217 : vector<1x256xf32> to vector<64x256xf32>
    %219 = arith.addf %216, %218 : vector<64x256xf32>
    %220 = vector.extract_strided_slice %219 {offsets = [0, 0], sizes = [64, 128], strides = [1, 1]} : vector<64x256xf32> to vector<64x128xf32>
    %221 = math.tanh %220 : vector<64x128xf32>
    %222 = vector.extract_strided_slice %219 {offsets = [0, 128], sizes = [64, 128], strides = [1, 1]} : vector<64x256xf32> to vector<64x128xf32>
    %223 = arith.negf %222 : vector<64x128xf32>
    %224 = math.exp %223 : vector<64x128xf32>
    %cst_161 = arith.constant 1.000000e+00 : f32
    %225 = vector.broadcast %cst_161 : f32 to vector<64x128xf32>
    %226 = arith.addf %225, %224 : vector<64x128xf32>
    %227 = arith.divf %225, %226 : vector<64x128xf32>
    %228 = arith.mulf %221, %227 : vector<64x128xf32>
    %229 = arith.truncf %228 : vector<64x128xf32> to vector<64x128xbf16>
    %c1_162 = arith.constant 1 : index
    %c0_163 = arith.constant 0 : index
    %c0_164 = arith.constant 0 : index
    %230 = vector.load %arg11[%c1_162, %c0_163, %c0_164] : memref<2x128x256xbf16, #tpu.memory_space<vmem>>, vector<1x128x256xbf16>
    %231 = vector.shape_cast %230 : vector<1x128x256xbf16> to vector<128x256xbf16>
    %232 = vector.extract_strided_slice %231 {offsets = [0, 0], sizes = [128, 128], strides = [1, 1]} : vector<128x256xbf16> to vector<128x128xbf16>
    %cst_165 = arith.constant dense<0.000000e+00> : vector<64x128xf32>
    %233 = tpu.matmul %229, %232, %cst_165 {dimension_numbers = #tpu.dot_dimension_numbers<[1], [0], [0], [1], [0, 0, 1, 1], [], []>} : vector<64x128xbf16>, vector<128x128xbf16>, vector<64x128xf32> -> vector<64x128xf32>
    %c1_166 = arith.constant 1 : index
    %c0_167 = arith.constant 0 : index
    %234 = vector.load %arg12[%c1_166, %c0_167] : memref<2x256xf32, #tpu.memory_space<vmem>>, vector<1x128xf32>
    %235 = vector.broadcast %234 : vector<1x128xf32> to vector<64x128xf32>
    %236 = arith.addf %233, %235 : vector<64x128xf32>
    %237 = arith.addf %190, %236 : vector<64x128xf32>
    %238 = vector.extract_strided_slice %237 {offsets = [16, 0], sizes = [32, 128], strides = [1, 1]} : vector<64x128xf32> to vector<32x128xf32>
    %239 = arith.mulf %238, %14 : vector<32x128xf32>
    %240 = arith.truncf %239 : vector<32x128xf32> to vector<32x128xbf16>
    %c1_168 = arith.constant 1 : index
    %c0_169 = arith.constant 0 : index
    %c0_170 = arith.constant 0 : index
    %241 = vector.load %arg8[%c1_168, %c0_169, %c0_170] : memref<2x128x128xbf16, #tpu.memory_space<vmem>>, vector<1x128x128xbf16>
    %242 = vector.shape_cast %241 : vector<1x128x128xbf16> to vector<128x128xbf16>
    %cst_171 = arith.constant dense<0.000000e+00> : vector<32x128xf32>
    %243 = tpu.matmul %240, %242, %cst_171 {dimension_numbers = #tpu.dot_dimension_numbers<[1], [0], [0], [1], [0, 0, 1, 1], [], []>} : vector<32x128xbf16>, vector<128x128xbf16>, vector<32x128xf32> -> vector<32x128xf32>
    %c1_172 = arith.constant 1 : index
    %c0_173 = arith.constant 0 : index
    %244 = vector.load %arg9[%c1_172, %c0_173] : memref<2x128xf32, #tpu.memory_space<vmem>>, vector<1x128xf32>
    %245 = vector.broadcast %244 : vector<1x128xf32> to vector<32x128xf32>
    %246 = arith.addf %243, %245 : vector<32x128xf32>
    %247 = arith.mulf %246, %17 : vector<32x128xf32>
    %248 = arith.mulf %136, %17 : vector<32x128xf32>
    %249 = arith.addf %247, %248 : vector<32x128xf32>
    %c0_174 = arith.constant 0 : index
    %c0_175 = arith.constant 0 : index
    %c0_176 = arith.constant 0 : index
    %250 = vector.load %arg13[%c0_174, %c0_175, %c0_176] : memref<1x32x128xf32, #tpu.memory_space<vmem>>, vector<1x32x128xf32>
    %251 = vector.shape_cast %250 : vector<1x32x128xf32> to vector<32x128xf32>
    %252 = vector.shape_cast %249 : vector<32x128xf32> to vector<1x32x128xf32>
    tpu.vector_store %arg13[%c0_174, %c0_175, %c0_176], %252 {strides = array<i32>} : memref<1x32x128xf32, #tpu.memory_space<vmem>>, vector<1x32x128xf32>,
    return
  }
  func.func @transform_0(%arg0: i32, %arg1: i32) -> (i32, i32, i32) {
    %c0_i32 = arith.constant 0 : i32
    %c0_i32_0 = arith.constant 0 : i32
    %c0_i32_1 = arith.constant 0 : i32
    return %arg0, %c0_i32, %c0_i32_0 : i32, i32, i32
  }
  func.func @transform_1(%arg0: i32, %arg1: i32) -> (i32, i32, i32) {
    %c0_i32 = arith.constant 0 : i32
    %c0_i32_0 = arith.constant 0 : i32
    return %arg0, %arg1, %c0_i32 : i32, i32, i32
  }
  func.func @transform_2(%arg0: i32, %arg1: i32) -> (i32, i32, i32) {
    %c0_i32 = arith.constant 0 : i32
    %c0_i32_0 = arith.constant 0 : i32
    %c0_i32_1 = arith.constant 0 : i32
    return %arg0, %c0_i32, %c0_i32_0 : i32, i32, i32
  }
  func.func @transform_3(%arg0: i32, %arg1: i32) -> (i32, i32, i32) {
    %c0_i32 = arith.constant 0 : i32
    %c0_i32_0 = arith.constant 0 : i32
    %c0_i32_1 = arith.constant 0 : i32
    return %arg0, %c0_i32, %c0_i32_0 : i32, i32, i32
  }
  func.func @transform_4(%arg0: i32, %arg1: i32) -> (i32, i32) {
    %c0_i32 = arith.constant 0 : i32
    %c0_i32_0 = arith.constant 0 : i32
    %c0_i32_1 = arith.constant 0 : i32
    return %c0_i32, %c0_i32_0 : i32, i32
  }
  func.func @transform_5(%arg0: i32, %arg1: i32) -> (i32, i32) {
    %c0_i32 = arith.constant 0 : i32
    %c0_i32_0 = arith.constant 0 : i32
    %c0_i32_1 = arith.constant 0 : i32
    return %c0_i32, %c0_i32_0 : i32, i32
  }
  func.func @transform_6(%arg0: i32, %arg1: i32) -> (i32, i32, i32) {
    %c0_i32 = arith.constant 0 : i32
    %c0_i32_0 = arith.constant 0 : i32
    %c0_i32_1 = arith.constant 0 : i32
    %c0_i32_2 = arith.constant 0 : i32
    return %c0_i32, %c0_i32_0, %c0_i32_1 : i32, i32, i32
  }
  func.func @transform_7(%arg0: i32, %arg1: i32) -> (i32, i32) {
    %c0_i32 = arith.constant 0 : i32
    %c0_i32_0 = arith.constant 0 : i32
    %c0_i32_1 = arith.constant 0 : i32
    return %c0_i32, %c0_i32_0 : i32, i32
  }
  func.func @transform_8(%arg0: i32, %arg1: i32) -> (i32, i32, i32) {
    %c0_i32 = arith.constant 0 : i32
    %c0_i32_0 = arith.constant 0 : i32
    %c0_i32_1 = arith.constant 0 : i32
    %c0_i32_2 = arith.constant 0 : i32
    return %c0_i32, %c0_i32_0, %c0_i32_1 : i32, i32, i32
  }
  func.func @transform_9(%arg0: i32, %arg1: i32) -> (i32, i32, i32) {
    %c0_i32 = arith.constant 0 : i32
    %c0_i32_0 = arith.constant 0 : i32
    %c0_i32_1 = arith.constant 0 : i32
    %c0_i32_2 = arith.constant 0 : i32
    return %c0_i32, %c0_i32_0, %c0_i32_1 : i32, i32, i32
  }
  func.func @transform_10(%arg0: i32, %arg1: i32) -> (i32, i32) {
    %c0_i32 = arith.constant 0 : i32
    %c0_i32_0 = arith.constant 0 : i32
    %c0_i32_1 = arith.constant 0 : i32
    return %c0_i32, %c0_i32_0 : i32, i32
  }
  func.func @transform_11(%arg0: i32, %arg1: i32) -> (i32, i32, i32) {
    %c0_i32 = arith.constant 0 : i32
    %c0_i32_0 = arith.constant 0 : i32
    return %arg0, %arg1, %c0_i32 : i32, i32, i32
  }
}

</mosaic_0001>

<bundles_post_ra>
// kernel: param_share_flow_pallas.1
= control target key start
LH: loop header
LB: loop body
LE: loop exit
PB: predicated region body
PF: predicated region fallthrough
CT: control target
= control target key end

     0   :  { %s9640_s17 = smov 0   ;;  %s9642_s18 = smov 0   ;;  %s13578_s0 = inlined_call_operand.vmem [shape: bf16[2,128,128], index: 0, kind: input, shape index: {}]   ;;  %s13579_s1 = inlined_call_operand.vmem [shape: f32[2,96,128], index: 1, kind: input, shape index: {}, may-alias: {1,11}]   ;;  %s13580_s2 = inlined_call_operand.vmem [shape: f32[2,128,1], index: 2, kind: input, shape index: {}]   ;;  %s13581_s3 = inlined_call_operand.vmem [shape: f32[2,2,256], index: 3, kind: input, shape index: {}]   ;;  %s13582_s4 = inlined_call_operand.vmem [shape: bf16[128,256], index: 4, kind: input, shape index: {}]   ;;  %s13583_s5 = inlined_call_operand.vmem [shape: f32[2,128], index: 5, kind: input, shape index: {}]   ;;  %s13584_s6 = inlined_call_operand.vmem [shape: bf16[2,128,128], index: 6, kind: input, shape index: {}]   ;;  %s13585_s7 = inlined_call_operand.vmem [shape: f32[2,128], index: 7, kind: input, shape index: {}]   ;;  %s13586_s8 = inlined_call_operand.vmem [shape: bf16[10,128,256], index: 8, kind: input, shape index: {}]   ;;  %s13587_s9 = inlined_call_operand.vmem [shape: bf16[2,128,256], index: 9, kind: input, shape index: {}]   ;;  %s13588_s10 = inlined_call_operand.vmem [shape: f32[2,256], index: 10, kind: input, shape index: {}]   ;;  %s13589_s11 = inlined_call_operand.vmem [shape: f32[2,96,128], index: 11, kind: output, shape index: {}, may-alias: {1,11}]  }
   0x1   :  { %13617 = sst [smem:[#allocation24_spill]] %s13580_s2  ;;  %s9644_s19 = smov 0  }
   0x2   :  { %s9646_s20 = smov 0   ;;  %s9648_s21 = smov 0  }
   0x3 LB: > { %s30_s22 = sadd.s32 1, %s9569_s19  ;;  %s33_s23 = sadd.s32 1, %s9573_s20  ;;  %s9577_s21 = sphi %s9648_s21, %s21_s21   ;;  %s9573_s20 = sphi %s9646_s20, %s13687_s20   ;;  %s9569_s19 = sphi %s9644_s19, %s13686_s19   ;;  %s9565_s18 = sphi %s9642_s18, %s13685_s18   ;;  %s9561_s17 = sphi %s9640_s17, %s13684_s17  }
   0x4   : > { %p31_p0 = scmp.ge.s32.totalorder %s30_s22, 3  ;;  %p6542_p1 = scmp.ge.s32.totalorder %s9577_s21, 1 }
   0x5   : > { %p388_p2 = scmp.lt.s32.totalorder %s9577_s21, 7 }
   0x6   : > { %s13689_s22 = smov (%p31_p0, %s30_s22), 0  ;;  %s13691_s23 = smov (!%p31_p0, %s33_s23), %s9573_s20 }
   0x7   : > { %13618 = sst [smem:[#allocation3_spill]] %s13689_s22  ;;  %p389_p3 = pnand %p6542_p1, %p388_p2 }
   0x8   : > { %p35_p4 = scmp.ge.s32.totalorder %s13691_s23, 2 }
   0x9   : > { %392 = sbr.rel (%p389_p3) target bundleno = 2215 (0x8a7), region = 64 }
   0xa   : > { %s13693_s23 = smov (%p35_p4, %s13691_s23), 0 }
   0xb   : > { %13619 = sst [smem:[#allocation4_spill]] %s13693_s23 }
   0xe   : > { %v6629_v0 = vld [vmem:[%s13582_s4 + $0x70] sm:$0xf]  ;;  %v8611_v1 = vld [vmem:[%s13582_s4 + $0x74] sm:$0xf0]  ;;  %v8610_v2 = vld [vmem:[%s13582_s4 + $0x74] sm:$0xf] }
   0xf   : > { %v6630_v3 = vor.u32 %v8611_v1, %v6629_v0  ;;  %v6631_v4 = vld [vmem:[%s13582_s4 + $0x78] sm:$0xf0]  ;;  %v6621_v5 = vld [vmem:[%s13582_s4 + $0x60] sm:$0xf]  ;;  %v8609_v6 = vld [vmem:[%s13582_s4 + $0x64] sm:$0xf0] }
  0x10   : > { %v6634_v7 = vor.u32 %v8610_v2, %v6631_v4  ;;  %v8608_v8 = vld [vmem:[%s13582_s4 + $0x64] sm:$0xf]  ;;  %v6623_v9 = vld [vmem:[%s13582_s4 + $0x68] sm:$0xf0]  ;;  %v6622_v10 = vor.u32 %v8609_v6, %v6621_v5  ;;  %v6613_v12 = vld [vmem:[%s13582_s4 + $0x50] sm:$0xf] }
  0x11   : > { %674 = vmatpush.bf16.msra.mxu0 %v6630_v3  ;;  %v6626_v11 = vor.u32 %v8608_v8, %v6623_v9  ;;  %v8607_v13 = vld [vmem:[%s13582_s4 + $0x54] sm:$0xf0]  ;;  %v8606_v14 = vld [vmem:[%s13582_s4 + $0x54] sm:$0xf]  ;;  %v6615_v15 = vld [vmem:[%s13582_s4 + $0x58] sm:$0xf0] }
  0x12   : > { %703 = vmatpush.bf16.msra.mxu1 %v6634_v7  ;;  %v6614_v16 = vor.u32 %v8607_v13, %v6613_v12  ;;  %v6618_v17 = vor.u32 %v8606_v14, %v6615_v15  ;;  %v6605_v18 = vld [vmem:[%s13582_s4 + $0x40] sm:$0xf]  ;;  %v8605_v19 = vld [vmem:[%s13582_s4 + $0x44] sm:$0xf0]  ;;  %v8604_v20 = vld [vmem:[%s13582_s4 + $0x44] sm:$0xf] }
  0x13   : > { %v6607_v21 = vld [vmem:[%s13582_s4 + $0x48] sm:$0xf0]  ;;  %v6597_v22 = vld [vmem:[%s13582_s4 + $0x30] sm:$0xf]  ;;  %v8603_v23 = vld [vmem:[%s13582_s4 + $0x34] sm:$0xf0]  ;;  %v6606_v24 = vor.u32 %v8605_v19, %v6605_v18 }
  0x14   : > { %p451_p5 = scmp.lt.s32.totalorder %s9565_s18, 1  ;;  %v6610_v25 = vor.u32 %v8604_v20, %v6607_v21  ;;  %v8602_v26 = vld [vmem:[%s13582_s4 + $0x34] sm:$0xf]  ;;  %v9579_v27 = vmov 0   ;;  %v6599_v28 = vld [vmem:[%s13582_s4 + $0x38] sm:$0xf0]  ;;  %v6598_v29 = vor.u32 %v8603_v23, %v6597_v22 }
  0x15   : > { %675 = vmatpush.bf16.msra.mxu0 %v6622_v10  ;;  %9330 = vset.pattern.permute.xlu0 %v9579_v27  ;;  %733 = vst [vmem:[#allocation2 + $0x4] sm:$0xf] %v9579_v27  ;;  %v6602_v30 = vor.u32 %v8602_v26, %v6599_v28  ;;  %v6589_v31 = vld [vmem:[%s13582_s4 + $0x20] sm:$0xf]  ;;  %v8601_v32 = vld [vmem:[%s13582_s4 + $0x24] sm:$0xf0] }
  0x16   : > { %704 = vmatpush.bf16.msra.mxu1 %v6626_v11  ;;  %9331 = vset.pattern.permute.xlu1 %v9579_v27  ;;  %s13695_s18 = smov (!%p451_p5, %s9565_s18), 1  ;;  %734 = vst [vmem:[#allocation2 + $0x28] sm:$0xf] %v9579_v27  ;;  %v8600_v33 = vld [vmem:[%s13582_s4 + $0x24] sm:$0xf]  ;;  %s6553_s25 = sshll.u32 %s9561_s17, 5  ;;  %v6590_v35 = vor.u32 %v8601_v32, %v6589_v31 }
  0x17   : > { %9332 = vset.pattern.permute.xlu2 %v9579_v27  ;;  %s8590_s13 = sshll.u32 %s13695_s18, 7  ;;  %v6591_v34 = vld [vmem:[%s13582_s4 + $0x28] sm:$0xf0]  ;;  %s13620_s2 = sld [smem:[#allocation24_spill]]  ;;  %v6581_v39 = vld [vmem:[%s13582_s4 + $0x10] sm:$0xf] }
  0x18   : > { %v6594_v38 = vor.u32 %v8600_v33, %v6591_v34  ;;  %v8599_v40 = vld [vmem:[%s13582_s4 + $0x14] sm:$0xf0]  ;;  %v8598_v41 = vld [vmem:[%s13582_s4 + $0x14] sm:$0xf]  ;;  %v6583_v42 = vld [vmem:[%s13582_s4 + $0x18] sm:$0xf0] }
  0x19   : > { %676 = vmatpush.bf16.msra.mxu0 %v6614_v16  ;;  %s8589_s27 = sshll.u32 %s13695_s18, 6  ;;  %v6582_v43 = vor.u32 %v8599_v40, %v6581_v39  ;;  %v6586_v44 = vor.u32 %v8598_v41, %v6583_v42  ;;  %v6573_v45 = vld [vmem:[%s13582_s4] sm:$0xf]  ;;  %v8597_v46 = vld [vmem:[%s13582_s4 + $0x4] sm:$0xf0]  ;;  %vm1026_vm0 = vcmask 1044480  }
  0x1a   : > { %705 = vmatpush.bf16.msra.mxu1 %v6618_v17  ;;  %s455_s24 = scalar_lea.vmem %s13578_s0, %s8589_s27  ;;  %v8596_v47 = vld [vmem:[%s13582_s4 + $0x4] sm:$0xf]  ;;  %v6575_v48 = vld [vmem:[%s13582_s4 + $0x8] sm:$0xf0]  ;;  %v6574_v51 = vor.u32 %v8597_v46, %v6573_v45  ;;  %v6773_v61 = vld [vmem:[%s13586_s8 + $0x70] sm:$0xf] }
  0x1b   : > { %v6578_v52 = vor.u32 %v8596_v47, %v6575_v48  ;;  %v8627_v62 = vld [vmem:[%s13586_s8 + $0x74] sm:$0xf0]  ;;  %v8626_v63 = vld [vmem:[%s13586_s8 + $0x74] sm:$0xf]  ;;  %v6775_v1 = vld [vmem:[%s13586_s8 + $0x78] sm:$0xf0] }
  0x1c   : > { %v6774_v0 = vor.u32 %v8627_v62, %v6773_v61  ;;  %v6778_v2 = vor.u32 %v8626_v63, %v6775_v1  ;;  %v6709_v3 = vld [vmem:[%s13586_s8 + $0xf0] sm:$0xf]  ;;  %v8643_v4 = vld [vmem:[%s13586_s8 + $0xf4] sm:$0xf0]  ;;  %v8642_v5 = vld [vmem:[%s13586_s8 + $0xf4] sm:$0xf] }
  0x1d   : > { %677 = vmatpush.bf16.msra.mxu0 %v6606_v24  ;;  %s470_s28 = scalar_lea.vmem %s13620_s2, %s8590_s13  ;;  %v6710_v6 = vor.u32 %v8643_v4, %v6709_v3  ;;  %v6711_v7 = vld [vmem:[%s13586_s8 + $0xf8] sm:$0xf0]  ;;  %v6765_v8 = vld [vmem:[%s13586_s8 + $0x60] sm:$0xf]  ;;  %v8625_v9 = vld [vmem:[%s13586_s8 + $0x64] sm:$0xf0] }
  0x1e   : > { %706 = vmatpush.bf16.msra.mxu1 %v6610_v25  ;;  %s9755_s29 = scalar_lea.vmem %s470_s28, %s6553_s25  ;;  %s488_s28 = sshra.s32 %s6553_s25, 3  ;;  %v6714_v10 = vor.u32 %v8642_v5, %v6711_v7  ;;  %v6766_v11 = vor.u32 %v8625_v9, %v6765_v8  ;;  %v8624_v12 = vld [vmem:[%s13586_s8 + $0x64] sm:$0xf]  ;;  %v6767_v13 = vld [vmem:[%s13586_s8 + $0x68] sm:$0xf0]  ;;  %vm1622_vm3 = vcmask 1046528  }
  0x1f   : > { %v501_v36 = vld [vmem:[%s9755_s29] sm:$0xff]  ;;  %v503_v37 = vld [vmem:[%s9755_s29 + $0x10] sm:$0xff]  ;;  %s6554_s26 = sshll.u32 %s488_s28, 2  ;;  %v502_v49 = vld [vmem:[%s9755_s29 + $0x8] sm:$0xff]  ;;  %965 = vmatpush.bf16.msra.mxu2 %v6710_v6  ;;  %v6770_v14 = vor.u32 %v8624_v12, %v6767_v13  ;;  %vm836_vm1 = vsmask.f32 4352 }
  0x20   : > { %516 = vperm.xlu0 %9330, %v501_v36   ;;  %526 = vperm.xlu1 %9331, %v503_v37   ;;  %v504_v50 = vld [vmem:[%s9755_s29 + $0x18] sm:$0xff]  ;;  %s491_s30 = scalar_lea.vmem %s455_s24, %s6554_s26  ;;  %v507_v54 = vld [vmem:[%s9755_s29 + $0x30] sm:$0xff]  ;;  %v505_v57 = vld [vmem:[%s9755_s29 + $0x20] sm:$0xff]  ;;  %vm1406_vm2 = vsmask.f32 7424  ;;  %s8591_s28 = sshll.u32 %s13695_s18, 2 }
  0x21   : > { %678 = vmatpush.bf16.msra.mxu0 %v6598_v29  ;;  %v8592_v53 = vld [vmem:[%s491_s30] sm:$0xff]  ;;  %v508_v55 = vld [vmem:[%s9755_s29 + $0x38] sm:$0xff]  ;;  %v8593_v56 = vld [vmem:[%s491_s30 + $0x8] sm:$0xff]  ;;  %536 = vperm.xlu2 %9332, %v505_v57   ;;  %s10519_s24 = scalar_lea.vmem %s13581_s3, %s8591_s28  ;;  %s6545_s2 = sshll.u32 %s9561_s17, 2 }
  0x22   : > { %707 = vmatpush.bf16.msra.mxu1 %v6602_v30  ;;  %v506_v58 = vld [vmem:[%s9755_s29 + $0x28] sm:$0xff]  ;;  %v8594_v59 = vld [vmem:[%s491_s30 + $0x10] sm:$0xff]  ;;  %v8595_v60 = vld [vmem:[%s491_s30 + $0x18] sm:$0xff]  ;;  %994 = vmatpush.bf16.msra.mxu3 %v6714_v10  ;;  %p459_p6 = scmp.lt.s32.totalorder %s6545_s2, 11  ;;  %s9288_s22 = smul.u32 12, %s13695_s18 }
  0x23   : > { %v6701_v15 = vld [vmem:[%s13586_s8 + $0xe0] sm:$0xf]  ;;  %v8641_v16 = vld [vmem:[%s13586_s8 + $0xe4] sm:$0xf0]  ;;  %v8640_v17 = vld [vmem:[%s13586_s8 + $0xe4] sm:$0xf] }
  0x24   : > { %v6702_v18 = vor.u32 %v8641_v16, %v6701_v15  ;;  %v6703_v19 = vld [vmem:[%s13586_s8 + $0xe8] sm:$0xf0]  ;;  %v6757_v20 = vld [vmem:[%s13586_s8 + $0x50] sm:$0xf]  ;;  %v8623_v21 = vld [vmem:[%s13586_s8 + $0x54] sm:$0xf0] }
  0x25   : > { %679 = vmatpush.bf16.msra.mxu0 %v6590_v35  ;;  %v6706_v22 = vor.u32 %v8640_v17, %v6703_v19  ;;  %v6758_v23 = vor.u32 %v8623_v21, %v6757_v20  ;;  %v8622_v24 = vld [vmem:[%s13586_s8 + $0x54] sm:$0xf]  ;;  %v6759_v25 = vld [vmem:[%s13586_s8 + $0x58] sm:$0xf0]  ;;  %v6693_v27 = vld [vmem:[%s13586_s8 + $0xd0] sm:$0xf] }
  0x26   : > { %708 = vmatpush.bf16.msra.mxu1 %v6594_v38  ;;  %966 = vmatpush.bf16.msra.mxu2 %v6702_v18  ;;  %v6762_v26 = vor.u32 %v8622_v24, %v6759_v25  ;;  %v8639_v28 = vld [vmem:[%s13586_s8 + $0xd4] sm:$0xf0]  ;;  %v8638_v29 = vld [vmem:[%s13586_s8 + $0xd4] sm:$0xf]  ;;  %v6695_v31 = vld [vmem:[%s13586_s8 + $0xd8] sm:$0xf0] }
  0x27   : > { %995 = vmatpush.bf16.msra.mxu3 %v6706_v22  ;;  %v6694_v30 = vor.u32 %v8639_v28, %v6693_v27  ;;  %v6749_v32 = vld [vmem:[%s13586_s8 + $0x40] sm:$0xf]  ;;  %v8621_v33 = vld [vmem:[%s13586_s8 + $0x44] sm:$0xf0]  ;;  %v6698_v34 = vor.u32 %v8638_v29, %v6695_v31  ;;  %v8620_v36 = vld [vmem:[%s13586_s8 + $0x44] sm:$0xf] }
  0x28   : > { %521 = vperm.xlu0 %9330, %v502_v49   ;;  %531 = vperm.xlu1 %9331, %v504_v50   ;;  %v6750_v35 = vor.u32 %v8621_v33, %v6749_v32  ;;  %v6751_v37 = vld [vmem:[%s13586_s8 + $0x48] sm:$0xf0]  ;;  %v6685_v39 = vld [vmem:[%s13586_s8 + $0xc0] sm:$0xf]  ;;  %v8637_v40 = vld [vmem:[%s13586_s8 + $0xc4] sm:$0xf0] }
  0x29   : > { %680 = vmatpush.bf16.msra.mxu0 %v6582_v43  ;;  %541 = vperm.xlu2 %9332, %v506_v58   ;;  %v6754_v38 = vor.u32 %v8620_v36, %v6751_v37  ;;  %v8636_v41 = vld [vmem:[%s13586_s8 + $0xc4] sm:$0xf]  ;;  %v6686_v42 = vor.u32 %v8637_v40, %v6685_v39  ;;  %v6687_v43 = vld [vmem:[%s13586_s8 + $0xc8] sm:$0xf0]  ;;  %v8619_v45 = vld [vmem:[%s13586_s8 + $0x34] sm:$0xf0] }
  0x2a   : > { %709 = vmatpush.bf16.msra.mxu1 %v6586_v44  ;;  %967 = vmatpush.bf16.msra.mxu2 %v6694_v30  ;;  %v6741_v44 = vld [vmem:[%s13586_s8 + $0x30] sm:$0xf]  ;;  %v6690_v46 = vor.u32 %v8636_v41, %v6687_v43  ;;  %v8618_v48 = vld [vmem:[%s13586_s8 + $0x34] sm:$0xf]  ;;  %v6743_v49 = vld [vmem:[%s13586_s8 + $0x38] sm:$0xf0] }
  0x2b   : > { %996 = vmatpush.bf16.msra.mxu3 %v6698_v34  ;;  %v6742_v47 = vor.u32 %v8619_v45, %v6741_v44  ;;  %v6746_v50 = vor.u32 %v8618_v48, %v6743_v49  ;;  %v6733_v57 = vld [vmem:[%s13586_s8 + $0x20] sm:$0xf]  ;;  %v8617_v58 = vld [vmem:[%s13586_s8 + $0x24] sm:$0xf0]  ;;  %v8616_v62 = vld [vmem:[%s13586_s8 + $0x24] sm:$0xf] }
  0x2c   : > { %v6734_v61 = vor.u32 %v8617_v58, %v6733_v57  ;;  %v6735_v63 = vld [vmem:[%s13586_s8 + $0x28] sm:$0xf0]  ;;  %v8633_v3 = vld [vmem:[%s13586_s8 + $0xa4] sm:$0xf0]  ;;  %v8632_v4 = vld [vmem:[%s13586_s8 + $0xa4] sm:$0xf] }
  0x2d   : > { %681 = vmatpush.bf16.msra.mxu0 %v6574_v51  ;;  %v6738_v1 = vor.u32 %v8616_v62, %v6735_v63  ;;  %v6671_v6 = vld [vmem:[%s13586_s8 + $0xa8] sm:$0xf0]  ;;  %v6725_v7 = vld [vmem:[%s13586_s8 + $0x10] sm:$0xf]  ;;  %v8615_v8 = vld [vmem:[%s13586_s8 + $0x14] sm:$0xf0] }
  0x2e   : > { %710 = vmatpush.bf16.msra.mxu1 %v6578_v52  ;;  %968 = vmatpush.bf16.msra.mxu2 %v6686_v42  ;;  %v6677_v52 = vld [vmem:[%s13586_s8 + $0xb0] sm:$0xf]  ;;  %v6674_v9 = vor.u32 %v8632_v4, %v6671_v6  ;;  %v6726_v10 = vor.u32 %v8615_v8, %v6725_v7  ;;  %v6727_v12 = vld [vmem:[%s13586_s8 + $0x18] sm:$0xf0]  ;;  %v8631_v15 = vld [vmem:[%s13586_s8 + $0x94] sm:$0xf0] }
  0x2f   : > { %997 = vmatpush.bf16.msra.mxu3 %v6690_v46  ;;  %v8630_v16 = vld [vmem:[%s13586_s8 + $0x94] sm:$0xf]  ;;  %v6663_v19 = vld [vmem:[%s13586_s8 + $0x98] sm:$0xf0]  ;;  %v6717_v20 = vld [vmem:[%s13586_s8] sm:$0xf] }
  0x30   : > { %682 = vmatmul.bf16.vlgmr.msra.gmra.mxu0 %v8592_v53  ;;  %546 = vperm.xlu0 %9330, %v507_v54   ;;  %v8634_v54 = vld [vmem:[%s13586_s8 + $0xb4] sm:$0xf]  ;;  %v8613_v21 = vld [vmem:[%s13586_s8 + $0x4] sm:$0xf0]  ;;  %v6666_v24 = vor.u32 %v8630_v16, %v6663_v19  ;;  %v6719_v27 = vld [vmem:[%s13586_s8 + $0x8] sm:$0xf0] }
  0x31   : > { %711 = vmatmul.bf16.vlgmr.msra.gmra.mxu1 %v8592_v53  ;;  %551 = vperm.xlu1 %9331, %v508_v55   ;;  %v8635_v53 = vld [vmem:[%s13586_s8 + $0xb4] sm:$0xf0]  ;;  %v6718_v25 = vor.u32 %v8613_v21, %v6717_v20  ;;  %v6653_v30 = vld [vmem:[%s13586_s8 + $0x80] sm:$0xf]  ;;  %v8629_v31 = vld [vmem:[%s13586_s8 + $0x84] sm:$0xf0] }
  0x32   : > { %1120 = vmatpush.bf16.msrb.mxu0 %v6774_v0  ;;  %1149 = vmatpush.bf16.msrb.mxu1 %v6778_v2  ;;  %v6678_v55 = vor.u32 %v8635_v53, %v6677_v52  ;;  %v9930_v0 = vld [vmem:[%s13583_s5] ss:$0 sm:$0xff]  ;;  %v6654_v34 = vor.u32 %v8629_v31, %v6653_v30  ;;  %v6655_v36 = vld [vmem:[%s13586_s8 + $0x88] sm:$0xf0]  ;;  %v8658_v41 = vld [vmem:[%s13586_s8 + $0x174] sm:$0xf] }
  0x33   : > { %v6669_v2 = vld [vmem:[%s13586_s8 + $0xa0] sm:$0xf]  ;;  %v6855_v42 = vld [vmem:[%s13586_s8 + $0x178] sm:$0xf0]  ;;  %v6853_v62 = vld [vmem:[%s13586_s8 + $0x170] sm:$0xf] }
  0x34   : > { %969 = vmatpush.bf16.msra.mxu2 %v6678_v55  ;;  %v6670_v5 = vor.u32 %v8633_v3, %v6669_v2  ;;  %v6858_v43 = vor.u32 %v8658_v41, %v6855_v42  ;;  %v8656_v55 = vld [vmem:[%s13586_s8 + $0x164] sm:$0xf]  ;;  %v8659_v63 = vld [vmem:[%s13586_s8 + $0x174] sm:$0xf0]  ;;  %v8677_v30 = vld [vmem:[%s13586_s8 + $0x1f4] sm:$0xf] }
  0x35   : > { %v6854_v2 = vor.u32 %v8659_v63, %v6853_v62  ;;  %v8652_v4 = vld [vmem:[%s13586_s8 + $0x144] sm:$0xf]  ;;  %v8674_v62 = vld [vmem:[%s13586_s8 + $0x1d4] sm:$0xf0]  ;;  %v8673_v63 = vld [vmem:[%s13586_s8 + $0x1d4] sm:$0xf] }
  0x36   : > { %1121 = vmatpush.bf16.msrb.mxu0 %v6766_v11  ;;  %1150 = vmatpush.bf16.msrb.mxu1 %v6770_v14  ;;  %v8614_v11 = vld [vmem:[%s13586_s8 + $0x14] sm:$0xf]  ;;  %v6661_v14 = vld [vmem:[%s13586_s8 + $0x90] sm:$0xf]  ;;  %s13697_s2 = smov (!%p459_p6, %s6545_s2), 11 }
  0x37   : > { %v6730_v13 = vor.u32 %v8614_v11, %v6727_v12  ;;  %v6662_v18 = vor.u32 %v8631_v15, %v6661_v14  ;;  %s462_s23 = sadd.s32 %s9288_s22, %s13697_s2 }
  0x38   : > { %970 = vmatpush.bf16.msra.mxu2 %v6670_v5  ;;  %v6831_v5 = vld [vmem:[%s13586_s8 + $0x148] sm:$0xf0]  ;;  %s6546_s12 = sshll.u32 %s462_s23, 3 }
  0x39   : > { %v6834_v8 = vor.u32 %v8652_v4, %v6831_v5  ;;  %v8648_v4 = vld [vmem:[%s13586_s8 + $0x124] sm:$0xf]  ;;  %v6815_v5 = vld [vmem:[%s13586_s8 + $0x128] sm:$0xf0]  ;;  %s464_s15 = scalar_lea.vmem %s13579_s1, %s6546_s12  ;;  %s13544_s16 = scalar_lea.vmem %s13589_s11, %s6546_s12 }
  0x3a   : > { %1122 = vmatpush.bf16.msrb.mxu0 %v6758_v23  ;;  %1151 = vmatpush.bf16.msrb.mxu1 %v6762_v26  ;;  %v8612_v26 = vld [vmem:[%s13586_s8 + $0x4] sm:$0xf] }
  0x3b   : > { %v6722_v29 = vor.u32 %v8612_v26, %v6719_v27 }
  0x3c   : > { %971 = vmatpush.bf16.msra.mxu2 %v6662_v18 }
  0x3e   : > { %1123 = vmatpush.bf16.msrb.mxu0 %v6750_v35  ;;  %1152 = vmatpush.bf16.msrb.mxu1 %v6754_v38  ;;  %v8628_v35 = vld [vmem:[%s13586_s8 + $0x84] sm:$0xf] }
  0x3f   : > { %v6658_v37 = vor.u32 %v8628_v35, %v6655_v36  ;;  %v8657_v35 = vld [vmem:[%s13586_s8 + $0x164] sm:$0xf0] }
  0x40   : > { %687 = vmatmul.bf16.gmra.mxu0 %v8593_v56  ;;  %972 = vmatpush.bf16.msra.mxu2 %v6654_v34  ;;  %v6845_v34 = vld [vmem:[%s13586_s8 + $0x160] sm:$0xf] }
  0x41   : > { %716 = vmatmul.bf16.gmra.mxu1 %v8593_v56  ;;  %v6679_v56 = vld [vmem:[%s13586_s8 + $0xb8] sm:$0xf0] }
  0x42   : > { %1124 = vmatpush.bf16.msrb.mxu0 %v6742_v47  ;;  %1153 = vmatpush.bf16.msrb.mxu1 %v6746_v50  ;;  %v9198_v50 = vld [vmem:[#allocation2 + $0x4] sm:$0x8] }
  0x44   : > { %1283 = vmatpush.bf16.msrb.mxu2 %v6854_v2 }
  0x46   : > { %1125 = vmatpush.bf16.msrb.mxu0 %v6734_v61  ;;  %1154 = vmatpush.bf16.msrb.mxu1 %v6738_v1  ;;  %v6839_v61 = vld [vmem:[%s13586_s8 + $0x158] sm:$0xf0] }
  0x4a   : > { %1126 = vmatpush.bf16.msrb.mxu0 %v6726_v10  ;;  %1155 = vmatpush.bf16.msrb.mxu1 %v6730_v13 }
  0x4e   : > { %1127 = vmatpush.bf16.msrb.mxu0 %v6718_v25  ;;  %1156 = vmatpush.bf16.msrb.mxu1 %v6722_v29  ;;  %v8678_v29 = vld [vmem:[%s13586_s8 + $0x1f4] sm:$0xf0] }
  0x50   : > { %692 = vmatmul.bf16.gmra.mxu0 %v8594_v59 }
  0x51   : > { %721 = vmatmul.bf16.gmra.mxu1 %v8594_v59 }
  0x60   : > { %697 = vmatmul.bf16.gmra.mxu0 %v8595_v60 }
  0x61   : > { %726 = vmatmul.bf16.gmra.mxu1 %v8595_v60  ;;  %v6682_v60 = vor.u32 %v8634_v54, %v6679_v56  ;;  %v6847_v56 = vld [vmem:[%s13586_s8 + $0x168] sm:$0xf0] }
  0x63   : > { %998 = vmatpush.bf16.msra.mxu3 %v6682_v60  ;;  %v8654_v60 = vld [vmem:[%s13586_s8 + $0x154] sm:$0xf] }
  0x64   : > { %v6842_v1 = vor.u32 %v8654_v60, %v6839_v61  ;;  %v6929_v60 = vld [vmem:[%s13586_s8 + $0x1d0] sm:$0xf] }
  0x65   : > { %v6930_v2 = vor.u32 %v8674_v62, %v6929_v60  ;;  %v8667_v62 = vld [vmem:[%s13586_s8 + $0x1a4] sm:$0xf] }
  0x67   : > { %999 = vmatpush.bf16.msra.mxu3 %v6674_v9 }
  0x6b   : > { %1000 = vmatpush.bf16.msra.mxu3 %v6666_v24 }
  0x6f   : > { %1001 = vmatpush.bf16.msra.mxu3 %v6658_v37  ;;  %v6947_v37 = vld [vmem:[%s13586_s8 + $0x1f8] sm:$0xf0] }
  0x70   : > { %v6950_v41 = vor.u32 %v8677_v30, %v6947_v37 }
  0x72   : > { %1556 = vmatpush.bf16.msra.mxu1 %v6950_v41 }
  0x73   : > { %1312 = vmatpush.bf16.msrb.mxu3 %v6858_v43  ;;  %v6937_v43 = vld [vmem:[%s13586_s8 + $0x1e0] sm:$0xf] }
  0x7b   : > { %v10036_v57 = vpop.permute.xlu2 %536 }
  0x7c   : > { %13623 = vst [vmem:[#allocation7_spill] sm:$0xff] %v10036_v57 }
  0x83   : > { %v10063_v18 = vpop.permute.xlu2 %541 }
  0x84   : > { %13624 = vst [vmem:[#allocation8_spill] sm:$0xff] %v10063_v18 }
  0x92   : > { %v9901_v51 = vpop.permute.xlu0 %516  ;;  %v10007_v39 = vpop.permute.xlu1 %526 }
  0x93   : > { %13621 = vst [vmem:[#allocation5_spill] sm:$0xff] %v9901_v51 }
  0x9a   : > { %v9975_v23 = vpop.permute.xlu0 %521  ;;  %v10017_v47 = vpop.permute.xlu1 %531 }
  0x9b   : > { %13622 = vst [vmem:[#allocation6_spill] sm:$0xff] %v9975_v23 }
  0xad   : > { %v683_v59 = vpop.f32.mrf.mxu0 }
  0xae   : > { %v738_v17 = vadd.f32 %v9930_v0, %v683_v59  ;;  %v6850_v59 = vor.u32 %v8656_v55, %v6847_v56 }
  0xb0   : > { %v9991_v32 = vmul.f32 %v738_v17, %v9901_v51  ;;  %1313 = vmatpush.bf16.msrb.mxu3 %v6850_v59  ;;  %v8655_v59 = vld [vmem:[%s13586_s8 + $0x154] sm:$0xf0] }
  0xb4   : > { %1314 = vmatpush.bf16.msrb.mxu3 %v6842_v1  ;;  %v6931_v1 = vld [vmem:[%s13586_s8 + $0x1d8] sm:$0xf0] }
  0xb5   : > { %v685_v22 = vpop.f32.mrf.mxu0 }
  0xb6   : > { %v739_v28 = vadd.f32 %v9930_v0, %v685_v22 }
  0xb8   : > { %v9994_v33 = vmul.f32 %v739_v28, %v9975_v23  ;;  %1315 = vmatpush.bf16.msrb.mxu3 %v6834_v8  ;;  %v6945_v28 = vld [vmem:[%s13586_s8 + $0x1f0] sm:$0xf] }
  0xb9   : > { %v6946_v36 = vor.u32 %v8678_v29, %v6945_v28  ;;  %v10162_v28 = vpop.permute.xlu1 %551  ;;  %v10164_v29 = vpop.permute.xlu0 %546 }
  0xba   : > { %v10004_v38 = vpack.c.bf16 %v9994_v33, %v9991_v32  ;;  %13626 = vst [vmem:[#allocation10_spill] sm:$0xff] %v10162_v28 }
  0xbb   : > { %1527 = vmatpush.bf16.msra.mxu0 %v6946_v36  ;;  %13627 = vst [vmem:[#allocation11_spill] sm:$0xff] %v10164_v29 }
  0xbc   : > { %9152 = vst [vmem:[#allocation2 + $0x8] sm:$0xff] %v10004_v38  }
  0xbd   : > { %v688_v40 = vpop.f32.mrf.mxu0 }
  0xbe   : > { %v740_v44 = vadd.f32 %v9930_v0, %v688_v40  ;;  %v6846_v40 = vor.u32 %v8657_v35, %v6845_v34 }
  0xc0   : > { %v10020_v48 = vmul.f32 %v740_v44, %v10007_v39  ;;  %1284 = vmatpush.bf16.msrb.mxu2 %v6846_v40  ;;  %v8676_v44 = vld [vmem:[%s13586_s8 + $0x1e4] sm:$0xf0]  ;;  %v6913_v40 = vld [vmem:[%s13586_s8 + $0x1b0] sm:$0xf] }
  0xc3   : > { %v9269_v52 = vld [vmem:[#allocation2 + $0x4] sm:$0xf0]  }
  0xc4   : > { %v9199_v54 = vor.u32 %v9269_v52, %v9198_v50  ;;  %v6823_v50 = vld [vmem:[%s13586_s8 + $0x138] sm:$0xf0]  ;;  %v6938_v52 = vor.u32 %v8676_v44, %v6937_v43  ;;  %v8670_v43 = vld [vmem:[%s13586_s8 + $0x1b4] sm:$0xf0]  ;;  %v8669_v44 = vld [vmem:[%s13586_s8 + $0x1b4] sm:$0xf] }
  0xc5   : > { %v690_v45 = vpop.f32.mrf.mxu0 }
  0xc6   : > { %v741_v46 = vadd.f32 %v9930_v0, %v690_v45  ;;  %v838_v3 = vshrl.u32 %v9199_v54, 16  ;;  %v841_v6 = vshll.u32 %v9199_v54, 16  ;;  %v1027_v10 = vrot.slane %v9199_v54, 3  ;;  %v8675_v45 = vld [vmem:[%s13586_s8 + $0x1e4] sm:$0xf]  ;;  %1528 = vmatpush.bf16.msra.mxu0 %v6938_v52 }
  0xc7   : > { %v6939_v54 = vld [vmem:[%s13586_s8 + $0x1e8] sm:$0xf0]  ;;  %v8651_v52 = vld [vmem:[%s13586_s8 + $0x134] sm:$0xf0] }
  0xc8   : > { %v10023_v49 = vmul.f32 %v741_v46, %v10017_v47  ;;  %v840_v11 = vrot.slane %v838_v3, 3  ;;  %v843_v14 = vrot.slane %v841_v6, 4  ;;  %v8650_v46 = vld [vmem:[%s13586_s8 + $0x134] sm:$0xf]  ;;  %v6942_v56 = vor.u32 %v8675_v45, %v6939_v54  ;;  %v6921_v6 = vld [vmem:[%s13586_s8 + $0x1c0] sm:$0xf] }
  0xc9   : > { %v6826_v55 = vor.u32 %v8650_v46, %v6823_v50  ;;  %v6934_v3 = vor.u32 %v8673_v63, %v6931_v1  ;;  %v6915_v45 = vld [vmem:[%s13586_s8 + $0x1b8] sm:$0xf0]  ;;  %v6914_v46 = vor.u32 %v8670_v43, %v6913_v40  ;;  %v6905_v54 = vld [vmem:[%s13586_s8 + $0x1a0] sm:$0xf]  ;;  %v6907_v63 = vld [vmem:[%s13586_s8 + $0x1a8] sm:$0xf0] }
  0xca   : > { %v10027_v53 = vpack.c.bf16 %v10023_v49, %v10020_v48  ;;  %v844_v25 = vor.u32 %v843_v14, %v840_v11  ;;  %1557 = vmatpush.bf16.msra.mxu1 %v6942_v56  ;;  %v8671_v11 = vld [vmem:[%s13586_s8 + $0x1c4] sm:$0xf]  ;;  %v6923_v14 = vld [vmem:[%s13586_s8 + $0x1c8] sm:$0xf0]  ;;  %1529 = vmatpush.bf16.msra.mxu0 %v6930_v2  ;;  %v6918_v50 = vor.u32 %v8669_v44, %v6915_v45  ;;  %v6807_v56 = vld [vmem:[%s13586_s8 + $0x118] sm:$0xf0] }
  0xcb   : > { %1316 = vmatpush.bf16.msrb.mxu3 %v6826_v55  ;;  %v8646_v55 = vld [vmem:[%s13586_s8 + $0x114] sm:$0xf]  ;;  %v6813_v1 = vld [vmem:[%s13586_s8 + $0x120] sm:$0xf]  ;;  %v6910_v2 = vor.u32 %v8667_v62, %v6907_v63  ;;  %v6891_v40 = vld [vmem:[%s13586_s8 + $0x188] sm:$0xf0] }
  0xcc   : > { %9153 = vst [vmem:[#allocation2 + $0x10] sm:$0xff] %v10027_v53   ;;  %v6810_v60 = vor.u32 %v8646_v55, %v6807_v56  ;;  %v8645_v55 = vld [vmem:[%s13586_s8 + $0x104] sm:$0xf0]  ;;  %v7027_v62 = vld [vmem:[%s13586_s8 + $0x278] sm:$0xf0] }
  0xcd   : > { %v693_v58 = vpop.f32.mrf.mxu0  ;;  %v8691_v63 = vld [vmem:[%s13586_s8 + $0x264] sm:$0xf] }
  0xce   : > { %v742_v9 = vadd.f32 %v9930_v0, %v693_v58  ;;  %v6837_v58 = vld [vmem:[%s13586_s8 + $0x150] sm:$0xf]  ;;  %1558 = vmatpush.bf16.msra.mxu1 %v6934_v3  ;;  %v8649_v3 = vld [vmem:[%s13586_s8 + $0x124] sm:$0xf0] }
  0xcf   : > { %v6838_v61 = vor.u32 %v8655_v59, %v6837_v58  ;;  %v8668_v59 = vld [vmem:[%s13586_s8 + $0x1a4] sm:$0xf0] }
  0xd0   : > { %v10069_v22 = vmul.f32 %v742_v9, %v10036_v57  ;;  %v6818_v9 = vor.u32 %v8648_v4, %v6815_v5  ;;  %v6897_v4 = vld [vmem:[%s13586_s8 + $0x190] sm:$0xf]  ;;  %v8666_v5 = vld [vmem:[%s13586_s8 + $0x194] sm:$0xf0] }
  0xd1   : > { %1285 = vmatpush.bf16.msrb.mxu2 %v6838_v61  ;;  %v6906_v61 = vor.u32 %v8668_v59, %v6905_v54  ;;  %v6797_v54 = vld [vmem:[%s13586_s8 + $0x100] sm:$0xf] }
  0xd2   : > { %1317 = vmatpush.bf16.msrb.mxu3 %v6818_v9  ;;  %v6898_v9 = vor.u32 %v8666_v5, %v6897_v4 }
  0xd3   : > { %v10056_v7 = vld [vmem:[#allocation2 + $0xc] sm:$0xff]  }
  0xd4   : > { %v1028_v13 = vrot.slane %v10056_v7, 3  ;;  %v846_v15 = vshrl.u32 %v10056_v7, 16  ;;  %v849_v16 = vshll.u32 %v10056_v7, 16  ;;  %v6829_v7 = vld [vmem:[%s13586_s8 + $0x140] sm:$0xf] }
  0xd5   : > { %v695_v12 = vpop.f32.mrf.mxu0 }
  0xd6   : > { %v743_v17 = vadd.f32 %v9930_v0, %v695_v12  ;;  %v1029_v19 = vsel %vm1026_vm0, %v1027_v10, %v1028_v13  ;;  %v848_v20 = vrot.slane %v846_v15, 3  ;;  %v851_v21 = vrot.slane %v849_v16, 4  ;;  %v8672_v10 = vld [vmem:[%s13586_s8 + $0x1c4] sm:$0xf0]  ;;  %1318 = vmatpush.bf16.msrb.mxu3 %v6810_v60 }
  0xd7   : > { %1128 = vmatmul.bf16.vlgmr.msrb.gmra.mxu0 %v1029_v19  ;;  %1157 = vmatmul.bf16.vlgmr.msrb.gmra.mxu1 %v1029_v19 }
  0xd8   : > { %v10072_v24 = vmul.f32 %v743_v17, %v10063_v18  ;;  %v10074_v26 = vor.u32 %v851_v21, %v848_v20  ;;  %v6922_v20 = vor.u32 %v8672_v10, %v6921_v6  ;;  %v6814_v6 = vor.u32 %v8649_v3, %v6813_v1  ;;  %v8665_v10 = vld [vmem:[%s13586_s8 + $0x194] sm:$0xf] }
  0xda   : > { %13625 = vst [vmem:[#allocation9_spill] sm:$0xff] %v10072_v24  ;;  %v10078_v27 = vpack.c.bf16 %v10072_v24, %v10069_v22  ;;  %v853_v31 = vsel %vm836_vm1, %v844_v25, %v10074_v26  ;;  %v6926_v25 = vor.u32 %v8671_v11, %v6923_v14  ;;  %1530 = vmatpush.bf16.msra.mxu0 %v6922_v20  ;;  %v6899_v11 = vld [vmem:[%s13586_s8 + $0x198] sm:$0xf0] }
  0xdb   : > { %973 = vmatmul.bf16.vlgmr.msra.gmra.mxu2 %v853_v31  ;;  %1002 = vmatmul.bf16.vlgmr.msra.gmra.mxu3 %v853_v31 }
  0xdc   : > { %9154 = vst [vmem:[#allocation2 + $0x18] sm:$0xff] %v10078_v27   ;;  %1559 = vmatpush.bf16.msra.mxu1 %v6926_v25 }
  0xdd   : > { %v698_v42 = vpop.f32.mrf.mxu0 }
  0xde   : > { %v744_v12 = vadd.f32 %v9930_v0, %v698_v42  ;;  %1531 = vmatpush.bf16.msra.mxu0 %v6914_v46 }
  0xe0   : > { %v10172_v35 = vmul.f32 %v744_v12, %v10164_v29  ;;  %1560 = vmatpush.bf16.msra.mxu1 %v6918_v50  ;;  %v8644_v12 = vld [vmem:[%s13586_s8 + $0x104] sm:$0xf]  ;;  %v7075_v29 = vld [vmem:[%s13587_s9 + $0x48] sm:$0xf0] }
  0xe2   : > { %13628 = vst [vmem:[#allocation12_spill] sm:$0xff] %v10172_v35  ;;  %1532 = vmatpush.bf16.msra.mxu0 %v6906_v61  ;;  %v8693_v61 = vld [vmem:[%s13586_s8 + $0x274] sm:$0xf] }
  0xe3   : > { %v10146_v8 = vld [vmem:[#allocation2 + $0x14] sm:$0xff]   ;;  %v7030_v1 = vor.u32 %v8693_v61, %v7027_v62  ;;  %v6987_v61 = vld [vmem:[%s13586_s8 + $0x228] sm:$0xf0] }
  0xe4   : > { %v1030_v16 = vrot.slane %v10146_v8, 3  ;;  %v855_v17 = vshrl.u32 %v10146_v8, 16  ;;  %v858_v19 = vshll.u32 %v10146_v8, 16  ;;  %1561 = vmatpush.bf16.msra.mxu1 %v6910_v2 }
  0xe5   : > { %v700_v15 = vpop.f32.mrf.mxu0 }
  0xe6   : > { %v745_v21 = vadd.f32 %v9930_v0, %v700_v15  ;;  %v1031_v30 = vsel %vm1026_vm0, %v1028_v13, %v1030_v16  ;;  %v857_v31 = vrot.slane %v855_v17, 3  ;;  %v860_v34 = vrot.slane %v858_v19, 4  ;;  %v8653_v13 = vld [vmem:[%s13586_s8 + $0x144] sm:$0xf0]  ;;  %v6799_v17 = vld [vmem:[%s13586_s8 + $0x108] sm:$0xf0]  ;;  %1533 = vmatpush.bf16.msra.mxu0 %v6898_v9 }
  0xe7   : > { %1133 = vmatmul.bf16.gmra.mxu0 %v1031_v30  ;;  %1162 = vmatmul.bf16.gmra.mxu1 %v1031_v30  ;;  %v6830_v42 = vor.u32 %v8653_v13, %v6829_v7  ;;  %v6902_v15 = vor.u32 %v8665_v10, %v6899_v11  ;;  %v9039_v19 = vunpack.c.h.b16 %v10078_v27  ;;  %v6802_v25 = vor.u32 %v8644_v12, %v6799_v17  ;;  %v6805_v30 = vld [vmem:[%s13586_s8 + $0x110] sm:$0xf]  ;;  %v8664_v7 = vld [vmem:[%s13586_s8 + $0x184] sm:$0xf0]  ;;  %v8663_v13 = vld [vmem:[%s13586_s8 + $0x184] sm:$0xf]  ;;  %v10296_v11 = vpop.f32.mrf.mxu1 }
  0xe8   : > { %v10175_v0 = vmul.f32 %v745_v21, %v10162_v28  ;;  %v10177_v36 = vor.u32 %v860_v34, %v857_v31  ;;  %v8647_v31 = vld [vmem:[%s13586_s8 + $0x114] sm:$0xf0]  ;;  %v6889_v34 = vld [vmem:[%s13586_s8 + $0x180] sm:$0xf]  ;;  %v6894_v46 = vor.u32 %v8663_v13, %v6891_v40  ;;  %v8703_v28 = vld [vmem:[%s13587_s9 + $0x44] sm:$0xf] }
  0xe9   : > { %1286 = vmatpush.bf16.msrb.mxu2 %v6830_v42  ;;  %1319 = vmatpush.bf16.msrb.mxu3 %v6802_v25  ;;  %v6890_v42 = vor.u32 %v8664_v7, %v6889_v34  ;;  %v7011_v25 = vld [vmem:[%s13586_s8 + $0x258] sm:$0xf0]  ;;  %v8694_v34 = vld [vmem:[%s13586_s8 + $0x274] sm:$0xf0]  ;;  %v7003_v7 = vld [vmem:[%s13586_s8 + $0x248] sm:$0xf0] }
  0xea   : > { %13629 = vst [vmem:[#allocation13_spill] sm:$0xff] %v10175_v0  ;;  %v9026_v37 = vpack.c.bf16 %v10175_v0, %v10172_v35  ;;  %v862_v41 = vsel %vm836_vm1, %v10074_v26, %v10177_v36  ;;  %v6821_v26 = vld [vmem:[%s13586_s8 + $0x130] sm:$0xf]  ;;  %1562 = vmatpush.bf16.msra.mxu1 %v6902_v15 }
  0xeb   : > { %978 = vmatmul.bf16.gmra.mxu2 %v862_v41  ;;  %1007 = vmatmul.bf16.gmra.mxu3 %v862_v41  ;;  %v6822_v58 = vor.u32 %v8651_v52, %v6821_v26 }
  0xec   : > { %9155 = vst [vmem:[#allocation2 + $0x20] sm:$0xff] %v9026_v37   ;;  %v6806_v37 = vor.u32 %v8647_v31, %v6805_v30  ;;  %1534 = vmatpush.bf16.msra.mxu0 %v6890_v42  ;;  %v7025_v30 = vld [vmem:[%s13586_s8 + $0x270] sm:$0xf] }
  0xed   : > { %1287 = vmatpush.bf16.msrb.mxu2 %v6822_v58  ;;  %v6798_v58 = vor.u32 %v8645_v55, %v6797_v54  ;;  %1745 = vmatpush.bf16.msra.mxu3 %v7030_v1  ;;  %v7026_v13 = vor.u32 %v8694_v34, %v7025_v30  ;;  %v8684_v30 = vld [vmem:[%s13586_s8 + $0x224] sm:$0xf0] }
  0xee   : > { %1563 = vmatpush.bf16.msra.mxu1 %v6894_v46 }
  0xef   : > { %v10322_v42 = vpop.f32.mrf.mxu1 }
  0xf1   : > { %1288 = vmatpush.bf16.msrb.mxu2 %v6814_v6 }
  0xf3   : > { %v10247_v14 = vld [vmem:[#allocation2 + $0x20] sm:$0xff]  }
  0xf4   : > { %v829_v20 = vunpack.c.l.b16 %v10247_v14  ;;  %v830_v21 = vunpack.c.h.b16 %v10247_v14  ;;  %v778_v56 = vld [vmem:[#allocation2 + $0x24] sm:$0x7] }
  0xf5   : > { %1289 = vmatpush.bf16.msrb.mxu2 %v6806_v37  ;;  %v8687_v37 = vld [vmem:[%s13586_s8 + $0x244] sm:$0xf] }
  0xf6   : > { %v834_v41 = vpack.c.b16 %v829_v20, %v9039_v19  ;;  %v835_v60 = vpack.c.b16 %v830_v21, %v830_v21  ;;  %v10300_v19 = vld [vmem:[#allocation2 + $0x10] sm:$0xff]  ;;  %v1410_v20 = vshll.u32 %v10004_v38, 16 }
  0xf7   : > { %v8689_v21 = vld [vmem:[%s13586_s8 + $0x254] sm:$0xf]  ;;  %v1415_v40 = vshll.u32 %v10300_v19, 16  ;;  %v10332_v55 = vpop.f32.mrf.mxu1 }
  0xf8   : > { %v1032_v43 = vrot.slane %v834_v41, 3  ;;  %v864_v44 = vshrl.u32 %v834_v41, 16  ;;  %v867_v45 = vshll.u32 %v834_v41, 16  ;;  %v873_v3 = vshrl.u32 %v835_v60, 16 }
  0xf9   : > { %1290 = vmatpush.bf16.msrb.mxu2 %v6798_v58  ;;  %v876_v4 = vshll.u32 %v835_v60, 16  ;;  %v7014_v31 = vor.u32 %v8689_v21, %v7011_v25  ;;  %v7006_v41 = vor.u32 %v8687_v37, %v7003_v7  ;;  %v8685_v58 = vld [vmem:[%s13586_s8 + $0x234] sm:$0xf]  ;;  %v8690_v60 = vld [vmem:[%s13586_s8 + $0x254] sm:$0xf0] }
  0xfa   : > { %v1033_v50 = vsel %vm1026_vm0, %v1030_v16, %v1032_v43  ;;  %v866_v26 = vrot.slane %v864_v44, 3  ;;  %v869_v52 = vrot.slane %v867_v45, 4  ;;  %v1024_v16 = vunpack.c.l.b16 %v778_v56  ;;  %v10334_v56 = vld [vmem:[#allocation2 + $0x18] sm:$0xff] }
  0xfb   : > { %1138 = vmatmul.bf16.gmra.mxu0 %v1033_v50  ;;  %1167 = vmatmul.bf16.gmra.mxu1 %v1033_v50  ;;  %v875_v9 = vrot.slane %v873_v3, 3  ;;  %v878_v10 = vrot.slane %v876_v4, 4  ;;  %v1408_v44 = vshrl.u32 %v10004_v38, 16  ;;  %v1417_v45 = vrot.slane %v1415_v40, 1  ;;  %v8686_v25 = vld [vmem:[%s13586_s8 + $0x234] sm:$0xf0] }
  0xfc   : > { %v870_v59 = vor.u32 %v869_v52, %v866_v26  ;;  %v1025_v2 = vpack.c.b16 %v1024_v16, %v1024_v16  ;;  %v7017_v26 = vld [vmem:[%s13586_s8 + $0x260] sm:$0xf]  ;;  %v8692_v52 = vld [vmem:[%s13586_s8 + $0x264] sm:$0xf0]  ;;  %v6971_v40 = vld [vmem:[%s13586_s8 + $0x208] sm:$0xf0] }
  0xfd   : > { %v879_v15 = vor.u32 %v878_v10, %v875_v9  ;;  %1716 = vmatpush.bf16.msra.mxu2 %v7026_v13  ;;  %v7018_v54 = vor.u32 %v8692_v52, %v7017_v26  ;;  %v8688_v9 = vld [vmem:[%s13586_s8 + $0x244] sm:$0xf0]  ;;  %v8679_v13 = vld [vmem:[%s13586_s8 + $0x204] sm:$0xf] }
  0xfe   : > { %v871_v8 = vsel %vm836_vm1, %v10177_v36, %v870_v59  ;;  %v7019_v36 = vld [vmem:[%s13586_s8 + $0x268] sm:$0xf0]  ;;  %v1034_v6 = vrot.slane %v1025_v2, 3  ;;  %v1365_v52 = vld [vmem:[#allocation2 + $0x28] sm:$0x1] }
  0xff   : > { %983 = vmatmul.bf16.gmra.mxu2 %v871_v8  ;;  %1012 = vmatmul.bf16.gmra.mxu3 %v871_v8  ;;  %v7022_v5 = vor.u32 %v8691_v63, %v7019_v36  ;;  %v880_v17 = vsel %vm836_vm1, %v870_v59, %v879_v15  ;;  %v6995_v59 = vld [vmem:[%s13586_s8 + $0x238] sm:$0xf0]  ;;  %v7009_v8 = vld [vmem:[%s13586_s8 + $0x250] sm:$0xf]  ;;  %v1423_v63 = vshll.u32 %v10334_v56, 16  ;;  %v1419_v36 = vshrl.u32 %v10300_v19, 16  ;;  %v10358_v3 = vpop.f32.mrf.mxu1 }
 0x100   : > { %v1035_v12 = vsel %vm1026_vm0, %v1032_v43, %v1034_v6  ;;  %v1412_v43 = vrot.slane %v1410_v20, 1  ;;  %v6998_v16 = vor.u32 %v8685_v58, %v6995_v59  ;;  %v7010_v62 = vor.u32 %v8690_v60, %v7009_v8  ;;  %v7001_v6 = vld [vmem:[%s13586_s8 + $0x240] sm:$0xf]  ;;  %v8681_v15 = vld [vmem:[%s13586_s8 + $0x214] sm:$0xf] }
 0x101   : > { %1746 = vmatpush.bf16.msra.mxu3 %v7022_v5  ;;  %1717 = vmatpush.bf16.msra.mxu2 %v7018_v54  ;;  %v1425_v2 = vrot.slane %v1423_v63, 1  ;;  %v1421_v4 = vor.u32 %v1419_v36, %v1417_v45  ;;  %v7002_v10 = vor.u32 %v8688_v9, %v7001_v6  ;;  %v6993_v20 = vld [vmem:[%s13586_s8 + $0x230] sm:$0xf]  ;;  %v6969_v54 = vld [vmem:[%s13586_s8 + $0x200] sm:$0xf] }
 0x102   : > { %v1413_v46 = vor.u32 %v1412_v43, %v1408_v44  ;;  %v6994_v34 = vor.u32 %v8686_v25, %v6993_v20  ;;  %v1427_v43 = vshrl.u32 %v10334_v56, 16  ;;  %v8680_v58 = vld [vmem:[%s13586_s8 + $0x204] sm:$0xf0] }
 0x103   : > { %v1426_v5 = vsel %vm1406_vm2, %v1421_v4, %v1425_v2  ;;  %v6970_v60 = vor.u32 %v8680_v58, %v6969_v54 }
 0x104   : > { %v1418_v50 = vsel %vm1406_vm2, %v1413_v46, %v1417_v45  ;;  %v6974_v45 = vor.u32 %v8679_v13, %v6971_v40  ;;  %v8682_v46 = vld [vmem:[%s13586_s8 + $0x214] sm:$0xf0] }
 0x105   : > { %1747 = vmatpush.bf16.msra.mxu3 %v7014_v31  ;;  %1718 = vmatpush.bf16.msra.mxu2 %v7010_v62 }
 0x107   : > { %v10389_v31 = vpop.f32.mrf.mxu1 }
 0x108   : > { %13630 = vst [vmem:[#allocation14_spill] sm:$0xff] %v10389_v31  ;;  %v7078_v31 = vor.u32 %v8703_v28, %v7075_v29  ;;  %v8701_v28 = vld [vmem:[%s13587_s9 + $0x34] sm:$0xf] }
 0x109   : > { %1748 = vmatpush.bf16.msra.mxu3 %v7006_v41  ;;  %1719 = vmatpush.bf16.msra.mxu2 %v7002_v10  ;;  %v6977_v41 = vld [vmem:[%s13586_s8 + $0x210] sm:$0xf] }
 0x10a   : > { %v6978_v26 = vor.u32 %v8682_v46, %v6977_v41 }
 0x10b   : > { %1143 = vmatmul.bf16.gmra.mxu0 %v1035_v12  ;;  %1172 = vmatmul.bf16.gmra.mxu1 %v1035_v12  ;;  %v10367_v12 = vld [vmem:[#allocation2 + $0x20] sm:$0xff] }
 0x10c   : > { %v1431_v37 = vshll.u32 %v10367_v12, 16  ;;  %v1435_v62 = vshrl.u32 %v10367_v12, 16 }
 0x10d   : > { %1749 = vmatpush.bf16.msra.mxu3 %v6998_v16  ;;  %1720 = vmatpush.bf16.msra.mxu2 %v6994_v34  ;;  %v1400_v16 = vunpack.c.l.b16 %v1365_v52 }
 0x10e   : > { %v1433_v44 = vrot.slane %v1431_v37, 1 }
 0x10f   : > { %988 = vmatmul.bf16.gmra.mxu2 %v880_v17  ;;  %1017 = vmatmul.bf16.gmra.mxu3 %v880_v17  ;;  %v6979_v17 = vld [vmem:[%s13586_s8 + $0x218] sm:$0xf0]  ;;  %v10412_v8 = vpop.f32.mrf.mxu1 }
 0x110   : > { %v6982_v21 = vor.u32 %v8681_v15, %v6979_v17  ;;  %13631 = vst [vmem:[#allocation15_spill] sm:$0xff] %v10412_v8  ;;  %v1624_v15 = vrot.slane %v10300_v19, 1  ;;  %v1626_v19 = vrot.slane %v10334_v56, 1  ;;  %v1628_v56 = vrot.slane %v10367_v12, 1 }
 0x112   : > { %v1627_v41 = vsel %vm1622_vm3, %v1624_v15, %v1626_v19 }
 0x117   : > { %v10420_v63 = vpop.f32.mrf.mxu1 }
 0x118   : > { %13632 = vst [vmem:[#allocation16_spill] sm:$0xff] %v10420_v63 }
 0x11b   : > { %1535 = vmatmul.bf16.vlgmr.msra.gmra.mxu0 %v1418_v50  ;;  %1564 = vmatmul.bf16.vlgmr.msra.gmra.mxu1 %v1418_v50  ;;  %v1429_v50 = vor.u32 %v1427_v43, %v1425_v2 }
 0x11d   : > { %v1434_v59 = vsel %vm1406_vm2, %v1429_v50, %v1433_v44 }
 0x11f   : > { %1291 = vmatmul.bf16.vlgmr.msrb.gmra.mxu2 %v10004_v38  ;;  %1320 = vmatmul.bf16.vlgmr.msrb.gmra.mxu3 %v10004_v38  ;;  %v8683_v38 = vld [vmem:[%s13586_s8 + $0x224] sm:$0xf]  ;;  %v10423_v4 = vpop.f32.mrf.mxu1 }
 0x120   : > { %v6990_v1 = vor.u32 %v8683_v38, %v6987_v61  ;;  %v10416_v38 = vpack.c.b16 %v1400_v16, %v1400_v16  ;;  %13633 = vst [vmem:[#allocation17_spill] sm:$0xff] %v10423_v4  ;;  %v1629_v16 = vsel %vm1622_vm3, %v1626_v19, %v1628_v56 }
 0x122   : > { %1750 = vmatpush.bf16.msra.mxu3 %v6990_v1  ;;  %v1439_v61 = vshll.u32 %v10416_v38, 16  ;;  %v1437_v1 = vor.u32 %v1435_v62, %v1433_v44  ;;  %v1630_v12 = vrot.slane %v10416_v38, 1 }
 0x124   : > { %v1441_v36 = vrot.slane %v1439_v61, 1 }
 0x126   : > { %1751 = vmatpush.bf16.msra.mxu3 %v6982_v21  ;;  %v1442_v2 = vsel %vm1406_vm2, %v1437_v1, %v1441_v36 }
 0x12a   : > { %1752 = vmatpush.bf16.msra.mxu3 %v6974_v45 }
 0x12b   : > { %1540 = vmatmul.bf16.gmra.mxu0 %v1426_v5  ;;  %1569 = vmatmul.bf16.gmra.mxu1 %v1426_v5  ;;  %v9161_v5 = vld [vmem:[#allocation2 + $0x8] sm:$0xe] }
 0x12f   : > { %1296 = vmatmul.bf16.gmra.mxu2 %v10027_v53  ;;  %1325 = vmatmul.bf16.gmra.mxu3 %v10027_v53  ;;  %v6985_v53 = vld [vmem:[%s13586_s8 + $0x220] sm:$0xf] }
 0x130   : > { %v6986_v7 = vor.u32 %v8684_v30, %v6985_v53 }
 0x132   : > { %1721 = vmatpush.bf16.msra.mxu2 %v6986_v7 }
 0x136   : > { %1722 = vmatpush.bf16.msra.mxu2 %v6978_v26 }
 0x13a   : > { %1723 = vmatpush.bf16.msra.mxu2 %v6970_v60 }
 0x13b   : > { %1545 = vmatmul.bf16.gmra.mxu0 %v1434_v59  ;;  %1574 = vmatmul.bf16.gmra.mxu1 %v1434_v59 }
 0x13f   : > { %1301 = vmatmul.bf16.gmra.mxu2 %v10078_v27  ;;  %1330 = vmatmul.bf16.gmra.mxu3 %v10078_v27  ;;  %v9160_v27 = vld [vmem:[#allocation2 + $0x8] sm:$0xf0] }
 0x140   : > { %v9162_v10 = vor.u32 %v9161_v5, %v9160_v27 }
 0x142   : > { %v1623_v17 = vrot.slane %v9162_v10, 1 }
 0x144   : > { %v1625_v20 = vsel %vm1622_vm3, %v1623_v17, %v1624_v15 }
 0x14b   : > { %1550 = vmatmul.bf16.gmra.mxu0 %v1442_v2  ;;  %1579 = vmatmul.bf16.gmra.mxu1 %v1442_v2 }
 0x14f   : > { %1306 = vmatmul.bf16.gmra.mxu2 %v10247_v14  ;;  %1335 = vmatmul.bf16.gmra.mxu3 %v10247_v14 }
 0x154   : > { %v1129_v6 = vpop.f32.mrf.mxu0  ;;  %v1158_v9 = vpop.f32.mrf.mxu1 }
 0x15c   : > { %v10429_v34 = vpop.f32.mrf.mxu0  ;;  %v10431_v14 = vpop.f32.mrf.mxu1 }
 0x15e   : > { %v974_v21 = vpop.f32.mrf.mxu2  ;;  %v1003_v25 = vpop.f32.mrf.mxu3 }
 0x15f   : > { %1724 = vmatmul.bf16.vlgmr.msra.gmra.mxu2 %v1625_v20  ;;  %1753 = vmatmul.bf16.vlgmr.msra.gmra.mxu3 %v1625_v20  ;;  %v1130_v53 = vadd.f32 %v1129_v6, %v974_v21  ;;  %v1159_v30 = vadd.f32 %v1158_v9, %v1003_v25  ;;  %v1631_v6 = vsel %vm1622_vm3, %v1628_v56, %v1630_v12  ;;  %v7097_v56 = vld [vmem:[%s13587_s9 + $0x70] sm:$0xf]  ;;  %v8708_v12 = vld [vmem:[%s13587_s9 + $0x64] sm:$0xf0] }
 0x164   : > { %v1134_v13 = vpop.f32.mrf.mxu0  ;;  %v1163_v40 = vpop.f32.mrf.mxu1 }
 0x166   : > { %v10433_v37 = vpop.f32.mrf.mxu2  ;;  %v10435_v7 = vpop.f32.mrf.mxu3 }
 0x167   : > { %v1161_v18 = vadd.f32 %v10431_v14, %v10435_v7 }
 0x16c   : > { %v10439_v50 = vpop.f32.mrf.mxu0  ;;  %v10441_v26 = vpop.f32.mrf.mxu1 }
 0x16e   : > { %v979_v43 = vpop.f32.mrf.mxu2  ;;  %v1008_v44 = vpop.f32.mrf.mxu3 }
 0x16f   : > { %1729 = vmatmul.bf16.gmra.mxu2 %v1627_v41  ;;  %1758 = vmatmul.bf16.gmra.mxu3 %v1627_v41  ;;  %v1135_v45 = vadd.f32 %v1134_v13, %v979_v43  ;;  %v1164_v46 = vadd.f32 %v1163_v40, %v1008_v44 }
 0x176   : > { %v10443_v52 = vpop.f32.mrf.mxu2  ;;  %v10445_v54 = vpop.f32.mrf.mxu3 }
 0x178   : > { %v1139_v58 = vpop.f32.mrf.mxu0  ;;  %v1168_v59 = vpop.f32.mrf.mxu1 }
 0x17f   : > { %1734 = vmatmul.bf16.gmra.mxu2 %v1629_v16  ;;  %1763 = vmatmul.bf16.gmra.mxu3 %v1629_v16 }
 0x180   : > { %v10449_v36 = vpop.f32.mrf.mxu0  ;;  %v10451_v2 = vpop.f32.mrf.mxu1 }
 0x182   : > { %v984_v60 = vpop.f32.mrf.mxu2  ;;  %v1013_v61 = vpop.f32.mrf.mxu3 }
 0x183   : > { %v1140_v62 = vadd.f32 %v1139_v58, %v984_v60  ;;  %v1169_v1 = vadd.f32 %v1168_v59, %v1013_v61  ;;  %v8710_v58 = vld [vmem:[%s13587_s9 + $0x74] sm:$0xf0] }
 0x184   : > { %v7098_v59 = vor.u32 %v8710_v58, %v7097_v56 }
 0x186   : > { %2087 = vmatpush.bf16.msrb.mxu0 %v7098_v59 }
 0x188   : > { %v1144_v9 = vpop.f32.mrf.mxu0  ;;  %v1173_v10 = vpop.f32.mrf.mxu1 }
 0x18a   : > { %v10453_v27 = vpop.f32.mrf.mxu2  ;;  %v10455_v5 = vpop.f32.mrf.mxu3 }
 0x18f   : > { %1739 = vmatmul.bf16.gmra.mxu2 %v1631_v6  ;;  %1768 = vmatmul.bf16.gmra.mxu3 %v1631_v6 }
 0x190   : > { %v10499_v58 = vpop.f32.mrf.mxu1 }
 0x192   : > { %v989_v15 = vpop.f32.mrf.mxu2  ;;  %v1018_v17 = vpop.f32.mrf.mxu3 }
 0x193   : > { %v1145_v20 = vadd.f32 %v1144_v9, %v989_v15  ;;  %v1174_v21 = vadd.f32 %v1173_v10, %v1018_v17 }
 0x19a   : > { %v10459_v25 = vpop.f32.mrf.mxu2  ;;  %v10461_v19 = vpop.f32.mrf.mxu3 }
 0x1a2   : > { %v1292_v13 = vpop.f32.mrf.mxu2  ;;  %v1321_v40 = vpop.f32.mrf.mxu3 }
 0x1a3   : > { %v10463_v41 = vadd.f32 %v1292_v13, %v1130_v53  ;;  %v1342_v43 = vadd.f32 %v1321_v40, %v1159_v30  ;;  %v7089_v30 = vld [vmem:[%s13587_s9 + $0x60] sm:$0xf] }
 0x1a4   : > { %v7090_v6 = vor.u32 %v8708_v12, %v7089_v30 }
 0x1a6   : > { %2088 = vmatpush.bf16.msrb.mxu0 %v7090_v6 }
 0x1aa   : > { %v10465_v38 = vpop.f32.mrf.mxu2  ;;  %v10467_v44 = vpop.f32.mrf.mxu3 }
 0x1b2   : > { %v1297_v16 = vpop.f32.mrf.mxu2  ;;  %v1326_v60 = vpop.f32.mrf.mxu3 }
 0x1b3   : > { %v10475_v61 = vadd.f32 %v1297_v16, %v1135_v45  ;;  %v10477_v53 = vadd.f32 %v1326_v60, %v1164_v46  ;;  %v7081_v45 = vld [vmem:[%s13587_s9 + $0x50] sm:$0xf]  ;;  %v8706_v46 = vld [vmem:[%s13587_s9 + $0x54] sm:$0xf0]  ;;  %v1565_v60 = vpop.f32.mrf.mxu1 }
 0x1b4   : > { %v7082_v15 = vor.u32 %v8706_v46, %v7081_v45  ;;  %v10527_v46 = vpop.f32.mrf.mxu0  ;;  %v1586_v35 = vadd.f32 %v1565_v60, %v1342_v43  ;;  %v1344_v43 = vadd.f32 %v10467_v44, %v1161_v18  ;;  %v7057_v60 = vld [vmem:[%s13587_s9 + $0x20] sm:$0xf]  ;;  %v8699_v18 = vld [vmem:[%s13587_s9 + $0x24] sm:$0xf] }
 0x1b6   : > { %2089 = vmatpush.bf16.msrb.mxu0 %v7082_v15 }
 0x1ba   : > { %v10485_v9 = vpop.f32.mrf.mxu2  ;;  %v10487_v10 = vpop.f32.mrf.mxu3 }
 0x1c2   : > { %v1302_v17 = vpop.f32.mrf.mxu2  ;;  %v1331_v13 = vpop.f32.mrf.mxu3 }
 0x1c3   : > { %v10495_v40 = vadd.f32 %v1302_v17, %v1140_v62  ;;  %v10497_v56 = vadd.f32 %v1331_v13, %v1169_v1  ;;  %v8709_v62 = vld [vmem:[%s13587_s9 + $0x74] sm:$0xf]  ;;  %v7099_v1 = vld [vmem:[%s13587_s9 + $0x78] sm:$0xf0]  ;;  %v10530_v17 = vld [vmem:[%s10519_s24] sm:$0xf] }
 0x1c4   : > { %v7102_v45 = vor.u32 %v8709_v62, %v7099_v1  ;;  %v8705_v62 = vld [vmem:[%s13587_s9 + $0x54] sm:$0xf]  ;;  %v7083_v1 = vld [vmem:[%s13587_s9 + $0x58] sm:$0xf0] }
 0x1c5   : > { %v7086_v4 = vor.u32 %v8705_v62, %v7083_v1  ;;  %v1536_v62 = vpop.f32.mrf.mxu0 }
 0x1c6   : > { %2116 = vmatpush.bf16.msrb.mxu1 %v7102_v45  ;;  %v1792_v45 = vperm.slane %v10530_v17, 2 }
 0x1c8   : > { %v10555_v0 = vperm.slane %v1792_v45, 0  ;;  %v8700_v45 = vld [vmem:[%s13587_s9 + $0x24] sm:$0xf0] }
 0x1ca   : > { %v10501_v59 = vpop.f32.mrf.mxu2  ;;  %v10503_v16 = vpop.f32.mrf.mxu3  ;;  %13634 = vst [vmem:[#allocation18_spill] sm:$0xff] %v10555_v0 }
 0x1d2   : > { %v1307_v30 = vpop.f32.mrf.mxu2  ;;  %v1336_v12 = vpop.f32.mrf.mxu3 }
 0x1d3   : > { %v10505_v6 = vadd.f32 %v1307_v30, %v1145_v20  ;;  %v10507_v63 = vadd.f32 %v1336_v12, %v1174_v21  ;;  %v8707_v20 = vld [vmem:[%s13587_s9 + $0x64] sm:$0xf]  ;;  %v7091_v21 = vld [vmem:[%s13587_s9 + $0x68] sm:$0xf0]  ;;  %v1567_v12 = vpop.f32.mrf.mxu1 }
 0x1d4   : > { %v7094_v15 = vor.u32 %v8707_v20, %v7091_v21  ;;  %v7073_v20 = vld [vmem:[%s13587_s9 + $0x40] sm:$0xf]  ;;  %v8704_v21 = vld [vmem:[%s13587_s9 + $0x44] sm:$0xf0]  ;;  %v1588_v44 = vadd.f32 %v1567_v12, %v1344_v43  ;;  %v8697_v12 = vld [vmem:[%s13587_s9 + $0x14] sm:$0xf] }
 0x1d5   : > { %v7051_v43 = vld [vmem:[%s13587_s9 + $0x18] sm:$0xf0] }
 0x1d6   : > { %2117 = vmatpush.bf16.msrb.mxu1 %v7094_v15  ;;  %v7074_v15 = vor.u32 %v8704_v21, %v7073_v20  ;;  %v7065_v20 = vld [vmem:[%s13587_s9 + $0x30] sm:$0xf]  ;;  %v8702_v21 = vld [vmem:[%s13587_s9 + $0x34] sm:$0xf0] }
 0x1d7   : > { %v7066_v7 = vor.u32 %v8702_v21, %v7065_v20  ;;  %v7049_v21 = vld [vmem:[%s13587_s9 + $0x10] sm:$0xf] }
 0x1d8   : > { %2090 = vmatpush.bf16.msrb.mxu0 %v7074_v15  ;;  %v7058_v15 = vor.u32 %v8700_v45, %v7057_v60  ;;  %v7054_v45 = vor.u32 %v8697_v12, %v7051_v43  ;;  %v1166_v12 = vadd.f32 %v10441_v26, %v10445_v54 }
 0x1da   : > { %v10532_v13 = vpop.f32.mrf.mxu2  ;;  %v10534_v30 = vpop.f32.mrf.mxu3  ;;  %2118 = vmatpush.bf16.msrb.mxu1 %v7086_v4 }
 0x1db   : > { %v1570_v29 = vpop.f32.mrf.mxu1 }
 0x1dc   : > { %2091 = vmatpush.bf16.msrb.mxu0 %v7066_v7 }
 0x1de   : > { %2119 = vmatpush.bf16.msrb.mxu1 %v7078_v31 }
 0x1e0   : > { %2092 = vmatpush.bf16.msrb.mxu0 %v7058_v15 }
 0x1e2   : > { %v1754_v8 = vpop.f32.mrf.mxu3  ;;  %v1725_v1 = vpop.f32.mrf.mxu2 }
 0x1e3   : > { %v1775_v4 = vadd.f32 %v1754_v8, %v1586_v35  ;;  %v7067_v35 = vld [vmem:[%s13587_s9 + $0x38] sm:$0xf0]  ;;  %v1572_v24 = vpop.f32.mrf.mxu1 }
 0x1e4   : > { %v7070_v31 = vor.u32 %v8701_v28, %v7067_v35  ;;  %v8698_v28 = vld [vmem:[%s13587_s9 + $0x14] sm:$0xf0] }
 0x1e5   : > { %v1798_v14 = vadd.f32 %v10555_v0, %v1775_v4  ;;  %v7059_v4 = vld [vmem:[%s13587_s9 + $0x28] sm:$0xf0]  ;;  %v7050_v35 = vor.u32 %v8698_v28, %v7049_v21  ;;  %v1590_v21 = vadd.f32 %v1570_v29, %v10477_v53  ;;  %v1132_v29 = vadd.f32 %v10429_v34, %v10433_v37 }
 0x1e6   : > { %2120 = vmatpush.bf16.msrb.mxu1 %v7070_v31  ;;  %v1538_v31 = vpop.f32.mrf.mxu0 }
 0x1e7   : > { %v7031_v8 = vmul.f32 -1.442695, %v1798_v14  ;;  %v7062_v14 = vor.u32 %v8699_v18, %v7059_v4  ;;  %2093 = vmatpush.bf16.msrb.mxu0 %v7050_v35  ;;  %v7041_v4 = vld [vmem:[%s13587_s9] sm:$0xf] }
 0x1e9   : > { %9339 = vpow2.f32 %v7031_v8 }
 0x1ea   : > { %v1756_v20 = vpop.f32.mrf.mxu3  ;;  %2121 = vmatpush.bf16.msrb.mxu1 %v7062_v14  ;;  %v1727_v8 = vpop.f32.mrf.mxu2  ;;  %v8695_v14 = vld [vmem:[%s13587_s9 + $0x4] sm:$0xf] }
 0x1eb   : > { %v1777_v7 = vadd.f32 %v1756_v20, %v1588_v44  ;;  %v1791_v44 = vperm.slane %v10530_v17, 0  ;;  %v8696_v20 = vld [vmem:[%s13587_s9 + $0x4] sm:$0xf0]  ;;  %v1585_v17 = vadd.f32 %v1536_v62, %v10463_v41  ;;  %v1343_v41 = vadd.f32 %v10465_v38, %v1132_v29 }
 0x1ec   : > { %v7042_v28 = vor.u32 %v8696_v20, %v7041_v4 }
 0x1ed   : > { %v1800_v60 = vadd.f32 %v10555_v0, %v1777_v7  ;;  %v10615_v53 = vperm.slane %v1791_v44, 0  ;;  %v1587_v37 = vadd.f32 %v1538_v31, %v1343_v41 }
 0x1ee   : > { %2122 = vmatpush.bf16.msrb.mxu1 %v7054_v45  ;;  %2094 = vmatpush.bf16.msrb.mxu0 %v7042_v28  ;;  %v1348_v45 = vadd.f32 %v10487_v10, %v1166_v12  ;;  %v1541_v4 = vpop.f32.mrf.mxu0 }
 0x1ef   : > { %v9340_v57 = vpop.eup %9339  ;;  %v7032_v18 = vmul.f32 -1.442695, %v1800_v60  ;;  %13635 = vst [vmem:[#allocation19_spill] sm:$0xff] %v10615_v53  ;;  %v1774_v60 = vadd.f32 %v1725_v1, %v1585_v17  ;;  %v1776_v17 = vadd.f32 %v1727_v8, %v1587_v37  ;;  %v1589_v37 = vadd.f32 %v1541_v4, %v10475_v61 }
 0x1f0   : > { %v1845_v15 = vadd.f32 1.0, %v9340_v57  ;;  %v7043_v57 = vld [vmem:[%s13587_s9 + $0x8] sm:$0xf0]  ;;  %v1592_v34 = vadd.f32 %v1572_v24, %v1348_v45 }
 0x1f1   : > { %9341 = vpow2.f32 %v7032_v18  ;;  %v7046_v35 = vor.u32 %v8695_v14, %v7043_v57  ;;  %v1797_v54 = vadd.f32 %v10615_v53, %v1774_v60  ;;  %v1799_v45 = vadd.f32 %v10615_v53, %v1776_v17 }
 0x1f2   : > { %9343 = vrcp.f32 %v1845_v15  ;;  %v1759_v7 = vpop.f32.mrf.mxu3  ;;  %v1730_v20 = vpop.f32.mrf.mxu2  ;;  %v1864_v38 = vand.u32 2147483648, %v1845_v15  ;;  %v1862_v12 = vand.u32 2147483647, %v1845_v15  ;;  %vm1858_vm5 = vweird.f32 %v1845_v15 }
 0x1f3   : > { %v1779_v43 = vadd.f32 %v1759_v7, %v1590_v21  ;;  %2123 = vmatpush.bf16.msrb.mxu1 %v7046_v35  ;;  %v1575_v21 = vpop.f32.mrf.mxu1 }
 0x1f4   : > { %v1865_v31 = vor.u32 1.1754944e-38, %v1864_v38  ;;  %v1594_v8 = vadd.f32 %v1575_v21, %v10497_v56  ;;  %vm1863_vm7 = vcmp.eq.f32.partialorder %v1862_v12, 8.507059e+37  ;;  %v1137_v56 = vadd.f32 %v10439_v50, %v10443_v52 }
 0x1f5   : > { %v1802_v18 = vadd.f32 %v10555_v0, %v1779_v43 }
 0x1f6   : > { %v1347_v4 = vadd.f32 %v10485_v9, %v1137_v56 }
 0x1f7   : > { %v9342_v62 = vpop.eup %9341  ;;  %v7033_v14 = vmul.f32 -1.442695, %v1802_v18 }
 0x1f8   : > { %v9344_v26 = vpop.eup %9343  ;;  %v10623_v44 = vadd.f32 1.0, %v9342_v62  ;;  %v1543_v62 = vpop.f32.mrf.mxu0 }
 0x1f9   : > { %v1854_v28 = vmul.f32 %v9344_v26, %v1845_v15  ;;  %9345 = vpow2.f32 %v7033_v14  ;;  %vm1859_vm4 = vweird.f32 %v9344_v26  ;;  %v1591_v9 = vadd.f32 %v1543_v62, %v1347_v4 }
 0x1fa   : > { %9347 = vrcp.f32 %v10623_v44  ;;  %v1761_v10 = vpop.f32.mrf.mxu3  ;;  %vm10627_vm6 = vmor %vm1858_vm5, %vm1859_vm4  ;;  %v1877_v61 = vand.u32 2147483647, %v10623_v44  ;;  %vm1873_vm9 = vweird.f32 %v10623_v44 }
 0x1fb   : > { %v1855_v1 = vsub.f32 1.0, %v1854_v28  ;;  %v1781_v57 = vadd.f32 %v1761_v10, %v1592_v34  ;;  %9349 = vtanh.f32 %v1797_v54  ;;  %v1732_v54 = vpop.f32.mrf.mxu2  ;;  %v1171_v34 = vadd.f32 %v10451_v2, %v10455_v5  ;;  %v1577_v21 = vpop.f32.mrf.mxu1 }
 0x1fc   : > { %vm1878_vm11 = vcmp.eq.f32.partialorder %v1877_v61, 8.507059e+37 }
 0x1fd   : > { %v1856_v7 = vmul.f32 %v9344_v26, %v1855_v1  ;;  %v1804_v35 = vadd.f32 %v10555_v0, %v1781_v57 }
 0x1ff   : > { %v9346_v43 = vpop.eup %9345  ;;  %v7034_v29 = vmul.f32 -1.442695, %v1804_v35  ;;  %v1857_v60 = vadd.f32 %v9344_v26, %v1856_v7  ;;  %v1879_v7 = vand.u32 2147483648, %v10623_v44  ;;  %v1778_v35 = vadd.f32 %v1730_v20, %v1589_v37 }
 0x200   : > { %v9348_v18 = vpop.eup %9347  ;;  %v10632_v41 = vadd.f32 1.0, %v9346_v43 }
 0x201   : > { %v1869_v14 = vmul.f32 %v9348_v18, %v10623_v44  ;;  %9351 = vpow2.f32 %v7034_v29  ;;  %v1861_v15 = vsel %vm10627_vm6, %v9344_v26, %v1857_v60  ;;  %v9350_v28 = vpop.eup %9349  ;;  %v1352_v26 = vadd.f32 %v10503_v16, %v1171_v34 }
 0x202   : > { %9353 = vrcp.f32 %v10632_v41  ;;  %v1764_v10 = vpop.f32.mrf.mxu3  ;;  %v1866_v1 = vsel %vm1863_vm7, %v1865_v31, %v1861_v15  ;;  %vm1874_vm8 = vweird.f32 %v9348_v18  ;;  %v1801_v16 = vadd.f32 %v10615_v53, %v1778_v35 }
 0x203   : > { %v1870_v57 = vsub.f32 1.0, %v1869_v14  ;;  %v1783_v38 = vadd.f32 %v1764_v10, %v1594_v8  ;;  %v1973_v17 = vmul.f32 %v9350_v28, %v1866_v1  ;;  %9355 = vtanh.f32 %v1799_v45  ;;  %vm1875_vm10 = vmor %vm1873_vm9, %vm1874_vm8  ;;  %v1546_v14 = vpop.f32.mrf.mxu0  ;;  %v1735_v15 = vpop.f32.mrf.mxu2 }
 0x204   : > { %v1596_v60 = vadd.f32 %v1577_v21, %v1352_v26  ;;  %v1880_v20 = vor.u32 1.1754944e-38, %v1879_v7  ;;  %v1780_v10 = vadd.f32 %v1732_v54, %v1591_v9  ;;  %v1892_v1 = vand.u32 2147483647, %v10632_v41  ;;  %v1580_v21 = vpop.f32.mrf.mxu1 }
 0x205   : > { %v1871_v2 = vmul.f32 %v9348_v18, %v1870_v57  ;;  %v1806_v5 = vadd.f32 %v10555_v0, %v1783_v38  ;;  %v1894_v56 = vand.u32 2147483648, %v10632_v41  ;;  %vm1888_vm13 = vweird.f32 %v10632_v41 }
 0x206   : > { %v1803_v54 = vadd.f32 %v10615_v53, %v1780_v10  ;;  %vm1893_vm15 = vcmp.eq.f32.partialorder %v1892_v1, 8.507059e+37 }
 0x207   : > { %v9352_v12 = vpop.eup %9351  ;;  %v7035_v50 = vmul.f32 -1.442695, %v1806_v5  ;;  %v1872_v52 = vadd.f32 %v9348_v18, %v1871_v2  ;;  %v1598_v5 = vadd.f32 %v1580_v21, %v10507_v63  ;;  %v1895_v61 = vor.u32 1.1754944e-38, %v1894_v56 }
 0x208   : > { %v9354_v43 = vpop.eup %9353  ;;  %v10651_v29 = vadd.f32 1.0, %v9352_v12  ;;  %v1142_v63 = vadd.f32 %v10449_v36, %v10453_v27 }
 0x209   : > { %v1884_v24 = vmul.f32 %v9354_v43, %v10632_v41  ;;  %9357 = vpow2.f32 %v7035_v50  ;;  %v1876_v31 = vsel %vm1875_vm10, %v9348_v18, %v1872_v52  ;;  %v9356_v45 = vpop.eup %9355  ;;  %vm1889_vm12 = vweird.f32 %v9354_v43 }
 0x20a   : > { %9359 = vrcp.f32 %v10651_v29  ;;  %v1766_v44 = vpop.f32.mrf.mxu3  ;;  %v1881_v8 = vsel %vm1878_vm11, %v1880_v20, %v1876_v31  ;;  %vm1890_vm14 = vmor %vm1888_vm13, %vm1889_vm12  ;;  %v1176_v50 = vadd.f32 %v10499_v58, %v10461_v19  ;;  %v1593_v41 = vadd.f32 %v1546_v14, %v10495_v40 }
 0x20b   : > { %v1785_v28 = vadd.f32 %v1766_v44, %v1596_v60  ;;  %v1974_v34 = vmul.f32 %v9356_v45, %v1881_v8  ;;  %v1885_v37 = vsub.f32 1.0, %v1884_v24  ;;  %9361 = vtanh.f32 %v1801_v16  ;;  %v1548_v9 = vpop.f32.mrf.mxu0  ;;  %v1737_v19 = vpop.f32.mrf.mxu2 }
 0x20c   : > { %v1782_v31 = vadd.f32 %v1735_v15, %v1593_v41  ;;  %v1909_v45 = vand.u32 2147483648, %v10651_v29  ;;  %v1907_v44 = vand.u32 2147483647, %v10651_v29  ;;  %v1351_v8 = vadd.f32 %v10501_v59, %v1142_v63  ;;  %v1582_v27 = vpop.f32.mrf.mxu1 }
 0x20d   : > { %v1808_v18 = vadd.f32 %v10555_v0, %v1785_v28  ;;  %v1981_v57 = vpack.c.bf16 %v1974_v34, %v1973_v17  ;;  %v1886_v62 = vmul.f32 %v9354_v43, %v1885_v37  ;;  %vm1903_vm5 = vweird.f32 %v10651_v29 }
 0x20e   : > { %v1805_v15 = vadd.f32 %v10615_v53, %v1782_v31  ;;  %v1910_v10 = vor.u32 1.1754944e-38, %v1909_v45  ;;  %vm1908_vm7 = vcmp.eq.f32.partialorder %v1907_v44, 8.507059e+37  ;;  %v1595_v21 = vadd.f32 %v1548_v9, %v1351_v8  ;;  %v7187_v31 = vld [vmem:[%s13586_s8 + $0x368] sm:$0xf0] }
 0x20f   : > { %v9358_v38 = vpop.eup %9357  ;;  %v7036_v26 = vmul.f32 -1.442695, %v1808_v18  ;;  %2095 = vmatmul.bf16.vlgmr.msrb.gmra.mxu0 %v1981_v57  ;;  %2124 = vmatmul.bf16.vlgmr.msrb.gmra.mxu1 %v1981_v57  ;;  %v1887_v7 = vadd.f32 %v9354_v43, %v1886_v62 }
 0x210   : > { %v9360_v35 = vpop.eup %9359  ;;  %v10660_v2 = vadd.f32 1.0, %v9358_v38 }
 0x211   : > { %9363 = vpow2.f32 %v7036_v26  ;;  %v1891_v17 = vsel %vm1890_vm14, %v9354_v43, %v1887_v7  ;;  %v1899_v4 = vmul.f32 %v9360_v35, %v10651_v29  ;;  %v9362_v12 = vpop.eup %9361  ;;  %v1356_v43 = vadd.f32 %v10534_v30, %v1176_v50 }
 0x212   : > { %9365 = vrcp.f32 %v10660_v2  ;;  %v1769_v52 = vpop.f32.mrf.mxu3  ;;  %v1896_v16 = vsel %vm1893_vm15, %v1895_v61, %v1891_v17  ;;  %vm1904_vm4 = vweird.f32 %v9360_v35  ;;  %v1784_v26 = vadd.f32 %v1737_v19, %v1595_v21 }
 0x213   : > { %v1787_v60 = vadd.f32 %v1769_v52, %v1598_v5  ;;  %v1900_v20 = vsub.f32 1.0, %v1899_v4  ;;  %v1975_v24 = vmul.f32 %v9362_v12, %v1896_v16  ;;  %9367 = vtanh.f32 %v1803_v54  ;;  %vm1905_vm6 = vmor %vm1903_vm5, %vm1904_vm4  ;;  %v1551_v4 = vpop.f32.mrf.mxu0  ;;  %v1740_v12 = vpop.f32.mrf.mxu2  ;;  %v8741_v52 = vld [vmem:[%s13586_s8 + $0x374] sm:$0xf]  ;;  %v7195_v16 = vld [vmem:[%s13586_s8 + $0x378] sm:$0xf0] }
 0x214   : > { %v1600_v37 = vadd.f32 %v1582_v27, %v1356_v43  ;;  %v1922_v7 = vand.u32 2147483647, %v10660_v2  ;;  %v1924_v54 = vand.u32 2147483648, %v10660_v2  ;;  %vm1918_vm9 = vweird.f32 %v10660_v2 }
 0x215   : > { %v1810_v40 = vadd.f32 %v10555_v0, %v1787_v60  ;;  %v1901_v58 = vmul.f32 %v9360_v35, %v1900_v20  ;;  %v1807_v60 = vadd.f32 %v10615_v53, %v1784_v26  ;;  %v7198_v43 = vor.u32 %v8741_v52, %v7195_v16 }
 0x216   : > { %vm1923_vm11 = vcmp.eq.f32.partialorder %v1922_v7, 8.507059e+37  ;;  %v1147_v27 = vadd.f32 %v10527_v46, %v10459_v25 }
 0x217   : > { %v9364_v36 = vpop.eup %9363  ;;  %v7037_v14 = vmul.f32 -1.442695, %v1810_v40  ;;  %v1902_v28 = vadd.f32 %v9360_v35, %v1901_v58  ;;  %v1597_v40 = vadd.f32 %v1551_v4, %v10505_v6  ;;  %2397 = vmatpush.bf16.msrb.mxu3 %v7198_v43 }
 0x218   : > { %v9366_v30 = vpop.eup %9365  ;;  %v10677_v34 = vadd.f32 1.0, %v9364_v36  ;;  %v1355_v6 = vadd.f32 %v10532_v13, %v1147_v27  ;;  %v7193_v27 = vld [vmem:[%s13586_s8 + $0x370] sm:$0xf] }
 0x219   : > { %v1914_v1 = vmul.f32 %v9366_v30, %v10660_v2  ;;  %9369 = vpow2.f32 %v7037_v14  ;;  %v1906_v56 = vsel %vm1905_vm6, %v9360_v35, %v1902_v28  ;;  %v9368_v59 = vpop.eup %9367  ;;  %vm1919_vm8 = vweird.f32 %v9366_v30  ;;  %v8739_v2 = vld [vmem:[%s13586_s8 + $0x364] sm:$0xf] }
 0x21a   : > { %9371 = vrcp.f32 %v10677_v34  ;;  %v1771_v18 = vpop.f32.mrf.mxu3  ;;  %v1911_v57 = vsel %vm1908_vm7, %v1910_v10, %v1906_v56  ;;  %vm1920_vm10 = vmor %vm1918_vm9, %vm1919_vm8  ;;  %v7190_v36 = vor.u32 %v8739_v2, %v7187_v31  ;;  %v1786_v14 = vadd.f32 %v1740_v12, %v1597_v40 }
 0x21b   : > { %v1789_v29 = vadd.f32 %v1771_v18, %v1600_v37  ;;  %v1976_v62 = vmul.f32 %v9368_v59, %v1911_v57  ;;  %v1915_v38 = vsub.f32 1.0, %v1914_v1  ;;  %9373 = vtanh.f32 %v1805_v15  ;;  %v1553_v46 = vpop.f32.mrf.mxu0  ;;  %v1742_v18 = vpop.f32.mrf.mxu2 }
 0x21c   : > { %v1939_v28 = vand.u32 2147483648, %v10677_v34  ;;  %v1937_v15 = vand.u32 2147483647, %v10677_v34  ;;  %2398 = vmatpush.bf16.msrb.mxu3 %v7190_v36  ;;  %vm1933_vm13 = vweird.f32 %v10677_v34  ;;  %v1809_v56 = vadd.f32 %v10615_v53, %v1786_v14  ;;  %v8742_v14 = vld [vmem:[%s13586_s8 + $0x374] sm:$0xf0] }
 0x21d   : > { %v1812_v5 = vadd.f32 %v10555_v0, %v1789_v29  ;;  %v1982_v61 = vpack.c.bf16 %v1976_v62, %v1975_v24  ;;  %v1916_v35 = vmul.f32 %v9366_v30, %v1915_v38  ;;  %v1925_v24 = vor.u32 1.1754944e-38, %v1924_v54 }
 0x21e   : > { %v1940_v25 = vor.u32 1.1754944e-38, %v1939_v28  ;;  %vm1938_vm15 = vcmp.eq.f32.partialorder %v1937_v15, 8.507059e+37  ;;  %v1599_v62 = vadd.f32 %v1553_v46, %v1355_v6  ;;  %v8735_v28 = vld [vmem:[%s13586_s8 + $0x344] sm:$0xf]  ;;  %v7171_v15 = vld [vmem:[%s13586_s8 + $0x348] sm:$0xf0] }
 0x21f   : > { %v9370_v17 = vpop.eup %9369  ;;  %v7038_v50 = vmul.f32 -1.442695, %v1812_v5  ;;  %2100 = vmatmul.bf16.gmra.mxu0 %v1982_v61  ;;  %2127 = vmatmul.bf16.gmra.mxu1 %v1982_v61  ;;  %v1917_v41 = vadd.f32 %v9366_v30, %v1916_v35  ;;  %v7257_v6 = vld [vmem:[%s13586_s8 + $0x2f0] sm:$0xf]  ;;  %v7185_v46 = vld [vmem:[%s13586_s8 + $0x360] sm:$0xf] }
 0x220   : > { %v9372_v63 = vpop.eup %9371  ;;  %v10692_v20 = vadd.f32 1.0, %v9370_v17 }
 0x221   : > { %9375 = vpow2.f32 %v7038_v50  ;;  %v1921_v45 = vsel %vm1920_vm10, %v9366_v30, %v1917_v41  ;;  %v1929_v9 = vmul.f32 %v9372_v63, %v10677_v34  ;;  %v9374_v19 = vpop.eup %9373  ;;  %vm1934_vm12 = vweird.f32 %v9372_v63 }
 0x222   : > { %9377 = vrcp.f32 %v10692_v20  ;;  %v1926_v58 = vsel %vm1923_vm11, %v1925_v24, %v1921_v45  ;;  %vm1935_vm14 = vmor %vm1933_vm13, %vm1934_vm12  ;;  %v1788_v34 = vadd.f32 %v1742_v18, %v1599_v62  ;;  %v1954_v7 = vand.u32 2147483648, %v10692_v20  ;;  %v8723_v62 = vld [vmem:[%s13586_s8 + $0x2e4] sm:$0xf] }
 0x223   : > { %v1930_v44 = vsub.f32 1.0, %v1929_v9  ;;  %v1977_v8 = vmul.f32 %v9374_v19, %v1926_v58  ;;  %9379 = vtanh.f32 %v1807_v60  ;;  %v1952_v61 = vand.u32 2147483647, %v10692_v20 }
 0x224   : > { %vm1948_vm5 = vweird.f32 %v10692_v20  ;;  %v1811_v4 = vadd.f32 %v10615_v53, %v1788_v34  ;;  %v1955_v12 = vor.u32 1.1754944e-38, %v1954_v7  ;;  %v7163_v34 = vld [vmem:[%s13586_s8 + $0x338] sm:$0xf0] }
 0x225   : > { %v1931_v30 = vmul.f32 %v9372_v63, %v1930_v44  ;;  %vm1953_vm7 = vcmp.eq.f32.partialorder %v1952_v61, 8.507059e+37  ;;  %v8737_v44 = vld [vmem:[%s13586_s8 + $0x354] sm:$0xf]  ;;  %v8722_v61 = vld [vmem:[%s13586_s8 + $0x2d4] sm:$0xf0] }
 0x227   : > { %v9376_v37 = vpop.eup %9375  ;;  %v1932_v10 = vadd.f32 %v9372_v63, %v1931_v30  ;;  %v7194_v30 = vor.u32 %v8742_v14, %v7193_v27  ;;  %v8718_v27 = vld [vmem:[%s13586_s8 + $0x2b4] sm:$0xf0] }
 0x228   : > { %v9378_v1 = vpop.eup %9377  ;;  %v1852_v59 = vadd.f32 1.0, %v9376_v37  ;;  %v8726_v37 = vld [vmem:[%s13586_s8 + $0x2f4] sm:$0xf0] }
 0x229   : > { %v1944_v21 = vmul.f32 %v9378_v1, %v10692_v20  ;;  %v1936_v57 = vsel %vm1935_vm14, %v9372_v63, %v1932_v10  ;;  %v9380_v29 = vpop.eup %9379  ;;  %vm1949_vm4 = vweird.f32 %v9378_v1  ;;  %v7174_v10 = vor.u32 %v8735_v28, %v7171_v15  ;;  %2368 = vmatpush.bf16.msrb.mxu2 %v7194_v30  ;;  %v8717_v30 = vld [vmem:[%s13586_s8 + $0x2b4] sm:$0xf]  ;;  %v7227_v15 = vld [vmem:[%s13586_s8 + $0x2b8] sm:$0xf0] }
 0x22a   : > { %9381 = vrcp.f32 %v1852_v59  ;;  %v1941_v13 = vsel %vm1938_vm15, %v1940_v25, %v1936_v57  ;;  %vm1950_vm6 = vmor %vm1948_vm5, %vm1949_vm4  ;;  %v1969_v24 = vand.u32 2147483648, %v1852_v59  ;;  %v1967_v2 = vand.u32 2147483647, %v1852_v59  ;;  %v7249_v57 = vld [vmem:[%s13586_s8 + $0x2e0] sm:$0xf] }
 0x22b   : > { %v1978_v38 = vmul.f32 %v9380_v29, %v1941_v13  ;;  %v1945_v26 = vsub.f32 1.0, %v1944_v21  ;;  %9383 = vtanh.f32 %v1809_v56  ;;  %vm1963_vm9 = vweird.f32 %v1852_v59  ;;  %v8725_v56 = vld [vmem:[%s13586_s8 + $0x2f4] sm:$0xf]  ;;  %v8740_v21 = vld [vmem:[%s13586_s8 + $0x364] sm:$0xf0] }
 0x22c   : > { %9385 = vtanh.f32 %v1811_v4  ;;  %v1970_v20 = vor.u32 1.1754944e-38, %v1969_v24  ;;  %vm1968_vm11 = vcmp.eq.f32.partialorder %v1967_v2, 8.507059e+37  ;;  %v7186_v18 = vor.u32 %v8740_v21, %v7185_v46  ;;  %v8724_v29 = vld [vmem:[%s13586_s8 + $0x2e4] sm:$0xf0]  ;;  %v7243_v4 = vld [vmem:[%s13586_s8 + $0x2d8] sm:$0xf0] }
 0x22d   : > { %v1983_v54 = vpack.c.bf16 %v1978_v38, %v1977_v8  ;;  %v1946_v5 = vmul.f32 %v9378_v1, %v1945_v26  ;;  %v7179_v8 = vld [vmem:[%s13586_s8 + $0x358] sm:$0xf0]  ;;  %v7250_v13 = vor.u32 %v8724_v29, %v7249_v57  ;;  %v7251_v38 = vld [vmem:[%s13586_s8 + $0x2e8] sm:$0xf0]  ;;  %v8733_v26 = vld [vmem:[%s13586_s8 + $0x334] sm:$0xf] }
 0x22e   : > { %v7182_v36 = vor.u32 %v8737_v44, %v7179_v8  ;;  %2369 = vmatpush.bf16.msrb.mxu2 %v7186_v18  ;;  %v7254_v7 = vor.u32 %v8723_v62, %v7251_v38  ;;  %v8719_v24 = vld [vmem:[%s13586_s8 + $0x2c4] sm:$0xf]  ;;  %v8736_v8 = vld [vmem:[%s13586_s8 + $0x344] sm:$0xf0]  ;;  %v7219_v21 = vld [vmem:[%s13586_s8 + $0x2a8] sm:$0xf0] }
 0x22f   : > { %2105 = vmatmul.bf16.gmra.mxu0 %v1983_v54  ;;  %2132 = vmatmul.bf16.gmra.mxu1 %v1983_v54  ;;  %v1947_v35 = vadd.f32 %v9378_v1, %v1946_v5  ;;  %v7166_v54 = vor.u32 %v8733_v26, %v7163_v34  ;;  %v7241_v5 = vld [vmem:[%s13586_s8 + $0x2d0] sm:$0xf]  ;;  %v8715_v46 = vld [vmem:[%s13586_s8 + $0x2a4] sm:$0xf]  ;;  %v8729_v29 = vld [vmem:[%s13586_s8 + $0x314] sm:$0xf] }
 0x230   : > { %v9382_v17 = vpop.eup %9381  ;;  %2399 = vmatpush.bf16.msrb.mxu3 %v7182_v36  ;;  %v7225_v36 = vld [vmem:[%s13586_s8 + $0x2b0] sm:$0xf]  ;;  %v7222_v57 = vor.u32 %v8715_v46, %v7219_v21  ;;  %v7147_v62 = vld [vmem:[%s13586_s8 + $0x318] sm:$0xf0] }
 0x231   : > { %v1951_v50 = vsel %vm1950_vm6, %v9378_v1, %v1947_v35  ;;  %v1959_v41 = vmul.f32 %v9382_v17, %v1852_v59  ;;  %v9384_v52 = vpop.eup %9383  ;;  %vm1964_vm8 = vweird.f32 %v9382_v17  ;;  %v7258_v1 = vor.u32 %v8726_v37, %v7257_v6  ;;  %v7259_v59 = vld [vmem:[%s13586_s8 + $0x2f8] sm:$0xf0]  ;;  %v8721_v35 = vld [vmem:[%s13586_s8 + $0x2d4] sm:$0xf] }
 0x232   : > { %v1956_v16 = vsel %vm1953_vm7, %v1955_v12, %v1951_v50  ;;  %vm1965_vm10 = vmor %vm1963_vm9, %vm1964_vm8  ;;  %v9386_v9 = vpop.eup %9385  ;;  %v7262_v25 = vor.u32 %v8725_v56, %v7259_v59  ;;  %v7246_v12 = vor.u32 %v8721_v35, %v7243_v4  ;;  %v2001_v50 = vld [vmem:[%s13588_s10] ss:$2 sm:$0x3]  ;;  %v7226_v28 = vor.u32 %v8718_v27, %v7225_v36  ;;  %v8713_v4 = vld [vmem:[%s13586_s8 + $0x294] sm:$0xf] }
 0x233   : > { %v1960_v63 = vsub.f32 1.0, %v1959_v41  ;;  %v1979_v60 = vmul.f32 %v9384_v52, %v1956_v16  ;;  %2522 = vmatpush.bf16.msra.mxu0 %v7258_v1  ;;  %v7177_v41 = vld [vmem:[%s13586_s8 + $0x350] sm:$0xf]  ;;  %v8738_v52 = vld [vmem:[%s13586_s8 + $0x354] sm:$0xf0]  ;;  %v10802_v2 = vperm.slane %v2001_v50, 0  ;;  %v7230_v6 = vor.u32 %v8717_v30, %v7227_v15 }
 0x234   : > { %2400 = vmatpush.bf16.msrb.mxu3 %v7174_v10  ;;  %2551 = vmatpush.bf16.msra.mxu1 %v7262_v25  ;;  %v7233_v16 = vld [vmem:[%s13586_s8 + $0x2c0] sm:$0xf]  ;;  %v7161_v10 = vld [vmem:[%s13586_s8 + $0x330] sm:$0xf]  ;;  %v8734_v1 = vld [vmem:[%s13586_s8 + $0x334] sm:$0xf0]  ;;  %v7150_v34 = vor.u32 %v8729_v29, %v7147_v62 }
 0x235   : > { %v1961_v43 = vmul.f32 %v9382_v17, %v1960_v63  ;;  %v7178_v63 = vor.u32 %v8738_v52, %v7177_v41  ;;  %v7217_v56 = vld [vmem:[%s13586_s8 + $0x2a0] sm:$0xf]  ;;  %v7162_v59 = vor.u32 %v8734_v1, %v7161_v10  ;;  %v8716_v25 = vld [vmem:[%s13586_s8 + $0x2a4] sm:$0xf0]  ;;  %v7139_v36 = vld [vmem:[%s13586_s8 + $0x308] sm:$0xf0] }
 0x236   : > { %v7218_v18 = vor.u32 %v8716_v25, %v7217_v56  ;;  %v8757_v10 = vld [vmem:[%s13586_s8 + $0x3f4] sm:$0xf]  ;;  %v7339_v1 = vld [vmem:[%s13586_s8 + $0x3f8] sm:$0xf0] }
 0x237   : > { %v1962_v31 = vadd.f32 %v9382_v17, %v1961_v43  ;;  %2523 = vmatpush.bf16.msra.mxu0 %v7250_v13  ;;  %v7235_v43 = vld [vmem:[%s13586_s8 + $0x2c8] sm:$0xf0]  ;;  %2370 = vmatpush.bf16.msrb.mxu2 %v7178_v63  ;;  %v7153_v13 = vld [vmem:[%s13586_s8 + $0x320] sm:$0xf]  ;;  %v7342_v56 = vor.u32 %v8757_v10, %v7339_v1  ;;  %v13642_v10 = vld [vmem:[#allocation9_spill] sm:$0xff] }
 0x238   : > { %2552 = vmatpush.bf16.msra.mxu1 %v7254_v7  ;;  %2401 = vmatpush.bf16.msrb.mxu3 %v7166_v54  ;;  %v8732_v7 = vld [vmem:[%s13586_s8 + $0x324] sm:$0xf0]  ;;  %v7209_v54 = vld [vmem:[%s13586_s8 + $0x290] sm:$0xf] }
 0x239   : > { %v1966_v45 = vsel %vm1965_vm10, %v9382_v17, %v1962_v31  ;;  %v7242_v17 = vor.u32 %v8722_v61, %v7241_v5  ;;  %v8714_v5 = vld [vmem:[%s13586_s8 + $0x294] sm:$0xf0] }
 0x23a   : > { %v1971_v19 = vsel %vm1968_vm11, %v1970_v20, %v1966_v45  ;;  %v7210_v50 = vor.u32 %v8714_v5, %v7209_v54 }
 0x23b   : > { %v1980_v40 = vmul.f32 %v9386_v9, %v1971_v19  ;;  %2524 = vmatpush.bf16.msra.mxu0 %v7242_v17  ;;  %v7238_v9 = vor.u32 %v8719_v24, %v7235_v43  ;;  %v8731_v19 = vld [vmem:[%s13586_s8 + $0x324] sm:$0xf]  ;;  %v7154_v17 = vor.u32 %v8732_v7, %v7153_v13  ;;  %v8730_v24 = vld [vmem:[%s13586_s8 + $0x314] sm:$0xf0] }
 0x23c   : > { %2553 = vmatpush.bf16.msra.mxu1 %v7246_v12  ;;  %v7211_v12 = vld [vmem:[%s13586_s8 + $0x298] sm:$0xf0] }
 0x23d   : > { %v1984_v58 = vpack.c.bf16 %v1980_v40, %v1979_v60  ;;  %v8720_v60 = vld [vmem:[%s13586_s8 + $0x2c4] sm:$0xf0]  ;;  %v7155_v40 = vld [vmem:[%s13586_s8 + $0x328] sm:$0xf0]  ;;  %v7214_v41 = vor.u32 %v8713_v4, %v7211_v12  ;;  %v8753_v4 = vld [vmem:[%s13586_s8 + $0x3d4] sm:$0xf] }
 0x23e   : > { %v7234_v45 = vor.u32 %v8720_v60, %v7233_v16  ;;  %v7158_v44 = vor.u32 %v8731_v19, %v7155_v40  ;;  %v7145_v60 = vld [vmem:[%s13586_s8 + $0x310] sm:$0xf]  ;;  %v8711_v19 = vld [vmem:[%s13586_s8 + $0x284] sm:$0xf]  ;;  %v7203_v40 = vld [vmem:[%s13586_s8 + $0x288] sm:$0xf0] }
 0x23f   : > { %2110 = vmatmul.bf16.gmra.mxu0 %v1984_v58  ;;  %2137 = vmatmul.bf16.gmra.mxu1 %v1984_v58  ;;  %v7169_v58 = vld [vmem:[%s13586_s8 + $0x340] sm:$0xf]  ;;  %v7337_v12 = vld [vmem:[%s13586_s8 + $0x3f0] sm:$0xf] }
 0x240   : > { %2525 = vmatpush.bf16.msra.mxu0 %v7234_v45  ;;  %2554 = vmatpush.bf16.msra.mxu1 %v7238_v9  ;;  %v7170_v14 = vor.u32 %v8736_v8, %v7169_v58  ;;  %v7146_v45 = vor.u32 %v8730_v24, %v7145_v60  ;;  %v8712_v9 = vld [vmem:[%s13586_s8 + $0x284] sm:$0xf0]  ;;  %v8727_v8 = vld [vmem:[%s13586_s8 + $0x304] sm:$0xf] }
 0x241   : > { %2402 = vmatpush.bf16.msrb.mxu3 %v7158_v44  ;;  %v7142_v27 = vor.u32 %v8727_v8, %v7139_v36 }
 0x242   : > { %2371 = vmatpush.bf16.msrb.mxu2 %v7170_v14  ;;  %v7137_v14 = vld [vmem:[%s13586_s8 + $0x300] sm:$0xf] }
 0x244   : > { %2526 = vmatpush.bf16.msra.mxu0 %v7226_v28  ;;  %2555 = vmatpush.bf16.msra.mxu1 %v7230_v6  ;;  %v8728_v28 = vld [vmem:[%s13586_s8 + $0x304] sm:$0xf0] }
 0x245   : > { %2403 = vmatpush.bf16.msrb.mxu3 %v7150_v34  ;;  %v7138_v6 = vor.u32 %v8728_v28, %v7137_v14  ;;  %v9212_v34 = vld [vmem:[#allocation2 + $0x4] sm:$0x8] }
 0x246   : > { %2372 = vmatpush.bf16.msrb.mxu2 %v7162_v59 }
 0x248   : > { %2527 = vmatpush.bf16.msra.mxu0 %v7218_v18  ;;  %2556 = vmatpush.bf16.msra.mxu1 %v7222_v57 }
 0x249   : > { %2404 = vmatpush.bf16.msrb.mxu3 %v7142_v27 }
 0x24a   : > { %2373 = vmatpush.bf16.msrb.mxu2 %v7154_v17  ;;  %v7331_v17 = vld [vmem:[%s13586_s8 + $0x3e8] sm:$0xf0] }
 0x24c   : > { %2528 = vmatpush.bf16.msra.mxu0 %v7210_v50  ;;  %2557 = vmatpush.bf16.msra.mxu1 %v7214_v41  ;;  %v8758_v41 = vld [vmem:[%s13586_s8 + $0x3f4] sm:$0xf0] }
 0x24d   : > { %2714 = vmatpush.bf16.msra.mxu3 %v7342_v56 }
 0x24e   : > { %2374 = vmatpush.bf16.msrb.mxu2 %v7146_v45 }
 0x252   : > { %2375 = vmatpush.bf16.msrb.mxu2 %v7138_v6 }
 0x28c   : > { %v2096_v31 = vpop.f32.mrf.mxu0  ;;  %v2125_v20 = vpop.f32.mrf.mxu1 }
 0x28d   : > { %v2097_v37 = vadd.f32 %v2096_v31, %v10802_v2 }
 0x28f   : > { %v2141_v61 = vadd.f32 %v2097_v37, %v9991_v32  ;;  %v10876_v32 = vld [vmem:[%s13583_s5 + $0x1] ss:$0 sm:$0xff] }
 0x290   : > { %v3585_v43 = vadd.f32 %v10876_v32, %v10296_v11  ;;  %v3586_v31 = vadd.f32 %v10876_v32, %v10322_v42  ;;  %v7206_v42 = vor.u32 %v8711_v19, %v7203_v40  ;;  %v3588_v7 = vadd.f32 %v10876_v32, %v10358_v3 }
 0x291   : > { %v2149_v16 = vmul.f32 %v2141_v61, %v9901_v51 }
 0x292   : > { %2558 = vmatpush.bf16.msra.mxu1 %v7206_v42  ;;  %v10921_v30 = vmul.f32 %v3585_v43, %v9901_v51  ;;  %v10924_v15 = vmul.f32 %v3586_v31, %v9975_v23  ;;  %v10971_v50 = vmul.f32 %v3588_v7, %v10017_v47  ;;  %v7315_v43 = vld [vmem:[%s13586_s8 + $0x3c8] sm:$0xf0] }
 0x294   : > { %v2098_v38 = vpop.f32.mrf.mxu0  ;;  %v2126_v26 = vpop.f32.mrf.mxu1  ;;  %13638 = vst [vmem:[#allocation20_spill] sm:$0xff] %v10921_v30  ;;  %v9083_v59 = vpack.c.bf16 %v10924_v15, %v10921_v30 }
 0x295   : > { %v2099_v35 = vadd.f32 %v2098_v38, %v10802_v2  ;;  %13639 = vst [vmem:[#allocation21_spill] sm:$0xff] %v10924_v15 }
 0x296   : > { %13640 = vst [vmem:[#allocation22_spill] sm:$0xff] %v10971_v50 }
 0x297   : > { %v2142_v52 = vadd.f32 %v2099_v35, %v9994_v33  ;;  %v7201_v33 = vld [vmem:[%s13586_s8 + $0x280] sm:$0xf] }
 0x298   : > { %v7202_v44 = vor.u32 %v8712_v9, %v7201_v33  ;;  %v8751_v33 = vld [vmem:[%s13586_s8 + $0x3c4] sm:$0xf] }
 0x299   : > { %v2150_v63 = vmul.f32 %v2142_v52, %v9975_v23 }
 0x29a   : > { %2529 = vmatpush.bf16.msra.mxu0 %v7202_v44 }
 0x29b   : > { %v10894_v20 = vpack.c.bf16 %v2150_v63, %v2149_v16  ;;  %v7338_v16 = vor.u32 %v8758_v41, %v7337_v12  ;;  %v8776_v12 = vld [vmem:[%s13586_s8 + $0x474] sm:$0xf]  ;;  %v13646_v41 = vld [vmem:[#allocation14_spill] sm:$0xff] }
 0x29c   : > { %v2101_v58 = vpop.f32.mrf.mxu0  ;;  %v10905_v11 = vpop.f32.mrf.mxu1 }
 0x29d   : > { %9163 = vst [vmem:[#allocation2 + $0x8] sm:$0xff] %v10894_v20   ;;  %v2102_v37 = vadd.f32 %v2101_v58, %v10802_v2  ;;  %2685 = vmatpush.bf16.msra.mxu2 %v7338_v16  ;;  %v7318_v58 = vor.u32 %v8751_v33, %v7315_v43  ;;  %v8749_v43 = vld [vmem:[%s13586_s8 + $0x3b4] sm:$0xf] }
 0x29f   : > { %v2143_v29 = vadd.f32 %v2102_v37, %v10020_v48  ;;  %v3587_v48 = vadd.f32 %v10876_v32, %v10332_v55  ;;  %v7323_v55 = vld [vmem:[%s13586_s8 + $0x3d8] sm:$0xf0] }
 0x2a0   : > { %v7326_v52 = vor.u32 %v8753_v4, %v7323_v55  ;;  %v8777_v55 = vld [vmem:[%s13586_s8 + $0x474] sm:$0xf0] }
 0x2a1   : > { %v2151_v38 = vmul.f32 %v2143_v29, %v10007_v39  ;;  %v10977_v63 = vmul.f32 %v3587_v48, %v10007_v39  ;;  %v13644_v29 = vld [vmem:[#allocation8_spill] sm:$0xff] }
 0x2a3   : > { %13641 = vst [vmem:[#allocation23_spill] sm:$0xff] %v10977_v63  ;;  %v9088_v45 = vpack.c.bf16 %v10971_v50, %v10977_v63 }
 0x2a4   : > { %v2103_v25 = vpop.f32.mrf.mxu0  ;;  %v10935_v46 = vpop.f32.mrf.mxu1  ;;  %v9274_v21 = vld [vmem:[#allocation2 + $0x4] sm:$0xf0]   ;;  %v10937_v18 = vld [vmem:[#allocation2 + $0x8] sm:$0xf0] }
 0x2a5   : > { %v10939_v57 = vld [vmem:[#allocation2 + $0x8] sm:$0xe]  ;;  %v2104_v62 = vadd.f32 %v2103_v25, %v10802_v2  ;;  %v9213_v35 = vor.u32 %v9274_v21, %v9212_v34  ;;  %v13643_v25 = vld [vmem:[#allocation7_spill] sm:$0xff] }
 0x2a6   : > { %9174 = vst [vmem:[#allocation2 + $0x8] sm:$0xff] %v9083_v59   ;;  %v13645_v34 = vld [vmem:[#allocation15_spill] sm:$0xff] }
 0x2a7   : > { %v2144_v13 = vadd.f32 %v2104_v62, %v10023_v49  ;;  %v8755_v49 = vld [vmem:[%s13586_s8 + $0x3e4] sm:$0xf]  ;;  %v2241_v24 = vshrl.u32 %v9213_v35, 16  ;;  %v2244_v31 = vshll.u32 %v9213_v35, 16  ;;  %v2429_v36 = vrot.slane %v9213_v35, 3 }
 0x2a8   : > { %v7334_v3 = vor.u32 %v8755_v49, %v7331_v17  ;;  %v3590_v7 = vadd.f32 %v10876_v32, %v13645_v34  ;;  %v7329_v49 = vld [vmem:[%s13586_s8 + $0x3e0] sm:$0xf]  ;;  %v8756_v17 = vld [vmem:[%s13586_s8 + $0x3e4] sm:$0xf0] }
 0x2a9   : > { %v2152_v26 = vmul.f32 %v2144_v13, %v10017_v47  ;;  %v2243_v27 = vrot.slane %v2241_v24, 3  ;;  %v2246_v28 = vrot.slane %v2244_v31, 4  ;;  %v7330_v4 = vor.u32 %v8756_v17, %v7329_v49  ;;  %v7307_v31 = vld [vmem:[%s13586_s8 + $0x3b8] sm:$0xf0]  ;;  %v13649_v49 = vld [vmem:[#allocation12_spill] sm:$0xff] }
 0x2aa   : > { %2715 = vmatpush.bf16.msra.mxu3 %v7334_v3  ;;  %v7429_v3 = vld [vmem:[%s13586_s8 + $0x470] sm:$0xf]  ;;  %v11035_v33 = vmul.f32 %v3590_v7, %v13644_v29 }
 0x2ab   : > { %v10948_v54 = vpack.c.bf16 %v2152_v26, %v2151_v38  ;;  %v2247_v13 = vor.u32 %v2246_v28, %v2243_v27  ;;  %v7430_v16 = vor.u32 %v8777_v55, %v7429_v3  ;;  %2686 = vmatpush.bf16.msra.mxu2 %v7330_v4  ;;  %v7405_v55 = vld [vmem:[%s13586_s8 + $0x440] sm:$0xf] }
 0x2ac   : > { %v2106_v5 = vpop.f32.mrf.mxu0  ;;  %v10950_v61 = vpop.f32.mrf.mxu1  ;;  %13647 = vst [vmem:[#allocation9_spill] sm:$0xff] %v11035_v33 }
 0x2ad   : > { %9164 = vst [vmem:[#allocation2 + $0x10] sm:$0xff] %v10948_v54   ;;  %v2107_v60 = vadd.f32 %v2106_v5, %v10802_v2  ;;  %2928 = vmatpush.bf16.msrb.mxu0 %v7430_v16 }
 0x2ae   : > { %2716 = vmatpush.bf16.msra.mxu3 %v7326_v52  ;;  %v3589_v52 = vadd.f32 %v10876_v32, %v13646_v41 }
 0x2af   : > { %v2145_v42 = vadd.f32 %v2107_v60, %v10069_v22  ;;  %v7431_v60 = vld [vmem:[%s13586_s8 + $0x478] sm:$0xf0] }
 0x2b0   : > { %v7434_v24 = vor.u32 %v8776_v12, %v7431_v60  ;;  %v11057_v27 = vmul.f32 %v3589_v52, %v13643_v25  ;;  %v8771_v12 = vld [vmem:[%s13586_s8 + $0x444] sm:$0xf0] }
 0x2b1   : > { %v2153_v21 = vmul.f32 %v2145_v42, %v13643_v25  ;;  %v8775_v42 = vld [vmem:[%s13586_s8 + $0x464] sm:$0xf0] }
 0x2b2   : > { %2717 = vmatpush.bf16.msra.mxu3 %v7318_v58  ;;  %2957 = vmatpush.bf16.msrb.mxu1 %v7434_v24  ;;  %v7310_v58 = vor.u32 %v8749_v43, %v7307_v31  ;;  %13648 = vst [vmem:[#allocation7_spill] sm:$0xff] %v11057_v27  ;;  %v8770_v31 = vld [vmem:[%s13586_s8 + $0x444] sm:$0xf] }
 0x2b4   : > { %v2108_v9 = vpop.f32.mrf.mxu0  ;;  %v10988_v19 = vpop.f32.mrf.mxu1  ;;  %v10990_v40 = vld [vmem:[#allocation2 + $0xc] sm:$0xff]  }
 0x2b5   : > { %v10992_v44 = vld [vmem:[#allocation2 + $0x10] sm:$0xff]  ;;  %v2109_v8 = vadd.f32 %v2108_v9, %v10802_v2  ;;  %v2430_v14 = vrot.slane %v10990_v40, 3  ;;  %v2249_v6 = vshrl.u32 %v10990_v40, 16  ;;  %v2252_v37 = vshll.u32 %v10990_v40, 16 }
 0x2b6   : > { %9175 = vst [vmem:[#allocation2 + $0x10] sm:$0xff] %v9088_v45   ;;  %v7421_v45 = vld [vmem:[%s13586_s8 + $0x460] sm:$0xf]  ;;  %2718 = vmatpush.bf16.msra.mxu3 %v7310_v58 }
 0x2b7   : > { %v2146_v1 = vadd.f32 %v2109_v8, %v13642_v10  ;;  %v2431_v56 = vsel %vm1026_vm0, %v2429_v36, %v2430_v14  ;;  %v2251_v59 = vrot.slane %v2249_v6, 3  ;;  %v2254_v22 = vrot.slane %v2252_v37, 4  ;;  %v8774_v8 = vld [vmem:[%s13586_s8 + $0x464] sm:$0xf]  ;;  %v7423_v36 = vld [vmem:[%s13586_s8 + $0x468] sm:$0xf0] }
 0x2b8   : > { %2530 = vmatmul.bf16.vlgmr.msra.gmra.mxu0 %v2431_v56  ;;  %2559 = vmatmul.bf16.vlgmr.msra.gmra.mxu1 %v2431_v56  ;;  %v7422_v28 = vor.u32 %v8775_v42, %v7421_v45  ;;  %v7426_v6 = vor.u32 %v8774_v8, %v7423_v36  ;;  %v7321_v37 = vld [vmem:[%s13586_s8 + $0x3d0] sm:$0xf]  ;;  %v8754_v10 = vld [vmem:[%s13586_s8 + $0x3d4] sm:$0xf0]  ;;  %v7407_v45 = vld [vmem:[%s13586_s8 + $0x448] sm:$0xf0]  ;;  %v7406_v8 = vor.u32 %v8771_v12, %v7405_v55 }
 0x2b9   : > { %v2154_v62 = vmul.f32 %v2146_v1, %v13644_v29  ;;  %v11005_v38 = vor.u32 %v2254_v22, %v2251_v59  ;;  %v7413_v1 = vld [vmem:[%s13586_s8 + $0x450] sm:$0xf]  ;;  %v7322_v56 = vor.u32 %v8754_v10, %v7321_v37  ;;  %v8773_v59 = vld [vmem:[%s13586_s8 + $0x454] sm:$0xf0]  ;;  %v8772_v22 = vld [vmem:[%s13586_s8 + $0x454] sm:$0xf] }
 0x2ba   : > { %2929 = vmatpush.bf16.msrb.mxu0 %v7422_v28  ;;  %2958 = vmatpush.bf16.msrb.mxu1 %v7426_v6  ;;  %v13651_v36 = vld [vmem:[#allocation11_spill] sm:$0xff]  ;;  %v13652_v6 = vld [vmem:[#allocation10_spill] sm:$0xff]  ;;  %v13654_v55 = vld [vmem:[#allocation16_spill] sm:$0xff] }
 0x2bb   : > { %v11007_v26 = vpack.c.bf16 %v2154_v62, %v2153_v21  ;;  %v2256_v35 = vsel %vm836_vm1, %v2247_v13, %v11005_v38  ;;  %v7415_v21 = vld [vmem:[%s13586_s8 + $0x458] sm:$0xf0]  ;;  %v11079_v62 = vpack.c.bf16 %v11035_v33, %v11057_v27  ;;  %2687 = vmatpush.bf16.msra.mxu2 %v7322_v56  ;;  %v3591_v12 = vadd.f32 %v10876_v32, %v13654_v55 }
 0x2bc   : > { %v2111_v5 = vpop.f32.mrf.mxu0  ;;  %v2138_v48 = vpop.f32.mrf.mxu1  ;;  %2376 = vmatmul.bf16.vlgmr.msrb.gmra.mxu2 %v2256_v35  ;;  %2405 = vmatmul.bf16.vlgmr.msrb.gmra.mxu3 %v2256_v35  ;;  %v7299_v35 = vld [vmem:[%s13586_s8 + $0x3a8] sm:$0xf0]  ;;  %v7418_v60 = vor.u32 %v8772_v22, %v7415_v21  ;;  %v7397_v22 = vld [vmem:[%s13586_s8 + $0x430] sm:$0xf] }
 0x2bd   : > { %9165 = vst [vmem:[#allocation2 + $0x18] sm:$0xff] %v11007_v26   ;;  %v2112_v9 = vadd.f32 %v2111_v5, %v10802_v2  ;;  %v7414_v5 = vor.u32 %v8773_v59, %v7413_v1  ;;  %v8747_v48 = vld [vmem:[%s13586_s8 + $0x3a4] sm:$0xf]  ;;  %v7410_v1 = vor.u32 %v8770_v31, %v7407_v45  ;;  %v8752_v59 = vld [vmem:[%s13586_s8 + $0x3c4] sm:$0xf0]  ;;  %v9533_v30 = vld [vmem:[#allocation2 + $0x10] sm:$0xff] }
 0x2be   : > { %v7302_v4 = vor.u32 %v8747_v48, %v7299_v35  ;;  %2959 = vmatpush.bf16.msrb.mxu1 %v7418_v60  ;;  %v13653_v48 = vld [vmem:[#allocation17_spill] sm:$0xff]  ;;  %v7389_v60 = vld [vmem:[%s13586_s8 + $0x420] sm:$0xf]  ;;  %v7391_v45 = vld [vmem:[%s13586_s8 + $0x428] sm:$0xf0] }
 0x2bf   : > { %v2147_v17 = vadd.f32 %v2112_v9, %v13649_v49  ;;  %2930 = vmatpush.bf16.msrb.mxu0 %v7414_v5  ;;  %v7399_v5 = vld [vmem:[%s13586_s8 + $0x438] sm:$0xf0]  ;;  %v3592_v35 = vadd.f32 %v10876_v32, %v13653_v48  ;;  %v8766_v32 = vld [vmem:[%s13586_s8 + $0x424] sm:$0xf]  ;;  %v7283_v48 = vld [vmem:[%s13586_s8 + $0x388] sm:$0xf0] }
 0x2c0   : > { %2719 = vmatpush.bf16.msra.mxu3 %v7302_v4  ;;  %v7305_v4 = vld [vmem:[%s13586_s8 + $0x3b0] sm:$0xf] }
 0x2c1   : > { %v2155_v28 = vmul.f32 %v2147_v17, %v13651_v36  ;;  %v8745_v17 = vld [vmem:[%s13586_s8 + $0x394] sm:$0xf] }
 0x2c2   : > { %2960 = vmatpush.bf16.msrb.mxu1 %v7410_v1 }
 0x2c3   : > { %2931 = vmatpush.bf16.msrb.mxu0 %v7406_v8  ;;  %v8748_v8 = vld [vmem:[%s13586_s8 + $0x3a4] sm:$0xf0] }
 0x2c4   : > { %v2113_v13 = vpop.f32.mrf.mxu0  ;;  %v2139_v34 = vpop.f32.mrf.mxu1  ;;  %v11081_v7 = vld [vmem:[#allocation2 + $0x14] sm:$0xff]  }
 0x2c5   : > { %v2114_v3 = vadd.f32 %v2113_v13, %v10802_v2  ;;  %v2432_v41 = vrot.slane %v11081_v7, 3  ;;  %v2258_v52 = vshrl.u32 %v11081_v7, 16  ;;  %v2261_v16 = vshll.u32 %v11081_v7, 16  ;;  %v11100_v24 = vld [vmem:[#allocation2 + $0x18] sm:$0xff]  ;;  %v13650_v2 = vld [vmem:[#allocation13_spill] sm:$0xff] }
 0x2c6   : > { %9176 = vst [vmem:[#allocation2 + $0x18] sm:$0xff] %v11079_v62   ;;  %v8768_v13 = vld [vmem:[%s13586_s8 + $0x434] sm:$0xf] }
 0x2c7   : > { %v2148_v43 = vadd.f32 %v2114_v3, %v13650_v2  ;;  %v2433_v9 = vsel %vm1026_vm0, %v2430_v14, %v2432_v41  ;;  %v2260_v58 = vrot.slane %v2258_v52, 3  ;;  %v2263_v42 = vrot.slane %v2261_v16, 4  ;;  %v7313_v14 = vld [vmem:[%s13586_s8 + $0x3c0] sm:$0xf]  ;;  %v7291_v3 = vld [vmem:[%s13586_s8 + $0x398] sm:$0xf0] }
 0x2c8   : > { %2535 = vmatmul.bf16.gmra.mxu0 %v2433_v9  ;;  %2564 = vmatmul.bf16.gmra.mxu1 %v2433_v9  ;;  %v7314_v21 = vor.u32 %v8752_v59, %v7313_v14  ;;  %v7402_v49 = vor.u32 %v8768_v13, %v7399_v5  ;;  %v7294_v52 = vor.u32 %v8745_v17, %v7291_v3  ;;  %v8750_v16 = vld [vmem:[%s13586_s8 + $0x3b4] sm:$0xf0]  ;;  %v8767_v2 = vld [vmem:[%s13586_s8 + $0x424] sm:$0xf0]  ;;  %v7297_v9 = vld [vmem:[%s13586_s8 + $0x3a0] sm:$0xf] }
 0x2c9   : > { %v2156_v37 = vmul.f32 %v2148_v43, %v13652_v6  ;;  %v11117_v10 = vor.u32 %v2263_v42, %v2260_v58  ;;  %v7306_v43 = vor.u32 %v8750_v16, %v7305_v4  ;;  %v7390_v31 = vor.u32 %v8767_v2, %v7389_v60  ;;  %v8764_v59 = vld [vmem:[%s13586_s8 + $0x414] sm:$0xf]  ;;  %v8743_v5 = vld [vmem:[%s13586_s8 + $0x384] sm:$0xf]  ;;  %v7289_v17 = vld [vmem:[%s13586_s8 + $0x390] sm:$0xf] }
 0x2ca   : > { %2688 = vmatpush.bf16.msra.mxu2 %v7314_v21  ;;  %2961 = vmatpush.bf16.msrb.mxu1 %v7402_v49  ;;  %v11172_v58 = vmul.f32 %v3592_v35, %v13652_v6  ;;  %v7394_v42 = vor.u32 %v8766_v32, %v7391_v45  ;;  %v9075_v21 = vunpack.c.h.b16 %v11007_v26  ;;  %v7286_v49 = vor.u32 %v8743_v5, %v7283_v48  ;;  %v8746_v3 = vld [vmem:[%s13586_s8 + $0x394] sm:$0xf0]  ;;  %v7373_v4 = vld [vmem:[%s13586_s8 + $0x400] sm:$0xf]  ;;  %v8762_v16 = vld [vmem:[%s13586_s8 + $0x404] sm:$0xf] }
 0x2cb   : > { %v9062_v56 = vpack.c.bf16 %v2156_v37, %v2155_v28  ;;  %v2265_v40 = vsel %vm836_vm1, %v11005_v38, %v11117_v10  ;;  %v8769_v38 = vld [vmem:[%s13586_s8 + $0x434] sm:$0xf0]  ;;  %2720 = vmatpush.bf16.msra.mxu3 %v7294_v52  ;;  %v7381_v28 = vld [vmem:[%s13586_s8 + $0x410] sm:$0xf]  ;;  %v8763_v52 = vld [vmem:[%s13586_s8 + $0x404] sm:$0xf0]  ;;  %v7290_v2 = vor.u32 %v8746_v3, %v7289_v17 }
 0x2cc   : > { %2381 = vmatmul.bf16.gmra.mxu2 %v2265_v40  ;;  %2410 = vmatmul.bf16.gmra.mxu3 %v2265_v40  ;;  %v7398_v34 = vor.u32 %v8769_v38, %v7397_v22  ;;  %13655 = vst [vmem:[#allocation8_spill] sm:$0xff] %v11172_v58  ;;  %v8765_v37 = vld [vmem:[%s13586_s8 + $0x414] sm:$0xf0]  ;;  %v7298_v40 = vor.u32 %v8748_v8, %v7297_v9  ;;  %v7375_v60 = vld [vmem:[%s13586_s8 + $0x408] sm:$0xf0] }
 0x2cd   : > { %9166 = vst [vmem:[#allocation2 + $0x20] sm:$0xff] %v9062_v56   ;;  %v7382_v14 = vor.u32 %v8765_v37, %v7381_v28  ;;  %v11191_v22 = vmul.f32 %v3591_v12, %v13651_v36  ;;  %v7374_v9 = vor.u32 %v8763_v52, %v7373_v4  ;;  %v7511_v5 = vld [vmem:[%s13586_s8 + $0x4f8] sm:$0xf0]  ;;  %v8790_v48 = vld [vmem:[%s13586_s8 + $0x4e4] sm:$0xf] }
 0x2ce   : > { %2932 = vmatpush.bf16.msrb.mxu0 %v7398_v34  ;;  %2689 = vmatpush.bf16.msra.mxu2 %v7306_v43  ;;  %v7383_v34 = vld [vmem:[%s13586_s8 + $0x418] sm:$0xf0] }
 0x2cf   : > { %13656 = vst [vmem:[#allocation15_spill] sm:$0xff] %v11191_v22  ;;  %2962 = vmatpush.bf16.msrb.mxu1 %v7394_v42  ;;  %v7386_v35 = vor.u32 %v8764_v59, %v7383_v34  ;;  %v9098_v55 = vpack.c.bf16 %v11172_v58, %v11191_v22  ;;  %2721 = vmatpush.bf16.msra.mxu3 %v7286_v49  ;;  %v8792_v34 = vld [vmem:[%s13586_s8 + $0x4f4] sm:$0xf]  ;;  %v7775_v6 = vld [vmem:[%s13586_s8 + $0x118] sm:$0xf0] }
 0x2d0   : > { %v7378_v42 = vor.u32 %v8762_v16, %v7375_v60  ;;  %v7765_v58 = vld [vmem:[%s13586_s8 + $0x100] sm:$0xf] }
 0x2d2   : > { %2933 = vmatpush.bf16.msrb.mxu0 %v7390_v31  ;;  %2690 = vmatpush.bf16.msra.mxu2 %v7298_v40  ;;  %v7281_v40 = vld [vmem:[%s13586_s8 + $0x380] sm:$0xf] }
 0x2d3   : > { %2963 = vmatpush.bf16.msrb.mxu1 %v7386_v35  ;;  %v7514_v35 = vor.u32 %v8792_v34, %v7511_v5 }
 0x2d4   : > { %v11183_v1 = vld [vmem:[#allocation2 + $0x20] sm:$0xff]  }
 0x2d5   : > { %v11185_v56 = vld [vmem:[#allocation2 + $0x24] sm:$0x7]  ;;  %v2233_v38 = vunpack.c.l.b16 %v11183_v1  ;;  %v2234_v13 = vunpack.c.h.b16 %v11183_v1  ;;  %3145 = vmatpush.bf16.msrb.mxu3 %v7514_v35  ;;  %v8791_v35 = vld [vmem:[%s13586_s8 + $0x4e4] sm:$0xf0] }
 0x2d6   : > { %2934 = vmatpush.bf16.msrb.mxu0 %v7382_v14  ;;  %v11225_v43 = vld [vmem:[#allocation2 + $0x20] sm:$0xff]  ;;  %v8744_v14 = vld [vmem:[%s13586_s8 + $0x384] sm:$0xf0]  ;;  %2691 = vmatpush.bf16.msra.mxu2 %v7290_v2 }
 0x2d7   : > { %v2238_v12 = vpack.c.b16 %v2233_v38, %v9075_v21  ;;  %9177 = vst [vmem:[#allocation2 + $0x20] sm:$0xff] %v9098_v55   ;;  %v7282_v21 = vor.u32 %v8744_v14, %v7281_v40  ;;  %2964 = vmatpush.bf16.msrb.mxu1 %v7378_v42  ;;  %v2239_v38 = vpack.c.b16 %v2234_v13, %v2234_v13  ;;  %v7495_v42 = vld [vmem:[%s13586_s8 + $0x4d8] sm:$0xf0]  ;;  %v7487_v40 = vld [vmem:[%s13586_s8 + $0x4c8] sm:$0xf0] }
 0x2d9   : > { %v2434_v31 = vrot.slane %v2238_v12, 3  ;;  %v2267_v32 = vshrl.u32 %v2238_v12, 16  ;;  %v2270_v45 = vshll.u32 %v2238_v12, 16  ;;  %v2276_v3 = vshrl.u32 %v2239_v38, 16 }
 0x2da   : > { %2935 = vmatpush.bf16.msrb.mxu0 %v7374_v9  ;;  %2692 = vmatpush.bf16.msra.mxu2 %v7282_v21  ;;  %v2279_v4 = vshll.u32 %v2239_v38, 16  ;;  %v8788_v9 = vld [vmem:[%s13586_s8 + $0x4d4] sm:$0xf] }
 0x2db   : > { %v2435_v8 = vsel %vm1026_vm0, %v2432_v41, %v2434_v31  ;;  %v2269_v28 = vrot.slane %v2267_v32, 3  ;;  %v2272_v37 = vrot.slane %v2270_v45, 4  ;;  %v2427_v41 = vunpack.c.l.b16 %v11185_v56 }
 0x2dc   : > { %2540 = vmatmul.bf16.gmra.mxu0 %v2435_v8  ;;  %2569 = vmatmul.bf16.gmra.mxu1 %v2435_v8  ;;  %v2278_v52 = vrot.slane %v2276_v3, 3  ;;  %v2281_v16 = vrot.slane %v2279_v4, 4  ;;  %v2811_v45 = vshll.u32 %v10894_v20, 16  ;;  %v7498_v8 = vor.u32 %v8788_v9, %v7495_v42  ;;  %v7479_v3 = vld [vmem:[%s13586_s8 + $0x4b8] sm:$0xf0] }
 0x2dd   : > { %v2273_v59 = vor.u32 %v2272_v37, %v2269_v28  ;;  %v2428_v17 = vpack.c.b16 %v2427_v41, %v2427_v41  ;;  %v8793_v28 = vld [vmem:[%s13586_s8 + $0x4f4] sm:$0xf0]  ;;  %v8786_v37 = vld [vmem:[%s13586_s8 + $0x4c4] sm:$0xf]  ;;  %v2809_v41 = vshrl.u32 %v10894_v20, 16 }
 0x2de   : > { %v11251_v56 = vld [vmem:[#allocation2 + $0x20] sm:$0xff]   ;;  %v2282_v2 = vor.u32 %v2281_v16, %v2278_v52  ;;  %v7490_v21 = vor.u32 %v8786_v37, %v7487_v40  ;;  %v7493_v4 = vld [vmem:[%s13586_s8 + $0x4d0] sm:$0xf]  ;;  %v7471_v52 = vld [vmem:[%s13586_s8 + $0x4a8] sm:$0xf0] }
 0x2df   : > { %v2274_v7 = vsel %vm836_vm1, %v11117_v10, %v2273_v59  ;;  %v7503_v10 = vld [vmem:[%s13586_s8 + $0x4e8] sm:$0xf0]  ;;  %v3675_v13 = vunpack.c.l.b16 %v11251_v56  ;;  %v2436_v12 = vrot.slane %v2428_v17, 3  ;;  %v8784_v17 = vld [vmem:[%s13586_s8 + $0x4b4] sm:$0xf] }
 0x2e0   : > { %2386 = vmatmul.bf16.gmra.mxu2 %v2274_v7  ;;  %2415 = vmatmul.bf16.gmra.mxu3 %v2274_v7  ;;  %v7506_v55 = vor.u32 %v8790_v48, %v7503_v10  ;;  %v2283_v32 = vsel %vm836_vm1, %v2273_v59, %v2282_v2  ;;  %v2816_v59 = vshll.u32 %v10992_v44, 16  ;;  %v2813_v7 = vrot.slane %v2811_v45, 1  ;;  %v7501_v48 = vld [vmem:[%s13586_s8 + $0x4e0] sm:$0xf]  ;;  %v8780_v37 = vld [vmem:[%s13586_s8 + $0x494] sm:$0xf] }
 0x2e1   : > { %v2437_v60 = vsel %vm1026_vm0, %v2434_v31, %v2436_v12  ;;  %v7509_v31 = vld [vmem:[%s13586_s8 + $0x4f0] sm:$0xf]  ;;  %v7502_v10 = vor.u32 %v8791_v35, %v7501_v48  ;;  %v8789_v12 = vld [vmem:[%s13586_s8 + $0x4d4] sm:$0xf0]  ;;  %v7463_v40 = vld [vmem:[%s13586_s8 + $0x498] sm:$0xf0] }
 0x2e2   : > { %3146 = vmatpush.bf16.msrb.mxu3 %v7506_v55  ;;  %v7510_v14 = vor.u32 %v8793_v28, %v7509_v31  ;;  %v2818_v38 = vrot.slane %v2816_v59, 1  ;;  %v2814_v34 = vor.u32 %v2813_v7, %v2809_v41  ;;  %v7482_v55 = vor.u32 %v8784_v17, %v7479_v3  ;;  %v7485_v31 = vld [vmem:[%s13586_s8 + $0x4c0] sm:$0xf]  ;;  %v8783_v7 = vld [vmem:[%s13586_s8 + $0x4a4] sm:$0xf0] }
 0x2e3   : > { %v7494_v16 = vor.u32 %v8789_v12, %v7493_v4  ;;  %v7466_v59 = vor.u32 %v8780_v37, %v7463_v40  ;;  %v7455_v48 = vld [vmem:[%s13586_s8 + $0x488] sm:$0xf0]  ;;  %v7461_v35 = vld [vmem:[%s13586_s8 + $0x490] sm:$0xf]  ;;  %v8781_v4 = vld [vmem:[%s13586_s8 + $0x494] sm:$0xf0] }
 0x2e4   : > { %3116 = vmatpush.bf16.msrb.mxu2 %v7510_v14  ;;  %v2819_v5 = vsel %vm1406_vm2, %v2814_v34, %v2818_v38  ;;  %v7477_v14 = vld [vmem:[%s13586_s8 + $0x4b0] sm:$0xf]  ;;  %v7462_v12 = vor.u32 %v8781_v4, %v7461_v35 }
 0x2e6   : > { %3147 = vmatpush.bf16.msrb.mxu3 %v7498_v8  ;;  %v8787_v8 = vld [vmem:[%s13586_s8 + $0x4c4] sm:$0xf0] }
 0x2e7   : > { %v7486_v28 = vor.u32 %v8787_v8, %v7485_v31 }
 0x2e8   : > { %3117 = vmatpush.bf16.msrb.mxu2 %v7502_v10  ;;  %v2828_v10 = vshrl.u32 %v11100_v24, 16 }
 0x2ea   : > { %3148 = vmatpush.bf16.msrb.mxu3 %v7490_v21  ;;  %v8785_v21 = vld [vmem:[%s13586_s8 + $0x4b4] sm:$0xf0] }
 0x2eb   : > { %v7478_v41 = vor.u32 %v8785_v21, %v7477_v14  ;;  %v3024_v14 = vrot.slane %v10992_v44, 1 }
 0x2ec   : > { %2545 = vmatmul.bf16.gmra.mxu0 %v2437_v60  ;;  %2574 = vmatmul.bf16.gmra.mxu1 %v2437_v60  ;;  %v2824_v60 = vshll.u32 %v11100_v24, 16 }
 0x2ed   : > { %3118 = vmatpush.bf16.msrb.mxu2 %v7494_v16  ;;  %v8779_v16 = vld [vmem:[%s13586_s8 + $0x484] sm:$0xf0] }
 0x2ee   : > { %3149 = vmatpush.bf16.msrb.mxu3 %v7482_v55  ;;  %v2826_v45 = vrot.slane %v2824_v60, 1 }
 0x2f0   : > { %2391 = vmatmul.bf16.gmra.mxu2 %v2283_v32  ;;  %2420 = vmatmul.bf16.gmra.mxu3 %v2283_v32  ;;  %v2820_v32 = vshrl.u32 %v10992_v44, 16  ;;  %v2830_v55 = vor.u32 %v2828_v10, %v2826_v45  ;;  %v7669_v10 = vld [vmem:[%s13586_s8 + $0xe0] sm:$0xf] }
 0x2f1   : > { %3119 = vmatpush.bf16.msrb.mxu2 %v7486_v28 }
 0x2f2   : > { %v2822_v9 = vor.u32 %v2820_v32, %v2818_v38  ;;  %v2832_v38 = vshll.u32 %v11225_v43, 16 }
 0x2f4   : > { %v2827_v42 = vsel %vm1406_vm2, %v2822_v9, %v2826_v45  ;;  %v2834_v17 = vrot.slane %v2832_v38, 1 }
 0x2f5   : > { %3120 = vmatpush.bf16.msrb.mxu2 %v7478_v41 }
 0x2f6   : > { %v2835_v60 = vsel %vm1406_vm2, %v2830_v55, %v2834_v17  ;;  %v7671_v55 = vld [vmem:[%s13586_s8 + $0xe8] sm:$0xf0] }
 0x2fc   : > { %2936 = vmatmul.bf16.vlgmr.msrb.gmra.mxu0 %v2819_v5  ;;  %2965 = vmatmul.bf16.vlgmr.msrb.gmra.mxu1 %v2819_v5  ;;  %v8778_v5 = vld [vmem:[%s13586_s8 + $0x484] sm:$0xf] }
 0x2fd   : > { %v7458_v3 = vor.u32 %v8778_v5, %v7455_v48  ;;  %v7679_v48 = vld [vmem:[%s13586_s8 + $0xf8] sm:$0xf0] }
 0x300   : > { %2693 = vmatmul.bf16.vlgmr.msra.gmra.mxu2 %v10894_v20  ;;  %2722 = vmatmul.bf16.vlgmr.msra.gmra.mxu3 %v10894_v20  ;;  %v8782_v20 = vld [vmem:[%s13586_s8 + $0x4a4] sm:$0xf] }
 0x301   : > { %v7474_v2 = vor.u32 %v8782_v20, %v7471_v52  ;;  %v2767_v20 = vld [vmem:[#allocation2 + $0x28] sm:$0x1]  ;;  %v7453_v52 = vld [vmem:[%s13586_s8 + $0x480] sm:$0xf] }
 0x302   : > { %v7454_v32 = vor.u32 %v8779_v16, %v7453_v52  ;;  %v7661_v16 = vld [vmem:[%s13586_s8 + $0xd0] sm:$0xf] }
 0x303   : > { %3150 = vmatpush.bf16.msrb.mxu3 %v7474_v2  ;;  %v2802_v2 = vunpack.c.l.b16 %v2767_v20 }
 0x305   : > { %v11357_v45 = vpack.c.b16 %v2802_v2, %v2802_v2  ;;  %v8836_v2 = vld [vmem:[%s13586_s8 + $0xd4] sm:$0xf] }
 0x307   : > { %3151 = vmatpush.bf16.msrb.mxu3 %v7466_v59  ;;  %v2840_v9 = vshll.u32 %v11357_v45, 16 }
 0x309   : > { %v2842_v8 = vrot.slane %v2840_v9, 1  ;;  %v7663_v9 = vld [vmem:[%s13586_s8 + $0xd8] sm:$0xf0] }
 0x30b   : > { %3152 = vmatpush.bf16.msrb.mxu3 %v7458_v3  ;;  %v8838_v3 = vld [vmem:[%s13586_s8 + $0xe4] sm:$0xf] }
 0x30c   : > { %2941 = vmatmul.bf16.gmra.mxu0 %v2827_v42  ;;  %2970 = vmatmul.bf16.gmra.mxu1 %v2827_v42  ;;  %v2836_v42 = vshrl.u32 %v11225_v43, 16 }
 0x30e   : > { %v2838_v31 = vor.u32 %v2836_v42, %v2834_v17  ;;  %v8839_v17 = vld [vmem:[%s13586_s8 + $0xe4] sm:$0xf0]  ;;  %v3026_v42 = vrot.slane %v11100_v24, 1  ;;  %v7655_v24 = vld [vmem:[%s13586_s8 + $0xc8] sm:$0xf0] }
 0x30f   : > { %v7670_v4 = vor.u32 %v8839_v17, %v7669_v10  ;;  %v7647_v10 = vld [vmem:[%s13586_s8 + $0xb8] sm:$0xf0] }
 0x310   : > { %2698 = vmatmul.bf16.gmra.mxu2 %v10948_v54  ;;  %2727 = vmatmul.bf16.gmra.mxu3 %v10948_v54  ;;  %v7469_v54 = vld [vmem:[%s13586_s8 + $0x4a0] sm:$0xf]  ;;  %v2843_v28 = vsel %vm1406_vm2, %v2838_v31, %v2842_v8  ;;  %v7666_v31 = vor.u32 %v8836_v2, %v7663_v9  ;;  %v7629_v9 = vld [vmem:[%s13586_s8 + $0x90] sm:$0xf] }
 0x311   : > { %v7470_v34 = vor.u32 %v8783_v7, %v7469_v54 }
 0x313   : > { %3121 = vmatpush.bf16.msrb.mxu2 %v7470_v34 }
 0x317   : > { %3122 = vmatpush.bf16.msrb.mxu2 %v7462_v12  ;;  %v7674_v12 = vor.u32 %v8838_v3, %v7671_v55  ;;  %v7637_v3 = vld [vmem:[%s13586_s8 + $0xa0] sm:$0xf]  ;;  %v8830_v55 = vld [vmem:[%s13586_s8 + $0xa4] sm:$0xf] }
 0x31b   : > { %3123 = vmatpush.bf16.msrb.mxu2 %v7454_v32 }
 0x31c   : > { %2946 = vmatmul.bf16.gmra.mxu0 %v2835_v60  ;;  %2975 = vmatmul.bf16.gmra.mxu1 %v2835_v60  ;;  %v8837_v60 = vld [vmem:[%s13586_s8 + $0xd4] sm:$0xf0] }
 0x31d   : > { %v7662_v32 = vor.u32 %v8837_v60, %v7661_v16  ;;  %v7639_v16 = vld [vmem:[%s13586_s8 + $0xa8] sm:$0xf0] }
 0x320   : > { %2703 = vmatmul.bf16.gmra.mxu2 %v11007_v26  ;;  %2732 = vmatmul.bf16.gmra.mxu3 %v11007_v26  ;;  %v9173_v26 = vor.u32 %v10939_v57, %v10937_v18  ;;  %v8841_v18 = vld [vmem:[%s13586_s8 + $0xf4] sm:$0xf0]  ;;  %v8840_v57 = vld [vmem:[%s13586_s8 + $0xf4] sm:$0xf] }
 0x321   : > { %v7682_v35 = vor.u32 %v8840_v57, %v7679_v48  ;;  %v8833_v48 = vld [vmem:[%s13586_s8 + $0xb4] sm:$0xf0] }
 0x322   : > { %v3023_v59 = vrot.slane %v9173_v26, 1  ;;  %v8834_v26 = vld [vmem:[%s13586_s8 + $0xc4] sm:$0xf] }
 0x323   : > { %3839 = vmatpush.bf16.msra.mxu3 %v7682_v35 }
 0x324   : > { %v3025_v21 = vsel %vm1622_vm3, %v3023_v59, %v3024_v14 }
 0x327   : > { %3840 = vmatpush.bf16.msra.mxu3 %v7674_v12 }
 0x32b   : > { %3841 = vmatpush.bf16.msra.mxu3 %v7666_v31  ;;  %v8829_v31 = vld [vmem:[%s13586_s8 + $0x94] sm:$0xf0] }
 0x32c   : > { %2951 = vmatmul.bf16.gmra.mxu0 %v2843_v28  ;;  %2980 = vmatmul.bf16.gmra.mxu1 %v2843_v28 }
 0x330   : > { %2708 = vmatmul.bf16.gmra.mxu2 %v11183_v1  ;;  %2737 = vmatmul.bf16.gmra.mxu3 %v11183_v1  ;;  %v7677_v1 = vld [vmem:[%s13586_s8 + $0xf0] sm:$0xf] }
 0x331   : > { %v7678_v5 = vor.u32 %v8841_v18, %v7677_v1 }
 0x333   : > { %3810 = vmatpush.bf16.msra.mxu2 %v7678_v5  ;;  %v7645_v5 = vld [vmem:[%s13586_s8 + $0xb0] sm:$0xf] }
 0x334   : > { %v7646_v35 = vor.u32 %v8833_v48, %v7645_v5 }
 0x335   : > { %v2531_v37 = vpop.f32.mrf.mxu0  ;;  %v2560_v40 = vpop.f32.mrf.mxu1 }
 0x337   : > { %3811 = vmatpush.bf16.msra.mxu2 %v7670_v4  ;;  %v8831_v4 = vld [vmem:[%s13586_s8 + $0xa4] sm:$0xf0] }
 0x338   : > { %v7638_v12 = vor.u32 %v8831_v4, %v7637_v3 }
 0x33b   : > { %3812 = vmatpush.bf16.msra.mxu2 %v7662_v32  ;;  %v7642_v32 = vor.u32 %v8830_v55, %v7639_v16 }
 0x33d   : > { %v11381_v44 = vpop.f32.mrf.mxu0  ;;  %v11383_v34 = vpop.f32.mrf.mxu1 }
 0x33f   : > { %v2377_v54 = vpop.f32.mrf.mxu2  ;;  %v2406_v7 = vpop.f32.mrf.mxu3 }
 0x340   : > { %3124 = vmatmul.bf16.vlgmr.msrb.gmra.mxu2 %v3025_v21  ;;  %3153 = vmatmul.bf16.vlgmr.msrb.gmra.mxu3 %v3025_v21  ;;  %v11368_v41 = vadd.f32 %v2531_v37, %v2377_v54  ;;  %v11370_v38 = vadd.f32 %v2560_v40, %v2406_v7  ;;  %v7653_v37 = vld [vmem:[%s13586_s8 + $0xc0] sm:$0xf]  ;;  %v8835_v40 = vld [vmem:[%s13586_s8 + $0xc4] sm:$0xf0]  ;;  %v7658_v21 = vor.u32 %v8834_v26, %v7655_v24 }
 0x341   : > { %v7654_v59 = vor.u32 %v8835_v40, %v7653_v37  ;;  %v3027_v54 = vsel %vm1622_vm3, %v3024_v14, %v3026_v42  ;;  %v8832_v14 = vld [vmem:[%s13586_s8 + $0xb4] sm:$0xf]  ;;  %v7631_v37 = vld [vmem:[%s13586_s8 + $0x98] sm:$0xf0] }
 0x342   : > { %3842 = vmatpush.bf16.msra.mxu3 %v7658_v21  ;;  %v7650_v17 = vor.u32 %v8832_v14, %v7647_v10  ;;  %v7621_v21 = vld [vmem:[%s13586_s8 + $0x80] sm:$0xf] }
 0x343   : > { %3813 = vmatpush.bf16.msra.mxu2 %v7654_v59  ;;  %v3028_v59 = vrot.slane %v11225_v43, 1  ;;  %v7623_v43 = vld [vmem:[%s13586_s8 + $0x88] sm:$0xf0] }
 0x345   : > { %v2536_v8 = vpop.f32.mrf.mxu0  ;;  %v2565_v28 = vpop.f32.mrf.mxu1 }
 0x346   : > { %3843 = vmatpush.bf16.msra.mxu3 %v7650_v17 }
 0x347   : > { %v11400_v20 = vpop.f32.mrf.mxu2  ;;  %v11402_v52 = vpop.f32.mrf.mxu3  ;;  %3814 = vmatpush.bf16.msra.mxu2 %v7646_v35  ;;  %v3029_v35 = vsel %vm1622_vm3, %v3026_v42, %v3028_v59  ;;  %v3030_v42 = vrot.slane %v11357_v45, 1 }
 0x348   : > { %v2563_v33 = vadd.f32 %v11383_v34, %v11402_v52  ;;  %v7549_v52 = vld [vmem:[%s13587_s9 + $0xa0] sm:$0xf] }
 0x34a   : > { %3844 = vmatpush.bf16.msra.mxu3 %v7642_v32 }
 0x34b   : > { %3815 = vmatpush.bf16.msra.mxu2 %v7638_v12 }
 0x34d   : > { %v11458_v60 = vpop.f32.mrf.mxu0  ;;  %v11460_v2 = vpop.f32.mrf.mxu1 }
 0x34f   : > { %v2382_v7 = vpop.f32.mrf.mxu2  ;;  %v2411_v1 = vpop.f32.mrf.mxu3 }
 0x350   : > { %3129 = vmatmul.bf16.gmra.mxu2 %v3027_v54  ;;  %3158 = vmatmul.bf16.gmra.mxu3 %v3027_v54  ;;  %v11430_v18 = vadd.f32 %v2536_v8, %v2382_v7  ;;  %v11432_v57 = vadd.f32 %v2565_v28, %v2411_v1  ;;  %v8828_v8 = vld [vmem:[%s13586_s8 + $0x94] sm:$0xf]  ;;  %v7630_v28 = vor.u32 %v8829_v31, %v7629_v9  ;;  %v8827_v54 = vld [vmem:[%s13586_s8 + $0x84] sm:$0xf0]  ;;  %v8826_v7 = vld [vmem:[%s13586_s8 + $0x84] sm:$0xf] }
 0x351   : > { %v7634_v24 = vor.u32 %v8828_v8, %v7631_v37  ;;  %v7622_v1 = vor.u32 %v8827_v54, %v7621_v21  ;;  %v7626_v14 = vor.u32 %v8826_v7, %v7623_v43  ;;  %v9226_v9 = vld [vmem:[#allocation2 + $0x4] sm:$0x8]  ;;  %v9279_v31 = vld [vmem:[#allocation2 + $0x4] sm:$0xf0]   ;;  %v3031_v8 = vsel %vm1622_vm3, %v3028_v59, %v3030_v42 }
 0x352   : > { %3816 = vmatpush.bf16.msra.mxu2 %v7630_v28  ;;  %v9281_v28 = vld [vmem:[#allocation2 + $0xc] sm:$0xff]   ;;  %v11506_v37 = vor.u32 %v9279_v31, %v9226_v9 }
 0x353   : > { %3845 = vmatpush.bf16.msra.mxu3 %v7634_v24  ;;  %v3694_v43 = vshll.u32 %v9281_v28, 16 }
 0x354   : > { %v3683_v45 = vshrl.u32 %v11506_v37, 16 }
 0x356   : > { %3817 = vmatpush.bf16.msra.mxu2 %v7622_v1  ;;  %v3691_v1 = vshrl.u32 %v9281_v28, 16 }
 0x357   : > { %v11474_v40 = vpop.f32.mrf.mxu2  ;;  %v11476_v26 = vpop.f32.mrf.mxu3  ;;  %3846 = vmatpush.bf16.msra.mxu3 %v7626_v14  ;;  %v3686_v14 = vshll.u32 %v11506_v37, 16 }
 0x358   : > { %v3693_v59 = vrot.slane %v3691_v1, 3 }
 0x359   : > { %v2541_v5 = vpop.f32.mrf.mxu0  ;;  %v2570_v48 = vpop.f32.mrf.mxu1 }
 0x360   : > { %3134 = vmatmul.bf16.gmra.mxu2 %v3029_v35  ;;  %3163 = vmatmul.bf16.gmra.mxu3 %v3029_v35  ;;  %v3696_v35 = vrot.slane %v3694_v43, 4  ;;  %v7823_v43 = vld [vmem:[%s13586_s8 + $0x178] sm:$0xf0] }
 0x361   : > { %v11496_v55 = vpop.f32.mrf.mxu0  ;;  %v11498_v12 = vpop.f32.mrf.mxu1 }
 0x362   : > { %v3697_v31 = vor.u32 %v3696_v35, %v3693_v59 }
 0x363   : > { %v2387_v10 = vpop.f32.mrf.mxu2  ;;  %v2416_v17 = vpop.f32.mrf.mxu3 }
 0x364   : > { %v11492_v3 = vadd.f32 %v2541_v5, %v2387_v10  ;;  %v11494_v4 = vadd.f32 %v2570_v48, %v2416_v17  ;;  %v3685_v10 = vrot.slane %v3683_v45, 3  ;;  %v3688_v17 = vrot.slane %v3686_v14, 4 }
 0x369   : > { %v2546_v24 = vpop.f32.mrf.mxu0  ;;  %v2575_v21 = vpop.f32.mrf.mxu1 }
 0x36b   : > { %v11500_v16 = vpop.f32.mrf.mxu2  ;;  %v11502_v32 = vpop.f32.mrf.mxu3 }
 0x370   : > { %3139 = vmatmul.bf16.gmra.mxu2 %v3031_v8  ;;  %3168 = vmatmul.bf16.gmra.mxu3 %v3031_v8  ;;  %v3689_v8 = vor.u32 %v3688_v17, %v3685_v10 }
 0x372   : > { %v3698_v28 = vsel %vm836_vm1, %v3689_v8, %v3697_v31 }
 0x373   : > { %v2392_v54 = vpop.f32.mrf.mxu2  ;;  %v2421_v7 = vpop.f32.mrf.mxu3 }
 0x374   : > { %v11508_v5 = vadd.f32 %v2546_v24, %v2392_v54  ;;  %v11510_v48 = vadd.f32 %v2575_v21, %v2421_v7  ;;  %v9282_v24 = vld [vmem:[#allocation2 + $0x14] sm:$0xff]   ;;  %v7821_v21 = vld [vmem:[%s13586_s8 + $0x170] sm:$0xf] }
 0x375   : > { %v8857_v54 = vld [vmem:[%s13586_s8 + $0x174] sm:$0xf0]  ;;  %v8856_v7 = vld [vmem:[%s13586_s8 + $0x174] sm:$0xf]  ;;  %v3700_v59 = vshrl.u32 %v9282_v24, 16  ;;  %v3703_v35 = vshll.u32 %v9282_v24, 16 }
 0x376   : > { %v7822_v1 = vor.u32 %v8857_v54, %v7821_v21  ;;  %v7826_v10 = vor.u32 %v8856_v7, %v7823_v43  ;;  %v8855_v21 = vld [vmem:[%s13586_s8 + $0x164] sm:$0xf0]  ;;  %v8854_v24 = vld [vmem:[%s13586_s8 + $0x164] sm:$0xf]  ;;  %v7805_v43 = vld [vmem:[%s13586_s8 + $0x150] sm:$0xf] }
 0x377   : > { %v3702_v7 = vrot.slane %v3700_v59, 3  ;;  %v7807_v59 = vld [vmem:[%s13586_s8 + $0x158] sm:$0xf0] }
 0x378   : > { %4126 = vmatpush.bf16.msrb.mxu2 %v7822_v1  ;;  %4155 = vmatpush.bf16.msrb.mxu3 %v7826_v10  ;;  %v3705_v1 = vrot.slane %v3703_v35, 4 }
 0x37b   : > { %v11514_v42 = vpop.f32.mrf.mxu2  ;;  %v11516_v9 = vpop.f32.mrf.mxu3 }
 0x380   : > { %3818 = vmatmul.bf16.vlgmr.msra.gmra.mxu2 %v3698_v28  ;;  %3847 = vmatmul.bf16.vlgmr.msra.gmra.mxu3 %v3698_v28  ;;  %v7813_v28 = vld [vmem:[%s13586_s8 + $0x160] sm:$0xf] }
 0x381   : > { %v7814_v54 = vor.u32 %v8855_v21, %v7813_v28  ;;  %v11565_v21 = vor.u32 %v3705_v1, %v3702_v7  ;;  %v7799_v7 = vld [vmem:[%s13586_s8 + $0x148] sm:$0xf0]  ;;  %v7569_v1 = vld [vmem:[%s13587_s9 + $0xf0] sm:$0xf] }
 0x383   : > { %v2694_v45 = vpop.f32.mrf.mxu2  ;;  %v2723_v14 = vpop.f32.mrf.mxu3  ;;  %4127 = vmatpush.bf16.msrb.mxu2 %v7814_v54  ;;  %v7797_v54 = vld [vmem:[%s13586_s8 + $0x140] sm:$0xf]  ;;  %v3707_v49 = vsel %vm836_vm1, %v3697_v31, %v11565_v21  ;;  %v8848_v31 = vld [vmem:[%s13586_s8 + $0x134] sm:$0xf] }
 0x384   : > { %v11532_v17 = vadd.f32 %v2694_v45, %v11368_v41  ;;  %v11535_v8 = vadd.f32 %v2723_v14, %v11370_v38  ;;  %v7815_v41 = vld [vmem:[%s13586_s8 + $0x168] sm:$0xf0]  ;;  %v8853_v45 = vld [vmem:[%s13586_s8 + $0x154] sm:$0xf0]  ;;  %v8852_v14 = vld [vmem:[%s13586_s8 + $0x154] sm:$0xf] }
 0x385   : > { %v7818_v38 = vor.u32 %v8854_v24, %v7815_v41  ;;  %v7806_v10 = vor.u32 %v8853_v45, %v7805_v43  ;;  %v7810_v24 = vor.u32 %v8852_v14, %v7807_v59  ;;  %v8851_v41 = vld [vmem:[%s13586_s8 + $0x144] sm:$0xf0]  ;;  %v9111_v43 = vunpack.c.h.b16 %v11079_v62  ;;  %v8801_v14 = vld [vmem:[%s13587_s9 + $0xf4] sm:$0xf0] }
 0x386   : > { %v7798_v45 = vor.u32 %v8851_v41, %v7797_v54  ;;  %v7570_v59 = vor.u32 %v8801_v14, %v7569_v1  ;;  %v8849_v54 = vld [vmem:[%s13586_s8 + $0x134] sm:$0xf0] }
 0x387   : > { %4156 = vmatpush.bf16.msrb.mxu3 %v7818_v38  ;;  %4128 = vmatpush.bf16.msrb.mxu2 %v7806_v10  ;;  %v8850_v38 = vld [vmem:[%s13586_s8 + $0x144] sm:$0xf]  ;;  %v11590_v62 = vpack.c.b16 %v3675_v13, %v9111_v43  ;;  %v7791_v13 = vld [vmem:[%s13586_s8 + $0x138] sm:$0xf0] }
 0x388   : > { %v7802_v10 = vor.u32 %v8850_v38, %v7799_v7  ;;  %3451 = vmatpush.bf16.msra.mxu0 %v7570_v59  ;;  %v7794_v7 = vor.u32 %v8848_v31, %v7791_v13  ;;  %v8847_v59 = vld [vmem:[%s13586_s8 + $0x124] sm:$0xf0] }
 0x389   : > { %v3709_v43 = vshrl.u32 %v11590_v62, 16  ;;  %v8800_v31 = vld [vmem:[%s13587_s9 + $0xe4] sm:$0xf0] }
 0x38b   : > { %v11561_v35 = vpop.f32.mrf.mxu2  ;;  %v11563_v28 = vpop.f32.mrf.mxu3  ;;  %4157 = vmatpush.bf16.msrb.mxu3 %v7810_v24  ;;  %4129 = vmatpush.bf16.msrb.mxu2 %v7798_v45  ;;  %v7789_v24 = vld [vmem:[%s13586_s8 + $0x130] sm:$0xf]  ;;  %v3712_v45 = vshll.u32 %v11590_v62, 16 }
 0x38c   : > { %v7790_v41 = vor.u32 %v8849_v54, %v7789_v24  ;;  %v8846_v24 = vld [vmem:[%s13586_s8 + $0x124] sm:$0xf]  ;;  %v2746_v51 = vadd.f32 %v11563_v28, %v2563_v33 }
 0x38f   : > { %4158 = vmatpush.bf16.msrb.mxu3 %v7802_v10  ;;  %v7781_v10 = vld [vmem:[%s13586_s8 + $0x120] sm:$0xf]  ;;  %4130 = vmatpush.bf16.msrb.mxu2 %v7790_v41  ;;  %v7773_v41 = vld [vmem:[%s13586_s8 + $0x110] sm:$0xf] }
 0x390   : > { %3823 = vmatmul.bf16.gmra.mxu2 %v3707_v49  ;;  %3852 = vmatmul.bf16.gmra.mxu3 %v3707_v49  ;;  %v7782_v54 = vor.u32 %v8847_v59, %v7781_v10  ;;  %v3711_v10 = vrot.slane %v3709_v43, 3  ;;  %v3714_v59 = vrot.slane %v3712_v45, 4  ;;  %v8843_v43 = vld [vmem:[%s13586_s8 + $0x104] sm:$0xf0]  ;;  %v8842_v45 = vld [vmem:[%s13586_s8 + $0x104] sm:$0xf] }
 0x392   : > { %v3715_v36 = vor.u32 %v3714_v59, %v3711_v10  ;;  %v13657_v10 = vunpack.c.h.b16 %v11251_v56 }
 0x393   : > { %v2699_v49 = vpop.f32.mrf.mxu2  ;;  %v2728_v38 = vpop.f32.mrf.mxu3  ;;  %4159 = vmatpush.bf16.msrb.mxu3 %v7794_v7  ;;  %v8844_v7 = vld [vmem:[%s13586_s8 + $0x114] sm:$0xf]  ;;  %4131 = vmatpush.bf16.msrb.mxu2 %v7782_v54  ;;  %v7767_v54 = vld [vmem:[%s13586_s8 + $0x108] sm:$0xf0] }
 0x394   : > { %v11607_v1 = vadd.f32 %v2699_v49, %v11430_v18  ;;  %v11610_v14 = vadd.f32 %v2728_v38, %v11432_v57  ;;  %v7783_v18 = vld [vmem:[%s13586_s8 + $0x128] sm:$0xf0]  ;;  %v7565_v57 = vld [vmem:[%s13587_s9 + $0xe0] sm:$0xf]  ;;  %v8845_v38 = vld [vmem:[%s13586_s8 + $0x114] sm:$0xf0] }
 0x395   : > { %v7786_v13 = vor.u32 %v8846_v24, %v7783_v18  ;;  %v7566_v49 = vor.u32 %v8800_v31, %v7565_v57  ;;  %v7774_v24 = vor.u32 %v8845_v38, %v7773_v41  ;;  %v7778_v18 = vor.u32 %v8844_v7, %v7775_v6 }
 0x396   : > { %v7766_v6 = vor.u32 %v8843_v43, %v7765_v58  ;;  %v7770_v41 = vor.u32 %v8842_v45, %v7767_v54  ;;  %v3716_v7 = vsel %vm836_vm1, %v11565_v21, %v3715_v36  ;;  %v3681_v58 = vpack.c.b16 %v13657_v10, %v13657_v10 }
 0x397   : > { %3452 = vmatpush.bf16.msra.mxu0 %v7566_v49  ;;  %4160 = vmatpush.bf16.msrb.mxu3 %v7786_v13  ;;  %v7561_v13 = vld [vmem:[%s13587_s9 + $0xd0] sm:$0xf]  ;;  %v8799_v49 = vld [vmem:[%s13587_s9 + $0xd4] sm:$0xf0] }
 0x398   : > { %4132 = vmatpush.bf16.msrb.mxu2 %v7774_v24  ;;  %v7562_v38 = vor.u32 %v8799_v49, %v7561_v13  ;;  %v3721_v43 = vshll.u32 %v3681_v58, 16  ;;  %v11675_v13 = vpop.f32.mrf.mxu1 }
 0x39a   : > { %v3723_v54 = vrot.slane %v3721_v43, 4 }
 0x39b   : > { %v11642_v57 = vpop.f32.mrf.mxu2  ;;  %v11644_v31 = vpop.f32.mrf.mxu3  ;;  %4161 = vmatpush.bf16.msrb.mxu3 %v7778_v18  ;;  %3453 = vmatpush.bf16.msra.mxu0 %v7562_v38  ;;  %v3718_v18 = vshrl.u32 %v3681_v58, 16 }
 0x39c   : > { %4133 = vmatpush.bf16.msrb.mxu2 %v7766_v6 }
 0x39d   : > { %v3720_v21 = vrot.slane %v3718_v18, 3 }
 0x39f   : > { %4162 = vmatpush.bf16.msrb.mxu3 %v7770_v41  ;;  %v3724_v41 = vor.u32 %v3723_v54, %v3720_v21  ;;  %v11695_v21 = vld [vmem:[%s10519_s24] sm:$0xf] }
 0x3a0   : > { %3828 = vmatmul.bf16.gmra.mxu2 %v3716_v7  ;;  %3857 = vmatmul.bf16.gmra.mxu3 %v3716_v7  ;;  %v2966_v7 = vpop.f32.mrf.mxu1  ;;  %v7557_v54 = vld [vmem:[%s13587_s9 + $0xc0] sm:$0xf]  ;;  %v3190_v53 = vperm.slane %v11695_v21, 1 }
 0x3a1   : > { %v3725_v38 = vsel %vm836_vm1, %v3715_v36, %v3724_v41  ;;  %v3191_v36 = vperm.slane %v11695_v21, 3  ;;  %v9532_v41 = vld [vmem:[#allocation2 + $0x8] sm:$0xff]  ;;  %v2534_v21 = vadd.f32 %v11381_v44, %v11400_v20 }
 0x3a3   : > { %v2704_v59 = vpop.f32.mrf.mxu2  ;;  %v2733_v24 = vpop.f32.mrf.mxu3 }
 0x3a4   : > { %v11670_v22 = vadd.f32 %v2704_v59, %v11492_v3  ;;  %v11673_v45 = vadd.f32 %v2733_v24, %v11494_v4  ;;  %v11688_v59 = vpop.f32.mrf.mxu0 }
 0x3a8   : > { %v2968_v43 = vpop.f32.mrf.mxu1 }
 0x3a9   : > { %v2989_v34 = vadd.f32 %v2968_v43, %v2746_v51  ;;  %v7993_v51 = vld [vmem:[%s13586_s8 + $0x270] sm:$0xf] }
 0x3ab   : > { %v11677_v49 = vpop.f32.mrf.mxu2  ;;  %v11679_v6 = vpop.f32.mrf.mxu3 }
 0x3ac   : > { %v2937_v27 = vpop.f32.mrf.mxu0 }
 0x3b0   : > { %3833 = vmatmul.bf16.gmra.mxu2 %v3725_v38  ;;  %3862 = vmatmul.bf16.gmra.mxu3 %v3725_v38  ;;  %v11704_v38 = vperm.slane %v3191_v36, 1  ;;  %v2971_v23 = vpop.f32.mrf.mxu1 }
 0x3b3   : > { %v2709_v3 = vpop.f32.mrf.mxu2  ;;  %v2738_v10 = vpop.f32.mrf.mxu3 }
 0x3b4   : > { %v11683_v4 = vadd.f32 %v2709_v3, %v11508_v5  ;;  %v11686_v58 = vadd.f32 %v2738_v10, %v11510_v48  ;;  %v8798_v5 = vld [vmem:[%s13587_s9 + $0xc4] sm:$0xf0]  ;;  %v2987_v3 = vadd.f32 %v2966_v7, %v11535_v8  ;;  %v8797_v8 = vld [vmem:[%s13587_s9 + $0xb4] sm:$0xf0] }
 0x3b5   : > { %v7558_v48 = vor.u32 %v8798_v5, %v7557_v54  ;;  %v7553_v5 = vld [vmem:[%s13587_s9 + $0xb0] sm:$0xf] }
 0x3b6   : > { %v7554_v7 = vor.u32 %v8797_v8, %v7553_v5 }
 0x3b7   : > { %3454 = vmatpush.bf16.msra.mxu0 %v7558_v48  ;;  %v7545_v48 = vld [vmem:[%s13587_s9 + $0x90] sm:$0xf] }
 0x3bb   : > { %v11690_v24 = vpop.f32.mrf.mxu2  ;;  %v11692_v18 = vpop.f32.mrf.mxu3  ;;  %3455 = vmatpush.bf16.msra.mxu0 %v7554_v7 }
 0x3c0   : > { %4134 = vmatmul.bf16.vlgmr.msrb.gmra.mxu2 %v9532_v41  ;;  %4163 = vmatmul.bf16.vlgmr.msrb.gmra.mxu3 %v9532_v41  ;;  %v8795_v41 = vld [vmem:[%s13587_s9 + $0x94] sm:$0xf0] }
 0x3c1   : > { %v7546_v5 = vor.u32 %v8795_v41, %v7545_v48  ;;  %v2986_v48 = vadd.f32 %v2937_v27, %v11532_v17  ;;  %v8889_v27 = vld [vmem:[%s13586_s8 + $0x264] sm:$0xf]  ;;  %v7987_v17 = vld [vmem:[%s13586_s8 + $0x268] sm:$0xf0] }
 0x3c3   : > { %v3154_v10 = vpop.f32.mrf.mxu3  ;;  %v3125_v50 = vpop.f32.mrf.mxu2 }
 0x3c4   : > { %v3175_v63 = vadd.f32 %v3154_v10, %v2987_v3  ;;  %v8892_v3 = vld [vmem:[%s13586_s8 + $0x274] sm:$0xf0]  ;;  %v8891_v10 = vld [vmem:[%s13586_s8 + $0x274] sm:$0xf] }
 0x3c5   : > { %v7994_v8 = vor.u32 %v8892_v3, %v7993_v51  ;;  %v7985_v51 = vld [vmem:[%s13586_s8 + $0x260] sm:$0xf]  ;;  %v3174_v3 = vadd.f32 %v3125_v50, %v2986_v48 }
 0x3c6   : > { %v3197_v54 = vadd.f32 %v11704_v38, %v3175_v63  ;;  %v8796_v63 = vld [vmem:[%s13587_s9 + $0xa4] sm:$0xf0] }
 0x3c7   : > { %v7550_v28 = vor.u32 %v8796_v63, %v7549_v52  ;;  %4555 = vmatpush.bf16.msra.mxu2 %v7994_v8 }
 0x3c8   : > { %v7515_v36 = vmul.f32 -1.442695, %v3197_v54  ;;  %v7995_v54 = vld [vmem:[%s13586_s8 + $0x278] sm:$0xf0] }
 0x3c9   : > { %3456 = vmatpush.bf16.msra.mxu0 %v7550_v28  ;;  %v7998_v7 = vor.u32 %v8891_v10, %v7995_v54  ;;  %v2991_v28 = vadd.f32 %v2971_v23, %v11610_v14  ;;  %v7990_v10 = vor.u32 %v8889_v27, %v7987_v17  ;;  %v2745_v54 = vadd.f32 %v11561_v35, %v2534_v21 }
 0x3ca   : > { %9387 = vpow2.f32 %v7515_v36  ;;  %v2939_v36 = vpop.f32.mrf.mxu0 }
 0x3cb   : > { %v3156_v33 = vpop.f32.mrf.mxu3  ;;  %v3127_v52 = vpop.f32.mrf.mxu2  ;;  %4584 = vmatpush.bf16.msra.mxu3 %v7998_v7  ;;  %v7979_v7 = vld [vmem:[%s13586_s8 + $0x258] sm:$0xf0] }
 0x3cc   : > { %v3177_v43 = vadd.f32 %v3156_v33, %v2989_v34  ;;  %v2973_v33 = vpop.f32.mrf.mxu1 }
 0x3cd   : > { %3457 = vmatpush.bf16.msra.mxu0 %v7546_v5 }
 0x3ce   : > { %v3199_v34 = vadd.f32 %v11704_v38, %v3177_v43  ;;  %v11764_v43 = vperm.slane %v3190_v53, 1  ;;  %v8887_v53 = vld [vmem:[%s13586_s8 + $0x254] sm:$0xf] }
 0x3cf   : > { %4585 = vmatpush.bf16.msra.mxu3 %v7990_v10  ;;  %v7982_v48 = vor.u32 %v8887_v53, %v7979_v7  ;;  %v8883_v7 = vld [vmem:[%s13586_s8 + $0x234] sm:$0xf] }
 0x3d0   : > { %v9388_v63 = vpop.eup %9387  ;;  %v7516_v15 = vmul.f32 -1.442695, %v3199_v34  ;;  %4139 = vmatmul.bf16.gmra.mxu2 %v9533_v30  ;;  %4168 = vmatmul.bf16.gmra.mxu3 %v9533_v30  ;;  %v8890_v30 = vld [vmem:[%s13586_s8 + $0x264] sm:$0xf0] }
 0x3d1   : > { %v11743_v0 = vadd.f32 1.0, %v9388_v63  ;;  %v7986_v14 = vor.u32 %v8890_v30, %v7985_v51  ;;  %v3196_v63 = vadd.f32 %v11764_v43, %v3174_v3  ;;  %v2988_v30 = vadd.f32 %v2939_v36, %v2745_v54  ;;  %v7969_v36 = vld [vmem:[%s13586_s8 + $0x240] sm:$0xf] }
 0x3d2   : > { %9389 = vpow2.f32 %v7516_v15  ;;  %v2568_v15 = vadd.f32 %v11460_v2, %v11476_v26  ;;  %v7977_v2 = vld [vmem:[%s13586_s8 + $0x250] sm:$0xf]  ;;  %v8888_v26 = vld [vmem:[%s13586_s8 + $0x254] sm:$0xf0]  ;;  %v11778_v35 = vpop.f32.mrf.mxu0 }
 0x3d3   : > { %9391 = vrcp.f32 %v11743_v0  ;;  %v3159_v41 = vpop.f32.mrf.mxu3  ;;  %4556 = vmatpush.bf16.msra.mxu2 %v7986_v14  ;;  %v7978_v8 = vor.u32 %v8888_v26, %v7977_v2  ;;  %4586 = vmatpush.bf16.msra.mxu3 %v7982_v48  ;;  %v3176_v3 = vadd.f32 %v3127_v52, %v2988_v30  ;;  %v3263_v2 = vand.u32 2147483648, %v11743_v0  ;;  %v7961_v52 = vld [vmem:[%s13586_s8 + $0x230] sm:$0xf] }
 0x3d4   : > { %v3179_v23 = vadd.f32 %v3159_v41, %v2991_v28  ;;  %v2750_v44 = vadd.f32 %v11644_v31, %v2568_v15  ;;  %v11780_v31 = vpop.f32.mrf.mxu2  ;;  %v2976_v41 = vpop.f32.mrf.mxu1  ;;  %v7541_v15 = vld [vmem:[%s13587_s9 + $0x80] sm:$0xf]  ;;  %v3261_v53 = vand.u32 2147483647, %v11743_v0  ;;  %v2539_v48 = vadd.f32 %v11458_v60, %v11474_v40  ;;  %v7947_v60 = vld [vmem:[%s13586_s8 + $0x218] sm:$0xf0] }
 0x3d5   : > { %vm3257_vm13 = vweird.f32 %v11743_v0 }
 0x3d6   : > { %v3201_v20 = vadd.f32 %v11704_v38, %v3179_v23  ;;  %v2993_v21 = vadd.f32 %v2973_v33, %v2750_v44  ;;  %v8794_v23 = vld [vmem:[%s13587_s9 + $0x84] sm:$0xf0]  ;;  %v8885_v44 = vld [vmem:[%s13586_s8 + $0x244] sm:$0xf]  ;;  %vm3262_vm15 = vcmp.eq.f32.partialorder %v3261_v53, 8.507059e+37 }
 0x3d7   : > { %4557 = vmatpush.bf16.msra.mxu2 %v7978_v8  ;;  %v7542_v27 = vor.u32 %v8794_v23, %v7541_v15  ;;  %v8886_v33 = vld [vmem:[%s13586_s8 + $0x244] sm:$0xf0]  ;;  %v8884_v8 = vld [vmem:[%s13586_s8 + $0x234] sm:$0xf0]  ;;  %v3198_v15 = vadd.f32 %v11764_v43, %v3176_v3 }
 0x3d8   : > { %v9390_v50 = vpop.eup %9389  ;;  %v7517_v5 = vmul.f32 -1.442695, %v3201_v20  ;;  %v7970_v54 = vor.u32 %v8886_v33, %v7969_v36  ;;  %v7971_v20 = vld [vmem:[%s13586_s8 + $0x248] sm:$0xf0]  ;;  %v2573_v33 = vadd.f32 %v11498_v12, %v11502_v32 }
 0x3d9   : > { %v11785_v34 = vpop.eup %9391  ;;  %v11788_v28 = vadd.f32 1.0, %v9390_v50  ;;  %3458 = vmatpush.bf16.msra.mxu0 %v7542_v27  ;;  %v7974_v26 = vor.u32 %v8885_v44, %v7971_v20  ;;  %v2990_v20 = vadd.f32 %v11778_v35, %v11607_v1  ;;  %v8881_v1 = vld [vmem:[%s13586_s8 + $0x224] sm:$0xf]  ;;  %v7955_v35 = vld [vmem:[%s13586_s8 + $0x228] sm:$0xf0] }
 0x3da   : > { %v3253_v51 = vmul.f32 %v11785_v34, %v11743_v0  ;;  %9393 = vpow2.f32 %v7517_v5  ;;  %vm3258_vm12 = vweird.f32 %v11785_v34  ;;  %v3264_v0 = vor.u32 1.1754944e-38, %v3263_v2  ;;  %v2944_v3 = vpop.f32.mrf.mxu0  ;;  %v7953_v2 = vld [vmem:[%s13586_s8 + $0x220] sm:$0xf] }
 0x3db   : > { %9395 = vrcp.f32 %v11788_v28  ;;  %v3161_v14 = vpop.f32.mrf.mxu3  ;;  %4558 = vmatpush.bf16.msra.mxu2 %v7970_v54  ;;  %4587 = vmatpush.bf16.msra.mxu3 %v7974_v26  ;;  %vm11839_vm14 = vmor %vm3257_vm13, %vm3258_vm12  ;;  %v2754_v44 = vadd.f32 %v11679_v6, %v2573_v33  ;;  %vm3272_vm5 = vweird.f32 %v11788_v28 }
 0x3dc   : > { %v3254_v17 = vsub.f32 1.0, %v3253_v51  ;;  %v3181_v10 = vadd.f32 %v3161_v14, %v2993_v21  ;;  %9397 = vtanh.f32 %v3196_v63  ;;  %v7963_v63 = vld [vmem:[%s13586_s8 + $0x238] sm:$0xf0]  ;;  %v7962_v51 = vor.u32 %v8884_v8, %v7961_v52  ;;  %v11848_v54 = vpop.f32.mrf.mxu2  ;;  %v2978_v26 = vpop.f32.mrf.mxu1 }
 0x3dd   : > { %v7966_v30 = vor.u32 %v8883_v7, %v7963_v63  ;;  %v9534_v14 = vld [vmem:[#allocation2 + $0x18] sm:$0xff]  ;;  %v7958_v7 = vor.u32 %v8881_v1, %v7955_v35 }
 0x3de   : > { %v3255_v50 = vmul.f32 %v11785_v34, %v3254_v17  ;;  %v3203_v5 = vadd.f32 %v11704_v38, %v3181_v10  ;;  %v2995_v17 = vadd.f32 %v2976_v41, %v11673_v45 }
 0x3df   : > { %4559 = vmatpush.bf16.msra.mxu2 %v7962_v51  ;;  %4588 = vmatpush.bf16.msra.mxu3 %v7966_v30  ;;  %v3276_v30 = vand.u32 2147483647, %v11788_v28 }
 0x3e0   : > { %v9394_v21 = vpop.eup %9393  ;;  %v7518_v23 = vmul.f32 -1.442695, %v3203_v5  ;;  %4144 = vmatmul.bf16.gmra.mxu2 %v9534_v14  ;;  %4173 = vmatmul.bf16.gmra.mxu3 %v9534_v14  ;;  %v3256_v27 = vadd.f32 %v11785_v34, %v3255_v50  ;;  %v3278_v50 = vand.u32 2147483648, %v11788_v28  ;;  %v3178_v5 = vadd.f32 %v11780_v31, %v2990_v20  ;;  %v8880_v31 = vld [vmem:[%s13586_s8 + $0x214] sm:$0xf0] }
 0x3e1   : > { %v11833_v36 = vpop.eup %9395  ;;  %v11843_v40 = vadd.f32 1.0, %v9394_v21  ;;  %v2749_v21 = vadd.f32 %v11642_v57, %v2539_v48  ;;  %v8879_v14 = vld [vmem:[%s13586_s8 + $0x214] sm:$0xf]  ;;  %vm3277_vm7 = vcmp.eq.f32.partialorder %v3276_v30, 8.507059e+37 }
 0x3e2   : > { %v3268_v10 = vmul.f32 %v11833_v36, %v11788_v28  ;;  %9399 = vpow2.f32 %v7518_v23  ;;  %v3260_v12 = vsel %vm11839_vm14, %v11785_v34, %v3256_v27  ;;  %v9398_v32 = vpop.eup %9397  ;;  %v8882_v34 = vld [vmem:[%s13586_s8 + $0x224] sm:$0xf0]  ;;  %vm3273_vm4 = vweird.f32 %v11833_v36  ;;  %v7945_v23 = vld [vmem:[%s13586_s8 + $0x210] sm:$0xf]  ;;  %v2947_v1 = vpop.f32.mrf.mxu0 }
 0x3e3   : > { %9401 = vrcp.f32 %v11843_v40  ;;  %v3164_v45 = vpop.f32.mrf.mxu3  ;;  %v3265_v41 = vsel %vm3262_vm15, %v3264_v0, %v3260_v12  ;;  %v7954_v8 = vor.u32 %v8882_v34, %v7953_v2  ;;  %4589 = vmatpush.bf16.msra.mxu3 %v7958_v7  ;;  %v7946_v48 = vor.u32 %v8880_v31, %v7945_v23  ;;  %vm3274_vm6 = vmor %vm3272_vm5, %vm3273_vm4 }
 0x3e4   : > { %9403 = vtanh.f32 %v3198_v15  ;;  %v3269_v53 = vsub.f32 1.0, %v3268_v10  ;;  %v3183_v6 = vadd.f32 %v3164_v45, %v2995_v17  ;;  %v11863_v52 = vmul.f32 %v9398_v32, %v3265_v41  ;;  %v11902_v45 = vld [vmem:[#allocation2 + $0x8] sm:$0xf0]  ;;  %v11904_v41 = vld [vmem:[#allocation2 + $0x8] sm:$0xe] }
 0x3e5   : > { %v2997_v15 = vadd.f32 %v2978_v26, %v2754_v44  ;;  %4560 = vmatpush.bf16.msra.mxu2 %v7954_v8  ;;  %v3200_v17 = vadd.f32 %v11764_v43, %v3178_v5  ;;  %v3279_v12 = vor.u32 1.1754944e-38, %v3278_v50  ;;  %v7950_v32 = vor.u32 %v8879_v14, %v7947_v60  ;;  %v7939_v8 = vld [vmem:[%s13586_s8 + $0x208] sm:$0xf0] }
 0x3e6   : > { %v3270_v63 = vmul.f32 %v11833_v36, %v3269_v53  ;;  %v3205_v51 = vadd.f32 %v11704_v38, %v3183_v6  ;;  %v2992_v2 = vadd.f32 %v2944_v3, %v2749_v21  ;;  %v7937_v53 = vld [vmem:[%s13586_s8 + $0x200] sm:$0xf]  ;;  %v8877_v6 = vld [vmem:[%s13586_s8 + $0x204] sm:$0xf]  ;;  %v3135_v3 = vpop.f32.mrf.mxu2  ;;  %v9184_v30 = vor.u32 %v11904_v41, %v11902_v45  ;;  %v2981_v21 = vpop.f32.mrf.mxu1  ;;  %v7719_v45 = vld [vmem:[%s13586_s8 + $0x48] sm:$0xf0] }
 0x3e7   : > { %4590 = vmatpush.bf16.msra.mxu3 %v7950_v32  ;;  %v2544_v14 = vadd.f32 %v11496_v55, %v11500_v16  ;;  %v2999_v55 = vadd.f32 %v2981_v21, %v11686_v58  ;;  %vm3287_vm9 = vweird.f32 %v11843_v40  ;;  %v11975_v21 = vld [vmem:[#allocation2 + $0x10] sm:$0xff] }
 0x3e8   : > { %v9400_v27 = vpop.eup %9399  ;;  %v7519_v33 = vmul.f32 -1.442695, %v3205_v51  ;;  %v3271_v57 = vadd.f32 %v11833_v36, %v3270_v63  ;;  %v3180_v7 = vadd.f32 %v11848_v54, %v2992_v2  ;;  %v7942_v63 = vor.u32 %v8877_v6, %v7939_v8 }
 0x3e9   : > { %v11892_v0 = vpop.eup %9401  ;;  %v11895_v10 = vadd.f32 1.0, %v9400_v27  ;;  %4561 = vmatpush.bf16.msra.mxu2 %v7946_v48  ;;  %v3291_v27 = vand.u32 2147483647, %v11843_v40  ;;  %v2994_v48 = vadd.f32 %v2947_v1, %v11670_v22  ;;  %v8824_v22 = vld [vmem:[%s13586_s8 + $0x74] sm:$0xf] }
 0x3ea   : > { %v9404_v28 = vpop.eup %9403  ;;  %v3283_v44 = vmul.f32 %v11892_v0, %v11843_v40  ;;  %9405 = vpow2.f32 %v7519_v33  ;;  %v3275_v20 = vsel %vm3274_vm6, %v11833_v36, %v3271_v57  ;;  %v8878_v36 = vld [vmem:[%s13586_s8 + $0x204] sm:$0xf0]  ;;  %vm3288_vm8 = vweird.f32 %v11892_v0 }
 0x3eb   : > { %9407 = vrcp.f32 %v11895_v10  ;;  %v3166_v34 = vpop.f32.mrf.mxu3  ;;  %v3280_v26 = vsel %vm3277_vm7, %v3279_v12, %v3275_v20  ;;  %v7938_v5 = vor.u32 %v8878_v36, %v7937_v53  ;;  %4591 = vmatpush.bf16.msra.mxu3 %v7942_v63  ;;  %v2578_v57 = vadd.f32 %v11675_v13, %v11516_v9  ;;  %v7743_v9 = vld [vmem:[%s13586_s8 + $0x78] sm:$0xf0]  ;;  %vm3289_vm10 = vmor %vm3287_vm9, %vm3288_vm8  ;;  %v7735_v20 = vld [vmem:[%s13586_s8 + $0x68] sm:$0xf0] }
 0x3ec   : > { %v3185_v35 = vadd.f32 %v3166_v34, %v2997_v15  ;;  %v3373_v50 = vmul.f32 %v9404_v28, %v3280_v26  ;;  %v3284_v51 = vsub.f32 1.0, %v3283_v44  ;;  %9409 = vtanh.f32 %v3200_v17  ;;  %v8822_v44 = vld [vmem:[%s13586_s8 + $0x64] sm:$0xf] }
 0x3ed   : > { %v3293_v15 = vand.u32 2147483648, %v11843_v40  ;;  %4562 = vmatpush.bf16.msra.mxu2 %v7938_v5  ;;  %v3202_v60 = vadd.f32 %v11764_v43, %v3180_v7  ;;  %v7746_v58 = vor.u32 %v8824_v22, %v7743_v9  ;;  %v3182_v32 = vadd.f32 %v3135_v3, %v2994_v48  ;;  %v8820_v3 = vld [vmem:[%s13586_s8 + $0x54] sm:$0xf] }
 0x3ee   : > { %v3207_v23 = vadd.f32 %v11704_v38, %v3185_v35  ;;  %v3380_v31 = vpack.c.bf16 %v3373_v50, %v11863_v52  ;;  %v3285_v54 = vmul.f32 %v11892_v0, %v3284_v51  ;;  %vm3292_vm11 = vcmp.eq.f32.partialorder %v3291_v27, 8.507059e+37  ;;  %v7727_v35 = vld [vmem:[%s13586_s8 + $0x58] sm:$0xf0]  ;;  %v2949_v50 = vpop.f32.mrf.mxu0  ;;  %v3137_v5 = vpop.f32.mrf.mxu2 }
 0x3ef   : > { %v3294_v13 = vor.u32 1.1754944e-38, %v3293_v15  ;;  %v2758_v34 = vadd.f32 %v11692_v18, %v2578_v57  ;;  %3993 = vmatpush.bf16.msrb.mxu0 %v7746_v58  ;;  %v3308_v6 = vand.u32 2147483648, %v11895_v10  ;;  %v7738_v1 = vor.u32 %v8822_v44, %v7735_v20 }
 0x3f0   : > { %v9406_v33 = vpop.eup %9405  ;;  %v7520_v52 = vmul.f32 -1.442695, %v3207_v23  ;;  %3459 = vmatmul.bf16.vlgmr.msra.gmra.mxu0 %v3380_v31  ;;  %4149 = vmatmul.bf16.gmra.mxu2 %v11251_v56  ;;  %v3286_v12 = vadd.f32 %v11892_v0, %v3285_v54  ;;  %v3306_v7 = vand.u32 2147483647, %v11895_v10  ;;  %v2753_v63 = vadd.f32 %v11677_v49, %v2544_v14  ;;  %v2983_v31 = vpop.f32.mrf.mxu1 }
 0x3f1   : > { %v11935_v16 = vpop.eup %9407  ;;  %v11938_v17 = vadd.f32 1.0, %v9406_v33  ;;  %4178 = vmatmul.bf16.gmra.mxu3 %v11251_v56  ;;  %v3204_v51 = vadd.f32 %v11764_v43, %v3182_v32  ;;  %vm3302_vm13 = vweird.f32 %v11895_v10  ;;  %v7730_v27 = vor.u32 %v8820_v3, %v7727_v35 }
 0x3f2   : > { %9411 = vpow2.f32 %v7520_v52  ;;  %v3298_v56 = vmul.f32 %v11935_v16, %v11895_v10  ;;  %v3290_v28 = vsel %vm3289_vm10, %v11892_v0, %v3286_v12  ;;  %v9410_v2 = vpop.eup %9409  ;;  %vm3303_vm12 = vweird.f32 %v11935_v16 }
 0x3f3   : > { %9413 = vrcp.f32 %v11938_v17  ;;  %v3169_v40 = vpop.f32.mrf.mxu3  ;;  %v3295_v53 = vsel %vm3292_vm11, %v3294_v13, %v3290_v28  ;;  %3994 = vmatpush.bf16.msrb.mxu0 %v7738_v1  ;;  %v3001_v48 = vadd.f32 %v2983_v31, %v2758_v34  ;;  %vm3304_vm14 = vmor %vm3302_vm13, %vm3303_vm12  ;;  %v3309_v49 = vor.u32 1.1754944e-38, %v3308_v6  ;;  %v8818_v13 = vld [vmem:[%s13586_s8 + $0x44] sm:$0xf] }
 0x3f4   : > { %v3187_v26 = vadd.f32 %v3169_v40, %v2999_v55  ;;  %v3299_v36 = vsub.f32 1.0, %v3298_v56  ;;  %9415 = vtanh.f32 %v3202_v60  ;;  %v3374_v0 = vmul.f32 %v9410_v2, %v3295_v53 }
 0x3f5   : > { %v4462_v14 = vrot.slane %v9184_v30, 1  ;;  %vm3307_vm15 = vcmp.eq.f32.partialorder %v3306_v7, 8.507059e+37  ;;  %v2996_v60 = vadd.f32 %v2949_v50, %v2753_v63  ;;  %v4463_v9 = vrot.slane %v11975_v21, 1  ;;  %v8816_v50 = vld [vmem:[%s13586_s8 + $0x34] sm:$0xf] }
 0x3f6   : > { %v3209_v18 = vadd.f32 %v11704_v38, %v3187_v26  ;;  %v3300_v8 = vmul.f32 %v11935_v16, %v3299_v36  ;;  %v3321_v58 = vand.u32 2147483647, %v11938_v17  ;;  %v3323_v32 = vand.u32 2147483648, %v11938_v17  ;;  %v2952_v26 = vpop.f32.mrf.mxu0  ;;  %v3140_v53 = vpop.f32.mrf.mxu2 }
 0x3f7   : > { %3995 = vmatpush.bf16.msrb.mxu0 %v7730_v27  ;;  %v3184_v56 = vadd.f32 %v3137_v5, %v2996_v60  ;;  %v7722_v40 = vor.u32 %v8818_v13, %v7719_v45  ;;  %v4464_v2 = vsel %vm1622_vm3, %v4462_v14, %v4463_v9  ;;  %vm3317_vm5 = vweird.f32 %v11938_v17  ;;  %v7711_v5 = vld [vmem:[%s13586_s8 + $0x38] sm:$0xf0] }
 0x3f8   : > { %v9412_v23 = vpop.eup %9411  ;;  %v7521_v15 = vmul.f32 -1.442695, %v3209_v18  ;;  %v3301_v54 = vadd.f32 %v11935_v16, %v3300_v8  ;;  %vm3322_vm7 = vcmp.eq.f32.partialorder %v3321_v58, 8.507059e+37  ;;  %v2998_v7 = vadd.f32 %v2952_v26, %v11683_v4 }
 0x3f9   : > { %v9414_v33 = vpop.eup %9413  ;;  %v11979_v57 = vadd.f32 1.0, %v9412_v23  ;;  %v3206_v3 = vadd.f32 %v11764_v43, %v3184_v56  ;;  %v7703_v23 = vld [vmem:[%s13586_s8 + $0x28] sm:$0xf0]  ;;  %v2549_v27 = vadd.f32 %v11688_v59, %v11514_v42  ;;  %v7695_v42 = vld [vmem:[%s13586_s8 + $0x18] sm:$0xf0] }
 0x3fa   : > { %v3313_v52 = vmul.f32 %v9414_v33, %v11938_v17  ;;  %9417 = vpow2.f32 %v7521_v15  ;;  %v3305_v55 = vsel %vm3304_vm14, %v11935_v16, %v3301_v54  ;;  %v9416_v10 = vpop.eup %9415  ;;  %vm3318_vm4 = vweird.f32 %v9414_v33 }
 0x3fb   : > { %9419 = vrcp.f32 %v11979_v57  ;;  %v3171_v12 = vpop.f32.mrf.mxu3  ;;  %v3310_v22 = vsel %vm3307_vm15, %v3309_v49, %v3305_v55  ;;  %vm3319_vm6 = vmor %vm3317_vm5, %vm3318_vm4  ;;  %3996 = vmatpush.bf16.msrb.mxu0 %v7722_v40  ;;  %v7714_v54 = vor.u32 %v8816_v50, %v7711_v5  ;;  %v3338_v4 = vand.u32 2147483648, %v11979_v57  ;;  %v12026_v55 = vld [vmem:[#allocation2 + $0x18] sm:$0xff] }
 0x3fc   : > { %9421 = vtanh.f32 %v3204_v51  ;;  %v3189_v41 = vadd.f32 %v3171_v12, %v3001_v48  ;;  %v3375_v30 = vmul.f32 %v9416_v10, %v3310_v22  ;;  %v3314_v16 = vsub.f32 1.0, %v3313_v52  ;;  %v8814_v51 = vld [vmem:[%s13586_s8 + $0x24] sm:$0xf]  ;;  %v8812_v10 = vld [vmem:[%s13586_s8 + $0x14] sm:$0xf] }
 0x3fd   : > { %v3336_v49 = vand.u32 2147483647, %v11979_v57  ;;  %v7706_v14 = vor.u32 %v8814_v51, %v7703_v23  ;;  %v2757_v52 = vadd.f32 %v11690_v24, %v2549_v27  ;;  %vm3332_vm9 = vweird.f32 %v11979_v57 }
 0x3fe   : > { %v3211_v28 = vadd.f32 %v11704_v38, %v3189_v41  ;;  %v3381_v44 = vpack.c.bf16 %v3375_v30, %v3374_v0  ;;  %v3315_v20 = vmul.f32 %v9414_v33, %v3314_v16  ;;  %v3324_v0 = vor.u32 1.1754944e-38, %v3323_v32  ;;  %v2954_v45 = vpop.f32.mrf.mxu0  ;;  %v3142_v30 = vpop.f32.mrf.mxu2 }
 0x3ff   : > { %3997 = vmatpush.bf16.msrb.mxu0 %v7714_v54  ;;  %v3339_v24 = vor.u32 1.1754944e-38, %v3338_v4  ;;  %vm3337_vm11 = vcmp.eq.f32.partialorder %v3336_v49, 8.507059e+37  ;;  %v7698_v56 = vor.u32 %v8812_v10, %v7695_v42  ;;  %v3000_v32 = vadd.f32 %v2954_v45, %v2757_v52  ;;  %v4208_v42 = vld [vmem:[#allocation2 + $0x28] sm:$0x1] }
 0x400   : > { %v9418_v34 = vpop.eup %9417  ;;  %v7522_v36 = vmul.f32 -1.442695, %v3211_v28  ;;  %3462 = vmatmul.bf16.gmra.mxu0 %v3381_v44  ;;  %4563 = vmatmul.bf16.vlgmr.msra.gmra.mxu2 %v4464_v2  ;;  %v3316_v6 = vadd.f32 %v9414_v33, %v3315_v20  ;;  %v8810_v28 = vld [vmem:[%s13586_s8 + $0x4] sm:$0xf]  ;;  %v7687_v44 = vld [vmem:[%s13586_s8 + $0x8] sm:$0xf0] }
 0x401   : > { %v9420_v1 = vpop.eup %9419  ;;  %v12004_v35 = vadd.f32 1.0, %v9418_v34  ;;  %4592 = vmatmul.bf16.vlgmr.msra.gmra.mxu3 %v4464_v2  ;;  %v3188_v34 = vadd.f32 %v3142_v30, %v3000_v32  ;;  %v3871_v45 = vrot.slane %v11506_v37, 3  ;;  %v8873_v37 = vld [vmem:[%s13586_s8 + $0x1e4] sm:$0xf]  ;;  %v7907_v32 = vld [vmem:[%s13586_s8 + $0x1e8] sm:$0xf0] }
 0x402   : > { %v9422_v18 = vpop.eup %9421  ;;  %9423 = vpow2.f32 %v7522_v36  ;;  %v3320_v17 = vsel %vm3319_vm6, %v9414_v33, %v3316_v6  ;;  %v3328_v8 = vmul.f32 %v9420_v1, %v11979_v57  ;;  %v3186_v33 = vadd.f32 %v3140_v53, %v2998_v7 }
 0x403   : > { %9425 = vrcp.f32 %v12004_v35  ;;  %v3325_v63 = vsel %vm3322_vm7, %v3324_v0, %v3320_v17  ;;  %vm3333_vm8 = vweird.f32 %v9420_v1  ;;  %3998 = vmatpush.bf16.msrb.mxu0 %v7706_v14  ;;  %v4465_v57 = vrot.slane %v12026_v55, 1 }
 0x404   : > { %v3329_v31 = vsub.f32 1.0, %v3328_v8  ;;  %v3376_v15 = vmul.f32 %v9422_v18, %v3325_v63  ;;  %9427 = vtanh.f32 %v3206_v3  ;;  %v3208_v22 = vadd.f32 %v11764_v43, %v3186_v33  ;;  %vm3334_vm10 = vmor %vm3332_vm9, %vm3333_vm8 }
 0x405   : > { %v3351_v26 = vand.u32 2147483647, %v12004_v35  ;;  %v3353_v53 = vand.u32 2147483648, %v12004_v35  ;;  %v4466_v3 = vsel %vm1622_vm3, %v4463_v9, %v4465_v57  ;;  %vm3347_vm13 = vweird.f32 %v12004_v35 }
 0x406   : > { %v3330_v48 = vmul.f32 %v9420_v1, %v3329_v31  ;;  %v3210_v5 = vadd.f32 %v11764_v43, %v3188_v34 }
 0x407   : > { %3999 = vmatpush.bf16.msrb.mxu0 %v7698_v56  ;;  %v3354_v18 = vor.u32 1.1754944e-38, %v3353_v53  ;;  %vm3352_vm15 = vcmp.eq.f32.partialorder %v3351_v26, 8.507059e+37  ;;  %v7915_v56 = vld [vmem:[%s13586_s8 + $0x1f8] sm:$0xf0]  ;;  %v8869_v26 = vld [vmem:[%s13586_s8 + $0x1c4] sm:$0xf] }
 0x408   : > { %v9424_v59 = vpop.eup %9423  ;;  %v3331_v60 = vadd.f32 %v9420_v1, %v3330_v48  ;;  %v7891_v53 = vld [vmem:[%s13586_s8 + $0x1c8] sm:$0xf0] }
 0x409   : > { %v9426_v12 = vpop.eup %9425  ;;  %v3251_v13 = vadd.f32 1.0, %v9424_v59  ;;  %v4242_v59 = vunpack.c.l.b16 %v4208_v42  ;;  %v9181_v42 = vld [vmem:[#allocation2 + $0x8] sm:$0xff]  }
 0x40a   : > { %v3343_v41 = vmul.f32 %v9426_v12, %v12004_v35  ;;  %v3335_v16 = vsel %vm3334_vm10, %v9420_v1, %v3331_v60  ;;  %v9428_v58 = vpop.eup %9427  ;;  %vm3348_vm12 = vweird.f32 %v9426_v12  ;;  %v7690_v1 = vor.u32 %v8810_v28, %v7687_v44  ;;  %v12051_v35 = vld [vmem:[#allocation2 + $0x20] sm:$0xff]  ;;  %v8871_v28 = vld [vmem:[%s13586_s8 + $0x1d4] sm:$0xf]  ;;  %v7899_v44 = vld [vmem:[%s13586_s8 + $0x1d8] sm:$0xf0] }
 0x40b   : > { %9429 = vrcp.f32 %v3251_v13  ;;  %v3340_v40 = vsel %vm3337_vm11, %v3339_v24, %v3335_v16  ;;  %vm3349_vm14 = vmor %vm3347_vm13, %vm3348_vm12  ;;  %v3368_v9 = vand.u32 2147483648, %v3251_v13  ;;  %vm3362_vm5 = vweird.f32 %v3251_v13  ;;  %v8809_v24 = vld [vmem:[%s13584_s6 + $0x38] sm:$0xff]  ;;  %v8875_v16 = vld [vmem:[%s13586_s8 + $0x1f4] sm:$0xf] }
 0x40c   : > { %v3377_v20 = vmul.f32 %v9428_v58, %v3340_v40  ;;  %v3344_v2 = vsub.f32 1.0, %v3343_v41  ;;  %9431 = vtanh.f32 %v3208_v22  ;;  %4000 = vmatpush.bf16.msrb.mxu0 %v7690_v1  ;;  %v4467_v49 = vrot.slane %v12051_v35, 1  ;;  %3552 = vmatpush.bf16.msra.mxu1 %v8809_v24  ;;  %v8808_v40 = vld [vmem:[%s13584_s6 + $0x30] sm:$0xff] }
 0x40d   : > { %9433 = vtanh.f32 %v3210_v5  ;;  %v3369_v27 = vor.u32 1.1754944e-38, %v3368_v9  ;;  %v12055_v60 = vpack.c.b16 %v4242_v59, %v4242_v59  ;;  %v7918_v58 = vor.u32 %v8875_v16, %v7915_v56  ;;  %v8865_v5 = vld [vmem:[%s13586_s8 + $0x1a4] sm:$0xf]  ;;  %v8803_v59 = vld [vmem:[%s13584_s6 + $0x8] sm:$0xff] }
 0x40e   : > { %v3382_v36 = vpack.c.bf16 %v3377_v20, %v3376_v15  ;;  %v3345_v6 = vmul.f32 %v9426_v12, %v3344_v2  ;;  %v3366_v15 = vand.u32 2147483647, %v3251_v13  ;;  %v4468_v10 = vsel %vm1622_vm3, %v4465_v57, %v4467_v49  ;;  %v9536_v2 = vld [vmem:[#allocation2 + $0x14] sm:$0xff]   ;;  %v8861_v9 = vld [vmem:[%s13586_s8 + $0x184] sm:$0xf] }
 0x40f   : > { %v7910_v57 = vor.u32 %v8873_v37, %v7907_v32  ;;  %v7902_v20 = vor.u32 %v8871_v28, %v7899_v44  ;;  %v3874_v34 = vrot.slane %v9536_v2, 3  ;;  %v4249_v24 = vshrl.u32 %v9181_v42, 16  ;;  %v8802_v16 = vld [vmem:[%s13584_s6] sm:$0xff]  ;;  %v7741_v32 = vld [vmem:[%s13586_s8 + $0x70] sm:$0xf] }
 0x410   : > { %3467 = vmatmul.bf16.gmra.mxu0 %v3382_v36  ;;  %4568 = vmatmul.bf16.gmra.mxu2 %v4466_v3  ;;  %v3346_v0 = vadd.f32 %v9426_v12, %v3345_v6  ;;  %vm3367_vm7 = vcmp.eq.f32.partialorder %v3366_v15, 8.507059e+37  ;;  %v8807_v36 = vld [vmem:[%s13584_s6 + $0x28] sm:$0xff]  ;;  %v7894_v6 = vor.u32 %v8869_v26, %v7891_v53  ;;  %v8805_v15 = vld [vmem:[%s13584_s6 + $0x18] sm:$0xff]  ;;  %v4264_v26 = vshll.u32 %v12026_v55, 16  ;;  %v7725_v53 = vld [vmem:[%s13586_s8 + $0x50] sm:$0xf] }
 0x411   : > { %v9430_v50 = vpop.eup %9429  ;;  %4597 = vmatmul.bf16.gmra.mxu3 %v4466_v3  ;;  %4397 = vmatpush.bf16.msra.mxu0 %v7918_v58  ;;  %v8867_v3 = vld [vmem:[%s13586_s8 + $0x1b4] sm:$0xf]  ;;  %v8823_v44 = vld [vmem:[%s13586_s8 + $0x64] sm:$0xf0] }
 0x412   : > { %v3350_v17 = vsel %vm3349_vm14, %v9426_v12, %v3346_v0  ;;  %v3358_v8 = vmul.f32 %v9430_v50, %v3251_v13  ;;  %v9432_v7 = vpop.eup %9431  ;;  %vm3363_vm4 = vweird.f32 %v9430_v50  ;;  %v9535_v12 = vld [vmem:[#allocation2 + $0xc] sm:$0xff]   ;;  %v4469_v13 = vrot.slane %v12055_v60, 1  ;;  %3553 = vmatpush.bf16.msra.mxu1 %v8808_v40  ;;  %v7883_v0 = vld [vmem:[%s13586_s8 + $0x1b8] sm:$0xf0]  ;;  %v8825_v40 = vld [vmem:[%s13586_s8 + $0x74] sm:$0xf0] }
 0x413   : > { %v3355_v63 = vsel %vm3352_vm15, %v3354_v18, %v3350_v17  ;;  %vm3364_vm6 = vmor %vm3362_vm5, %vm3363_vm4  ;;  %v9434_v4 = vpop.eup %9433  ;;  %v3872_v22 = vrot.slane %v9535_v12, 3  ;;  %v7875_v18 = vld [vmem:[%s13586_s8 + $0x1a8] sm:$0xf0]  ;;  %v8806_v17 = vld [vmem:[%s13584_s6 + $0x20] sm:$0xff]  ;;  %v4251_v12 = vshll.u32 %v9181_v42, 16  ;;  %v7742_v28 = vor.u32 %v8825_v40, %v7741_v32 }
 0x414   : > { %v3359_v51 = vsub.f32 1.0, %v3358_v8  ;;  %v3378_v23 = vmul.f32 %v9432_v7, %v3355_v63  ;;  %v4470_v30 = vsel %vm1622_vm3, %v4467_v49, %v4469_v13  ;;  %v7878_v8 = vor.u32 %v8865_v5, %v7875_v18  ;;  %v8863_v7 = vld [vmem:[%s13586_s8 + $0x194] sm:$0xf]  ;;  %v7867_v63 = vld [vmem:[%s13586_s8 + $0x198] sm:$0xf0]  ;;  %v12139_v49 = vpop.f32.mrf.mxu3 }
 0x415   : > { %v12063_v41 = vsel %vm1026_vm0, %v3871_v45, %v3872_v22  ;;  %4398 = vmatpush.bf16.msra.mxu0 %v7910_v57  ;;  %v12098_v1 = vsel %vm1026_vm0, %v3872_v22, %v3874_v34  ;;  %v4256_v22 = vshll.u32 %v11975_v21, 16  ;;  %v4253_v13 = vrot.slane %v4251_v12, 1  ;;  %v7733_v57 = vld [vmem:[%s13586_s8 + $0x60] sm:$0xf]  ;;  %v8819_v5 = vld [vmem:[%s13586_s8 + $0x44] sm:$0xf0] }
 0x416   : > { %v3360_v31 = vmul.f32 %v9430_v50, %v3359_v51  ;;  %3554 = vmatpush.bf16.msra.mxu1 %v8807_v36  ;;  %v7870_v51 = vor.u32 %v8863_v7, %v7867_v63  ;;  %v7734_v2 = vor.u32 %v8823_v44, %v7733_v57  ;;  %v8821_v36 = vld [vmem:[%s13586_s8 + $0x54] sm:$0xf0]  ;;  %v9335_v7 = vld [vmem:[%s13588_s10 + $0x1] ss:$0 sm:$0xff]  ;;  %v7709_v63 = vld [vmem:[%s13586_s8 + $0x30] sm:$0xf] }
 0x417   : > { %v4258_v45 = vrot.slane %v4256_v22, 1  ;;  %v4254_v58 = vor.u32 %v4253_v13, %v4249_v24  ;;  %v7693_v22 = vld [vmem:[%s13586_s8 + $0x10] sm:$0xf]  ;;  %v8813_v13 = vld [vmem:[%s13586_s8 + $0x14] sm:$0xf0]  ;;  %v4272_v24 = vshll.u32 %v12051_v35, 16 }
 0x418   : > { %v3361_v54 = vadd.f32 %v9430_v50, %v3360_v31  ;;  %v7859_v31 = vld [vmem:[%s13586_s8 + $0x188] sm:$0xf0]  ;;  %v8811_v32 = vld [vmem:[%s13586_s8 + $0x4] sm:$0xf0]  ;;  %v4268_v40 = vshrl.u32 %v12026_v55, 16 }
 0x419   : > { %4399 = vmatpush.bf16.msra.mxu0 %v7902_v20  ;;  %v12157_v37 = vsel %vm1406_vm2, %v4254_v58, %v4258_v45  ;;  %v7685_v58 = vld [vmem:[%s13586_s8] sm:$0xf]  ;;  %v4274_v57 = vrot.slane %v4272_v24, 1 }
 0x41a   : > { %v3365_v33 = vsel %vm3364_vm6, %v9430_v50, %v3361_v54  ;;  %v7886_v50 = vor.u32 %v8867_v3, %v7883_v0  ;;  %3555 = vmatpush.bf16.msra.mxu1 %v8806_v17  ;;  %v7862_v54 = vor.u32 %v8861_v9, %v7859_v31  ;;  %v4260_v3 = vshrl.u32 %v11975_v21, 16  ;;  %v8817_v21 = vld [vmem:[%s13586_s8 + $0x34] sm:$0xf0] }
 0x41b   : > { %v3370_v48 = vsel %vm3367_vm7, %v3369_v27, %v3365_v33  ;;  %v4266_v0 = vrot.slane %v4264_v26, 1  ;;  %v7913_v26 = vld [vmem:[%s13586_s8 + $0x1f0] sm:$0xf] }
 0x41c   : > { %v3379_v14 = vmul.f32 %v9434_v4, %v3370_v48  ;;  %v8804_v4 = vld [vmem:[%s13584_s6 + $0x10] sm:$0xff]  ;;  %v4262_v17 = vor.u32 %v4260_v3, %v4258_v45 }
 0x41d   : > { %4400 = vmatpush.bf16.msra.mxu0 %v7894_v6  ;;  %v7717_v6 = vld [vmem:[%s13586_s8 + $0x40] sm:$0xf] }
 0x41e   : > { %v3383_v52 = vpack.c.bf16 %v3379_v14, %v3378_v23  ;;  %v3876_v23 = vrot.slane %v11590_v62, 3  ;;  %3556 = vmatpush.bf16.msra.mxu1 %v8805_v15  ;;  %v3625_v62 = vld [vmem:[#allocation2 + $0x24] sm:$0x7]  ;;  %v7710_v15 = vor.u32 %v8817_v21, %v7709_v63  ;;  %v8874_v63 = vld [vmem:[%s13586_s8 + $0x1e4] sm:$0xf0]  ;;  %v4280_v21 = vshll.u32 %v12055_v60, 16 }
 0x41f   : > { %v3869_v33 = vunpack.c.l.b16 %v3625_v62  ;;  %v7701_v62 = vld [vmem:[%s13586_s8 + $0x20] sm:$0xf]  ;;  %v7897_v60 = vld [vmem:[%s13586_s8 + $0x1d0] sm:$0xf] }
 0x420   : > { %3472 = vmatmul.bf16.gmra.mxu0 %v3383_v52  ;;  %4573 = vmatmul.bf16.gmra.mxu2 %v4468_v10  ;;  %v12133_v27 = vsel %vm1026_vm0, %v3874_v34, %v3876_v23 }
 0x421   : > { %4602 = vmatmul.bf16.gmra.mxu3 %v4468_v10  ;;  %4401 = vmatpush.bf16.msra.mxu0 %v7886_v50  ;;  %v3870_v48 = vpack.c.b16 %v3869_v33, %v3869_v33  ;;  %v12145_v10 = vpop.f32.mrf.mxu3  ;;  %v7726_v50 = vor.u32 %v8821_v36, %v7725_v53  ;;  %v8815_v33 = vld [vmem:[%s13586_s8 + $0x24] sm:$0xf0]  ;;  %v8876_v53 = vld [vmem:[%s13586_s8 + $0x1f4] sm:$0xf0] }
 0x422   : > { %3557 = vmatpush.bf16.msra.mxu1 %v8804_v4 }
 0x423   : > { %v3878_v14 = vrot.slane %v3870_v48, 3 }
 0x425   : > { %4402 = vmatpush.bf16.msra.mxu0 %v7878_v8  ;;  %v12142_v52 = vsel %vm1026_vm0, %v3876_v23, %v3878_v14  ;;  %v7718_v8 = vor.u32 %v8819_v5, %v7717_v6  ;;  %v9537_v23 = vld [vmem:[%s13588_s10] ss:$2 sm:$0x3]  ;;  %v7702_v14 = vor.u32 %v8815_v33, %v7701_v62  ;;  %v7914_v6 = vor.u32 %v8876_v53, %v7913_v26  ;;  %v3819_v26 = vpop.f32.mrf.mxu2 }
 0x426   : > { %3558 = vmatpush.bf16.msra.mxu1 %v8803_v59  ;;  %v2004_v9 = vperm.slane %v9537_v23, 1 }
 0x428   : > { %v2129_v4 = vadd.f32 %v10905_v11, %v2004_v9  ;;  %v2131_v42 = vadd.f32 %v10935_v46, %v2004_v9  ;;  %v7694_v11 = vor.u32 %v8813_v13, %v7693_v22  ;;  %v2134_v3 = vadd.f32 %v10950_v61, %v2004_v9 }
 0x429   : > { %4403 = vmatpush.bf16.msra.mxu0 %v7870_v51  ;;  %v12198_v51 = vsel %vm1406_vm2, %v4262_v17, %v4266_v0  ;;  %v2136_v5 = vadd.f32 %v10988_v19, %v2004_v9  ;;  %v4276_v61 = vshrl.u32 %v12051_v35, 16  ;;  %v4282_v9 = vrot.slane %v4280_v21, 1  ;;  %v8872_v35 = vld [vmem:[%s13586_s8 + $0x1d4] sm:$0xf0] }
 0x42a   : > { %3559 = vmatpush.bf16.msra.mxu1 %v8802_v16 }
 0x42d   : > { %4404 = vmatpush.bf16.msra.mxu0 %v7862_v54 }
 0x42e   : > { %3964 = vmatpush.bf16.msrb.mxu1 %v7742_v28 }
 0x430   : > { %4001 = vmatmul.bf16.vlgmr.msrb.gmra.mxu0 %v12063_v41  ;;  %4578 = vmatmul.bf16.gmra.mxu2 %v4470_v30 }
 0x431   : > { %4607 = vmatmul.bf16.gmra.mxu3 %v4470_v30  ;;  %v12151_v30 = vpop.f32.mrf.mxu3 }
 0x432   : > { %3965 = vmatpush.bf16.msrb.mxu1 %v7734_v2  ;;  %v7686_v2 = vor.u32 %v8811_v32, %v7685_v58 }
 0x436   : > { %3966 = vmatpush.bf16.msrb.mxu1 %v7726_v50 }
 0x439   : > { %v12172_v34 = vpop.f32.mrf.mxu3 }
 0x43a   : > { %3967 = vmatpush.bf16.msrb.mxu1 %v7718_v8  ;;  %v7905_v8 = vld [vmem:[%s13586_s8 + $0x1e0] sm:$0xf] }
 0x43b   : > { %v7906_v23 = vor.u32 %v8874_v63, %v7905_v8 }
 0x43e   : > { %3968 = vmatpush.bf16.msrb.mxu1 %v7710_v15 }
 0x440   : > { %4006 = vmatmul.bf16.gmra.mxu0 %v12098_v1 }
 0x441   : > { %v12203_v31 = vpop.f32.mrf.mxu3 }
 0x442   : > { %3969 = vmatpush.bf16.msrb.mxu1 %v7702_v14  ;;  %v7898_v14 = vor.u32 %v8872_v35, %v7897_v60 }
 0x446   : > { %3970 = vmatpush.bf16.msrb.mxu1 %v7694_v11  ;;  %v8868_v11 = vld [vmem:[%s13586_s8 + $0x1b4] sm:$0xf0] }
 0x449   : > { %v12221_v16 = vpop.f32.mrf.mxu3 }
 0x44a   : > { %3971 = vmatpush.bf16.msrb.mxu1 %v7686_v2  ;;  %v8864_v2 = vld [vmem:[%s13586_s8 + $0x194] sm:$0xf0] }
 0x450   : > { %4011 = vmatmul.bf16.gmra.mxu0 %v12133_v27 }
 0x460   : > { %4016 = vmatmul.bf16.gmra.mxu0 %v12142_v52 }
 0x46d   : > { %v3460_v56 = vpop.f32.mrf.mxu0 }
 0x470   : > { %4405 = vmatmul.bf16.vlgmr.msra.gmra.mxu0 %v12157_v37 }
 0x475   : > { %v3461_v20 = vpop.f32.mrf.mxu0 }
 0x476   : > { %v4270_v20 = vor.u32 %v4268_v40, %v4266_v0  ;;  %v12243_v0 = vpop.f32.mrf.mxu3 }
 0x478   : > { %v12239_v36 = vsel %vm1406_vm2, %v4270_v20, %v4274_v57 }
 0x47d   : > { %v3463_v18 = vpop.f32.mrf.mxu0 }
 0x47e   : > { %v3464_v54 = vadd.f32 %v9335_v7, %v3463_v18 }
 0x480   : > { %4410 = vmatmul.bf16.gmra.mxu0 %v12198_v51  ;;  %v3476_v59 = vadd.f32 %v3464_v54, %v2129_v4  ;;  %v12256_v4 = vpop.f32.mrf.mxu3 }
 0x482   : > { %v3480_v56 = vmul.f32 %v3476_v59, %v10007_v39  ;;  %v7889_v59 = vld [vmem:[%s13586_s8 + $0x1c0] sm:$0xf] }
 0x485   : > { %v3465_v48 = vpop.f32.mrf.mxu0 }
 0x486   : > { %v3466_v12 = vadd.f32 %v9335_v7, %v3465_v48 }
 0x488   : > { %v3477_v45 = vadd.f32 %v3466_v12, %v2131_v42  ;;  %v8870_v12 = vld [vmem:[%s13586_s8 + $0x1c4] sm:$0xf0]  ;;  %v4164_v13 = vpop.f32.mrf.mxu3 }
 0x489   : > { %v7890_v22 = vor.u32 %v8870_v12, %v7889_v59 }
 0x48a   : > { %v3481_v46 = vmul.f32 %v3477_v45, %v10017_v47  ;;  %v7881_v45 = vld [vmem:[%s13586_s8 + $0x1b0] sm:$0xf] }
 0x48c   : > { %v3484_v28 = vpack.c.bf16 %v3481_v46, %v3480_v56  ;;  %v7882_v56 = vor.u32 %v8868_v11, %v7881_v45  ;;  %v8906_v45 = vld [vmem:[%s13587_s9 + $0x64] sm:$0xf0] }
 0x48d   : > { %v3468_v44 = vpop.f32.mrf.mxu0 }
 0x48e   : > { %3560 = vmatmul.bf16.vlgmr.msra.gmra.mxu1 %v3484_v28  ;;  %v3469_v55 = vadd.f32 %v9335_v7, %v3468_v44 }
 0x48f   : > { %4368 = vmatpush.bf16.msra.mxu1 %v7914_v6 }
 0x490   : > { %4415 = vmatmul.bf16.gmra.mxu0 %v12239_v36  ;;  %v3478_v18 = vadd.f32 %v3469_v55, %v2134_v3  ;;  %v12282_v58 = vpop.f32.mrf.mxu3 }
 0x492   : > { %v3482_v54 = vmul.f32 %v3478_v18, %v13643_v25 }
 0x493   : > { %4369 = vmatpush.bf16.msra.mxu1 %v7906_v23 }
 0x495   : > { %v3470_v50 = vpop.f32.mrf.mxu0 }
 0x496   : > { %v3471_v17 = vadd.f32 %v9335_v7, %v3470_v50  ;;  %v4278_v7 = vor.u32 %v4276_v61, %v4274_v57  ;;  %v8866_v57 = vld [vmem:[%s13586_s8 + $0x1a4] sm:$0xf0] }
 0x497   : > { %4370 = vmatpush.bf16.msra.mxu1 %v7898_v14 }
 0x498   : > { %v3479_v15 = vadd.f32 %v3471_v17, %v2136_v5  ;;  %v12265_v48 = vsel %vm1406_vm2, %v4278_v7, %v4282_v9  ;;  %v4169_v44 = vpop.f32.mrf.mxu3  ;;  %v8862_v5 = vld [vmem:[%s13586_s8 + $0x184] sm:$0xf0]  ;;  %v12314_v17 = vpop.f32.mrf.mxu2 }
 0x49a   : > { %v3483_v19 = vmul.f32 %v3479_v15, %v13644_v29 }
 0x49b   : > { %4371 = vmatpush.bf16.msra.mxu1 %v7890_v22 }
 0x49c   : > { %v3485_v62 = vpack.c.bf16 %v3483_v19, %v3482_v54 }
 0x49d   : > { %v3473_v33 = vpop.f32.mrf.mxu0 }
 0x49e   : > { %3565 = vmatmul.bf16.gmra.mxu1 %v3485_v62 }
 0x49f   : > { %4372 = vmatpush.bf16.msra.mxu1 %v7882_v56 }
 0x4a0   : > { %4420 = vmatmul.bf16.gmra.mxu0 %v12265_v48  ;;  %v12306_v50 = vpop.f32.mrf.mxu3  ;;  %v3824_v21 = vpop.f32.mrf.mxu2 }
 0x4a5   : > { %v3474_v42 = vpop.f32.mrf.mxu0 }
 0x4a8   : > { %v4174_v8 = vpop.f32.mrf.mxu3  ;;  %v12324_v54 = vpop.f32.mrf.mxu2 }
 0x4ad   : > { %v4002_v24 = vpop.f32.mrf.mxu0 }
 0x4ae   : > { %3972 = vmatmul.bf16.vlgmr.msrb.gmra.mxu1 %v12063_v41  ;;  %v4003_v46 = vadd.f32 %v4002_v24, %v12139_v49  ;;  %v7873_v41 = vld [vmem:[%s13586_s8 + $0x1a0] sm:$0xf]  ;;  %v7865_v49 = vld [vmem:[%s13586_s8 + $0x190] sm:$0xf] }
 0x4af   : > { %v7874_v28 = vor.u32 %v8866_v57, %v7873_v41  ;;  %v7866_v53 = vor.u32 %v8864_v2, %v7865_v49  ;;  %v8904_v49 = vld [vmem:[%s13587_s9 + $0x54] sm:$0xf0] }
 0x4b0   : > { %v12286_v40 = vadd.f32 %v4164_v13, %v4003_v46  ;;  %v12322_v61 = vpop.f32.mrf.mxu3 }
 0x4b1   : > { %4373 = vmatpush.bf16.msra.mxu1 %v7874_v28 }
 0x4b5   : > { %v12284_v32 = vpop.f32.mrf.mxu0  ;;  %4374 = vmatpush.bf16.msra.mxu1 %v7866_v53 }
 0x4b8   : > { %v4179_v9 = vpop.f32.mrf.mxu3 }
 0x4bd   : > { %v4007_v20 = vpop.f32.mrf.mxu0 }
 0x4be   : > { %3977 = vmatmul.bf16.gmra.mxu1 %v12098_v1  ;;  %v4008_v6 = vadd.f32 %v4007_v20, %v12151_v30  ;;  %v7857_v1 = vld [vmem:[%s13586_s8 + $0x180] sm:$0xf]  ;;  %v8049_v20 = vld [vmem:[%s13587_s9 + $0x50] sm:$0xf] }
 0x4bf   : > { %v7858_v18 = vor.u32 %v8862_v5, %v7857_v1  ;;  %v8050_v2 = vor.u32 %v8904_v49, %v8049_v20  ;;  %v8902_v5 = vld [vmem:[%s13587_s9 + $0x44] sm:$0xf0] }
 0x4c0   : > { %v12304_v3 = vadd.f32 %v4169_v44, %v4008_v6  ;;  %v12360_v13 = vpop.f32.mrf.mxu3 }
 0x4c1   : > { %4375 = vmatpush.bf16.msra.mxu1 %v7858_v18 }
 0x4c5   : > { %v12302_v55 = vpop.f32.mrf.mxu0 }
 0x4c8   : > { %v4593_v44 = vpop.f32.mrf.mxu3 }
 0x4cd   : > { %v4012_v30 = vpop.f32.mrf.mxu0 }
 0x4ce   : > { %3982 = vmatmul.bf16.gmra.mxu1 %v12133_v27  ;;  %v4013_v63 = vadd.f32 %v4012_v30, %v12203_v31  ;;  %v12330_v27 = vpop.f32.mrf.mxu2 }
 0x4d0   : > { %v12320_v15 = vadd.f32 %v4174_v8, %v4013_v63  ;;  %v4595_v30 = vpop.f32.mrf.mxu3 }
 0x4d5   : > { %v12318_v23 = vpop.f32.mrf.mxu0 }
 0x4d6   : > { %v12333_v31 = vpop.f32.mrf.mxu2 }
 0x4dd   : > { %v4017_v19 = vpop.f32.mrf.mxu0 }
 0x4de   : > { %3987 = vmatmul.bf16.gmra.mxu1 %v12142_v52  ;;  %v4018_v7 = vadd.f32 %v4017_v19, %v12243_v0  ;;  %v12335_v33 = vpop.f32.mrf.mxu2 }
 0x4e0   : > { %v12328_v62 = vadd.f32 %v4179_v9, %v4018_v7  ;;  %v4005_v7 = vadd.f32 %v12284_v32, %v12145_v10 }
 0x4e2   : > { %v4187_v10 = vadd.f32 %v12282_v58, %v4005_v7 }
 0x4e5   : > { %v12352_v12 = vpop.f32.mrf.mxu0 }
 0x4e6   : > { %v12338_v60 = vpop.f32.mrf.mxu2 }
 0x4ed   : > { %v4406_v46 = vpop.f32.mrf.mxu0 }
 0x4ee   : > { %4376 = vmatmul.bf16.vlgmr.msra.gmra.mxu1 %v12157_v37  ;;  %v4135_v52 = vpop.f32.mrf.mxu2  ;;  %v4427_v8 = vadd.f32 %v4406_v46, %v12286_v40  ;;  %v8900_v40 = vld [vmem:[%s13587_s9 + $0x34] sm:$0xf0] }
 0x4f5   : > { %v4408_v6 = vpop.f32.mrf.mxu0 }
 0x4f6   : > { %v12345_v14 = vpop.f32.mrf.mxu2 }
 0x4fd   : > { %v4411_v9 = vpop.f32.mrf.mxu0 }
 0x4fe   : > { %4381 = vmatmul.bf16.gmra.mxu1 %v12198_v51  ;;  %v4140_v37 = vpop.f32.mrf.mxu2  ;;  %v8065_v51 = vld [vmem:[%s13587_s9 + $0x70] sm:$0xf] }
 0x506   : > { %v12368_v11 = vpop.f32.mrf.mxu2 }
 0x50b   : > { %v12340_v35 = vpop.f32.mrf.mxu1 }
 0x50e   : > { %4386 = vmatmul.bf16.gmra.mxu1 %v12239_v36  ;;  %v8908_v36 = vld [vmem:[%s13587_s9 + $0x74] sm:$0xf0]  ;;  %v4145_v53 = vpop.f32.mrf.mxu2 }
 0x50f   : > { %v8066_v22 = vor.u32 %v8908_v36, %v8065_v51 }
 0x511   : > { %4919 = vmatpush.bf16.msrb.mxu1 %v8066_v22  ;;  %v8033_v22 = vld [vmem:[%s13587_s9 + $0x30] sm:$0xf] }
 0x512   : > { %v8034_v32 = vor.u32 %v8900_v40, %v8033_v22 }
 0x513   : > { %v12343_v0 = vpop.f32.mrf.mxu1 }
 0x516   : > { %v12387_v19 = vpop.f32.mrf.mxu2 }
 0x51b   : > { %v12347_v42 = vpop.f32.mrf.mxu1 }
 0x51e   : > { %4391 = vmatmul.bf16.gmra.mxu1 %v12265_v48  ;;  %v8057_v48 = vld [vmem:[%s13587_s9 + $0x60] sm:$0xf]  ;;  %v12415_v20 = vpop.f32.mrf.mxu2 }
 0x51f   : > { %v8058_v56 = vor.u32 %v8906_v45, %v8057_v48  ;;  %v8059_v48 = vld [vmem:[%s13587_s9 + $0x68] sm:$0xf0] }
 0x521   : > { %4920 = vmatpush.bf16.msrb.mxu1 %v8058_v56  ;;  %v13660_v56 = vld [vmem:[#allocation18_spill] sm:$0xff] }
 0x523   : > { %v12350_v59 = vpop.f32.mrf.mxu1 }
 0x525   : > { %4921 = vmatpush.bf16.msrb.mxu1 %v8050_v2 }
 0x52b   : > { %v3973_v24 = vpop.f32.mrf.mxu1 }
 0x52c   : > { %v3974_v41 = vadd.f32 %v3973_v24, %v3819_v26  ;;  %v8041_v26 = vld [vmem:[%s13587_s9 + $0x40] sm:$0xf]  ;;  %v8905_v24 = vld [vmem:[%s13587_s9 + $0x64] sm:$0xf] }
 0x52d   : > { %v8042_v18 = vor.u32 %v8902_v5, %v8041_v26  ;;  %v8062_v58 = vor.u32 %v8905_v24, %v8059_v48  ;;  %v4413_v26 = vpop.f32.mrf.mxu0  ;;  %v8901_v24 = vld [vmem:[%s13587_s9 + $0x44] sm:$0xf]  ;;  %v8043_v48 = vld [vmem:[%s13587_s9 + $0x48] sm:$0xf0] }
 0x52e   : > { %v12372_v28 = vadd.f32 %v4135_v52, %v3974_v41  ;;  %v4614_v52 = vadd.f32 %v4593_v44, %v4427_v8  ;;  %v4429_v41 = vadd.f32 %v4408_v6, %v4187_v10  ;;  %v4598_v44 = vpop.f32.mrf.mxu3  ;;  %v4010_v6 = vadd.f32 %v12302_v55, %v12172_v34  ;;  %v8025_v34 = vld [vmem:[%s13587_s9 + $0x20] sm:$0xf]  ;;  %v8898_v55 = vld [vmem:[%s13587_s9 + $0x24] sm:$0xf0] }
 0x52f   : > { %4922 = vmatpush.bf16.msrb.mxu1 %v8042_v18  ;;  %v4431_v18 = vadd.f32 %v4411_v9, %v12304_v3 }
 0x530   : > { %v4630_v46 = vadd.f32 %v4614_v52, %v13660_v56  ;;  %v4616_v2 = vadd.f32 %v4595_v30, %v4429_v41  ;;  %v4191_v10 = vadd.f32 %v12306_v50, %v4010_v6  ;;  %v8026_v50 = vor.u32 %v8898_v55, %v8025_v34  ;;  %v8009_v55 = vld [vmem:[%s13587_s9] sm:$0xf] }
 0x531   : > { %v4618_v52 = vadd.f32 %v4598_v44, %v4431_v18 }
 0x532   : > { %v7999_v49 = vmul.f32 -1.442695, %v4630_v46  ;;  %v4632_v5 = vadd.f32 %v4616_v2, %v13660_v56  ;;  %v8046_v2 = vor.u32 %v8901_v24, %v8043_v48 }
 0x533   : > { %v12370_v57 = vpop.f32.mrf.mxu1  ;;  %4923 = vmatpush.bf16.msrb.mxu1 %v8034_v32  ;;  %v4634_v3 = vadd.f32 %v4618_v52, %v13660_v56  ;;  %v8896_v52 = vld [vmem:[%s13587_s9 + $0x14] sm:$0xf0] }
 0x534   : > { %9435 = vpow2.f32 %v7999_v49  ;;  %v8000_v7 = vmul.f32 -1.442695, %v4632_v5 }
 0x535   : > { %v4416_v32 = vpop.f32.mrf.mxu0 }
 0x536   : > { %9437 = vpow2.f32 %v8000_v7  ;;  %v4435_v5 = vadd.f32 %v4416_v32, %v12320_v15  ;;  %v8017_v7 = vld [vmem:[%s13587_s9 + $0x10] sm:$0xf]  ;;  %v8899_v15 = vld [vmem:[%s13587_s9 + $0x34] sm:$0xf] }
 0x537   : > { %4924 = vmatpush.bf16.msrb.mxu1 %v8026_v50 }
 0x53a   : > { %v9436_v30 = vpop.eup %9435 }
 0x53b   : > { %v3978_v1 = vpop.f32.mrf.mxu1  ;;  %v12430_v9 = vadd.f32 1.0, %v9436_v30  ;;  %v8018_v30 = vor.u32 %v8896_v52, %v8017_v7  ;;  %v8893_v7 = vld [vmem:[%s13587_s9 + $0x4] sm:$0xf]  ;;  %v8011_v52 = vld [vmem:[%s13587_s9 + $0x8] sm:$0xf0] }
 0x53c   : > { %v3979_v63 = vadd.f32 %v3978_v1, %v3824_v21  ;;  %v8907_v21 = vld [vmem:[%s13587_s9 + $0x74] sm:$0xf]  ;;  %v9438_v49 = vpop.eup %9437 }
 0x53d   : > { %9439 = vrcp.f32 %v12430_v9  ;;  %v4418_v6 = vpop.f32.mrf.mxu0  ;;  %4925 = vmatpush.bf16.msrb.mxu1 %v8018_v30  ;;  %vm4690_vm9 = vweird.f32 %v12430_v9 }
 0x53e   : > { %v12393_v36 = vadd.f32 %v4140_v37, %v3979_v63  ;;  %v8067_v37 = vld [vmem:[%s13587_s9 + $0x78] sm:$0xf0]  ;;  %v4600_v63 = vpop.f32.mrf.mxu3 }
 0x53f   : > { %v8070_v45 = vor.u32 %v8907_v21, %v8067_v37  ;;  %v12426_v21 = vpop.f32.mrf.mxu2  ;;  %v8051_v37 = vld [vmem:[%s13587_s9 + $0x58] sm:$0xf0] }
 0x541   : > { %4948 = vmatpush.bf16.msrb.mxu0 %v8070_v45  ;;  %v8001_v45 = vmul.f32 -1.442695, %v4634_v3 }
 0x543   : > { %v12391_v51 = vpop.f32.mrf.mxu1  ;;  %9441 = vpow2.f32 %v8001_v45 }
 0x545   : > { %4949 = vmatpush.bf16.msrb.mxu0 %v8062_v58 }
 0x546   : > { %v4603_v58 = vpop.f32.mrf.mxu3 }
 0x547   : > { %v4622_v3 = vadd.f32 %v4603_v58, %v4435_v5 }
 0x549   : > { %v4638_v58 = vadd.f32 %v4622_v3, %v13660_v56  ;;  %v8014_v3 = vor.u32 %v8893_v7, %v8011_v52 }
 0x54b   : > { %v3983_v1 = vpop.f32.mrf.mxu1 }
 0x54c   : > { %v3984_v8 = vadd.f32 %v3983_v1, %v12330_v27  ;;  %v4433_v27 = vadd.f32 %v4413_v26, %v4191_v10  ;;  %v4564_v1 = vpop.f32.mrf.mxu2  ;;  %v8027_v10 = vld [vmem:[%s13587_s9 + $0x28] sm:$0xf0] }
 0x54e   : > { %v12424_v40 = vadd.f32 %v4145_v53, %v3984_v8  ;;  %v8903_v53 = vld [vmem:[%s13587_s9 + $0x54] sm:$0xf]  ;;  %v4620_v46 = vadd.f32 %v4600_v63, %v4433_v27  ;;  %v12454_v8 = vadd.f32 1.0, %v9438_v49  ;;  %v4015_v63 = vadd.f32 %v12318_v23, %v12221_v16  ;;  %v8035_v16 = vld [vmem:[%s13587_s9 + $0x38] sm:$0xf0] }
 0x54f   : > { %v8054_v44 = vor.u32 %v8903_v53, %v8051_v37  ;;  %v8897_v23 = vld [vmem:[%s13587_s9 + $0x24] sm:$0xf]  ;;  %v8038_v34 = vor.u32 %v8899_v15, %v8035_v16  ;;  %v8894_v53 = vld [vmem:[%s13587_s9 + $0x4] sm:$0xf0]  ;;  %v8003_v15 = vmul.f32 -1.442695, %v4638_v58 }
 0x550   : > { %v4636_v26 = vadd.f32 %v4620_v46, %v13660_v56  ;;  %9443 = vrcp.f32 %v12454_v8  ;;  %v8010_v37 = vor.u32 %v8894_v53, %v8009_v55  ;;  %v4195_v45 = vadd.f32 %v12322_v61, %v4015_v63  ;;  %v4421_v63 = vpop.f32.mrf.mxu0 }
 0x551   : > { %4950 = vmatpush.bf16.msrb.mxu0 %v8054_v44  ;;  %v8030_v46 = vor.u32 %v8897_v23, %v8027_v10  ;;  %v8895_v44 = vld [vmem:[%s13587_s9 + $0x14] sm:$0xf]  ;;  %vm4705_vm13 = vweird.f32 %v12454_v8 }
 0x552   : > { %v8002_v32 = vmul.f32 -1.442695, %v4636_v26  ;;  %v4437_v49 = vadd.f32 %v4418_v6, %v4195_v45  ;;  %4926 = vmatpush.bf16.msrb.mxu1 %v8010_v37  ;;  %v4439_v37 = vadd.f32 %v4421_v63, %v12328_v62 }
 0x553   : > { %v12422_v22 = vpop.f32.mrf.mxu1 }
 0x554   : > { %9445 = vpow2.f32 %v8002_v32  ;;  %v4566_v26 = vpop.f32.mrf.mxu2 }
 0x555   : > { %4951 = vmatpush.bf16.msrb.mxu0 %v8046_v2 }
 0x559   : > { %4952 = vmatpush.bf16.msrb.mxu0 %v8038_v34  ;;  %v3976_v34 = vadd.f32 %v12370_v57, %v12314_v17  ;;  %v4696_v57 = vand.u32 2147483648, %v12430_v9 }
 0x55b   : > { %v3988_v41 = vpop.f32.mrf.mxu1  ;;  %v4186_v62 = vadd.f32 %v12345_v14, %v3976_v34 }
 0x55c   : > { %v3989_v18 = vadd.f32 %v3988_v41, %v12335_v33  ;;  %v12467_v33 = vpop.eup %9439  ;;  %v4605_v41 = vpop.f32.mrf.mxu3 }
 0x55d   : > { %v9442_v24 = vpop.eup %9441  ;;  %v4686_v48 = vmul.f32 %v12467_v33, %v12430_v9  ;;  %4953 = vmatpush.bf16.msrb.mxu0 %v8030_v46  ;;  %v4624_v6 = vadd.f32 %v4605_v41, %v4437_v49  ;;  %v4020_v46 = vadd.f32 %v12352_v12, %v12256_v4  ;;  %vm4691_vm8 = vweird.f32 %v12467_v33  ;;  %v4423_v49 = vpop.f32.mrf.mxu0 }
 0x55e   : > { %v12487_v50 = vadd.f32 %v12415_v20, %v3989_v18  ;;  %v8019_v20 = vld [vmem:[%s13587_s9 + $0x18] sm:$0xf0]  ;;  %v12500_v2 = vadd.f32 1.0, %v9442_v24  ;;  %v12502_v18 = vpop.eup %9443  ;;  %v4694_v4 = vand.u32 2147483647, %v12430_v9  ;;  %vm12533_vm10 = vmor %vm4690_vm9, %vm4691_vm8 }
 0x55f   : > { %v4687_v61 = vsub.f32 1.0, %v4686_v48  ;;  %v8022_v5 = vor.u32 %v8895_v44, %v8019_v20  ;;  %v9446_v23 = vpop.eup %9445  ;;  %v4701_v10 = vmul.f32 %v12502_v18, %v12454_v8  ;;  %v4640_v53 = vadd.f32 %v4624_v6, %v13660_v56 }
 0x560   : > { %9447 = vrcp.f32 %v12500_v2  ;;  %v12519_v48 = vadd.f32 1.0, %v9446_v23  ;;  %v4199_v7 = vadd.f32 %v12360_v13, %v4020_v46  ;;  %vm4695_vm11 = vcmp.eq.f32.partialorder %v4694_v4, 8.507059e+37 }
 0x561   : > { %v4688_v32 = vmul.f32 %v12467_v33, %v4687_v61  ;;  %4954 = vmatpush.bf16.msrb.mxu0 %v8022_v5  ;;  %9449 = vpow2.f32 %v8003_v15  ;;  %v4702_v41 = vsub.f32 1.0, %v4701_v10  ;;  %v8004_v20 = vmul.f32 -1.442695, %v4640_v53 }
 0x562   : > { %v4697_v15 = vor.u32 1.1754944e-38, %v4696_v57  ;;  %vm4706_vm12 = vweird.f32 %v12502_v18  ;;  %v4711_v53 = vand.u32 2147483648, %v12454_v8  ;;  %v3981_v4 = vadd.f32 %v12391_v51, %v12324_v54 }
 0x563   : > { %v12478_v27 = vpop.f32.mrf.mxu1  ;;  %v4689_v44 = vadd.f32 %v12467_v33, %v4688_v32  ;;  %v4703_v52 = vmul.f32 %v12502_v18, %v4702_v41  ;;  %vm12556_vm14 = vmor %vm4705_vm13, %vm4706_vm12  ;;  %v4726_v51 = vand.u32 2147483648, %v12500_v2  ;;  %vm4720_vm5 = vweird.f32 %v12500_v2 }
 0x564   : > { %v4608_v24 = vpop.f32.mrf.mxu3  ;;  %v4190_v54 = vadd.f32 %v12368_v11, %v3981_v4  ;;  %v4741_v41 = vand.u32 2147483648, %v12519_v48  ;;  %vm4735_vm9 = vweird.f32 %v12519_v48 }
 0x565   : > { %4955 = vmatpush.bf16.msrb.mxu0 %v8014_v3  ;;  %v4626_v58 = vadd.f32 %v4608_v24, %v4439_v37  ;;  %v4693_v14 = vsel %vm12533_vm10, %v12467_v33, %v4689_v44  ;;  %v4704_v33 = vadd.f32 %v12502_v18, %v4703_v52 }
 0x566   : > { %v12526_v17 = vpop.eup %9447  ;;  %v4698_v13 = vsel %vm4695_vm11, %v4697_v15, %v4693_v14 }
 0x567   : > { %v9450_v63 = vpop.eup %9449  ;;  %v4716_v9 = vmul.f32 %v12526_v17, %v12500_v2  ;;  %vm4721_vm4 = vweird.f32 %v12526_v17 }
 0x568   : > { %v12545_v10 = vadd.f32 1.0, %v9450_v63  ;;  %vm12582_vm6 = vmor %vm4720_vm5, %vm4721_vm4 }
 0x569   : > { %v4717_v34 = vsub.f32 1.0, %v4716_v9 }
 0x56a   : > { %vm4750_vm13 = vweird.f32 %v12545_v10 }
 0x56b   : > { %v4377_v30 = vpop.f32.mrf.mxu1 }
 0x56c   : > { %v4426_v16 = vadd.f32 %v4377_v30, %v12372_v28  ;;  %v13661_v28 = vld [vmem:[#allocation19_spill] sm:$0xff]  ;;  %v4642_v30 = vadd.f32 %v4626_v58, %v13660_v56  ;;  %v4718_v58 = vmul.f32 %v12526_v17, %v4717_v34 }
 0x56e   : > { %v4613_v55 = vadd.f32 %v4564_v1, %v4426_v16  ;;  %v4569_v1 = vpop.f32.mrf.mxu2  ;;  %v4441_v16 = vadd.f32 %v4423_v49, %v4199_v7  ;;  %v8005_v37 = vmul.f32 -1.442695, %v4642_v30  ;;  %v4719_v14 = vadd.f32 %v12526_v17, %v4718_v58 }
 0x570   : > { %v4629_v45 = vadd.f32 %v4613_v55, %v13661_v28  ;;  %v4723_v11 = vsel %vm12582_vm6, %v12526_v17, %v4719_v14 }
 0x572   : > { %9451 = vtanh.f32 %v4629_v45  ;;  %v4709_v45 = vand.u32 2147483647, %v12454_v8 }
 0x573   : > { %v4379_v12 = vpop.f32.mrf.mxu1  ;;  %9453 = vrcp.f32 %v12519_v48 }
 0x574   : > { %v4428_v5 = vadd.f32 %v4379_v12, %v4186_v62  ;;  %9455 = vpow2.f32 %v8004_v20  ;;  %v4708_v20 = vsel %vm12556_vm14, %v12502_v18, %v4704_v33  ;;  %v4712_v12 = vor.u32 1.1754944e-38, %v4711_v53 }
 0x575   : > { %vm4710_vm15 = vcmp.eq.f32.partialorder %v4709_v45, 8.507059e+37 }
 0x576   : > { %v4615_v6 = vadd.f32 %v4566_v26, %v4428_v5  ;;  %v4610_v26 = vpop.f32.mrf.mxu3  ;;  %v4571_v62 = vpop.f32.mrf.mxu2  ;;  %v4713_v63 = vsel %vm4710_vm15, %v4712_v12, %v4708_v20  ;;  %v3986_v12 = vadd.f32 %v12422_v22, %v12333_v31  ;;  %v4756_v22 = vand.u32 2147483648, %v12545_v10 }
 0x577   : > { %v4628_v24 = vadd.f32 %v4610_v26, %v4441_v16  ;;  %v8163_v16 = vld [vmem:[%s13586_s8 + $0x378] sm:$0xf0] }
 0x578   : > { %v9452_v23 = vpop.eup %9451  ;;  %v4631_v32 = vadd.f32 %v4615_v6, %v13661_v28  ;;  %v4724_v6 = vand.u32 2147483647, %v12500_v2  ;;  %v4194_v31 = vadd.f32 %v12387_v19, %v3986_v12 }
 0x579   : > { %v4805_v3 = vmul.f32 %v9452_v23, %v4698_v13  ;;  %v12550_v55 = vpop.eup %9453  ;;  %v4644_v61 = vadd.f32 %v4628_v24, %v13660_v56 }
 0x57a   : > { %9457 = vtanh.f32 %v4631_v32  ;;  %v9456_v57 = vpop.eup %9455  ;;  %v4731_v8 = vmul.f32 %v12550_v55, %v12519_v48  ;;  %vm4725_vm7 = vcmp.eq.f32.partialorder %v4724_v6, 8.507059e+37  ;;  %vm4736_vm8 = vweird.f32 %v12550_v55 }
 0x57b   : > { %v4382_v46 = vpop.f32.mrf.mxu1  ;;  %9459 = vrcp.f32 %v12545_v10  ;;  %v12570_v5 = vadd.f32 1.0, %v9456_v57  ;;  %v8006_v56 = vmul.f32 -1.442695, %v4644_v61  ;;  %v4739_v57 = vand.u32 2147483647, %v12519_v48  ;;  %vm4737_vm10 = vmor %vm4735_vm9, %vm4736_vm8 }
 0x57c   : > { %v4430_v44 = vadd.f32 %v4382_v46, %v12393_v36  ;;  %9461 = vpow2.f32 %v8005_v37  ;;  %v4732_v52 = vsub.f32 1.0, %v4731_v8  ;;  %v4742_v61 = vor.u32 1.1754944e-38, %v4741_v41 }
 0x57d   : > { %vm4740_vm11 = vcmp.eq.f32.partialorder %v4739_v57, 8.507059e+37  ;;  %vm4765_vm5 = vweird.f32 %v12570_v5  ;;  %v4769_v57 = vand.u32 2147483647, %v12570_v5 }
 0x57e   : > { %v4617_v49 = vadd.f32 %v4569_v1, %v4430_v44  ;;  %v4733_v13 = vmul.f32 %v12550_v55, %v4732_v52  ;;  %v4574_v33 = vpop.f32.mrf.mxu2 }
 0x580   : > { %v9458_v36 = vpop.eup %9457  ;;  %v4633_v18 = vadd.f32 %v4617_v49, %v13661_v28  ;;  %v4734_v24 = vadd.f32 %v12550_v55, %v4733_v13  ;;  %v4757_v13 = vor.u32 1.1754944e-38, %v4756_v22 }
 0x581   : > { %v4806_v7 = vmul.f32 %v9458_v36, %v4713_v63  ;;  %v12575_v9 = vpop.eup %9459 }
 0x582   : > { %9463 = vtanh.f32 %v4633_v18  ;;  %v9462_v23 = vpop.eup %9461  ;;  %v4746_v32 = vmul.f32 %v12575_v9, %v12545_v10  ;;  %v4738_v58 = vsel %vm4737_vm10, %v12550_v55, %v4734_v24  ;;  %vm4751_vm12 = vweird.f32 %v12575_v9 }
 0x583   : > { %v4384_v1 = vpop.f32.mrf.mxu1  ;;  %v4813_v15 = vpack.c.bf16 %v4806_v7, %v4805_v3  ;;  %9465 = vrcp.f32 %v12570_v5  ;;  %v4727_v3 = vor.u32 1.1754944e-38, %v4726_v51  ;;  %v12592_v26 = vadd.f32 1.0, %v9462_v23  ;;  %vm12622_vm14 = vmor %vm4750_vm13, %vm4751_vm12  ;;  %v8937_v23 = vld [vmem:[%s13586_s8 + $0x364] sm:$0xf] }
 0x584   : > { %v4432_v30 = vadd.f32 %v4384_v1, %v4190_v54  ;;  %9467 = vpow2.f32 %v8006_v56  ;;  %v4747_v45 = vsub.f32 1.0, %v4746_v32  ;;  %v4743_v63 = vsel %vm4740_vm11, %v4742_v61, %v4738_v58  ;;  %v8155_v32 = vld [vmem:[%s13586_s8 + $0x368] sm:$0xf0] }
 0x585   : > { %4927 = vmatmul.bf16.vlgmr.msrb.gmra.mxu1 %v4813_v15  ;;  %4956 = vmatmul.bf16.vlgmr.msrb.gmra.mxu0 %v4813_v15  ;;  %v4728_v37 = vsel %vm4725_vm7, %v4727_v3, %v4723_v11  ;;  %v4754_v56 = vand.u32 2147483647, %v12545_v10  ;;  %v8939_v10 = vld [vmem:[%s13586_s8 + $0x374] sm:$0xf]  ;;  %vm4770_vm7 = vcmp.eq.f32.partialorder %v4769_v57, 8.507059e+37  ;;  %vm4780_vm9 = vweird.f32 %v12592_v26 }
 0x586   : > { %v4619_v2 = vadd.f32 %v4571_v62, %v4432_v30  ;;  %v4748_v8 = vmul.f32 %v12575_v9, %v4747_v45  ;;  %v4576_v18 = vpop.f32.mrf.mxu2  ;;  %v4771_v45 = vand.u32 2147483648, %v12570_v5  ;;  %v8938_v57 = vld [vmem:[%s13586_s8 + $0x364] sm:$0xf0] }
 0x587   : > { %vm4755_vm15 = vcmp.eq.f32.partialorder %v4754_v56, 8.507059e+37 }
 0x588   : > { %v9464_v34 = vpop.eup %9463  ;;  %v4635_v53 = vadd.f32 %v4619_v2, %v13661_v28  ;;  %v4749_v55 = vadd.f32 %v12575_v9, %v4748_v8 }
 0x589   : > { %v4807_v17 = vmul.f32 %v9464_v34, %v4728_v37  ;;  %v12597_v46 = vpop.eup %9465  ;;  %v8158_v34 = vor.u32 %v8937_v23, %v8155_v32  ;;  %v8940_v32 = vld [vmem:[%s13586_s8 + $0x374] sm:$0xf0] }
 0x58a   : > { %9469 = vtanh.f32 %v4635_v53  ;;  %v9468_v20 = vpop.eup %9467  ;;  %v4761_v4 = vmul.f32 %v12597_v46, %v12570_v5  ;;  %v4753_v19 = vsel %vm12622_vm14, %v12575_v9, %v4749_v55  ;;  %v8166_v9 = vor.u32 %v8939_v10, %v8163_v16 }
 0x58b   : > { %v4387_v44 = vpop.f32.mrf.mxu1  ;;  %9471 = vrcp.f32 %v12592_v26  ;;  %v12610_v36 = vadd.f32 1.0, %v9468_v20  ;;  %vm4766_vm4 = vweird.f32 %v12597_v46 }
 0x58c   : > { %v4434_v62 = vadd.f32 %v4387_v44, %v12424_v40  ;;  %v4762_v14 = vsub.f32 1.0, %v4761_v4  ;;  %5227 = vmatpush.bf16.msrb.mxu3 %v8166_v9  ;;  %vm4767_vm6 = vmor %vm4765_vm5, %vm4766_vm4  ;;  %v3991_v4 = vadd.f32 %v12478_v27, %v12338_v60  ;;  %v4784_v27 = vand.u32 2147483647, %v12592_v26 }
 0x58d   : > { %vm4795_vm13 = vweird.f32 %v12610_v36 }
 0x58e   : > { %v4621_v49 = vadd.f32 %v4574_v33, %v4434_v62  ;;  %v4763_v6 = vmul.f32 %v12597_v46, %v4762_v14  ;;  %v4758_v33 = vsel %vm4755_vm15, %v4757_v13, %v4753_v19  ;;  %v4579_v41 = vpop.f32.mrf.mxu2  ;;  %vm4785_vm11 = vcmp.eq.f32.partialorder %v4784_v27, 8.507059e+37  ;;  %v8147_v13 = vld [vmem:[%s13586_s8 + $0x358] sm:$0xf0] }
 0x590   : > { %v9470_v48 = vpop.eup %9469  ;;  %v4637_v40 = vadd.f32 %v4621_v49, %v13661_v28  ;;  %v4764_v53 = vadd.f32 %v12597_v46, %v4763_v6  ;;  %5228 = vmatpush.bf16.msrb.mxu3 %v8158_v34  ;;  %v4772_v49 = vor.u32 1.1754944e-38, %v4771_v45  ;;  %v4799_v6 = vand.u32 2147483647, %v12610_v36  ;;  %v8225_v34 = vld [vmem:[%s13586_s8 + $0x2f0] sm:$0xf] }
 0x591   : > { %v4808_v7 = vmul.f32 %v9470_v48, %v4743_v63  ;;  %v12615_v52 = vpop.eup %9471  ;;  %v4198_v63 = vadd.f32 %v12426_v21, %v3991_v4  ;;  %v8227_v45 = vld [vmem:[%s13586_s8 + $0x2f8] sm:$0xf0] }
 0x592   : > { %9473 = vtanh.f32 %v4637_v40  ;;  %v4776_v30 = vmul.f32 %v12615_v52, %v12592_v26  ;;  %v4768_v20 = vsel %vm4767_vm6, %v12597_v46, %v4764_v53  ;;  %vm4781_vm8 = vweird.f32 %v12615_v52  ;;  %v8924_v53 = vld [vmem:[%s13586_s8 + $0x2f4] sm:$0xf0] }
 0x593   : > { %v4389_v54 = vpop.f32.mrf.mxu1  ;;  %v4814_v51 = vpack.c.bf16 %v4808_v7, %v4807_v17  ;;  %9475 = vrcp.f32 %v12610_v36  ;;  %v4773_v5 = vsel %vm4770_vm7, %v4772_v49, %v4768_v20  ;;  %vm4782_vm10 = vmor %vm4780_vm9, %vm4781_vm8  ;;  %vm4800_vm15 = vcmp.eq.f32.partialorder %v4799_v6, 8.507059e+37  ;;  %v8217_v20 = vld [vmem:[%s13586_s8 + $0x2e0] sm:$0xf]  ;;  %v8931_v49 = vld [vmem:[%s13586_s8 + $0x334] sm:$0xf] }
 0x594   : > { %v4436_v1 = vadd.f32 %v4389_v54, %v4194_v31  ;;  %v4777_v24 = vsub.f32 1.0, %v4776_v30  ;;  %v8123_v6 = vld [vmem:[%s13586_s8 + $0x328] sm:$0xf0] }
 0x595   : > { %4932 = vmatmul.bf16.gmra.mxu1 %v4814_v51  ;;  %4959 = vmatmul.bf16.gmra.mxu0 %v4814_v51 }
 0x596   : > { %v4623_v11 = vadd.f32 %v4576_v18, %v4436_v1  ;;  %v4778_v58 = vmul.f32 %v12615_v52, %v4777_v24  ;;  %v4786_v18 = vand.u32 2147483648, %v12592_v26  ;;  %v4581_v14 = vpop.f32.mrf.mxu2  ;;  %v4801_v26 = vand.u32 2147483648, %v12610_v36 }
 0x597   : > { %v8226_v24 = vor.u32 %v8924_v53, %v8225_v34  ;;  %v8914_v34 = vld [vmem:[%s13586_s8 + $0x2a4] sm:$0xf0]  ;;  %v8913_v53 = vld [vmem:[%s13586_s8 + $0x2a4] sm:$0xf] }
 0x598   : > { %v9474_v2 = vpop.eup %9473  ;;  %v4639_v3 = vadd.f32 %v4623_v11, %v13661_v28  ;;  %v4787_v51 = vor.u32 1.1754944e-38, %v4786_v18  ;;  %v4802_v30 = vor.u32 1.1754944e-38, %v4801_v26  ;;  %v8211_v18 = vld [vmem:[%s13586_s8 + $0x2d8] sm:$0xf0]  ;;  %v8929_v26 = vld [vmem:[%s13586_s8 + $0x324] sm:$0xf] }
 0x599   : > { %v4809_v37 = vmul.f32 %v9474_v2, %v4758_v33  ;;  %v9476_v17 = vpop.eup %9475  ;;  %v8933_v2 = vld [vmem:[%s13586_s8 + $0x344] sm:$0xf]  ;;  %v8139_v33 = vld [vmem:[%s13586_s8 + $0x348] sm:$0xf0]  ;;  %5352 = vmatpush.bf16.msra.mxu1 %v8226_v24  ;;  %v8927_v24 = vld [vmem:[%s13586_s8 + $0x314] sm:$0xf] }
 0x59a   : > { %9477 = vtanh.f32 %v4639_v3  ;;  %v4791_v8 = vmul.f32 %v9476_v17, %v12610_v36  ;;  %vm4796_vm12 = vweird.f32 %v9476_v17  ;;  %v8161_v36 = vld [vmem:[%s13586_s8 + $0x370] sm:$0xf] }
 0x59b   : > { %v4392_v44 = vpop.f32.mrf.mxu1  ;;  %vm4797_vm14 = vmor %vm4795_vm13, %vm4796_vm12  ;;  %v8162_v3 = vor.u32 %v8940_v32, %v8161_v36  ;;  %v8195_v36 = vld [vmem:[%s13586_s8 + $0x2b8] sm:$0xf0]  ;;  %v8129_v32 = vld [vmem:[%s13586_s8 + $0x330] sm:$0xf] }
 0x59c   : > { %v4438_v62 = vadd.f32 %v4392_v44, %v12487_v50  ;;  %v4779_v50 = vadd.f32 %v12615_v52, %v4778_v58  ;;  %v4792_v46 = vsub.f32 1.0, %v4791_v8  ;;  %v8153_v44 = vld [vmem:[%s13586_s8 + $0x360] sm:$0xf]  ;;  %v8922_v58 = vld [vmem:[%s13586_s8 + $0x2e4] sm:$0xf0] }
 0x59d   : > { %5198 = vmatpush.bf16.msrb.mxu2 %v8162_v3  ;;  %v8921_v8 = vld [vmem:[%s13586_s8 + $0x2e4] sm:$0xf]  ;;  %v8218_v4 = vor.u32 %v8922_v58, %v8217_v20  ;;  %v8932_v3 = vld [vmem:[%s13586_s8 + $0x334] sm:$0xf0]  ;;  %v8115_v20 = vld [vmem:[%s13586_s8 + $0x318] sm:$0xf0] }
 0x59e   : > { %v4625_v12 = vadd.f32 %v4579_v41, %v4438_v62  ;;  %v4783_v31 = vsel %vm4782_vm10, %v12615_v52, %v4779_v50  ;;  %v4793_v22 = vmul.f32 %v9476_v17, %v4792_v46  ;;  %v8154_v62 = vor.u32 %v8938_v57, %v8153_v44  ;;  %v8920_v50 = vld [vmem:[%s13586_s8 + $0x2d4] sm:$0xf0]  ;;  %v8919_v46 = vld [vmem:[%s13586_s8 + $0x2d4] sm:$0xf] }
 0x59f   : > { %v4788_v1 = vsel %vm4785_vm11, %v4787_v51, %v4783_v31  ;;  %5353 = vmatpush.bf16.msra.mxu1 %v8218_v4  ;;  %v8145_v31 = vld [vmem:[%s13586_s8 + $0x350] sm:$0xf]  ;;  %v8130_v57 = vor.u32 %v8932_v3, %v8129_v32  ;;  %v8118_v4 = vor.u32 %v8927_v24, %v8115_v20  ;;  %v8307_v32 = vld [vmem:[%s13586_s8 + $0x3f8] sm:$0xf0] }
 0x5a0   : > { %v9478_v61 = vpop.eup %9477  ;;  %v4641_v48 = vadd.f32 %v4625_v12, %v13661_v28  ;;  %v4794_v15 = vadd.f32 %v9476_v17, %v4793_v22  ;;  %v8219_v12 = vld [vmem:[%s13586_s8 + $0x2e8] sm:$0xf0]  ;;  %v8936_v22 = vld [vmem:[%s13586_s8 + $0x354] sm:$0xf0] }
 0x5a1   : > { %v4810_v40 = vmul.f32 %v9478_v61, %v4773_v5  ;;  %v8131_v61 = vld [vmem:[%s13586_s8 + $0x338] sm:$0xf0]  ;;  %5199 = vmatpush.bf16.msrb.mxu2 %v8154_v62  ;;  %v8146_v51 = vor.u32 %v8936_v22, %v8145_v31 }
 0x5a2   : > { %9479 = vtanh.f32 %v4641_v48  ;;  %v4798_v52 = vsel %vm4797_vm14, %v9476_v17, %v4794_v15  ;;  %v8923_v17 = vld [vmem:[%s13586_s8 + $0x2f4] sm:$0xf]  ;;  %v8222_v48 = vor.u32 %v8921_v8, %v8219_v12  ;;  %v8134_v5 = vor.u32 %v8931_v49, %v8131_v61  ;;  %v8121_v12 = vld [vmem:[%s13586_s8 + $0x320] sm:$0xf]  ;;  %v8930_v49 = vld [vmem:[%s13586_s8 + $0x324] sm:$0xf0] }
 0x5a3   : > { %v4394_v7 = vpop.f32.mrf.mxu1  ;;  %v4815_v60 = vpack.c.bf16 %v4810_v40, %v4809_v37  ;;  %v4803_v16 = vsel %vm4800_vm15, %v4802_v30, %v4798_v52  ;;  %v8142_v37 = vor.u32 %v8933_v2, %v8139_v33  ;;  %v8230_v41 = vor.u32 %v8923_v17, %v8227_v45  ;;  %v8209_v40 = vld [vmem:[%s13586_s8 + $0x2d0] sm:$0xf]  ;;  %v8137_v52 = vld [vmem:[%s13586_s8 + $0x340] sm:$0xf]  ;;  %v13670_v17 = vld [vmem:[#allocation20_spill] sm:$0xff] }
 0x5a4   : > { %v4440_v55 = vadd.f32 %v4394_v7, %v4198_v63  ;;  %v8210_v63 = vor.u32 %v8920_v50, %v8209_v40  ;;  %v8214_v7 = vor.u32 %v8919_v46, %v8211_v18  ;;  %v8185_v33 = vld [vmem:[%s13586_s8 + $0x2a0] sm:$0xf]  ;;  %v8177_v61 = vld [vmem:[%s13586_s8 + $0x290] sm:$0xf]  ;;  %v8179_v40 = vld [vmem:[%s13586_s8 + $0x298] sm:$0xf0] }
 0x5a5   : > { %4937 = vmatmul.bf16.gmra.mxu1 %v4815_v60  ;;  %4964 = vmatmul.bf16.gmra.mxu0 %v4815_v60  ;;  %v4833_v60 = vld [vmem:[%s13588_s10] ss:$2 sm:$0x3]  ;;  %v8186_v62 = vor.u32 %v8914_v34, %v8185_v33  ;;  %v13671_v50 = vld [vmem:[#allocation21_spill] sm:$0xff]  ;;  %v13675_v24 = vld [vmem:[#allocation22_spill] sm:$0xff] }
 0x5a6   : > { %v4627_v54 = vadd.f32 %v4581_v14, %v4440_v55  ;;  %5381 = vmatpush.bf16.msra.mxu0 %v8230_v41  ;;  %5354 = vmatpush.bf16.msra.mxu1 %v8210_v63  ;;  %v12737_v27 = vperm.slane %v4833_v60, 0  ;;  %v13672_v63 = vld [vmem:[#allocation5_spill] sm:$0xff]  ;;  %v13673_v60 = vld [vmem:[#allocation6_spill] sm:$0xff]  ;;  %v13674_v34 = vld [vmem:[#allocation23_spill] sm:$0xff] }
 0x5a7   : > { %5200 = vmatpush.bf16.msrb.mxu2 %v8146_v51 }
 0x5a8   : > { %v9480_v21 = vpop.eup %9479  ;;  %v4643_v56 = vadd.f32 %v4627_v54, %v13661_v28  ;;  %v8935_v28 = vld [vmem:[%s13586_s8 + $0x354] sm:$0xf]  ;;  %v8201_v54 = vld [vmem:[%s13586_s8 + $0x2c0] sm:$0xf] }
 0x5a9   : > { %v4811_v19 = vmul.f32 %v9480_v21, %v4788_v1  ;;  %v8150_v9 = vor.u32 %v8935_v28, %v8147_v13  ;;  %v8918_v21 = vld [vmem:[%s13586_s8 + $0x2c4] sm:$0xf0]  ;;  %v8203_v1 = vld [vmem:[%s13586_s8 + $0x2c8] sm:$0xf0] }
 0x5aa   : > { %9481 = vtanh.f32 %v4643_v56  ;;  %5382 = vmatpush.bf16.msra.mxu0 %v8222_v48  ;;  %v8917_v56 = vld [vmem:[%s13586_s8 + $0x2c4] sm:$0xf]  ;;  %v8202_v15 = vor.u32 %v8918_v21, %v8201_v54  ;;  %v8912_v48 = vld [vmem:[%s13586_s8 + $0x294] sm:$0xf0]  ;;  %v8113_v21 = vld [vmem:[%s13586_s8 + $0x310] sm:$0xf] }
 0x5ab   : > { %5229 = vmatpush.bf16.msrb.mxu3 %v8150_v9  ;;  %v8915_v9 = vld [vmem:[%s13586_s8 + $0x2b4] sm:$0xf] }
 0x5ac   : > { %5355 = vmatpush.bf16.msra.mxu1 %v8202_v15  ;;  %v8198_v2 = vor.u32 %v8915_v9, %v8195_v36  ;;  %v8169_v15 = vld [vmem:[%s13586_s8 + $0x280] sm:$0xf]  ;;  %v8955_v36 = vld [vmem:[%s13586_s8 + $0x3f4] sm:$0xf] }
 0x5ae   : > { %5383 = vmatpush.bf16.msra.mxu0 %v8214_v7  ;;  %v8122_v7 = vor.u32 %v8930_v49, %v8121_v12  ;;  %v8299_v12 = vld [vmem:[%s13586_s8 + $0x3e8] sm:$0xf0] }
 0x5af   : > { %5230 = vmatpush.bf16.msrb.mxu3 %v8142_v37  ;;  %v8187_v37 = vld [vmem:[%s13586_s8 + $0x2a8] sm:$0xf0] }
 0x5b0   : > { %v9482_v10 = vpop.eup %9481  ;;  %v8190_v8 = vor.u32 %v8913_v53, %v8187_v37 }
 0x5b1   : > { %v4812_v23 = vmul.f32 %v9482_v10, %v4803_v16  ;;  %v8126_v10 = vor.u32 %v8929_v26, %v8123_v6  ;;  %v8934_v16 = vld [vmem:[%s13586_s8 + $0x344] sm:$0xf0]  ;;  %v8909_v26 = vld [vmem:[%s13586_s8 + $0x284] sm:$0xf] }
 0x5b2   : > { %v8138_v28 = vor.u32 %v8934_v16, %v8137_v52  ;;  %v8171_v52 = vld [vmem:[%s13586_s8 + $0x288] sm:$0xf0] }
 0x5b3   : > { %v4816_v11 = vpack.c.bf16 %v4812_v23, %v4811_v19  ;;  %5231 = vmatpush.bf16.msrb.mxu3 %v8134_v5  ;;  %v8206_v19 = vor.u32 %v8917_v56, %v8203_v1  ;;  %v8193_v23 = vld [vmem:[%s13586_s8 + $0x2b0] sm:$0xf]  ;;  %v8911_v5 = vld [vmem:[%s13586_s8 + $0x294] sm:$0xf]  ;;  %v8928_v56 = vld [vmem:[%s13586_s8 + $0x314] sm:$0xf0]  ;;  %v8174_v16 = vor.u32 %v8909_v26, %v8171_v52 }
 0x5b4   : > { %5201 = vmatpush.bf16.msrb.mxu2 %v8138_v28  ;;  %v8182_v31 = vor.u32 %v8911_v5, %v8179_v40  ;;  %v8114_v1 = vor.u32 %v8928_v56, %v8113_v21  ;;  %v8926_v28 = vld [vmem:[%s13586_s8 + $0x304] sm:$0xf0]  ;;  %v8305_v5 = vld [vmem:[%s13586_s8 + $0x3f0] sm:$0xf]  ;;  %v8956_v40 = vld [vmem:[%s13586_s8 + $0x3f4] sm:$0xf0] }
 0x5b5   : > { %4942 = vmatmul.bf16.gmra.mxu1 %v4816_v11  ;;  %4969 = vmatmul.bf16.gmra.mxu0 %v4816_v11  ;;  %v8916_v11 = vld [vmem:[%s13586_s8 + $0x2b4] sm:$0xf0]  ;;  %v13676_v56 = vld [vmem:[#allocation7_spill] sm:$0xff] }
 0x5b6   : > { %5384 = vmatpush.bf16.msra.mxu0 %v8206_v19  ;;  %v8194_v13 = vor.u32 %v8916_v11, %v8193_v23  ;;  %v8910_v19 = vld [vmem:[%s13586_s8 + $0x284] sm:$0xf0]  ;;  %v8105_v11 = vld [vmem:[%s13586_s8 + $0x300] sm:$0xf] }
 0x5b7   : > { %5232 = vmatpush.bf16.msrb.mxu3 %v8126_v10  ;;  %v8170_v6 = vor.u32 %v8910_v19, %v8169_v15  ;;  %v8107_v10 = vld [vmem:[%s13586_s8 + $0x308] sm:$0xf0]  ;;  %v8106_v9 = vor.u32 %v8926_v28, %v8105_v11 }
 0x5b8   : > { %5356 = vmatpush.bf16.msra.mxu1 %v8194_v13  ;;  %5202 = vmatpush.bf16.msrb.mxu2 %v8130_v57 }
 0x5ba   : > { %5385 = vmatpush.bf16.msra.mxu0 %v8198_v2  ;;  %v8310_v2 = vor.u32 %v8955_v36, %v8307_v32 }
 0x5bb   : > { %5233 = vmatpush.bf16.msrb.mxu3 %v8118_v4  ;;  %v8953_v4 = vld [vmem:[%s13586_s8 + $0x3e4] sm:$0xf] }
 0x5bc   : > { %5357 = vmatpush.bf16.msra.mxu1 %v8186_v62  ;;  %5203 = vmatpush.bf16.msrb.mxu2 %v8122_v7  ;;  %v8302_v49 = vor.u32 %v8953_v4, %v8299_v12  ;;  %v8949_v7 = vld [vmem:[%s13586_s8 + $0x3c4] sm:$0xf]  ;;  %v8947_v12 = vld [vmem:[%s13586_s8 + $0x3b4] sm:$0xf] }
 0x5be   : > { %5386 = vmatpush.bf16.msra.mxu0 %v8190_v8 }
 0x5c0   : > { %5204 = vmatpush.bf16.msrb.mxu2 %v8114_v1 }
 0x5c2   : > { %5387 = vmatpush.bf16.msra.mxu0 %v8182_v31 }
 0x5c4   : > { %5205 = vmatpush.bf16.msrb.mxu2 %v8106_v9 }
 0x5c6   : > { %5388 = vmatpush.bf16.msra.mxu0 %v8174_v16  ;;  %v13677_v16 = vld [vmem:[#allocation9_spill] sm:$0xff] }
 0x602   : > { %v4928_v55 = vpop.f32.mrf.mxu1  ;;  %v4957_v14 = vpop.f32.mrf.mxu0 }
 0x603   : > { %v4929_v30 = vadd.f32 %v4928_v55, %v12737_v27  ;;  %v8178_v14 = vor.u32 %v8912_v48, %v8177_v61  ;;  %v8951_v61 = vld [vmem:[%s13586_s8 + $0x3d4] sm:$0xf]  ;;  %v8291_v48 = vld [vmem:[%s13586_s8 + $0x3d8] sm:$0xf0] }
 0x605   : > { %v4973_v45 = vadd.f32 %v4929_v30, %v13670_v17  ;;  %5358 = vmatpush.bf16.msra.mxu1 %v8178_v14  ;;  %v8925_v30 = vld [vmem:[%s13586_s8 + $0x304] sm:$0xf] }
 0x606   : > { %v8110_v23 = vor.u32 %v8925_v30, %v8107_v10 }
 0x607   : > { %v4981_v18 = vmul.f32 %v4973_v45, %v13672_v63 }
 0x608   : > { %5234 = vmatpush.bf16.msrb.mxu3 %v8110_v23 }
 0x609   : > { %5359 = vmatpush.bf16.msra.mxu1 %v8170_v6 }
 0x60a   : > { %v4930_v41 = vpop.f32.mrf.mxu1  ;;  %v4958_v44 = vpop.f32.mrf.mxu0 }
 0x60b   : > { %v4931_v58 = vadd.f32 %v4930_v41, %v12737_v27  ;;  %v9240_v44 = vld [vmem:[#allocation2 + $0x4] sm:$0x8] }
 0x60c   : > { %5543 = vmatpush.bf16.msra.mxu3 %v8310_v2 }
 0x60d   : > { %v4974_v46 = vadd.f32 %v4931_v58, %v13671_v50  ;;  %v8294_v50 = vor.u32 %v8951_v61, %v8291_v48  ;;  %v8389_v61 = vld [vmem:[%s13586_s8 + $0x460] sm:$0xf] }
 0x60f   : > { %v4982_v55 = vmul.f32 %v4974_v46, %v13673_v60  ;;  %v8306_v46 = vor.u32 %v8956_v40, %v8305_v5  ;;  %v8283_v60 = vld [vmem:[%s13586_s8 + $0x3c8] sm:$0xf0]  ;;  %v8973_v40 = vld [vmem:[%s13586_s8 + $0x464] sm:$0xf0] }
 0x610   : > { %5544 = vmatpush.bf16.msra.mxu3 %v8302_v49  ;;  %v8286_v21 = vor.u32 %v8949_v7, %v8283_v60  ;;  %v8275_v49 = vld [vmem:[%s13586_s8 + $0x3b8] sm:$0xf0]  ;;  %v8289_v7 = vld [vmem:[%s13586_s8 + $0x3d0] sm:$0xf]  ;;  %v8952_v60 = vld [vmem:[%s13586_s8 + $0x3d4] sm:$0xf0] }
 0x611   : > { %v12829_v22 = vpack.c.bf16 %v4982_v55, %v4981_v18  ;;  %5514 = vmatpush.bf16.msra.mxu2 %v8306_v46  ;;  %v8278_v5 = vor.u32 %v8947_v12, %v8275_v49  ;;  %v8391_v46 = vld [vmem:[%s13586_s8 + $0x468] sm:$0xf0]  ;;  %v13681_v12 = vld [vmem:[#allocation10_spill] sm:$0xff] }
 0x612   : > { %v4933_v54 = vpop.f32.mrf.mxu1  ;;  %v12831_v51 = vpop.f32.mrf.mxu0 }
 0x613   : > { %9185 = vst [vmem:[#allocation2 + $0x8] sm:$0xff] %v12829_v22   ;;  %v4934_v13 = vadd.f32 %v4933_v54, %v12737_v27 }
 0x614   : > { %5545 = vmatpush.bf16.msra.mxu3 %v8294_v50  ;;  %v8972_v50 = vld [vmem:[%s13586_s8 + $0x464] sm:$0xf] }
 0x615   : > { %v4975_v53 = vadd.f32 %v4934_v13, %v13674_v34 }
 0x617   : > { %v4983_v45 = vmul.f32 %v4975_v53, %v10007_v39 }
 0x618   : > { %5546 = vmatpush.bf16.msra.mxu3 %v8286_v21  ;;  %v8971_v21 = vld [vmem:[%s13586_s8 + $0x454] sm:$0xf0] }
 0x61a   : > { %v4935_v3 = vpop.f32.mrf.mxu1  ;;  %v12871_v33 = vpop.f32.mrf.mxu0  ;;  %v9284_v57 = vld [vmem:[#allocation2 + $0x4] sm:$0xf0]  }
 0x61b   : > { %v4936_v37 = vadd.f32 %v4935_v3, %v12737_v27  ;;  %v9241_v8 = vor.u32 %v9284_v57, %v9240_v44  ;;  %v8975_v44 = vld [vmem:[%s13586_s8 + $0x474] sm:$0xf0]  ;;  %v8974_v57 = vld [vmem:[%s13586_s8 + $0x474] sm:$0xf] }
 0x61c   : > { %5547 = vmatpush.bf16.msra.mxu3 %v8278_v5 }
 0x61d   : > { %v4976_v17 = vadd.f32 %v4936_v37, %v13675_v24  ;;  %v5071_v18 = vshrl.u32 %v9241_v8, 16  ;;  %v5074_v55 = vshll.u32 %v9241_v8, 16  ;;  %v5259_v19 = vrot.slane %v9241_v8, 3  ;;  %v8297_v24 = vld [vmem:[%s13586_s8 + $0x3e0] sm:$0xf] }
 0x61e   : > { %v8399_v8 = vld [vmem:[%s13586_s8 + $0x478] sm:$0xf0] }
 0x61f   : > { %v4984_v41 = vmul.f32 %v4976_v17, %v10017_v47  ;;  %v5073_v26 = vrot.slane %v5071_v18, 3  ;;  %v5076_v52 = vrot.slane %v5074_v55, 4  ;;  %v8954_v17 = vld [vmem:[%s13586_s8 + $0x3e4] sm:$0xf0]  ;;  %v8402_v4 = vor.u32 %v8974_v57, %v8399_v8  ;;  %v8381_v55 = vld [vmem:[%s13586_s8 + $0x450] sm:$0xf] }
 0x620   : > { %v8394_v18 = vor.u32 %v8972_v50, %v8391_v46  ;;  %v13680_v8 = vld [vmem:[#allocation11_spill] sm:$0xff] }
 0x621   : > { %v12878_v62 = vpack.c.bf16 %v4984_v41, %v4983_v45  ;;  %v5077_v32 = vor.u32 %v5076_v52, %v5073_v26  ;;  %v8397_v45 = vld [vmem:[%s13586_s8 + $0x470] sm:$0xf]  ;;  %v8298_v41 = vor.u32 %v8954_v17, %v8297_v24  ;;  %5785 = vmatpush.bf16.msrb.mxu0 %v8402_v4  ;;  %v8382_v52 = vor.u32 %v8971_v21, %v8381_v55  ;;  %v8968_v24 = vld [vmem:[%s13586_s8 + $0x444] sm:$0xf]  ;;  %v8375_v17 = vld [vmem:[%s13586_s8 + $0x448] sm:$0xf0] }
 0x622   : > { %v4938_v20 = vpop.f32.mrf.mxu1  ;;  %v12880_v58 = vpop.f32.mrf.mxu0  ;;  %v8378_v5 = vor.u32 %v8968_v24, %v8375_v17  ;;  %v8281_v46 = vld [vmem:[%s13586_s8 + $0x3c0] sm:$0xf]  ;;  %v8367_v21 = vld [vmem:[%s13586_s8 + $0x438] sm:$0xf0] }
 0x623   : > { %9186 = vst [vmem:[#allocation2 + $0x10] sm:$0xff] %v12878_v62   ;;  %v4939_v63 = vadd.f32 %v4938_v20, %v12737_v27  ;;  %v8398_v20 = vor.u32 %v8975_v44, %v8397_v45  ;;  %5515 = vmatpush.bf16.msra.mxu2 %v8298_v41 }
 0x625   : > { %v4977_v1 = vadd.f32 %v4939_v63, %v13676_v56  ;;  %5756 = vmatpush.bf16.msrb.mxu1 %v8398_v20  ;;  %v8390_v63 = vor.u32 %v8973_v40, %v8389_v61  ;;  %v8970_v56 = vld [vmem:[%s13586_s8 + $0x454] sm:$0xf]  ;;  %5786 = vmatpush.bf16.msrb.mxu0 %v8394_v18  ;;  %v8365_v18 = vld [vmem:[%s13586_s8 + $0x430] sm:$0xf] }
 0x627   : > { %v4985_v9 = vmul.f32 %v4977_v1, %v13643_v25  ;;  %v8383_v1 = vld [vmem:[%s13586_s8 + $0x458] sm:$0xf0] }
 0x629   : > { %5757 = vmatpush.bf16.msrb.mxu1 %v8390_v63  ;;  %v8950_v63 = vld [vmem:[%s13586_s8 + $0x3c4] sm:$0xf0] }
 0x62a   : > { %v4940_v14 = vpop.f32.mrf.mxu1  ;;  %v12908_v31 = vpop.f32.mrf.mxu0  ;;  %v12910_v54 = vld [vmem:[#allocation2 + $0xc] sm:$0xff]  }
 0x62b   : > { %v4941_v15 = vadd.f32 %v4940_v14, %v12737_v27  ;;  %v5260_v6 = vrot.slane %v12910_v54, 3  ;;  %v5079_v30 = vshrl.u32 %v12910_v54, 16  ;;  %v5082_v10 = vshll.u32 %v12910_v54, 16  ;;  %v13011_v45 = vld [vmem:[#allocation2 + $0x10] sm:$0xff] }
 0x62c   : > { %v8290_v14 = vor.u32 %v8952_v60, %v8289_v7  ;;  %v5851_v54 = vrot.slane %v13011_v45, 1  ;;  %v8282_v7 = vor.u32 %v8950_v63, %v8281_v46  ;;  %v8966_v60 = vld [vmem:[%s13586_s8 + $0x434] sm:$0xf]  ;;  %v8961_v63 = vld [vmem:[%s13586_s8 + $0x404] sm:$0xf0] }
 0x62d   : > { %v4978_v23 = vadd.f32 %v4941_v15, %v13677_v16  ;;  %v5261_v11 = vsel %vm1026_vm0, %v5259_v19, %v5260_v6  ;;  %v5081_v28 = vrot.slane %v5079_v30, 3  ;;  %v5084_v13 = vrot.slane %v5082_v10, 4  ;;  %v8945_v30 = vld [vmem:[%s13586_s8 + $0x3a4] sm:$0xf]  ;;  %v8267_v10 = vld [vmem:[%s13586_s8 + $0x3a8] sm:$0xf0]  ;;  %5758 = vmatpush.bf16.msrb.mxu1 %v8382_v52 }
 0x62e   : > { %5360 = vmatmul.bf16.vlgmr.msra.gmra.mxu1 %v5261_v11  ;;  %5389 = vmatmul.bf16.vlgmr.msra.gmra.mxu0 %v5261_v11  ;;  %v13678_v16 = vld [vmem:[#allocation15_spill] sm:$0xff] }
 0x62f   : > { %v4986_v36 = vmul.f32 %v4978_v23, %v13644_v29  ;;  %v12923_v2 = vor.u32 %v5084_v13, %v5081_v28  ;;  %5516 = vmatpush.bf16.msra.mxu2 %v8290_v14  ;;  %v8270_v28 = vor.u32 %v8945_v30, %v8267_v10  ;;  %v8373_v13 = vld [vmem:[%s13586_s8 + $0x440] sm:$0xf]  ;;  %v8948_v30 = vld [vmem:[%s13586_s8 + $0x3b4] sm:$0xf0] }
 0x630   : > { %v8357_v10 = vld [vmem:[%s13586_s8 + $0x420] sm:$0xf] }
 0x631   : > { %v12925_v3 = vpack.c.bf16 %v4986_v36, %v4985_v9  ;;  %v5086_v37 = vsel %vm836_vm1, %v5077_v32, %v12923_v2  ;;  %v8969_v9 = vld [vmem:[%s13586_s8 + $0x444] sm:$0xf0]  ;;  %5548 = vmatpush.bf16.msra.mxu3 %v8270_v28  ;;  %v8964_v28 = vld [vmem:[%s13586_s8 + $0x424] sm:$0xf] }
 0x632   : > { %v4943_v34 = vpop.f32.mrf.mxu1  ;;  %v4970_v53 = vpop.f32.mrf.mxu0  ;;  %5206 = vmatmul.bf16.vlgmr.msrb.gmra.mxu2 %v5086_v37  ;;  %5235 = vmatmul.bf16.vlgmr.msrb.gmra.mxu3 %v5086_v37  ;;  %v13679_v37 = vld [vmem:[#allocation8_spill] sm:$0xff]  ;;  %v8374_v20 = vor.u32 %v8969_v9, %v8373_v13  ;;  %v8265_v9 = vld [vmem:[%s13586_s8 + $0x3a0] sm:$0xf] }
 0x633   : > { %9187 = vst [vmem:[#allocation2 + $0x18] sm:$0xff] %v12925_v3   ;;  %v4944_v48 = vadd.f32 %v4943_v34, %v12737_v27  ;;  %v8386_v53 = vor.u32 %v8970_v56, %v8383_v1  ;;  %5517 = vmatpush.bf16.msra.mxu2 %v8282_v7  ;;  %v8370_v56 = vor.u32 %v8966_v60, %v8367_v21  ;;  %v8943_v1 = vld [vmem:[%s13586_s8 + $0x394] sm:$0xf]  ;;  %v8359_v13 = vld [vmem:[%s13586_s8 + $0x428] sm:$0xf0] }
 0x634   : > { %5759 = vmatpush.bf16.msrb.mxu1 %v8374_v20  ;;  %v8351_v20 = vld [vmem:[%s13586_s8 + $0x418] sm:$0xf0]  ;;  %v8343_v7 = vld [vmem:[%s13586_s8 + $0x408] sm:$0xf0] }
 0x635   : > { %v4979_v23 = vadd.f32 %v4944_v48, %v13678_v16  ;;  %5787 = vmatpush.bf16.msrb.mxu0 %v8386_v53  ;;  %v8965_v16 = vld [vmem:[%s13586_s8 + $0x424] sm:$0xf0]  ;;  %v8349_v53 = vld [vmem:[%s13586_s8 + $0x410] sm:$0xf] }
 0x637   : > { %v4987_v4 = vmul.f32 %v4979_v23, %v13680_v8  ;;  %v8941_v8 = vld [vmem:[%s13586_s8 + $0x384] sm:$0xf] }
 0x639   : > { %5788 = vmatpush.bf16.msrb.mxu0 %v8378_v5  ;;  %v8257_v5 = vld [vmem:[%s13586_s8 + $0x390] sm:$0xf] }
 0x63a   : > { %v4945_v15 = vpop.f32.mrf.mxu1  ;;  %v4971_v19 = vpop.f32.mrf.mxu0  ;;  %v12985_v26 = vld [vmem:[#allocation2 + $0x14] sm:$0xff]  }
 0x63b   : > { %v4946_v11 = vadd.f32 %v4945_v15, %v12737_v27  ;;  %v5262_v36 = vrot.slane %v12985_v26, 3  ;;  %v5088_v32 = vshrl.u32 %v12985_v26, 16  ;;  %v5091_v34 = vshll.u32 %v12985_v26, 16  ;;  %v13020_v61 = vld [vmem:[#allocation2 + $0x18] sm:$0xff]  ;;  %v8273_v19 = vld [vmem:[%s13586_s8 + $0x3b0] sm:$0xf] }
 0x63c   : > { %v8259_v15 = vld [vmem:[%s13586_s8 + $0x398] sm:$0xf0]  ;;  %v8274_v23 = vor.u32 %v8948_v30, %v8273_v19 }
 0x63d   : > { %v4980_v27 = vadd.f32 %v4946_v11, %v13679_v37  ;;  %v5263_v41 = vsel %vm1026_vm0, %v5260_v6, %v5262_v36  ;;  %v5090_v44 = vrot.slane %v5088_v32, 3  ;;  %v5093_v57 = vrot.slane %v5091_v34, 4  ;;  %5789 = vmatpush.bf16.msrb.mxu0 %v8370_v56  ;;  %v8946_v34 = vld [vmem:[%s13586_s8 + $0x3a4] sm:$0xf0]  ;;  %v8963_v37 = vld [vmem:[%s13586_s8 + $0x414] sm:$0xf0] }
 0x63e   : > { %5365 = vmatmul.bf16.gmra.mxu1 %v5263_v41  ;;  %5394 = vmatmul.bf16.gmra.mxu0 %v5263_v41  ;;  %v5853_v6 = vrot.slane %v13020_v61, 1  ;;  %v8262_v52 = vor.u32 %v8943_v1, %v8259_v15  ;;  %v8358_v11 = vor.u32 %v8965_v16, %v8357_v10  ;;  %v8362_v32 = vor.u32 %v8964_v28, %v8359_v13  ;;  %v8962_v41 = vld [vmem:[%s13586_s8 + $0x414] sm:$0xf]  ;;  %v8249_v28 = vld [vmem:[%s13586_s8 + $0x380] sm:$0xf] }
 0x63f   : > { %v4988_v49 = vmul.f32 %v4980_v27, %v13681_v12  ;;  %v13022_v48 = vor.u32 %v5093_v57, %v5090_v44  ;;  %5518 = vmatpush.bf16.msra.mxu2 %v8274_v23  ;;  %v8266_v24 = vor.u32 %v8946_v34, %v8265_v9  ;;  %v8350_v17 = vor.u32 %v8963_v37, %v8349_v53  ;;  %v8942_v13 = vld [vmem:[%s13586_s8 + $0x384] sm:$0xf0] }
 0x640   : > { %v13049_v55 = vsel %vm1622_vm3, %v5851_v54, %v5853_v6  ;;  %5549 = vmatpush.bf16.msra.mxu3 %v8262_v52  ;;  %v9147_v44 = vunpack.c.h.b16 %v12925_v3  ;;  %v8354_v12 = vor.u32 %v8962_v41, %v8351_v20  ;;  %v8250_v26 = vor.u32 %v8942_v13, %v8249_v28  ;;  %v8479_v41 = vld [vmem:[%s13586_s8 + $0x4f8] sm:$0xf0] }
 0x641   : > { %v9134_v40 = vpack.c.bf16 %v4988_v49, %v4987_v4  ;;  %v5095_v50 = vsel %vm836_vm1, %v12923_v2, %v13022_v48  ;;  %v8967_v2 = vld [vmem:[%s13586_s8 + $0x434] sm:$0xf0]  ;;  %v8251_v4 = vld [vmem:[%s13586_s8 + $0x388] sm:$0xf0]  ;;  %5790 = vmatpush.bf16.msrb.mxu0 %v8362_v32 }
 0x642   : > { %5211 = vmatmul.bf16.gmra.mxu2 %v5095_v50  ;;  %5240 = vmatmul.bf16.gmra.mxu3 %v5095_v50  ;;  %v8366_v14 = vor.u32 %v8967_v2, %v8365_v18  ;;  %v8254_v49 = vor.u32 %v8941_v8, %v8251_v4  ;;  %v8341_v50 = vld [vmem:[%s13586_s8 + $0x400] sm:$0xf]  ;;  %v8960_v18 = vld [vmem:[%s13586_s8 + $0x404] sm:$0xf]  ;;  %v8471_v8 = vld [vmem:[%s13586_s8 + $0x4e8] sm:$0xf0] }
 0x643   : > { %9188 = vst [vmem:[#allocation2 + $0x20] sm:$0xff] %v9134_v40   ;;  %v8944_v40 = vld [vmem:[%s13586_s8 + $0x394] sm:$0xf0]  ;;  %5519 = vmatpush.bf16.msra.mxu2 %v8266_v24  ;;  %v8342_v15 = vor.u32 %v8961_v63, %v8341_v50  ;;  %v8346_v19 = vor.u32 %v8960_v18, %v8343_v7  ;;  %v5639_v7 = vshll.u32 %v12829_v22, 16 }
 0x644   : > { %5760 = vmatpush.bf16.msrb.mxu1 %v8366_v14  ;;  %v8258_v60 = vor.u32 %v8944_v40, %v8257_v5  ;;  %v5596_v14 = vld [vmem:[#allocation2 + $0x28] sm:$0x1]  ;;  %5550 = vmatpush.bf16.msra.mxu3 %v8254_v49 }
 0x645   : > { %5791 = vmatpush.bf16.msrb.mxu0 %v8354_v12  ;;  %v5630_v30 = vunpack.c.l.b16 %v5596_v14  ;;  %v8477_v14 = vld [vmem:[%s13586_s8 + $0x4f0] sm:$0xf] }
 0x647   : > { %v13136_v9 = vpack.c.b16 %v5630_v30, %v5630_v30  ;;  %5520 = vmatpush.bf16.msra.mxu2 %v8258_v60  ;;  %v8463_v60 = vld [vmem:[%s13586_s8 + $0x4d8] sm:$0xf0]  ;;  %v5644_v30 = vshll.u32 %v13011_v45, 16 }
 0x648   : > { %5761 = vmatpush.bf16.msrb.mxu1 %v8358_v11 }
 0x649   : > { %5792 = vmatpush.bf16.msrb.mxu0 %v8346_v19  ;;  %v5857_v34 = vrot.slane %v13136_v9, 1 }
 0x64a   : > { %v13090_v27 = vld [vmem:[#allocation2 + $0x20] sm:$0xff]  }
 0x64b   : > { %v5063_v57 = vunpack.c.l.b16 %v13090_v27  ;;  %v5064_v2 = vunpack.c.h.b16 %v13090_v27  ;;  %v13125_v52 = vld [vmem:[#allocation2 + $0x20] sm:$0xff]  ;;  %5521 = vmatpush.bf16.msra.mxu2 %v8250_v26  ;;  %v8989_v26 = vld [vmem:[%s13586_s8 + $0x4e4] sm:$0xf0] }
 0x64c   : > { %5762 = vmatpush.bf16.msrb.mxu1 %v8350_v17  ;;  %v5013_v11 = vld [vmem:[#allocation2 + $0x24] sm:$0x7]  ;;  %v8990_v17 = vld [vmem:[%s13586_s8 + $0x4f4] sm:$0xf] }
 0x64d   : > { %v5068_v46 = vpack.c.b16 %v5063_v57, %v9147_v44  ;;  %v5257_v37 = vunpack.c.l.b16 %v5013_v11  ;;  %v5069_v24 = vpack.c.b16 %v5064_v2, %v5064_v2  ;;  %v8988_v44 = vld [vmem:[%s13586_s8 + $0x4e4] sm:$0xf]  ;;  %v8482_v20 = vor.u32 %v8990_v17, %v8479_v41  ;;  %v8986_v2 = vld [vmem:[%s13586_s8 + $0x4d4] sm:$0xf]  ;;  %v8987_v17 = vld [vmem:[%s13586_s8 + $0x4d4] sm:$0xf0] }
 0x64e   : > { %v8474_v5 = vor.u32 %v8988_v44, %v8471_v8  ;;  %v5646_v11 = vrot.slane %v5644_v30, 1  ;;  %v8439_v41 = vld [vmem:[%s13586_s8 + $0x4a8] sm:$0xf0]  ;;  %v5656_v30 = vshrl.u32 %v13020_v61, 16 }
 0x64f   : > { %v5264_v21 = vrot.slane %v5068_v46, 3  ;;  %v5097_v56 = vshrl.u32 %v5068_v46, 16  ;;  %v5100_v1 = vshll.u32 %v5068_v46, 16  ;;  %v5258_v4 = vpack.c.b16 %v5257_v37, %v5257_v37  ;;  %5972 = vmatpush.bf16.msrb.mxu3 %v8482_v20  ;;  %v8461_v37 = vld [vmem:[%s13586_s8 + $0x4d0] sm:$0xf] }
 0x650   : > { %5763 = vmatpush.bf16.msrb.mxu1 %v8342_v15  ;;  %v5106_v12 = vshrl.u32 %v5069_v24, 16  ;;  %v5109_v49 = vshll.u32 %v5069_v24, 16  ;;  %v8455_v15 = vld [vmem:[%s13586_s8 + $0x4c8] sm:$0xf0]  ;;  %v8462_v44 = vor.u32 %v8987_v17, %v8461_v37  ;;  %v5652_v20 = vshll.u32 %v13020_v61, 16 }
 0x651   : > { %v5265_v10 = vsel %vm1026_vm0, %v5262_v36, %v5264_v21  ;;  %v5099_v16 = vrot.slane %v5097_v56, 3  ;;  %v5102_v23 = vrot.slane %v5100_v1, 4  ;;  %v5855_v36 = vrot.slane %v13125_v52, 1  ;;  %v8991_v56 = vld [vmem:[%s13586_s8 + $0x4f4] sm:$0xf0] }
 0x652   : > { %5370 = vmatmul.bf16.gmra.mxu1 %v5265_v10  ;;  %5399 = vmatmul.bf16.gmra.mxu0 %v5265_v10  ;;  %v5266_v40 = vrot.slane %v5258_v4, 3  ;;  %v5108_v50 = vrot.slane %v5106_v12, 3  ;;  %v5111_v46 = vrot.slane %v5109_v49, 4  ;;  %v8984_v1 = vld [vmem:[%s13586_s8 + $0x4c4] sm:$0xf]  ;;  %v8478_v19 = vor.u32 %v8991_v56, %v8477_v14 }
 0x653   : > { %v5103_v32 = vor.u32 %v5102_v23, %v5099_v16  ;;  %v13157_v57 = vsel %vm1622_vm3, %v5855_v36, %v5857_v34  ;;  %5973 = vmatpush.bf16.msrb.mxu3 %v8474_v5  ;;  %v8458_v10 = vor.u32 %v8984_v1, %v8455_v15  ;;  %v5641_v16 = vrot.slane %v5639_v7, 1  ;;  %v8982_v34 = vld [vmem:[%s13586_s8 + $0x4b4] sm:$0xf]  ;;  %v8976_v1 = vld [vmem:[%s13586_s8 + $0x484] sm:$0xf] }
 0x654   : > { %v5112_v63 = vor.u32 %v5111_v46, %v5108_v50  ;;  %5943 = vmatpush.bf16.msrb.mxu2 %v8478_v19  ;;  %v5637_v23 = vshrl.u32 %v12829_v22, 16  ;;  %v5648_v4 = vshrl.u32 %v13011_v45, 16  ;;  %v5654_v12 = vrot.slane %v5652_v20, 1  ;;  %v8985_v50 = vld [vmem:[%s13586_s8 + $0x4c4] sm:$0xf0] }
 0x655   : > { %v5104_v53 = vsel %vm836_vm1, %v13022_v48, %v5103_v32  ;;  %v13154_v48 = vsel %vm1622_vm3, %v5853_v6, %v5855_v36  ;;  %v5267_v6 = vsel %vm1026_vm0, %v5264_v21, %v5266_v40  ;;  %v8466_v21 = vor.u32 %v8986_v2, %v8463_v60  ;;  %v8453_v40 = vld [vmem:[%s13586_s8 + $0x4c0] sm:$0xf]  ;;  %v8983_v2 = vld [vmem:[%s13586_s8 + $0x4b4] sm:$0xf0]  ;;  %v8981_v60 = vld [vmem:[%s13586_s8 + $0x4a4] sm:$0xf0] }
 0x656   : > { %5216 = vmatmul.bf16.gmra.mxu2 %v5104_v53  ;;  %5245 = vmatmul.bf16.gmra.mxu3 %v5104_v53  ;;  %v5113_v18 = vsel %vm836_vm1, %v5103_v32, %v5112_v63  ;;  %v5642_v28 = vor.u32 %v5641_v16, %v5637_v23  ;;  %v8469_v32 = vld [vmem:[%s13586_s8 + $0x4e0] sm:$0xf]  ;;  %v8447_v53 = vld [vmem:[%s13586_s8 + $0x4b8] sm:$0xf0]  ;;  %v5650_v49 = vor.u32 %v5648_v4, %v5646_v11  ;;  %v8423_v15 = vld [vmem:[%s13586_s8 + $0x488] sm:$0xf0] }
 0x657   : > { %5974 = vmatpush.bf16.msrb.mxu3 %v8466_v21  ;;  %v8470_v36 = vor.u32 %v8989_v26, %v8469_v32  ;;  %v8450_v24 = vor.u32 %v8982_v34, %v8447_v53  ;;  %v8454_v46 = vor.u32 %v8985_v50, %v8453_v40  ;;  %v8431_v63 = vld [vmem:[%s13586_s8 + $0x498] sm:$0xf0]  ;;  %v5660_v21 = vshll.u32 %v13125_v52, 16  ;;  %v8429_v19 = vld [vmem:[%s13586_s8 + $0x490] sm:$0xf] }
 0x658   : > { %v5647_v13 = vsel %vm1406_vm2, %v5642_v28, %v5646_v11  ;;  %v5655_v5 = vsel %vm1406_vm2, %v5650_v49, %v5654_v12  ;;  %v8426_v16 = vor.u32 %v8976_v1, %v8423_v15  ;;  %v8979_v23 = vld [vmem:[%s13586_s8 + $0x494] sm:$0xf0]  ;;  %v5658_v11 = vor.u32 %v5656_v30, %v5654_v12  ;;  %v8977_v32 = vld [vmem:[%s13586_s8 + $0x484] sm:$0xf0]  ;;  %v9193_v17 = vld [vmem:[#allocation2 + $0x8] sm:$0xf0] }
 0x659   : > { %5944 = vmatpush.bf16.msrb.mxu2 %v8470_v36  ;;  %v8430_v28 = vor.u32 %v8979_v23, %v8429_v19  ;;  %v5668_v36 = vshll.u32 %v13136_v9, 16  ;;  %v5664_v34 = vshrl.u32 %v13125_v52, 16 }
 0x65b   : > { %5975 = vmatpush.bf16.msrb.mxu3 %v8458_v10  ;;  %v5662_v10 = vrot.slane %v5660_v21, 1  ;;  %v5670_v37 = vrot.slane %v5668_v36, 1 }
 0x65d   : > { %5945 = vmatpush.bf16.msrb.mxu2 %v8462_v44  ;;  %v5663_v61 = vsel %vm1406_vm2, %v5658_v11, %v5662_v10  ;;  %v5666_v53 = vor.u32 %v5664_v34, %v5662_v10 }
 0x65f   : > { %5976 = vmatpush.bf16.msrb.mxu3 %v8450_v24  ;;  %v5671_v24 = vsel %vm1406_vm2, %v5666_v53, %v5670_v37 }
 0x661   : > { %5946 = vmatpush.bf16.msrb.mxu2 %v8454_v46 }
 0x662   : > { %5375 = vmatmul.bf16.gmra.mxu1 %v5267_v6  ;;  %5404 = vmatmul.bf16.gmra.mxu0 %v5267_v6  ;;  %v8978_v6 = vld [vmem:[%s13586_s8 + $0x494] sm:$0xf] }
 0x663   : > { %v8434_v7 = vor.u32 %v8978_v6, %v8431_v63 }
 0x666   : > { %5221 = vmatmul.bf16.gmra.mxu2 %v5113_v18  ;;  %5250 = vmatmul.bf16.gmra.mxu3 %v5113_v18  ;;  %v8445_v18 = vld [vmem:[%s13586_s8 + $0x4b0] sm:$0xf] }
 0x667   : > { %v8446_v14 = vor.u32 %v8983_v2, %v8445_v18 }
 0x669   : > { %5947 = vmatpush.bf16.msrb.mxu2 %v8446_v14 }
 0x672   : > { %5764 = vmatmul.bf16.vlgmr.msrb.gmra.mxu1 %v5647_v13  ;;  %5793 = vmatmul.bf16.vlgmr.msrb.gmra.mxu0 %v5647_v13  ;;  %v8421_v13 = vld [vmem:[%s13586_s8 + $0x480] sm:$0xf] }
 0x673   : > { %v8422_v26 = vor.u32 %v8977_v32, %v8421_v13 }
 0x676   : > { %5522 = vmatmul.bf16.vlgmr.msra.gmra.mxu2 %v12829_v22  ;;  %5551 = vmatmul.bf16.vlgmr.msra.gmra.mxu3 %v12829_v22  ;;  %v8980_v22 = vld [vmem:[%s13586_s8 + $0x4a4] sm:$0xf] }
 0x677   : > { %v8442_v8 = vor.u32 %v8980_v22, %v8439_v41  ;;  %v9194_v22 = vld [vmem:[#allocation2 + $0x8] sm:$0xe] }
 0x679   : > { %5977 = vmatpush.bf16.msrb.mxu3 %v8442_v8 }
 0x67d   : > { %5978 = vmatpush.bf16.msrb.mxu3 %v8434_v7 }
 0x681   : > { %5979 = vmatpush.bf16.msrb.mxu3 %v8426_v16 }
 0x682   : > { %5769 = vmatmul.bf16.gmra.mxu1 %v5655_v5  ;;  %5798 = vmatmul.bf16.gmra.mxu0 %v5655_v5 }
 0x686   : > { %5527 = vmatmul.bf16.gmra.mxu2 %v12878_v62  ;;  %5556 = vmatmul.bf16.gmra.mxu3 %v12878_v62  ;;  %v8437_v62 = vld [vmem:[%s13586_s8 + $0x4a0] sm:$0xf] }
 0x687   : > { %v8438_v56 = vor.u32 %v8981_v60, %v8437_v62 }
 0x689   : > { %5948 = vmatpush.bf16.msrb.mxu2 %v8438_v56 }
 0x68d   : > { %5949 = vmatpush.bf16.msrb.mxu2 %v8430_v28 }
 0x691   : > { %5950 = vmatpush.bf16.msrb.mxu2 %v8422_v26 }
 0x692   : > { %5774 = vmatmul.bf16.gmra.mxu1 %v5663_v61  ;;  %5803 = vmatmul.bf16.gmra.mxu0 %v5663_v61 }
 0x696   : > { %5532 = vmatmul.bf16.gmra.mxu2 %v12925_v3  ;;  %5561 = vmatmul.bf16.gmra.mxu3 %v12925_v3  ;;  %v9195_v3 = vor.u32 %v9194_v22, %v9193_v17  ;;  %v8999_v17 = vld [vmem:[%s13587_s9 + $0xf4] sm:$0xf0] }
 0x698   : > { %v5850_v20 = vrot.slane %v9195_v3, 1 }
 0x69a   : > { %v5852_v52 = vsel %vm1622_vm3, %v5850_v20, %v5851_v54 }
 0x6a2   : > { %5779 = vmatmul.bf16.gmra.mxu1 %v5671_v24  ;;  %5808 = vmatmul.bf16.gmra.mxu0 %v5671_v24 }
 0x6a6   : > { %5537 = vmatmul.bf16.gmra.mxu2 %v13090_v27  ;;  %5566 = vmatmul.bf16.gmra.mxu3 %v13090_v27 }
 0x6ab   : > { %v5361_v41 = vpop.f32.mrf.mxu1  ;;  %v5390_v44 = vpop.f32.mrf.mxu0 }
 0x6b3   : > { %v13272_v49 = vpop.f32.mrf.mxu1  ;;  %v13274_v5 = vpop.f32.mrf.mxu0 }
 0x6b5   : > { %v5207_v9 = vpop.f32.mrf.mxu2  ;;  %v5236_v8 = vpop.f32.mrf.mxu3 }
 0x6b6   : > { %5951 = vmatmul.bf16.vlgmr.msrb.gmra.mxu2 %v5852_v52  ;;  %5980 = vmatmul.bf16.vlgmr.msrb.gmra.mxu3 %v5852_v52  ;;  %v5362_v4 = vadd.f32 %v5361_v41, %v5207_v9  ;;  %v5391_v12 = vadd.f32 %v5390_v44, %v5236_v8  ;;  %v8533_v52 = vld [vmem:[%s13587_s9 + $0xe0] sm:$0xf]  ;;  %v8998_v9 = vld [vmem:[%s13587_s9 + $0xe4] sm:$0xf0] }
 0x6b7   : > { %v8534_v8 = vor.u32 %v8998_v9, %v8533_v52 }
 0x6bb   : > { %v5366_v50 = vpop.f32.mrf.mxu1  ;;  %v5395_v46 = vpop.f32.mrf.mxu0 }
 0x6bd   : > { %v13276_v27 = vpop.f32.mrf.mxu2  ;;  %v13278_v40 = vpop.f32.mrf.mxu3 }
 0x6c3   : > { %v13282_v18 = vpop.f32.mrf.mxu1  ;;  %v13284_v7 = vpop.f32.mrf.mxu0 }
 0x6c5   : > { %v5212_v45 = vpop.f32.mrf.mxu2  ;;  %v5241_v54 = vpop.f32.mrf.mxu3 }
 0x6c6   : > { %5956 = vmatmul.bf16.gmra.mxu2 %v13049_v55  ;;  %5985 = vmatmul.bf16.gmra.mxu3 %v13049_v55  ;;  %v5367_v6 = vadd.f32 %v5366_v50, %v5212_v45  ;;  %v5396_v63 = vadd.f32 %v5395_v46, %v5241_v54  ;;  %v8529_v50 = vld [vmem:[%s13587_s9 + $0xd0] sm:$0xf]  ;;  %v8997_v46 = vld [vmem:[%s13587_s9 + $0xd4] sm:$0xf0] }
 0x6c7   : > { %v8530_v45 = vor.u32 %v8997_v46, %v8529_v50 }
 0x6cd   : > { %v13286_v2 = vpop.f32.mrf.mxu2  ;;  %v13288_v62 = vpop.f32.mrf.mxu3 }
 0x6cf   : > { %v5371_v60 = vpop.f32.mrf.mxu1  ;;  %v5400_v14 = vpop.f32.mrf.mxu0 }
 0x6d6   : > { %5961 = vmatmul.bf16.gmra.mxu2 %v13154_v48  ;;  %5990 = vmatmul.bf16.gmra.mxu3 %v13154_v48 }
 0x6d7   : > { %v13292_v15 = vpop.f32.mrf.mxu1  ;;  %v13294_v19 = vpop.f32.mrf.mxu0 }
 0x6d9   : > { %v5217_v21 = vpop.f32.mrf.mxu2  ;;  %v5246_v55 = vpop.f32.mrf.mxu3 }
 0x6da   : > { %v5372_v56 = vadd.f32 %v5371_v60, %v5217_v21  ;;  %v5401_v1 = vadd.f32 %v5400_v14, %v5246_v55 }
 0x6df   : > { %v5376_v16 = vpop.f32.mrf.mxu1  ;;  %v5405_v23 = vpop.f32.mrf.mxu0 }
 0x6e1   : > { %v13296_v30 = vpop.f32.mrf.mxu2  ;;  %v13298_v10 = vpop.f32.mrf.mxu3 }
 0x6e6   : > { %5966 = vmatmul.bf16.gmra.mxu2 %v13157_v57  ;;  %5995 = vmatmul.bf16.gmra.mxu3 %v13157_v57  ;;  %v8537_v57 = vld [vmem:[%s13587_s9 + $0xf0] sm:$0xf] }
 0x6e7   : > { %v8538_v22 = vor.u32 %v8999_v17, %v8537_v57  ;;  %v13340_v14 = vpop.f32.mrf.mxu0  ;;  %v8525_v17 = vld [vmem:[%s13587_s9 + $0xc0] sm:$0xf] }
 0x6e9   : > { %v5222_v11 = vpop.f32.mrf.mxu2  ;;  %v5251_v48 = vpop.f32.mrf.mxu3  ;;  %6271 = vmatpush.bf16.msra.mxu1 %v8538_v22  ;;  %9252 = vmatpush.bf16.msra.mxu3 %v8538_v22  ;;  %v8996_v22 = vld [vmem:[%s13587_s9 + $0xc4] sm:$0xf0] }
 0x6ea   : > { %v5377_v28 = vadd.f32 %v5376_v16, %v5222_v11  ;;  %v5406_v13 = vadd.f32 %v5405_v23, %v5251_v48 }
 0x6ed   : > { %6272 = vmatpush.bf16.msra.mxu1 %v8534_v8  ;;  %9253 = vmatpush.bf16.msra.mxu3 %v8534_v8 }
 0x6ef   : > { %v5794_v16 = vpop.f32.mrf.mxu0 }
 0x6f1   : > { %v13302_v32 = vpop.f32.mrf.mxu2  ;;  %v13304_v61 = vpop.f32.mrf.mxu3  ;;  %6273 = vmatpush.bf16.msra.mxu1 %v8530_v45  ;;  %9254 = vmatpush.bf16.msra.mxu3 %v8530_v45 }
 0x6f9   : > { %v5523_v26 = vpop.f32.mrf.mxu2  ;;  %v5552_v36 = vpop.f32.mrf.mxu3 }
 0x6fa   : > { %v13306_v34 = vadd.f32 %v5523_v26, %v5362_v4  ;;  %v5573_v53 = vadd.f32 %v5552_v36, %v5391_v12  ;;  %v13350_v36 = vpop.f32.mrf.mxu1 }
 0x701   : > { %v13308_v37 = vpop.f32.mrf.mxu2  ;;  %v5554_v24 = vpop.f32.mrf.mxu3 }
 0x702   : > { %v5765_v52 = vpop.f32.mrf.mxu1 }
 0x709   : > { %v5528_v41 = vpop.f32.mrf.mxu2  ;;  %v5557_v44 = vpop.f32.mrf.mxu3 }
 0x70a   : > { %v13316_v3 = vadd.f32 %v5528_v41, %v5367_v6  ;;  %v13318_v20 = vadd.f32 %v5557_v44, %v5396_v63  ;;  %v8526_v41 = vor.u32 %v8996_v22, %v8525_v17  ;;  %v5393_v44 = vadd.f32 %v13274_v5, %v13278_v40  ;;  %v8517_v40 = vld [vmem:[%s13587_s9 + $0xa0] sm:$0xf]  ;;  %v5767_v22 = vpop.f32.mrf.mxu1 }
 0x70c   : > { %6274 = vmatpush.bf16.msra.mxu1 %v8526_v41  ;;  %9255 = vmatpush.bf16.msra.mxu3 %v8526_v41  ;;  %v5575_v46 = vadd.f32 %v5554_v24, %v5393_v44  ;;  %v8994_v24 = vld [vmem:[%s13587_s9 + $0xa4] sm:$0xf0] }
 0x711   : > { %v13326_v4 = vpop.f32.mrf.mxu2  ;;  %v13328_v12 = vpop.f32.mrf.mxu3 }
 0x719   : > { %v5533_v54 = vpop.f32.mrf.mxu2  ;;  %v5562_v6 = vpop.f32.mrf.mxu3 }
 0x71a   : > { %v13336_v63 = vadd.f32 %v5533_v54, %v5372_v56  ;;  %v13338_v60 = vadd.f32 %v5562_v6, %v5401_v1  ;;  %v5796_v1 = vpop.f32.mrf.mxu0  ;;  %v8521_v54 = vld [vmem:[%s13587_s9 + $0xb0] sm:$0xf]  ;;  %v8995_v6 = vld [vmem:[%s13587_s9 + $0xb4] sm:$0xf0] }
 0x71b   : > { %v5817_v5 = vadd.f32 %v5796_v1, %v5575_v46 }
 0x721   : > { %v13342_v21 = vpop.f32.mrf.mxu2  ;;  %v13344_v55 = vpop.f32.mrf.mxu3 }
 0x722   : > { %v5799_v50 = vpop.f32.mrf.mxu0 }
 0x723   : > { %v5819_v46 = vadd.f32 %v5799_v50, %v13318_v20  ;;  %v5814_v20 = vadd.f32 %v5765_v52, %v13306_v34 }
 0x729   : > { %v5538_v23 = vpop.f32.mrf.mxu2  ;;  %v5567_v11 = vpop.f32.mrf.mxu3 }
 0x72a   : > { %v13346_v48 = vadd.f32 %v5538_v23, %v5377_v28  ;;  %v13348_v26 = vadd.f32 %v5567_v11, %v5406_v13  ;;  %v5815_v28 = vadd.f32 %v5794_v16, %v5573_v53  ;;  %v8522_v53 = vor.u32 %v8995_v6, %v8521_v54  ;;  %v5801_v44 = vpop.f32.mrf.mxu0  ;;  %v8993_v54 = vld [vmem:[%s13587_s9 + $0x94] sm:$0xf0] }
 0x72b   : > { %v8518_v11 = vor.u32 %v8994_v24, %v8517_v40  ;;  %v5364_v40 = vadd.f32 %v13272_v49, %v13276_v27 }
 0x72c   : > { %6275 = vmatpush.bf16.msra.mxu1 %v8522_v53  ;;  %9256 = vmatpush.bf16.msra.mxu3 %v8522_v53 }
 0x730   : > { %6276 = vmatpush.bf16.msra.mxu1 %v8518_v11  ;;  %9257 = vmatpush.bf16.msra.mxu3 %v8518_v11 }
 0x731   : > { %v13352_v57 = vpop.f32.mrf.mxu2  ;;  %v13354_v56 = vpop.f32.mrf.mxu3 }
 0x732   : > { %v5804_v49 = vpop.f32.mrf.mxu0 }
 0x739   : > { %v5981_v13 = vpop.f32.mrf.mxu3  ;;  %v5952_v9 = vpop.f32.mrf.mxu2 }
 0x73a   : > { %v6002_v8 = vadd.f32 %v5981_v13, %v5815_v28  ;;  %v6001_v11 = vadd.f32 %v5952_v9, %v5814_v20 }
 0x73c   : > { %v6018_v45 = vadd.f32 %v6002_v8, %v11704_v38  ;;  %v6017_v52 = vadd.f32 %v6001_v11, %v11764_v43  ;;  %v5823_v11 = vadd.f32 %v5804_v49, %v13338_v60 }
 0x73e   : > { %v8483_v16 = vmul.f32 -1.442695, %v6018_v45  ;;  %v8513_v45 = vld [vmem:[%s13587_s9 + $0x90] sm:$0xf] }
 0x73f   : > { %v8514_v53 = vor.u32 %v8993_v54, %v8513_v45 }
 0x740   : > { %9483 = vpow2.f32 %v8483_v16  ;;  %v5398_v16 = vadd.f32 %v13284_v7, %v13288_v62 }
 0x741   : > { %v5983_v23 = vpop.f32.mrf.mxu3  ;;  %v5954_v41 = vpop.f32.mrf.mxu2  ;;  %6277 = vmatpush.bf16.msra.mxu1 %v8514_v53  ;;  %9258 = vmatpush.bf16.msra.mxu3 %v8514_v53 }
 0x742   : > { %v6004_v17 = vadd.f32 %v5983_v23, %v5817_v5  ;;  %v5579_v50 = vadd.f32 %v13328_v12, %v5398_v16  ;;  %v5574_v23 = vadd.f32 %v13308_v37, %v5364_v40  ;;  %v8509_v12 = vld [vmem:[%s13587_s9 + $0x80] sm:$0xf]  ;;  %v8992_v37 = vld [vmem:[%s13587_s9 + $0x84] sm:$0xf0] }
 0x743   : > { %v8510_v45 = vor.u32 %v8992_v37, %v8509_v12  ;;  %v5369_v12 = vadd.f32 %v13282_v18, %v13286_v2 }
 0x744   : > { %v6020_v28 = vadd.f32 %v6004_v17, %v11704_v38  ;;  %v5821_v34 = vadd.f32 %v5801_v44, %v5579_v50  ;;  %v5816_v9 = vadd.f32 %v5767_v22, %v5574_v23 }
 0x745   : > { %6278 = vmatpush.bf16.msra.mxu1 %v8510_v45  ;;  %9259 = vmatpush.bf16.msra.mxu3 %v8510_v45 }
 0x746   : > { %v9484_v13 = vpop.eup %9483  ;;  %v8484_v1 = vmul.f32 -1.442695, %v6020_v28  ;;  %v5770_v28 = vpop.f32.mrf.mxu1  ;;  %v6003_v53 = vadd.f32 %v5954_v41, %v5816_v9 }
 0x747   : > { %v13378_v8 = vadd.f32 1.0, %v9484_v13 }
 0x748   : > { %9485 = vpow2.f32 %v8484_v1  ;;  %v6019_v23 = vadd.f32 %v6003_v53, %v11764_v43 }
 0x749   : > { %9487 = vrcp.f32 %v13378_v8  ;;  %v5986_v6 = vpop.f32.mrf.mxu3  ;;  %v13396_v13 = vpop.f32.mrf.mxu2  ;;  %v6082_v40 = vand.u32 2147483647, %v13378_v8  ;;  %vm6078_vm1 = vweird.f32 %v13378_v8 }
 0x74a   : > { %v6006_v5 = vadd.f32 %v5986_v6, %v5819_v46 }
 0x74b   : > { %vm6083_vm3 = vcmp.eq.f32.partialorder %v6082_v40, 8.507059e+37 }
 0x74c   : > { %v6022_v24 = vadd.f32 %v6006_v5, %v11704_v38  ;;  %v6084_v5 = vand.u32 2147483648, %v13378_v8 }
 0x74e   : > { %v9486_v17 = vpop.eup %9485  ;;  %v8485_v7 = vmul.f32 -1.442695, %v6022_v24  ;;  %v5403_v24 = vadd.f32 %v13294_v19, %v13298_v10  ;;  %v6085_v19 = vor.u32 1.1754944e-38, %v6084_v5 }
 0x74f   : > { %v9488_v62 = vpop.eup %9487  ;;  %v13398_v1 = vadd.f32 1.0, %v9486_v17  ;;  %v5772_v17 = vpop.f32.mrf.mxu1 }
 0x750   : > { %v6074_v27 = vmul.f32 %v9488_v62, %v13378_v8  ;;  %9489 = vpow2.f32 %v8485_v7  ;;  %vm6079_vm0 = vweird.f32 %v9488_v62  ;;  %v5583_v37 = vadd.f32 %v13344_v55, %v5403_v24 }
 0x751   : > { %9491 = vrcp.f32 %v13398_v1  ;;  %v5988_v46 = vpop.f32.mrf.mxu3  ;;  %vm6080_vm2 = vmor %vm6078_vm1, %vm6079_vm0  ;;  %v6097_v18 = vand.u32 2147483647, %v13398_v1  ;;  %vm6093_vm5 = vweird.f32 %v13398_v1 }
 0x752   : > { %v6075_v54 = vsub.f32 1.0, %v6074_v27  ;;  %v6008_v6 = vadd.f32 %v5988_v46, %v5821_v34  ;;  %9493 = vtanh.f32 %v6017_v52  ;;  %v5959_v27 = vpop.f32.mrf.mxu2  ;;  %v5806_v52 = vpop.f32.mrf.mxu0  ;;  %v6099_v46 = vand.u32 2147483648, %v13398_v1 }
 0x753   : > { %v5825_v24 = vadd.f32 %v5806_v52, %v5583_v37  ;;  %vm6098_vm7 = vcmp.eq.f32.partialorder %v6097_v18, 8.507059e+37 }
 0x754   : > { %v6076_v44 = vmul.f32 %v9488_v62, %v6075_v54  ;;  %v6024_v16 = vadd.f32 %v6008_v6, %v11704_v38  ;;  %v5818_v6 = vadd.f32 %v5770_v28, %v13316_v3  ;;  %v6100_v5 = vor.u32 1.1754944e-38, %v6099_v46 }
 0x756   : > { %v9490_v20 = vpop.eup %9489  ;;  %v8486_v22 = vmul.f32 -1.442695, %v6024_v16  ;;  %v6077_v34 = vadd.f32 %v9488_v62, %v6076_v44  ;;  %v5578_v44 = vadd.f32 %v13326_v4, %v5369_v12  ;;  %v6005_v40 = vadd.f32 %v13396_v13, %v5818_v6 }
 0x757   : > { %v9492_v50 = vpop.eup %9491  ;;  %v13415_v41 = vadd.f32 1.0, %v9490_v20 }
 0x758   : > { %v6089_v7 = vmul.f32 %v9492_v50, %v13398_v1  ;;  %9495 = vpow2.f32 %v8486_v22  ;;  %v6081_v49 = vsel %vm6080_vm2, %v9488_v62, %v6077_v34  ;;  %v9494_v9 = vpop.eup %9493  ;;  %vm6094_vm4 = vweird.f32 %v9492_v50  ;;  %v5775_v1 = vpop.f32.mrf.mxu1 }
 0x759   : > { %v5991_v10 = vpop.f32.mrf.mxu3  ;;  %9497 = vrcp.f32 %v13415_v41  ;;  %v6086_v45 = vsel %vm6083_vm3, %v6085_v19, %v6081_v49  ;;  %vm6095_vm6 = vmor %vm6093_vm5, %vm6094_vm4  ;;  %v6021_v13 = vadd.f32 %v6005_v40, %v11764_v43  ;;  %v5822_v52 = vadd.f32 %v5775_v1, %v13336_v63 }
 0x75a   : > { %v6090_v60 = vsub.f32 1.0, %v6089_v7  ;;  %v6010_v8 = vadd.f32 %v5991_v10, %v5823_v11  ;;  %9499 = vtanh.f32 %v6019_v23  ;;  %v6193_v54 = vmul.f32 %v9494_v9, %v6086_v45  ;;  %v5962_v7 = vpop.f32.mrf.mxu2  ;;  %v5809_v10 = vpop.f32.mrf.mxu0 }
 0x75b   : > { %v5820_v11 = vadd.f32 %v5772_v17, %v5578_v44  ;;  %v5374_v49 = vadd.f32 %v13292_v15, %v13296_v30  ;;  %v5408_v17 = vadd.f32 %v13340_v14, %v13304_v61  ;;  %v5827_v46 = vadd.f32 %v5809_v10, %v13348_v26 }
 0x75c   : > { %v6091_v2 = vmul.f32 %v9492_v50, %v6090_v60  ;;  %v6026_v55 = vadd.f32 %v6010_v8, %v11704_v38  ;;  %v6009_v18 = vadd.f32 %v5962_v7, %v5822_v52  ;;  %v6114_v15 = vand.u32 2147483648, %v13415_v41 }
 0x75d   : > { %v6007_v60 = vadd.f32 %v5959_v27, %v5820_v11  ;;  %v6112_v14 = vand.u32 2147483647, %v13415_v41  ;;  %v5582_v26 = vadd.f32 %v13342_v21, %v5374_v49  ;;  %v5587_v6 = vadd.f32 %v13354_v56, %v5408_v17 }
 0x75e   : > { %v9496_v53 = vpop.eup %9495  ;;  %v8487_v62 = vmul.f32 -1.442695, %v6026_v55  ;;  %v6092_v16 = vadd.f32 %v9492_v50, %v6091_v2  ;;  %vm6108_vm9 = vweird.f32 %v13415_v41  ;;  %v6115_v40 = vor.u32 1.1754944e-38, %v6114_v15 }
 0x75f   : > { %v13432_v20 = vadd.f32 1.0, %v9496_v53  ;;  %v13434_v22 = vpop.eup %9497  ;;  %v6023_v55 = vadd.f32 %v6007_v60, %v11764_v43  ;;  %v6025_v53 = vadd.f32 %v6009_v18, %v11764_v43  ;;  %vm6113_vm11 = vcmp.eq.f32.partialorder %v6112_v14, 8.507059e+37 }
 0x760   : > { %9501 = vpow2.f32 %v8487_v62  ;;  %v6096_v23 = vsel %vm6095_vm6, %v9492_v50, %v6092_v16  ;;  %v9500_v3 = vpop.eup %9499  ;;  %v6104_v19 = vmul.f32 %v13434_v22, %v13415_v41  ;;  %vm6109_vm8 = vweird.f32 %v13434_v22  ;;  %v5777_v62 = vpop.f32.mrf.mxu1 }
 0x761   : > { %9503 = vrcp.f32 %v13432_v20  ;;  %v5993_v4 = vpop.f32.mrf.mxu3  ;;  %v6101_v28 = vsel %vm6098_vm7, %v6100_v5, %v6096_v23  ;;  %vm6110_vm10 = vmor %vm6108_vm9, %vm6109_vm8  ;;  %v6127_v56 = vand.u32 2147483647, %v13432_v20  ;;  %vm6123_vm13 = vweird.f32 %v13432_v20 }
 0x762   : > { %v6012_v34 = vadd.f32 %v5993_v4, %v5825_v24  ;;  %v6194_v12 = vmul.f32 %v9500_v3, %v6101_v28  ;;  %9505 = vtanh.f32 %v6021_v13  ;;  %v6105_v2 = vsub.f32 1.0, %v6104_v19  ;;  %v5964_v16 = vpop.f32.mrf.mxu2  ;;  %v5811_v28 = vpop.f32.mrf.mxu0 }
 0x763   : > { %v6129_v3 = vand.u32 2147483648, %v13432_v20  ;;  %v5824_v10 = vadd.f32 %v5777_v62, %v5582_v26  ;;  %vm6128_vm15 = vcmp.eq.f32.partialorder %v6127_v56, 8.507059e+37 }
 0x764   : > { %v6028_v50 = vadd.f32 %v6012_v34, %v11704_v38  ;;  %v6201_v37 = vpack.c.bf16 %v6194_v12, %v6193_v54  ;;  %v6106_v61 = vmul.f32 %v13434_v22, %v6105_v2  ;;  %v5829_v12 = vadd.f32 %v5811_v28, %v5587_v6 }
 0x765   : > { %v6011_v17 = vadd.f32 %v5964_v16, %v5824_v10 }
 0x766   : > { %v9502_v8 = vpop.eup %9501  ;;  %v8488_v9 = vmul.f32 -1.442695, %v6028_v50  ;;  %6279 = vmatmul.bf16.vlgmr.msra.gmra.mxu1 %v6201_v37  ;;  %v6107_v44 = vadd.f32 %v13434_v22, %v6106_v61  ;;  %v6130_v50 = vor.u32 1.1754944e-38, %v6129_v3 }
 0x767   : > { %v9504_v45 = vpop.eup %9503  ;;  %v13447_v27 = vadd.f32 1.0, %v9502_v8 }
 0x768   : > { %v6119_v63 = vmul.f32 %v9504_v45, %v13432_v20  ;;  %9507 = vpow2.f32 %v8488_v9  ;;  %v9506_v23 = vpop.eup %9505  ;;  %v6111_v21 = vsel %vm6110_vm10, %v13434_v22, %v6107_v44  ;;  %vm6124_vm12 = vweird.f32 %v9504_v45 }
 0x769   : > { %9509 = vrcp.f32 %v13447_v27  ;;  %v5996_v30 = vpop.f32.mrf.mxu3  ;;  %v6116_v41 = vsel %vm6113_vm11, %v6115_v40, %v6111_v21  ;;  %vm6125_vm14 = vmor %vm6123_vm13, %vm6124_vm12  ;;  %v6144_v18 = vand.u32 2147483648, %v13447_v27  ;;  %vm6138_vm1 = vweird.f32 %v13447_v27  ;;  %v9006_v40 = vld [vmem:[%s13584_s6 + $0x70] sm:$0xff] }
 0x76a   : > { %v6014_v54 = vadd.f32 %v5996_v30, %v5827_v46  ;;  %9511 = vtanh.f32 %v6023_v55  ;;  %v6120_v24 = vsub.f32 1.0, %v6119_v63  ;;  %v6195_v13 = vmul.f32 %v9506_v23, %v6116_v41  ;;  %v5780_v30 = vpop.f32.mrf.mxu1  ;;  %v5967_v61 = vpop.f32.mrf.mxu2 }
 0x76b   : > { %9513 = vtanh.f32 %v6025_v53  ;;  %v6142_v46 = vand.u32 2147483647, %v13447_v27  ;;  %v6027_v53 = vadd.f32 %v6011_v17, %v11764_v43  ;;  %v6145_v44 = vor.u32 1.1754944e-38, %v6144_v18 }
 0x76c   : > { %v6030_v5 = vadd.f32 %v6014_v54, %v11704_v38  ;;  %v6121_v11 = vmul.f32 %v9504_v45, %v6120_v24  ;;  %v9007_v54 = vld [vmem:[%s13584_s6 + $0x78] sm:$0xff]  ;;  %v5379_v21 = vadd.f32 %v13350_v36, %v13302_v32 }
 0x76d   : > { %vm6143_vm3 = vcmp.eq.f32.partialorder %v6142_v46, 8.507059e+37  ;;  %9260 = vmatpush.bf16.msra.mxu2 %v9007_v54  ;;  %6373 = vmatpush.bf16.msra.mxu0 %v9007_v54 }
 0x76e   : > { %v9508_v4 = vpop.eup %9507  ;;  %v8489_v1 = vmul.f32 -1.442695, %v6030_v5  ;;  %v6122_v22 = vadd.f32 %v9504_v45, %v6121_v11  ;;  %v5826_v5 = vadd.f32 %v5780_v30, %v13346_v48  ;;  %v5586_v28 = vadd.f32 %v13352_v57, %v5379_v21  ;;  %v9000_v21 = vld [vmem:[%s13584_s6 + $0x40] sm:$0xff] }
 0x76f   : > { %v9510_v7 = vpop.eup %9509  ;;  %v13465_v34 = vadd.f32 1.0, %v9508_v4 }
 0x770   : > { %v6134_v19 = vmul.f32 %v9510_v7, %v13447_v27  ;;  %9515 = vpow2.f32 %v8489_v1  ;;  %v9512_v37 = vpop.eup %9511  ;;  %v6126_v8 = vsel %vm6125_vm14, %v9504_v45, %v6122_v22  ;;  %vm6139_vm0 = vweird.f32 %v9510_v7 }
 0x771   : > { %9517 = vrcp.f32 %v13465_v34  ;;  %v5998_v60 = vpop.f32.mrf.mxu3  ;;  %v6131_v9 = vsel %vm6128_vm15, %v6130_v50, %v6126_v8  ;;  %v9514_v63 = vpop.eup %9513  ;;  %vm6140_vm2 = vmor %vm6138_vm1, %vm6139_vm0  ;;  %v6013_v56 = vadd.f32 %v5967_v61, %v5826_v5  ;;  %v6159_v3 = vand.u32 2147483648, %v13465_v34  ;;  %9261 = vmatpush.bf16.msra.mxu2 %v9006_v40  ;;  %6374 = vmatpush.bf16.msra.mxu0 %v9006_v40  ;;  %v9004_v5 = vld [vmem:[%s13584_s6 + $0x60] sm:$0xff]  ;;  %v9002_v40 = vld [vmem:[%s13584_s6 + $0x50] sm:$0xff] }
 0x772   : > { %v6016_v52 = vadd.f32 %v5998_v60, %v5829_v12  ;;  %v6135_v49 = vsub.f32 1.0, %v6134_v19  ;;  %v6196_v20 = vmul.f32 %v9512_v37, %v6131_v9  ;;  %v6157_v48 = vand.u32 2147483647, %v13465_v34  ;;  %v5782_v12 = vpop.f32.mrf.mxu1  ;;  %v5969_v19 = vpop.f32.mrf.mxu2 }
 0x773   : > { %vm6153_vm5 = vweird.f32 %v13465_v34  ;;  %v6160_v36 = vor.u32 1.1754944e-38, %v6159_v3  ;;  %v5828_v60 = vadd.f32 %v5782_v12, %v5586_v28 }
 0x774   : > { %v6032_v2 = vadd.f32 %v6016_v52, %v11704_v38  ;;  %v6136_v55 = vmul.f32 %v9510_v7, %v6135_v49  ;;  %v6202_v26 = vpack.c.bf16 %v6196_v20, %v6195_v13  ;;  %vm6158_vm7 = vcmp.eq.f32.partialorder %v6157_v48, 8.507059e+37  ;;  %v9538_v48 = vld [vmem:[%s13588_s10] ss:$2 sm:$0x3] }
 0x775   : > { %v4836_v28 = vperm.slane %v9538_v48, 1 }
 0x776   : > { %v9516_v15 = vpop.eup %9515  ;;  %v8490_v14 = vmul.f32 -1.442695, %v6032_v2  ;;  %v6137_v45 = vadd.f32 %v9510_v7, %v6136_v55  ;;  %6282 = vmatmul.bf16.gmra.mxu1 %v6202_v26 }
 0x777   : > { %v9518_v6 = vpop.eup %9517  ;;  %v6071_v38 = vadd.f32 1.0, %v9516_v15 }
 0x778   : > { %v6149_v62 = vmul.f32 %v9518_v6, %v13465_v34  ;;  %9519 = vpow2.f32 %v8490_v14  ;;  %v6141_v16 = vsel %vm6140_vm2, %v9510_v7, %v6137_v45  ;;  %vm6154_vm4 = vweird.f32 %v9518_v6 }
 0x779   : > { %9521 = vrcp.f32 %v6071_v38  ;;  %v6146_v27 = vsel %vm6143_vm3, %v6145_v44, %v6141_v16  ;;  %v6029_v7 = vadd.f32 %v6013_v56, %v11764_v43  ;;  %vm6155_vm6 = vmor %vm6153_vm5, %vm6154_vm4  ;;  %v6174_v52 = vand.u32 2147483648, %v6071_v38  ;;  %v9005_v16 = vld [vmem:[%s13584_s6 + $0x68] sm:$0xff] }
 0x77a   : > { %v6150_v24 = vsub.f32 1.0, %v6149_v62  ;;  %v6197_v23 = vmul.f32 %v9514_v63, %v6146_v27  ;;  %9523 = vtanh.f32 %v6027_v53  ;;  %v6015_v34 = vadd.f32 %v5969_v19, %v5828_v60  ;;  %9262 = vmatpush.bf16.msra.mxu2 %v9005_v16  ;;  %6375 = vmatpush.bf16.msra.mxu0 %v9005_v16  ;;  %v9003_v27 = vld [vmem:[%s13584_s6 + $0x58] sm:$0xff] }
 0x77b   : > { %v6172_v17 = vand.u32 2147483647, %v6071_v38  ;;  %vm6168_vm9 = vweird.f32 %v6071_v38  ;;  %v6175_v18 = vor.u32 1.1754944e-38, %v6174_v52 }
 0x77c   : > { %v6151_v4 = vmul.f32 %v9518_v6, %v6150_v24  ;;  %v6031_v2 = vadd.f32 %v6015_v34, %v11764_v43 }
 0x77d   : > { %vm6173_vm11 = vcmp.eq.f32.partialorder %v6172_v17, 8.507059e+37 }
 0x77e   : > { %v9520_v1 = vpop.eup %9519  ;;  %v6152_v41 = vadd.f32 %v9518_v6, %v6151_v4  ;;  %9263 = vmatpush.bf16.msra.mxu2 %v9004_v5  ;;  %6376 = vmatpush.bf16.msra.mxu0 %v9004_v5  ;;  %v9337_v4 = vld [vmem:[%s13588_s10 + $0x1] ss:$0 sm:$0xff] }
 0x77f   : > { %v9522_v11 = vpop.eup %9521  ;;  %v6072_v32 = vadd.f32 1.0, %v9520_v1 }
 0x780   : > { %v6164_v13 = vmul.f32 %v9522_v11, %v6071_v38  ;;  %v6156_v22 = vsel %vm6155_vm6, %v9518_v6, %v6152_v41  ;;  %v9524_v10 = vpop.eup %9523  ;;  %vm6169_vm8 = vweird.f32 %v9522_v11  ;;  %v4961_v41 = vadd.f32 %v12831_v51, %v4836_v28 }
 0x781   : > { %9525 = vrcp.f32 %v6072_v32  ;;  %v6161_v57 = vsel %vm6158_vm7, %v6160_v36, %v6156_v22  ;;  %vm6170_vm10 = vmor %vm6168_vm9, %vm6169_vm8  ;;  %v6189_v14 = vand.u32 2147483648, %v6072_v32  ;;  %v6187_v45 = vand.u32 2147483647, %v6072_v32 }
 0x782   : > { %v6165_v50 = vsub.f32 1.0, %v6164_v13  ;;  %v6198_v37 = vmul.f32 %v9524_v10, %v6161_v57  ;;  %9527 = vtanh.f32 %v6029_v7  ;;  %vm6183_vm13 = vweird.f32 %v6072_v32  ;;  %9264 = vmatpush.bf16.msra.mxu2 %v9003_v27  ;;  %6377 = vmatpush.bf16.msra.mxu0 %v9003_v27 }
 0x783   : > { %9529 = vtanh.f32 %v6031_v2  ;;  %v6190_v6 = vor.u32 1.1754944e-38, %v6189_v14  ;;  %vm6188_vm15 = vcmp.eq.f32.partialorder %v6187_v45, 8.507059e+37  ;;  %v4963_v7 = vadd.f32 %v12871_v33, %v4836_v28 }
 0x784   : > { %v6166_v8 = vmul.f32 %v9522_v11, %v6165_v50  ;;  %v6203_v49 = vpack.c.bf16 %v6198_v37, %v6197_v23  ;;  %v9001_v23 = vld [vmem:[%s13584_s6 + $0x48] sm:$0xff]  ;;  %v4966_v57 = vadd.f32 %v12880_v58, %v4836_v28  ;;  %v4968_v51 = vadd.f32 %v12908_v31, %v4836_v28  ;;  %v9336_v58 = vld [vmem:[%s13585_s7] ss:$0 sm:$0xff] }
 0x785   : > { %v3562_v31 = vadd.f32 %v9336_v58, %v12340_v35 }
 0x786   : > { %v6167_v9 = vadd.f32 %v9522_v11, %v6166_v8  ;;  %6287 = vmatmul.bf16.gmra.mxu1 %v6203_v49  ;;  %6378 = vmatpush.bf16.msra.mxu0 %v9002_v40 }
 0x787   : > { %v9526_v46 = vpop.eup %9525  ;;  %9265 = vmatpush.bf16.msra.mxu2 %v9002_v40 }
 0x788   : > { %v6179_v20 = vmul.f32 %v9526_v46, %v6072_v32  ;;  %v6171_v55 = vsel %vm6170_vm10, %v9522_v11, %v6167_v9  ;;  %v9528_v63 = vpop.eup %9527  ;;  %vm6184_vm12 = vweird.f32 %v9526_v46 }
 0x789   : > { %v6176_v15 = vsel %vm6173_vm11, %v6175_v18, %v6171_v55  ;;  %vm6185_vm14 = vmor %vm6183_vm13, %vm6184_vm12  ;;  %v9530_v43 = vpop.eup %9529  ;;  %v3571_v18 = vmul.f32 %v3562_v31, %v10007_v39 }
 0x78a   : > { %v6180_v30 = vsub.f32 1.0, %v6179_v20  ;;  %v6199_v61 = vmul.f32 %v9528_v63, %v6176_v15  ;;  %6379 = vmatpush.bf16.msra.mxu0 %v9001_v23  ;;  %v9338_v20 = vld [vmem:[%s13585_s7 + $0x1] ss:$0 sm:$0xff]  ;;  %v3564_v63 = vadd.f32 %v9336_v58, %v12343_v0  ;;  %v511_v0 = vld [vmem:[%s464_s15 + $0x10] sm:$0xff] }
 0x78b   : > { %9266 = vmatpush.bf16.msra.mxu2 %v9001_v23  ;;  %v3577_v27 = vmul.f32 %v13643_v25, %v511_v0 }
 0x78c   : > { %v6181_v26 = vmul.f32 %v9526_v46, %v6180_v30  ;;  %v3572_v14 = vmul.f32 %v3564_v63, %v10017_v47 }
 0x78e   : > { %v6182_v54 = vadd.f32 %v9526_v46, %v6181_v26  ;;  %6380 = vmatpush.bf16.msra.mxu0 %v9000_v21 }
 0x78f   : > { %9267 = vmatpush.bf16.msra.mxu2 %v9000_v21 }
 0x790   : > { %v6186_v53 = vsel %vm6185_vm14, %v9526_v46, %v6182_v54  ;;  %v509_v46 = vld [vmem:[%s464_s15] sm:$0xff] }
 0x791   : > { %v6191_v38 = vsel %vm6188_vm15, %v6190_v6, %v6186_v53  ;;  %v3575_v2 = vmul.f32 %v10007_v39, %v509_v46  ;;  %v512_v6 = vld [vmem:[%s464_s15 + $0x18] sm:$0xff] }
 0x792   : > { %v6200_v44 = vmul.f32 %v9530_v43, %v6191_v38 }
 0x793   : > { %v3579_v55 = vadd.f32 %v3575_v2, %v3571_v18 }
 0x794   : > { %v6204_v62 = vpack.c.bf16 %v6200_v44, %v6199_v61  ;;  %v510_v61 = vld [vmem:[%s464_s15 + $0x8] sm:$0xff] }
 0x795   : > { %v6396_v35 = vmul.f32 %v3579_v55, %v10007_v39  ;;  %v3576_v45 = vmul.f32 %v10017_v47, %v510_v61 }
 0x796   : > { %6292 = vmatmul.bf16.vlgmr.msra.gmra.mxu3 %v6204_v62  ;;  %v3567_v62 = vadd.f32 %v9336_v58, %v12347_v42  ;;  %v3578_v42 = vmul.f32 %v13644_v29, %v512_v6 }
 0x797   : > { %v3580_v53 = vadd.f32 %v3576_v45, %v3572_v14 }
 0x798   : > { %v3573_v5 = vmul.f32 %v3567_v62, %v13643_v25 }
 0x79a   : > { %v3581_v40 = vadd.f32 %v3577_v27, %v3573_v5 }
 0x7e3   : > { %v6280_v24 = vpop.f32.mrf.mxu1 }
 0x7e4   : > { %v3569_v24 = vadd.f32 %v9336_v58, %v12350_v59 }
 0x7eb   : > { %v6281_v56 = vpop.f32.mrf.mxu1 }
 0x7ec   : > { %v3574_v56 = vmul.f32 %v3569_v24, %v13644_v29 }
 0x7ee   : > { %v3582_v48 = vadd.f32 %v3578_v42, %v3574_v56 }
 0x7f3   : > { %v6283_v3 = vpop.f32.mrf.mxu1 }
 0x7f4   : > { %v6284_v1 = vadd.f32 %v9337_v4, %v6283_v3 }
 0x7f6   : > { %v6296_v32 = vadd.f32 %v6284_v1, %v4961_v41 }
 0x7f8   : > { %v6300_v13 = vmul.f32 %v6296_v32, %v10007_v39 }
 0x7fb   : > { %v6285_v11 = vpop.f32.mrf.mxu1 }
 0x7fc   : > { %v6286_v36 = vadd.f32 %v9337_v4, %v6285_v11  ;;  %v6399_v11 = vmul.f32 %v3582_v48, %v13644_v29 }
 0x7fe   : > { %v6297_v12 = vadd.f32 %v6286_v36, %v4963_v7 }
 0x800   : > { %v6301_v19 = vmul.f32 %v6297_v12, %v10017_v47 }
 0x802   : > { %v6304_v22 = vpack.c.bf16 %v6301_v19, %v6300_v13 }
 0x803   : > { %v6288_v10 = vpop.f32.mrf.mxu1 }
 0x804   : > { %6381 = vmatmul.bf16.vlgmr.msra.gmra.mxu0 %v6304_v22  ;;  %v6289_v60 = vadd.f32 %v9337_v4, %v6288_v10 }
 0x806   : > { %v6298_v37 = vadd.f32 %v6289_v60, %v4966_v57 }
 0x808   : > { %v6302_v34 = vmul.f32 %v6298_v37, %v13643_v25 }
 0x80b   : > { %v6290_v50 = vpop.f32.mrf.mxu1 }
 0x80c   : > { %v6291_v33 = vadd.f32 %v9337_v4, %v6290_v50 }
 0x80e   : > { %v6299_v52 = vadd.f32 %v6291_v33, %v4968_v51 }
 0x810   : > { %v6303_v8 = vmul.f32 %v6299_v52, %v13644_v29 }
 0x812   : > { %v6305_v49 = vpack.c.bf16 %v6303_v8, %v6302_v34 }
 0x814   : > { %6386 = vmatmul.bf16.vlgmr.msra.gmra.mxu2 %v6305_v49 }
 0x819   : > { %v6293_v17 = vpop.f32.mrf.mxu3 }
 0x821   : > { %v6294_v9 = vpop.f32.mrf.mxu3 }
 0x881   : > { %v6382_v15 = vpop.f32.mrf.mxu0 }
 0x882   : > { %v6383_v30 = vadd.f32 %v9338_v20, %v6382_v15 }
 0x884   : > { %v6392_v26 = vmul.f32 %v6383_v30, %v10007_v39  ;;  %v6397_v39 = vmul.f32 %v3580_v53, %v10017_v47 }
 0x886   : > { %v6400_v54 = vadd.f32 %v6396_v35, %v6392_v26 }
 0x888   : > { %6404 = vst [vmem:[%s13544_s16] sm:$0xff] %v6400_v54 }
 0x889   : > { %v6384_v43 = vpop.f32.mrf.mxu0 }
 0x88a   : > { %v6385_v38 = vadd.f32 %v9338_v20, %v6384_v43 }
 0x88c   : > { %v6393_v44 = vmul.f32 %v6385_v38, %v10017_v47  ;;  %v6398_v47 = vmul.f32 %v3581_v40, %v13643_v25 }
 0x88e   : > { %v6401_v16 = vadd.f32 %v6397_v39, %v6393_v44 }
 0x890   : > { %6405 = vst [vmem:[%s13544_s16 + $0x8] sm:$0xff] %v6401_v16 }
 0x897   : > { %v6387_v23 = vpop.f32.mrf.mxu2 }
 0x898   : > { %v6388_v21 = vadd.f32 %v9338_v20, %v6387_v23 }
 0x89a   : > { %v6394_v3 = vmul.f32 %v6388_v21, %v13643_v25 }
 0x89c   : > { %v6402_v4 = vadd.f32 %v6398_v47, %v6394_v3 }
 0x89e   : > { %6406 = vst [vmem:[%s13544_s16 + $0x10] sm:$0xff] %v6402_v4 }
 0x89f   : > { %v6389_v28 = vpop.f32.mrf.mxu2 }
 0x8a0   : > { %v6390_v1 = vadd.f32 %v9338_v20, %v6389_v28 }
 0x8a2   : > { %v6395_v41 = vmul.f32 %v6390_v1, %v13644_v29 }
 0x8a4   : > { %v6403_v59 = vadd.f32 %v6399_v11, %v6395_v41 }
 0x8a6   : > { %6407 = vst [vmem:[%s13544_s16 + $0x18] sm:$0xff] %v6403_v59 }
 0x8a7 PF: > { %s21_s21 = sadd.s32 1, %s9577_s21   ;;  %s13682_s26 = sld [smem:[#allocation3_spill]] }
 0x8a8   : > { %p18_p7 = scmp.ge.s32.totalorder %s21_s21, 8   ;;  %s13683_s25 = sld [smem:[#allocation4_spill]] }
 0x8a9   : > { %s13684_s17 = smov %s9569_s19  ;;  %s13685_s18 = smov %s9573_s20 }
 0x8aa   :  { %20 = sbr.rel (!%p18_p7) target bundleno = 3 (0x3), region = 116 }
 0x8ad   : > { %s13686_s19 = smov %s13682_s26 }
 0x8ae   : > { %s13687_s20 = smov %s13683_s25 }

</bundles_post_ra>
